<compile_context>
chip_gen: v6e
topology: v6e:2x2x1
jax: 0.10.0
libtpu: 0.0.40
codegen_flags: <defaults>
</compile_context>

<pallas_src>
import jax
import jax.numpy as jnp
import numpy as np
from jax.experimental import pallas as pl
from jax.experimental.pallas import tpu as pltpu

# ----------------------------- static tiling --------------------------------
TB = 16           # images per grid step (batch tile)
R1 = TB * 32      # conv1 row space per tile  (32 rows / image: 28 valid + slack)
R2 = TB * 16      # conv2 / pooled-1 row space (16 rows / image)
R3 = TB * 8       # pooled-2 row space         (8 rows / image, h-major ordering)
KX = 90           # conv1 K: 3 kh bands x 30 padded width (concatenated in the wrapper)
L1 = 256          # conv1 out lanes: 8*wo + co   (wo<28, co<8), zero-padded to 256
L1Q = 128         # pooled-1 lanes : 8*w  + co   (w<14,  co<8), zero-padded to 128
L2 = 512          # conv2 out lanes: 32*wo + co  (wo<16, co<32)
L2Q = 256         # pooled-2 lanes : 32*w + co   (w<8,   co<32)
NFC1 = 640        # fc1 width padded 600 -> 640 (5*128)
NFC2 = 128        # fc2 width padded 10  -> 128


# ----------------------------- Pallas kernel ---------------------------------
def _cnn_kernel(xc_ref, w1c_ref, bi1_ref, s1_ref, p1_ref,
                w2c_ref, bi2_ref, s2_ref, p2_ref,
                wf1_ref, bf1_ref, wf2_ref, bf2_ref, o_ref):
    f32, bf16 = jnp.float32, jnp.bfloat16
    r1 = xc_ref.shape[0]          # TB*32
    r2 = r1 // 2                  # TB*16
    tb = r1 // 32

    # conv1 + BN1 + ReLU: one K=90 bf16 matmul (kh bands pre-concatenated in the wrapper).
    acc1 = jnp.dot(xc_ref[...], w1c_ref[...], preferred_element_type=f32)      # [R1, 256]
    a1 = jnp.maximum(acc1 + bi1_ref[...], 0.0)

    # maxpool1 (2x2): row-pair max via sublane roll, one row-compaction matmul,
    # lane-pair max via lane roll, one lane-compaction matmul.
    a1m = jnp.maximum(a1, pltpu.roll(a1, shift=r1 - 1, axis=0))                # row r: max(r, r+1)
    pr1 = jnp.dot(s1_ref[...], a1m.astype(bf16), preferred_element_type=f32)   # [R2, 256]; rows h=14,15 per image -> 0
    pl1 = jnp.maximum(pr1, pltpu.roll(pr1, shift=L1 - 8, axis=1))              # lane l: max(l, l+8)
    q1 = jnp.dot(pl1.astype(bf16), p1_ref[...], preferred_element_type=f32)    # [R2, 128]

    # conv2 + BN2 + ReLU: kh shifts via sublane rolls; bands lane-concatenated (K=384).
    # q1 rows 14,15 per image are exact zeros, so the cyclic roll wrap supplies the
    # padding=2 zeros (rows and image boundaries) for free.
    qcat = jnp.concatenate(
        [pltpu.roll(q1, shift=2, axis=0),      # reads q1[r-2]  (kh=0)
         pltpu.roll(q1, shift=1, axis=0),      # reads q1[r-1]  (kh=1)
         q1],                                  #       q1[r]    (kh=2)
        axis=1).astype(bf16)                                                    # [R2, 384]
    acc2 = jnp.dot(qcat, w2c_ref[...], preferred_element_type=f32)              # [R2, 512]
    a2 = jnp.maximum(acc2 + bi2_ref[...], 0.0)

    # maxpool2 (2x2): same scheme; the row compaction writes h-major rows (row = h*TB+img)
    # so the fused fc1 below can consume contiguous per-h row blocks.
    a2m = jnp.maximum(a2, pltpu.roll(a2, shift=r2 - 1, axis=0))
    pr2 = jnp.dot(s2_ref[...], a2m.astype(bf16), preferred_element_type=f32)    # [R3, 512]
    pl2 = jnp.maximum(pr2, pltpu.roll(pr2, shift=L2 - 32, axis=1))
    q2 = jnp.dot(pl2.astype(bf16), p2_ref[...], preferred_element_type=f32)     # [R3, 256], row = h*TB+img

    # fc1 + ReLU (+ eval-mode Dropout identity) + fc2, fused epilogue.
    # fc1's K=2048 is split by spatial h: 8 contiguous [TB,256] row blocks of q2 against
    # 8 [256,640] row blocks of wfc1 (torch NCHW flatten folded into wfc1 at init).
    accf = None
    for h in range(8):
        t = jnp.dot(q2[h * tb:(h + 1) * tb, :].astype(bf16),
                    wf1_ref[256 * h:256 * (h + 1), :],
                    preferred_element_type=f32)
        accf = t if accf is None else accf + t
    h1 = jnp.maximum(accf + bf1_ref[...], 0.0)                                  # [TB, 640]
    out = jnp.dot(h1.astype(bf16), wf2_ref[...], preferred_element_type=f32) + bf2_ref[...]
    o_ref[...] = out                                                            # [TB, 128] f32


# ----------------------------- pallas_call wrapper ----------------------------
def _cnn_pallas(xc, p):
    n_blocks = xc.shape[0] // R1
    c2 = lambda i: (0, 0)
    return pl.pallas_call(
        _cnn_kernel,
        out_shape=jax.ShapeDtypeStruct((n_blocks * TB, NFC2), jnp.float32),
        grid=(n_blocks,),
        in_specs=[
            pl.BlockSpec((R1, KX), lambda i: (i, 0)),   # xc (batch-tiled), bf16
            pl.BlockSpec((KX, L1), c2),                 # w1cat (conv1 bands, BN folded)
            pl.BlockSpec((1, L1), c2),                  # bi1
            pl.BlockSpec((R2, R1), c2),                 # s1sel (pool1 row compaction)
            pl.BlockSpec((L1, L1Q), c2),                # p1sel (pool1 lane compaction)
            pl.BlockSpec((3 * L1Q, L2), c2),            # w2cat (conv2 bands, BN folded)
            pl.BlockSpec((1, L2), c2),                  # bi2
            pl.BlockSpec((R3, R2), c2),                 # s2sel (pool2 row compaction, h-major)
            pl.BlockSpec((L2, L2Q), c2),                # p2sel (pool2 lane compaction)
            pl.BlockSpec((2048, NFC1), c2),             # wfc1 (permuted, padded)
            pl.BlockSpec((1, NFC1), c2),                # bfc1
            pl.BlockSpec((NFC1, NFC2), c2),             # wfc2
            pl.BlockSpec((1, NFC2), c2),                # bfc2
        ],
        out_specs=pl.BlockSpec((TB, NFC2), lambda i: (i, 0)),
        compiler_params=pltpu.CompilerParams(
            dimension_semantics=("parallel",),
            vmem_limit_bytes=32 * 1024 * 1024,
        ),
    )(xc, p["w1cat"], p["bi1"], p["s1sel"], p["p1sel"],
      p["w2cat"], p["bi2"], p["s2sel"], p["p2sel"],
      p["wfc1"], p["bfc1"], p["wfc2"], p["bfc2"])


# ----------------------------- parameters ------------------------------------
def init_params(key):
    """Deterministic synthetic torch-equivalent params, pre-folded/rearranged for the kernel."""
    ks = jax.random.split(key, 16)
    eps = 1e-5

    # conv1 (HWIO [3,3,1,8]) + BN1
    w1 = 0.2 * jax.random.normal(ks[0], (3, 3, 1, 8), jnp.float32)
    b1 = 0.1 * jax.random.normal(ks[1], (8,), jnp.float32)
    g1 = 1.0 + 0.1 * jax.random.normal(ks[2], (8,), jnp.float32)
    be1 = 0.1 * jax.random.normal(ks[3], (8,), jnp.float32)
    m1 = 0.1 * jax.random.normal(ks[4], (8,), jnp.float32)
    v1 = 0.5 + jnp.abs(jax.random.normal(ks[5], (8,), jnp.float32))
    s1 = g1 / jnp.sqrt(v1 + eps)               # BN scale (folded into conv weights)
    fb1 = (b1 - m1) * s1 + be1                 # conv bias + BN shift (per-channel bias)

    # conv2 (HWIO [3,3,8,32]) + BN2
    w2 = 0.1 * jax.random.normal(ks[6], (3, 3, 8, 32), jnp.float32)
    b2 = 0.1 * jax.random.normal(ks[7], (32,), jnp.float32)
    g2 = 1.0 + 0.1 * jax.random.normal(ks[8], (32,), jnp.float32)
    be2 = 0.1 * jax.random.normal(ks[9], (32,), jnp.float32)
    m2 = 0.1 * jax.random.normal(ks[10], (32,), jnp.float32)
    v2 = 0.5 + jnp.abs(jax.random.normal(ks[11], (32,), jnp.float32))
    s2 = g2 / jnp.sqrt(v2 + eps)
    fb2 = (b2 - m2) * s2 + be2

    wfc1 = 0.02 * jax.random.normal(ks[12], (2048, 600), jnp.float32)
    bfc1 = 0.1 * jax.random.normal(ks[13], (600,), jnp.float32)
    wfc2 = 0.05 * jax.random.normal(ks[14], (600, 10), jnp.float32)
    bfc2 = 0.1 * jax.random.normal(ks[15], (10,), jnp.float32)

    # ---- host-side (numpy) rearrangement into band / selection matrices ----
    W1 = np.asarray(w1); S1c = np.asarray(s1); FB1 = np.asarray(fb1)
    W2 = np.asarray(w2); S2c = np.asarray(s2); FB2 = np.asarray(fb2)
    WF1 = np.asarray(wfc1); BF1 = np.asarray(bfc1)
    WF2 = np.asarray(wfc2); BF2 = np.asarray(bfc2)

    # conv1: kh bands stacked along K (input lane = 30*dh + wi); BN scale folded.
    w1cat = np.zeros((KX, L1), np.float32)
    for dh in range(3):
        for dw in range(3):
            for wo in range(28):
                w1cat[30 * dh + wo + dw, 8 * wo:8 * wo + 8] = W1[dh, dw, 0, :] * S1c
    bi1 = np.zeros((1, L1), np.float32)
    bi1[0, :224] = np.tile(FB1, 28)

    # pool1 row compaction: dest row img*16 + h <- src row img*32 + 2h (h < 14).
    # Rows h = 14,15 per image stay all-zero (they become conv2's zero padding).
    s1sel = np.zeros((R2, R1), np.float32)
    for img in range(TB):
        for h in range(14):
            s1sel[img * 16 + h, img * 32 + 2 * h] = 1.0
    # pool1 lane compaction: dest 8*w + c <- src 8*(2w) + c.
    p1sel = np.zeros((L1, L1Q), np.float32)
    for w in range(14):
        for c in range(8):
            p1sel[8 * (2 * w) + c, 8 * w + c] = 1.0

    # conv2 (padding=2): kh bands stacked along K (input lane = 128*dh + 8*wi + ci).
    w2cat = np.zeros((3 * L1Q, L2), np.float32)
    for dh in range(3):
        for dw in range(3):
            for wo in range(16):
                wi = wo + dw - 2
                if 0 <= wi < 14:
                    for ci in range(8):
                        w2cat[128 * dh + 8 * wi + ci, 32 * wo:32 * wo + 32] = W2[dh, dw, ci, :] * S2c
    bi2 = np.tile(FB2, 16).reshape(1, L2).astype(np.float32)

    # pool2 row compaction, h-major destination: dest row h*TB + img <- src row img*16 + 2h.
    s2sel = np.zeros((R3, R2), np.float32)
    for img in range(TB):
        for h in range(8):
            s2sel[h * TB + img, img * 16 + 2 * h] = 1.0
    # pool2 lane compaction: dest 32*w + c <- src 32*(2w) + c.
    p2sel = np.zeros((L2, L2Q), np.float32)
    for w in range(8):
        for c in range(32):
            p2sel[32 * (2 * w) + c, 32 * w + c] = 1.0

    # fc1: fold the torch NCHW flatten (index c*64 + h*8 + w) into a row permutation so it
    # consumes q2's layout (row block = spatial h, lane = 32*w + c); pad 600->640, 10->128.
    wfc1_re = np.zeros((2048, NFC1), np.float32)
    for h in range(8):
        for w in range(8):
            for c in range(32):
                wfc1_re[256 * h + 32 * w + c, :600] = WF1[c * 64 + h * 8 + w, :]
    bfc1_p = np.zeros((1, NFC1), np.float32); bfc1_p[0, :600] = BF1
    wfc2_p = np.zeros((NFC1, NFC2), np.float32); wfc2_p[:600, :10] = WF2
    bfc2_p = np.zeros((1, NFC2), np.float32); bfc2_p[0, :10] = BF2

    bf = jnp.bfloat16
    return dict(
        w1cat=jnp.asarray(w1cat, bf), bi1=jnp.asarray(bi1),
        s1sel=jnp.asarray(s1sel, bf), p1sel=jnp.asarray(p1sel, bf),
        w2cat=jnp.asarray(w2cat, bf), bi2=jnp.asarray(bi2),
        s2sel=jnp.asarray(s2sel, bf), p2sel=jnp.asarray(p2sel, bf),
        wfc1=jnp.asarray(wfc1_re, bf), bfc1=jnp.asarray(bfc1_p),
        wfc2=jnp.asarray(wfc2_p, bf), bfc2=jnp.asarray(bfc2_p),
    )


# ------------------------------- forward -------------------------------------
@jax.jit
def cnn_forward(x_nchw, params):
    n = x_nchw.shape[0]
    n_pad = ((n + TB - 1) // TB) * TB
    x = x_nchw.reshape(n, 28, 28).astype(jnp.float32)
    # Per-image 34-row slab: row0 = top conv pad, rows1..28 = image, rows29..33 = zeros;
    # width padded 28 -> 30.  Then pre-concatenate the 3 kh bands along the lane axis so
    # conv1 is a single K=90 matmul in the kernel (lane = 30*kh + wi).
    slab = jnp.pad(x, ((0, n_pad - n), (1, 5), (1, 1)))                   # [n_pad, 34, 30]
    xc = jnp.stack([slab[:, 0:32, :], slab[:, 1:33, :], slab[:, 2:34, :]], axis=2)
    xc = xc.reshape(n_pad * 32, KX).astype(jnp.bfloat16)                  # [n_pad*32, 90]

    out = _cnn_pallas(xc, params)                                         # [n_pad, 128] f32
    return out[:n, :10]


if __name__ == "__main__":
    key = jax.random.PRNGKey(0)
    kp, kx = jax.random.split(key)
    params = init_params(kp)
    x = jax.random.normal(kx, (2, 1, 28, 28), jnp.float32)  # NCHW, MNIST-sized

    out = cnn_forward(x, params)
    out = jax.block_until_ready(out)
    assert out.shape == (2, 10) and out.dtype == jnp.float32
    print("KERNEL_OK")
</pallas_src>

<mosaic_0001>
module attributes {stable_mosaic.version = 11 : i64} {
  func.func @_cnn_kernel(%arg0: i32, %arg1: memref<512x90xbf16, #tpu.memory_space<vmem>>, %arg2: memref<90x256xbf16, #tpu.memory_space<vmem>>, %arg3: memref<1x256xf32, #tpu.memory_space<vmem>>, %arg4: memref<256x512xbf16, #tpu.memory_space<vmem>>, %arg5: memref<256x128xbf16, #tpu.memory_space<vmem>>, %arg6: memref<384x512xbf16, #tpu.memory_space<vmem>>, %arg7: memref<1x512xf32, #tpu.memory_space<vmem>>, %arg8: memref<128x256xbf16, #tpu.memory_space<vmem>>, %arg9: memref<512x256xbf16, #tpu.memory_space<vmem>>, %arg10: memref<2048x640xbf16, #tpu.memory_space<vmem>>, %arg11: memref<1x640xf32, #tpu.memory_space<vmem>>, %arg12: memref<640x128xbf16, #tpu.memory_space<vmem>>, %arg13: memref<1x128xf32, #tpu.memory_space<vmem>>, %arg14: memref<16x128xf32, #tpu.memory_space<vmem>>) attributes {dimension_semantics = [#tpu.dimension_semantics<parallel>], iteration_bounds = array<i64: 1>, scalar_prefetch = 0 : i64, scratch_operands = 0 : i64, tpu.core_type = #tpu.core_type<tc>, window_params = [{transform_indices = @transform_0, window_bounds = array<i64: 512, 90>}, {pipeline_mode = #tpu.pipeline_mode<synchronous>, transform_indices = @transform_1, window_bounds = array<i64: 90, 256>}, {pipeline_mode = #tpu.pipeline_mode<synchronous>, transform_indices = @transform_2, window_bounds = array<i64: 1, 256>}, {pipeline_mode = #tpu.pipeline_mode<synchronous>, transform_indices = @transform_3, window_bounds = array<i64: 256, 512>}, {pipeline_mode = #tpu.pipeline_mode<synchronous>, transform_indices = @transform_4, window_bounds = array<i64: 256, 128>}, {pipeline_mode = #tpu.pipeline_mode<synchronous>, transform_indices = @transform_5, window_bounds = array<i64: 384, 512>}, {pipeline_mode = #tpu.pipeline_mode<synchronous>, transform_indices = @transform_6, window_bounds = array<i64: 1, 512>}, {pipeline_mode = #tpu.pipeline_mode<synchronous>, transform_indices = @transform_7, window_bounds = array<i64: 128, 256>}, {pipeline_mode = #tpu.pipeline_mode<synchronous>, transform_indices = @transform_8, window_bounds = array<i64: 512, 256>}, {pipeline_mode = #tpu.pipeline_mode<synchronous>, transform_indices = @transform_9, window_bounds = array<i64: 2048, 640>}, {pipeline_mode = #tpu.pipeline_mode<synchronous>, transform_indices = @transform_10, window_bounds = array<i64: 1, 640>}, {pipeline_mode = #tpu.pipeline_mode<synchronous>, transform_indices = @transform_11, window_bounds = array<i64: 640, 128>}, {pipeline_mode = #tpu.pipeline_mode<synchronous>, transform_indices = @transform_12, window_bounds = array<i64: 1, 128>}, {transform_indices = @transform_13, window_bounds = array<i64: 16, 128>}]} {
    %c0 = arith.constant 0 : index
    %c0_0 = arith.constant 0 : index
    %0 = vector.load %arg1[%c0, %c0_0] : memref<512x90xbf16, #tpu.memory_space<vmem>>, vector<512x90xbf16>
    %c0_1 = arith.constant 0 : index
    %c0_2 = arith.constant 0 : index
    %1 = vector.load %arg2[%c0_1, %c0_2] : memref<90x256xbf16, #tpu.memory_space<vmem>>, vector<90x256xbf16>
    %cst = arith.constant dense<0.000000e+00> : vector<512x256xf32>
    %2 = tpu.matmul %0, %1, %cst {dimension_numbers = #tpu.dot_dimension_numbers<[1], [0], [0], [1], [0, 0, 1, 1], [], []>} : vector<512x90xbf16>, vector<90x256xbf16>, vector<512x256xf32> -> vector<512x256xf32>
    %c0_3 = arith.constant 0 : index
    %c0_4 = arith.constant 0 : index
    %3 = vector.load %arg3[%c0_3, %c0_4] : memref<1x256xf32, #tpu.memory_space<vmem>>, vector<1x256xf32>
    %4 = vector.broadcast %3 : vector<1x256xf32> to vector<512x256xf32>
    %5 = arith.addf %2, %4 : vector<512x256xf32>
    %cst_5 = arith.constant 0.000000e+00 : f32
    %6 = vector.broadcast %cst_5 : f32 to vector<512x256xf32>
    %7 = arith.maximumf %5, %6 : vector<512x256xf32>
    %c511_i32 = arith.constant 511 : i32
    %8 = tpu.dynamic_rotate %7 by %c511_i32 dim 0 : vector<512x256xf32>, i32 -> vector<512x256xf32>
    %9 = arith.maximumf %7, %8 : vector<512x256xf32>
    %c0_6 = arith.constant 0 : index
    %c0_7 = arith.constant 0 : index
    %10 = vector.load %arg4[%c0_6, %c0_7] : memref<256x512xbf16, #tpu.memory_space<vmem>>, vector<256x512xbf16>
    %11 = arith.truncf %9 : vector<512x256xf32> to vector<512x256xbf16>
    %cst_8 = arith.constant dense<0.000000e+00> : vector<256x256xf32>
    %12 = tpu.matmul %10, %11, %cst_8 {dimension_numbers = #tpu.dot_dimension_numbers<[1], [0], [0], [1], [0, 0, 1, 1], [], []>} : vector<256x512xbf16>, vector<512x256xbf16>, vector<256x256xf32> -> vector<256x256xf32>
    %c248_i32 = arith.constant 248 : i32
    %13 = tpu.dynamic_rotate %12 by %c248_i32 dim 1 : vector<256x256xf32>, i32 -> vector<256x256xf32>
    %14 = arith.maximumf %12, %13 : vector<256x256xf32>
    %15 = arith.truncf %14 : vector<256x256xf32> to vector<256x256xbf16>
    %c0_9 = arith.constant 0 : index
    %c0_10 = arith.constant 0 : index
    %16 = vector.load %arg5[%c0_9, %c0_10] : memref<256x128xbf16, #tpu.memory_space<vmem>>, vector<256x128xbf16>
    %cst_11 = arith.constant dense<0.000000e+00> : vector<256x128xf32>
    %17 = tpu.matmul %15, %16, %cst_11 {dimension_numbers = #tpu.dot_dimension_numbers<[1], [0], [0], [1], [0, 0, 1, 1], [], []>} : vector<256x256xbf16>, vector<256x128xbf16>, vector<256x128xf32> -> vector<256x128xf32>
    %c2_i32 = arith.constant 2 : i32
    %18 = tpu.dynamic_rotate %17 by %c2_i32 dim 0 : vector<256x128xf32>, i32 -> vector<256x128xf32>
    %c1_i32 = arith.constant 1 : i32
    %19 = tpu.dynamic_rotate %17 by %c1_i32 dim 0 : vector<256x128xf32>, i32 -> vector<256x128xf32>
    %20 = tpu.concatenate %18, %19, %17 in 1 : vector<256x128xf32>, vector<256x128xf32>, vector<256x128xf32> -> vector<256x384xf32>
    %21 = arith.truncf %20 : vector<256x384xf32> to vector<256x384xbf16>
    %c0_12 = arith.constant 0 : index
    %c0_13 = arith.constant 0 : index
    %22 = vector.load %arg6[%c0_12, %c0_13] : memref<384x512xbf16, #tpu.memory_space<vmem>>, vector<384x512xbf16>
    %cst_14 = arith.constant dense<0.000000e+00> : vector<256x512xf32>
    %23 = tpu.matmul %21, %22, %cst_14 {dimension_numbers = #tpu.dot_dimension_numbers<[1], [0], [0], [1], [0, 0, 1, 1], [], []>} : vector<256x384xbf16>, vector<384x512xbf16>, vector<256x512xf32> -> vector<256x512xf32>
    %c0_15 = arith.constant 0 : index
    %c0_16 = arith.constant 0 : index
    %24 = vector.load %arg7[%c0_15, %c0_16] : memref<1x512xf32, #tpu.memory_space<vmem>>, vector<1x512xf32>
    %25 = vector.broadcast %24 : vector<1x512xf32> to vector<256x512xf32>
    %26 = arith.addf %23, %25 : vector<256x512xf32>
    %cst_17 = arith.constant 0.000000e+00 : f32
    %27 = vector.broadcast %cst_17 : f32 to vector<256x512xf32>
    %28 = arith.maximumf %26, %27 : vector<256x512xf32>
    %c255_i32 = arith.constant 255 : i32
    %29 = tpu.dynamic_rotate %28 by %c255_i32 dim 0 : vector<256x512xf32>, i32 -> vector<256x512xf32>
    %30 = arith.maximumf %28, %29 : vector<256x512xf32>
    %c0_18 = arith.constant 0 : index
    %c0_19 = arith.constant 0 : index
    %31 = vector.load %arg8[%c0_18, %c0_19] : memref<128x256xbf16, #tpu.memory_space<vmem>>, vector<128x256xbf16>
    %32 = arith.truncf %30 : vector<256x512xf32> to vector<256x512xbf16>
    %cst_20 = arith.constant dense<0.000000e+00> : vector<128x512xf32>
    %33 = tpu.matmul %31, %32, %cst_20 {dimension_numbers = #tpu.dot_dimension_numbers<[1], [0], [0], [1], [0, 0, 1, 1], [], []>} : vector<128x256xbf16>, vector<256x512xbf16>, vector<128x512xf32> -> vector<128x512xf32>
    %c480_i32 = arith.constant 480 : i32
    %34 = tpu.dynamic_rotate %33 by %c480_i32 dim 1 : vector<128x512xf32>, i32 -> vector<128x512xf32>
    %35 = arith.maximumf %33, %34 : vector<128x512xf32>
    %36 = arith.truncf %35 : vector<128x512xf32> to vector<128x512xbf16>
    %c0_21 = arith.constant 0 : index
    %c0_22 = arith.constant 0 : index
    %37 = vector.load %arg9[%c0_21, %c0_22] : memref<512x256xbf16, #tpu.memory_space<vmem>>, vector<512x256xbf16>
    %cst_23 = arith.constant dense<0.000000e+00> : vector<128x256xf32>
    %38 = tpu.matmul %36, %37, %cst_23 {dimension_numbers = #tpu.dot_dimension_numbers<[1], [0], [0], [1], [0, 0, 1, 1], [], []>} : vector<128x512xbf16>, vector<512x256xbf16>, vector<128x256xf32> -> vector<128x256xf32>
    %39 = vector.extract_strided_slice %38 {offsets = [0, 0], sizes = [16, 256], strides = [1, 1]} : vector<128x256xf32> to vector<16x256xf32>
    %40 = arith.truncf %39 : vector<16x256xf32> to vector<16x256xbf16>
    %c0_24 = arith.constant 0 : index
    %c0_25 = arith.constant 0 : index
    %41 = vector.load %arg10[%c0_24, %c0_25] : memref<2048x640xbf16, #tpu.memory_space<vmem>>, vector<256x640xbf16>
    %cst_26 = arith.constant dense<0.000000e+00> : vector<16x640xf32>
    %42 = tpu.matmul %40, %41, %cst_26 {dimension_numbers = #tpu.dot_dimension_numbers<[1], [0], [0], [1], [0, 0, 1, 1], [], []>} : vector<16x256xbf16>, vector<256x640xbf16>, vector<16x640xf32> -> vector<16x640xf32>
    %43 = vector.extract_strided_slice %38 {offsets = [16, 0], sizes = [16, 256], strides = [1, 1]} : vector<128x256xf32> to vector<16x256xf32>
    %44 = arith.truncf %43 : vector<16x256xf32> to vector<16x256xbf16>
    %c256 = arith.constant 256 : index
    %c0_27 = arith.constant 0 : index
    %45 = vector.load %arg10[%c256, %c0_27] : memref<2048x640xbf16, #tpu.memory_space<vmem>>, vector<256x640xbf16>
    %cst_28 = arith.constant dense<0.000000e+00> : vector<16x640xf32>
    %46 = tpu.matmul %44, %45, %cst_28 {dimension_numbers = #tpu.dot_dimension_numbers<[1], [0], [0], [1], [0, 0, 1, 1], [], []>} : vector<16x256xbf16>, vector<256x640xbf16>, vector<16x640xf32> -> vector<16x640xf32>
    %47 = arith.addf %42, %46 : vector<16x640xf32>
    %48 = vector.extract_strided_slice %38 {offsets = [32, 0], sizes = [16, 256], strides = [1, 1]} : vector<128x256xf32> to vector<16x256xf32>
    %49 = arith.truncf %48 : vector<16x256xf32> to vector<16x256xbf16>
    %c512 = arith.constant 512 : index
    %c0_29 = arith.constant 0 : index
    %50 = vector.load %arg10[%c512, %c0_29] : memref<2048x640xbf16, #tpu.memory_space<vmem>>, vector<256x640xbf16>
    %cst_30 = arith.constant dense<0.000000e+00> : vector<16x640xf32>
    %51 = tpu.matmul %49, %50, %cst_30 {dimension_numbers = #tpu.dot_dimension_numbers<[1], [0], [0], [1], [0, 0, 1, 1], [], []>} : vector<16x256xbf16>, vector<256x640xbf16>, vector<16x640xf32> -> vector<16x640xf32>
    %52 = arith.addf %47, %51 : vector<16x640xf32>
    %53 = vector.extract_strided_slice %38 {offsets = [48, 0], sizes = [16, 256], strides = [1, 1]} : vector<128x256xf32> to vector<16x256xf32>
    %54 = arith.truncf %53 : vector<16x256xf32> to vector<16x256xbf16>
    %c768 = arith.constant 768 : index
    %c0_31 = arith.constant 0 : index
    %55 = vector.load %arg10[%c768, %c0_31] : memref<2048x640xbf16, #tpu.memory_space<vmem>>, vector<256x640xbf16>
    %cst_32 = arith.constant dense<0.000000e+00> : vector<16x640xf32>
    %56 = tpu.matmul %54, %55, %cst_32 {dimension_numbers = #tpu.dot_dimension_numbers<[1], [0], [0], [1], [0, 0, 1, 1], [], []>} : vector<16x256xbf16>, vector<256x640xbf16>, vector<16x640xf32> -> vector<16x640xf32>
    %57 = arith.addf %52, %56 : vector<16x640xf32>
    %58 = vector.extract_strided_slice %38 {offsets = [64, 0], sizes = [16, 256], strides = [1, 1]} : vector<128x256xf32> to vector<16x256xf32>
    %59 = arith.truncf %58 : vector<16x256xf32> to vector<16x256xbf16>
    %c1024 = arith.constant 1024 : index
    %c0_33 = arith.constant 0 : index
    %60 = vector.load %arg10[%c1024, %c0_33] : memref<2048x640xbf16, #tpu.memory_space<vmem>>, vector<256x640xbf16>
    %cst_34 = arith.constant dense<0.000000e+00> : vector<16x640xf32>
    %61 = tpu.matmul %59, %60, %cst_34 {dimension_numbers = #tpu.dot_dimension_numbers<[1], [0], [0], [1], [0, 0, 1, 1], [], []>} : vector<16x256xbf16>, vector<256x640xbf16>, vector<16x640xf32> -> vector<16x640xf32>
    %62 = arith.addf %57, %61 : vector<16x640xf32>
    %63 = vector.extract_strided_slice %38 {offsets = [80, 0], sizes = [16, 256], strides = [1, 1]} : vector<128x256xf32> to vector<16x256xf32>
    %64 = arith.truncf %63 : vector<16x256xf32> to vector<16x256xbf16>
    %c1280 = arith.constant 1280 : index
    %c0_35 = arith.constant 0 : index
    %65 = vector.load %arg10[%c1280, %c0_35] : memref<2048x640xbf16, #tpu.memory_space<vmem>>, vector<256x640xbf16>
    %cst_36 = arith.constant dense<0.000000e+00> : vector<16x640xf32>
    %66 = tpu.matmul %64, %65, %cst_36 {dimension_numbers = #tpu.dot_dimension_numbers<[1], [0], [0], [1], [0, 0, 1, 1], [], []>} : vector<16x256xbf16>, vector<256x640xbf16>, vector<16x640xf32> -> vector<16x640xf32>
    %67 = arith.addf %62, %66 : vector<16x640xf32>
    %68 = vector.extract_strided_slice %38 {offsets = [96, 0], sizes = [16, 256], strides = [1, 1]} : vector<128x256xf32> to vector<16x256xf32>
    %69 = arith.truncf %68 : vector<16x256xf32> to vector<16x256xbf16>
    %c1536 = arith.constant 1536 : index
    %c0_37 = arith.constant 0 : index
    %70 = vector.load %arg10[%c1536, %c0_37] : memref<2048x640xbf16, #tpu.memory_space<vmem>>, vector<256x640xbf16>
    %cst_38 = arith.constant dense<0.000000e+00> : vector<16x640xf32>
    %71 = tpu.matmul %69, %70, %cst_38 {dimension_numbers = #tpu.dot_dimension_numbers<[1], [0], [0], [1], [0, 0, 1, 1], [], []>} : vector<16x256xbf16>, vector<256x640xbf16>, vector<16x640xf32> -> vector<16x640xf32>
    %72 = arith.addf %67, %71 : vector<16x640xf32>
    %73 = vector.extract_strided_slice %38 {offsets = [112, 0], sizes = [16, 256], strides = [1, 1]} : vector<128x256xf32> to vector<16x256xf32>
    %74 = arith.truncf %73 : vector<16x256xf32> to vector<16x256xbf16>
    %c1792 = arith.constant 1792 : index
    %c0_39 = arith.constant 0 : index
    %75 = vector.load %arg10[%c1792, %c0_39] : memref<2048x640xbf16, #tpu.memory_space<vmem>>, vector<256x640xbf16>
    %cst_40 = arith.constant dense<0.000000e+00> : vector<16x640xf32>
    %76 = tpu.matmul %74, %75, %cst_40 {dimension_numbers = #tpu.dot_dimension_numbers<[1], [0], [0], [1], [0, 0, 1, 1], [], []>} : vector<16x256xbf16>, vector<256x640xbf16>, vector<16x640xf32> -> vector<16x640xf32>
    %77 = arith.addf %72, %76 : vector<16x640xf32>
    %c0_41 = arith.constant 0 : index
    %c0_42 = arith.constant 0 : index
    %78 = vector.load %arg11[%c0_41, %c0_42] : memref<1x640xf32, #tpu.memory_space<vmem>>, vector<1x640xf32>
    %79 = vector.broadcast %78 : vector<1x640xf32> to vector<16x640xf32>
    %80 = arith.addf %77, %79 : vector<16x640xf32>
    %cst_43 = arith.constant 0.000000e+00 : f32
    %81 = vector.broadcast %cst_43 : f32 to vector<16x640xf32>
    %82 = arith.maximumf %80, %81 : vector<16x640xf32>
    %83 = arith.truncf %82 : vector<16x640xf32> to vector<16x640xbf16>
    %c0_44 = arith.constant 0 : index
    %c0_45 = arith.constant 0 : index
    %84 = vector.load %arg12[%c0_44, %c0_45] : memref<640x128xbf16, #tpu.memory_space<vmem>>, vector<640x128xbf16>
    %cst_46 = arith.constant dense<0.000000e+00> : vector<16x128xf32>
    %85 = tpu.matmul %83, %84, %cst_46 {dimension_numbers = #tpu.dot_dimension_numbers<[1], [0], [0], [1], [0, 0, 1, 1], [], []>} : vector<16x640xbf16>, vector<640x128xbf16>, vector<16x128xf32> -> vector<16x128xf32>
    %c0_47 = arith.constant 0 : index
    %c0_48 = arith.constant 0 : index
    %86 = vector.load %arg13[%c0_47, %c0_48] : memref<1x128xf32, #tpu.memory_space<vmem>>, vector<1x128xf32>
    %87 = vector.broadcast %86 : vector<1x128xf32> to vector<16x128xf32>
    %88 = arith.addf %85, %87 : vector<16x128xf32>
    %c0_49 = arith.constant 0 : index
    %c0_50 = arith.constant 0 : index
    %89 = vector.load %arg14[%c0_49, %c0_50] : memref<16x128xf32, #tpu.memory_space<vmem>>, vector<16x128xf32>
    tpu.vector_store %arg14[%c0_49, %c0_50], %88 {strides = array<i32>} : memref<16x128xf32, #tpu.memory_space<vmem>>, vector<16x128xf32>,
    return
  }
  func.func @transform_0(%arg0: i32) -> (i32, i32) {
    %c0_i32 = arith.constant 0 : i32
    %c0_i32_0 = arith.constant 0 : i32
    return %arg0, %c0_i32 : i32, i32
  }
  func.func @transform_1(%arg0: i32) -> (i32, i32) {
    %c0_i32 = arith.constant 0 : i32
    %c0_i32_0 = arith.constant 0 : i32
    %c0_i32_1 = arith.constant 0 : i32
    return %c0_i32, %c0_i32_0 : i32, i32
  }
  func.func @transform_2(%arg0: i32) -> (i32, i32) {
    %c0_i32 = arith.constant 0 : i32
    %c0_i32_0 = arith.constant 0 : i32
    %c0_i32_1 = arith.constant 0 : i32
    return %c0_i32, %c0_i32_0 : i32, i32
  }
  func.func @transform_3(%arg0: i32) -> (i32, i32) {
    %c0_i32 = arith.constant 0 : i32
    %c0_i32_0 = arith.constant 0 : i32
    %c0_i32_1 = arith.constant 0 : i32
    return %c0_i32, %c0_i32_0 : i32, i32
  }
  func.func @transform_4(%arg0: i32) -> (i32, i32) {
    %c0_i32 = arith.constant 0 : i32
    %c0_i32_0 = arith.constant 0 : i32
    %c0_i32_1 = arith.constant 0 : i32
    return %c0_i32, %c0_i32_0 : i32, i32
  }
  func.func @transform_5(%arg0: i32) -> (i32, i32) {
    %c0_i32 = arith.constant 0 : i32
    %c0_i32_0 = arith.constant 0 : i32
    %c0_i32_1 = arith.constant 0 : i32
    return %c0_i32, %c0_i32_0 : i32, i32
  }
  func.func @transform_6(%arg0: i32) -> (i32, i32) {
    %c0_i32 = arith.constant 0 : i32
    %c0_i32_0 = arith.constant 0 : i32
    %c0_i32_1 = arith.constant 0 : i32
    return %c0_i32, %c0_i32_0 : i32, i32
  }
  func.func @transform_7(%arg0: i32) -> (i32, i32) {
    %c0_i32 = arith.constant 0 : i32
    %c0_i32_0 = arith.constant 0 : i32
    %c0_i32_1 = arith.constant 0 : i32
    return %c0_i32, %c0_i32_0 : i32, i32
  }
  func.func @transform_8(%arg0: i32) -> (i32, i32) {
    %c0_i32 = arith.constant 0 : i32
    %c0_i32_0 = arith.constant 0 : i32
    %c0_i32_1 = arith.constant 0 : i32
    return %c0_i32, %c0_i32_0 : i32, i32
  }
  func.func @transform_9(%arg0: i32) -> (i32, i32) {
    %c0_i32 = arith.constant 0 : i32
    %c0_i32_0 = arith.constant 0 : i32
    %c0_i32_1 = arith.constant 0 : i32
    return %c0_i32, %c0_i32_0 : i32, i32
  }
  func.func @transform_10(%arg0: i32) -> (i32, i32) {
    %c0_i32 = arith.constant 0 : i32
    %c0_i32_0 = arith.constant 0 : i32
    %c0_i32_1 = arith.constant 0 : i32
    return %c0_i32, %c0_i32_0 : i32, i32
  }
  func.func @transform_11(%arg0: i32) -> (i32, i32) {
    %c0_i32 = arith.constant 0 : i32
    %c0_i32_0 = arith.constant 0 : i32
    %c0_i32_1 = arith.constant 0 : i32
    return %c0_i32, %c0_i32_0 : i32, i32
  }
  func.func @transform_12(%arg0: i32) -> (i32, i32) {
    %c0_i32 = arith.constant 0 : i32
    %c0_i32_0 = arith.constant 0 : i32
    %c0_i32_1 = arith.constant 0 : i32
    return %c0_i32, %c0_i32_0 : i32, i32
  }
  func.func @transform_13(%arg0: i32) -> (i32, i32) {
    %c0_i32 = arith.constant 0 : i32
    %c0_i32_0 = arith.constant 0 : i32
    return %arg0, %c0_i32 : i32, i32
  }
}

</mosaic_0001>

<bundles_post_ra>
// kernel: cnn_forward.1
= control target key start
LH: loop header
LB: loop body
LE: loop exit
PB: predicated region body
PF: predicated region fallthrough
CT: control target
= control target key end

     0   :  { %18 = vsyncpa [#allocation3], 0  ;;  %s22548_s0 = inlined_call_operand.vmem [shape: bf16[512,90], index: 0, kind: input, shape index: {}]   ;;  %s22549_s1 = inlined_call_operand.hbm [shape: bf16[90,256], index: 1, kind: input, shape index: {}]   ;;  %s22550_s2 = inlined_call_operand.vmem [shape: f32[1,256], index: 2, kind: input, shape index: {}]   ;;  %s22551_s3 = inlined_call_operand.vmem [shape: bf16[256,512], index: 3, kind: input, shape index: {}]   ;;  %s22552_s4 = inlined_call_operand.vmem [shape: bf16[256,128], index: 4, kind: input, shape index: {}]   ;;  %s22553_s5 = inlined_call_operand.vmem [shape: bf16[384,512], index: 5, kind: input, shape index: {}]   ;;  %s22554_s6 = inlined_call_operand.vmem [shape: f32[1,512], index: 6, kind: input, shape index: {}]   ;;  %s22555_s7 = inlined_call_operand.hbm [shape: bf16[128,256], index: 7, kind: input, shape index: {}]   ;;  %s22556_s8 = inlined_call_operand.hbm [shape: bf16[512,256], index: 8, kind: input, shape index: {}]   ;;  %s22557_s9 = inlined_call_operand.vmem [shape: bf16[2048,640], index: 9, kind: input, shape index: {}]   ;;  %s22558_s10 = inlined_call_operand.vmem [shape: f32[1,640], index: 10, kind: input, shape index: {}]   ;;  %s22559_s11 = inlined_call_operand.hbm [shape: bf16[640,128], index: 11, kind: input, shape index: {}]   ;;  %s22560_s12 = inlined_call_operand.vmem [shape: f32[1,128], index: 12, kind: input, shape index: {}]   ;;  %s22561_s13 = inlined_call_operand.vmem [shape: f32[16,128], index: 13, kind: output, shape index: {}]  }
   0x1   :  { %19 = vsyncpa [#allocation5], 0 }
   0x2   :  { %20 = vsyncpa [#allocation8], 0  ;;  %s14993_s25 = smov [#allocation4]   ;;  %s14994_s27 = smov [#allocation2]  }
   0x3   :  { %s50_s26 = sshll.u32 %s14993_s25, 4  ;;  %s28_s28 = sshll.u32 %s14994_s27, 4  ;;  %s51_s26 = int_to_ptr.vmem [resolvable:$true] %s50_s26  ;;  %s29_s28 = int_to_ptr.vmem [resolvable:$true] %s28_s28 }
   0x4   :  { %s14915_s29 = scalar_lea.vmem %s51_s26, 2048  ;;  %p14920_p1 = scmp.lt.s32.totalorder %s51_s26, %s51_s26 }
   0x5   :  { %p14916_p0 = scmp.ne.s32.totalorder %s51_s26, %s14915_s29  ;;  %p14921_p2 = scmp.lt.s32.totalorder %s14915_s29, %s14915_s29 }
   0x7   :  { %p14922_p3 = por %p14921_p2, %p14920_p1 }
   0x9   :  { %p14923_p4 = pnand %p14922_p3, %p14916_p0 }
   0xb   :  { %14926 = shalt.err (!%p14923_p4)
}
   0xc   :  { %s14995_s30 = smov 128   ;;  %s14996_s14 = smov 8  }
   0xd   :  { %56 = dma.hbm_to_vmem [thread:$0]  %s22555_s7, 2048, %s51_s26, [#allocation5], %s14995_s30, %s14995_s30, %s14996_s14  }
   0xe   :  { %s14935_s17 = scalar_lea.vmem %s29_s28, 1536  ;;  %p14940_p6 = scmp.lt.s32.totalorder %s29_s28, %s29_s28 }
   0xf   :  { %p14936_p5 = scmp.ne.s32.totalorder %s29_s28, %s14935_s17  ;;  %p14941_p7 = scmp.lt.s32.totalorder %s14935_s17, %s14935_s17 }
  0x11   :  { %p14942_p8 = por %p14941_p7, %p14940_p6 }
  0x13   :  { %p14943_p9 = pnand %p14942_p8, %p14936_p5 }
  0x15   :  { %14946 = shalt.err (!%p14943_p9)
}
  0x16   :  { %34 = dma.hbm_to_vmem [thread:$0]  %s22549_s1, 1536, %s29_s28, [#allocation3], %s14995_s30, %s14995_s30, %s14996_s14  }
  0x17   :  { %s14997_s20 = smov [#allocation6]   ;;  %s14998_s22 = smov [#allocation7]  }
  0x18   :  { %s62_s21 = sshll.u32 %s14997_s20, 4  ;;  %s78_s23 = sshll.u32 %s14998_s22, 4  ;;  %s63_s21 = int_to_ptr.vmem [resolvable:$true] %s62_s21  ;;  %s79_s23 = int_to_ptr.vmem [resolvable:$true] %s78_s23 }
  0x19   :  { %s14955_s24 = scalar_lea.vmem %s63_s21, 8192  ;;  %p14960_p11 = scmp.lt.s32.totalorder %s63_s21, %s63_s21 }
  0x1a   :  { %p14956_p10 = scmp.ne.s32.totalorder %s63_s21, %s14955_s24  ;;  %p14961_p12 = scmp.lt.s32.totalorder %s14955_s24, %s14955_s24 }
  0x1c   :  { %p14962_p13 = por %p14961_p12, %p14960_p11 }
  0x1e   :  { %p14963_p0 = pnand %p14962_p13, %p14956_p10 }
  0x20   :  { %14966 = shalt.err (!%p14963_p0)
}
  0x21   :  { %68 = dma.hbm_to_vmem [thread:$0]  %s22556_s8, 8192, %s63_s21, [#allocation5], %s14995_s30, %s14995_s30, %s14996_s14  }
  0x22   :  { %s14975_s26 = scalar_lea.vmem %s79_s23, 5120  ;;  %p14980_p2 = scmp.lt.s32.totalorder %s79_s23, %s79_s23 }
  0x23   :  { %p14976_p1 = scmp.ne.s32.totalorder %s79_s23, %s14975_s26  ;;  %p14981_p3 = scmp.lt.s32.totalorder %s14975_s26, %s14975_s26 }
  0x25   :  { %p14982_p4 = por %p14981_p3, %p14980_p2 }
  0x27   :  { %p14983_p5 = pnand %p14982_p4, %p14976_p1 }
  0x29   :  { %14986 = shalt.err (!%p14983_p5)
}
  0x2a   :  { %s14999_s1 = smov 64   ;;  %s15000_s27 = smov 4  }
  0x2b   :  { %84 = dma.hbm_to_vmem [thread:$0]  %s22559_s11, 5120, %s79_s23, [#allocation8], %s14999_s1, %s14999_s1, %s15000_s27  }
  0x2c   :  { %14987 = dma.done.wait [#allocation3], 1536  }
  0x2d   :  { %14988 = vsyncadd [#allocation3], 4294965760 }
  0x2e   :  { %14989 = dma.done.wait [#allocation5], 10240  }
  0x2f   :  { %14990 = vsyncadd [#allocation5], 4294957056 }
  0x30   :  { %14991 = dma.done.wait [#allocation8], 5120  }
  0x31   :  { %14992 = vsyncadd [#allocation8], 4294962176  ;;  %v22562_v0 = vmov 0   ;;  %vm503_vm0 = vcmask 1044480   ;;  %v13547_v3 = vld [vmem:[#allocation2 + $0x44] ss:$8 sps:$4 sm:$0xff]   ;;  %v22564_v37 = vlaneseq }
  0x32   :  { %542 = vmatprep.mubr.bf16.mxu0 %v22562_v0  ;;  %v13544_v1 = vld [vmem:[#allocation2 + $0x54] ss:$8 sps:$4 sm:$0x1f]   ;;  %v13546_v2 = vld [vmem:[#allocation2 + $0x50] ss:$8 sps:$4 sm:$0x1f]  }
  0x33   :  { %11880 = vmatprep.subr.msk.bf16.mxu0 %vm503_vm0, %v13544_v1  ;;  %v505_v4 = vsel %vm503_vm0, %v13546_v2, 0  ;;  %v13549_v5 = vld [vmem:[#allocation2 + $0x40] ss:$8 sps:$4 sm:$0xff]   ;;  %v13550_v6 = vld [vmem:[#allocation2 + $0x34] ss:$8 sps:$4 sm:$0xff]   ;;  %vm406_vm1 = vcmask 736256  }
  0x34   :  { %515 = vmatpush1.bf16.msra.mxu0 %v505_v4  ;;  %v13552_v7 = vld [vmem:[#allocation2 + $0x30] ss:$8 sps:$4 sm:$0xff]   ;;  %v13553_v8 = vld [vmem:[#allocation2 + $0x24] ss:$8 sps:$4 sm:$0xff]   ;;  %v13555_v9 = vld [vmem:[#allocation2 + $0x20] ss:$8 sps:$4 sm:$0xff]  }
  0x35   :  { %516 = vmatprep.subr.bf16.mxu0 %v13547_v3  ;;  %v13556_v10 = vld [vmem:[#allocation2 + $0x14] ss:$8 sps:$4 sm:$0xff]   ;;  %v13558_v11 = vld [vmem:[#allocation2 + $0x10] ss:$8 sps:$4 sm:$0xff]   ;;  %v13559_v12 = vld [vmem:[#allocation2 + $0x4] ss:$8 sps:$4 sm:$0xff]  }
  0x36   :  { %v13561_v13 = vld [vmem:[#allocation2] ss:$8 sps:$4 sm:$0xff]   ;;  %v13564_v16 = vld [vmem:[%s22548_s0 + $0x10] sm:$0xff]   ;;  %v13565_v17 = vld [vmem:[%s22548_s0 + $0x18] sm:$0xff]   ;;  %v15208_v39 = vshrl.u32 %v22564_v37, 7  ;;  %vm15005_vm7 = vmmov 0  }
  0x37   :  { %v13562_v14 = vld [vmem:[%s22548_s0] sm:$0xff]   ;;  %v13563_v15 = vld [vmem:[%s22548_s0 + $0x8] sm:$0xff]   ;;  %v13568_v20 = vld [vmem:[%s22548_s0 + $0x30] sm:$0xff]  }
  0x38   :  { %517 = vmatpush1.bf16.msra.mxu0 %v13549_v5  ;;  %v13566_v18 = vld [vmem:[%s22548_s0 + $0x20] sm:$0xff]   ;;  %v13567_v19 = vld [vmem:[%s22548_s0 + $0x28] sm:$0xff]   ;;  %v13569_v21 = vld [vmem:[%s22548_s0 + $0x38] sm:$0xff]   ;;  %22797 = vst [vmem:[#allocation12_spill] sm:$0xff] %v15208_v39  ;;  %v15216_v41 = vsub.s32 0, %v15208_v39  ;;  %v15222_v43 = vsub.s32 1, %v15208_v39 }
  0x39   :  { %518 = vmatprep.subr.bf16.mxu0 %v13550_v6  ;;  %v13570_v22 = vld [vmem:[%s22548_s0 + $0x40] sm:$0xff]   ;;  %v13571_v23 = vld [vmem:[%s22548_s0 + $0x48] sm:$0xff]   ;;  %v13572_v24 = vld [vmem:[%s22548_s0 + $0x50] sm:$0xff]   ;;  %vm1121_vm2 = vcmp.lt.s32.totalorder %v15208_v39, 7 }
  0x3a   :  { %v13573_v25 = vld [vmem:[%s22548_s0 + $0x58] sm:$0xff]   ;;  %v13574_v26 = vld [vmem:[%s22548_s0 + $0x60] sm:$0xff]   ;;  %v13575_v27 = vld [vmem:[%s22548_s0 + $0x68] sm:$0xff]   ;;  %22798 = vst [vmem:[#allocation13_spill] sm:$0xff] %v15216_v41 }
  0x3b   :  { %v13576_v28 = vld [vmem:[%s22548_s0 + $0x70] sm:$0xff]   ;;  %v13577_v29 = vld [vmem:[%s22548_s0 + $0x78] sm:$0xff]   ;;  %v13578_v30 = vld [vmem:[%s22548_s0 + $0x80] sm:$0xff]   ;;  %22799 = vst [vmem:[#allocation14_spill] sm:$0xff] %v15222_v43 }
  0x3c   :  { %519 = vmatpush1.bf16.msra.mxu0 %v13552_v7  ;;  %v13579_v31 = vld [vmem:[%s22548_s0 + $0x88] sm:$0xff]   ;;  %v13580_v32 = vld [vmem:[%s22548_s0 + $0x90] sm:$0xff]   ;;  %v13581_v33 = vld [vmem:[%s22548_s0 + $0x98] sm:$0xff]  }
  0x3d   :  { %520 = vmatprep.subr.bf16.mxu0 %v13553_v8  ;;  %v13582_v34 = vld [vmem:[%s22548_s0 + $0xa0] sm:$0xff]   ;;  %v13583_v35 = vld [vmem:[%s22548_s0 + $0xa8] sm:$0xff]   ;;  %v13584_v36 = vld [vmem:[%s22548_s0 + $0xb0] sm:$0xff]  }
  0x3e   :  { %v13585_v38 = vld [vmem:[%s22548_s0 + $0xb8] sm:$0xff]   ;;  %v176_v40 = vld [vmem:[%s22550_s2] sm:$0x3]  ;;  %v13587_v49 = vld [vmem:[%s22548_s0 + $0xc8] sm:$0xff]  }
  0x3f   :  { %v13586_v42 = vld [vmem:[%s22548_s0 + $0xc0] sm:$0xff]   ;;  %v15225_v44 = vrot.slane %v176_v40, %v15216_v41  ;;  %v15228_v45 = vrot.slane %v176_v40, %v15222_v43  ;;  %v13588_v2 = vld [vmem:[%s22548_s0 + $0xd0] sm:$0xff]  }
  0x40   :  { %521 = vmatpush1.bf16.msra.mxu0 %v13555_v9 }
  0x41   :  { %522 = vmatprep.subr.bf16.mxu0 %v13556_v10 }
  0x44   :  { %523 = vmatpush1.bf16.msra.mxu0 %v13558_v11 }
  0x45   :  { %524 = vmatprep.subr.bf16.mxu0 %v13559_v12 }
  0x48   :  { %525 = vmatpush1.bf16.msra.mxu0 %v13561_v13 }
  0x4b   :  { %11881 = vmatmul.mubr.msk.bf16.vlgmr.msra.gmra.mxu0 %vm406_vm1, %v13562_v14 }
  0x4c   :  { %552 = vmatprep.mubr.bf16.mxu0 %v22562_v0 }
  0x53   :  { %11882 = vmatmul.mubr.msk.bf16.gmra.mxu0 %vm406_vm1, %v13563_v15 }
  0x54   :  { %562 = vmatprep.mubr.bf16.mxu0 %v22562_v0 }
  0x5b   :  { %11883 = vmatmul.mubr.msk.bf16.gmra.mxu0 %vm406_vm1, %v13564_v16 }
  0x5c   :  { %572 = vmatprep.mubr.bf16.mxu0 %v22562_v0 }
  0x63   :  { %11884 = vmatmul.mubr.msk.bf16.gmra.mxu0 %vm406_vm1, %v13565_v17 }
  0x64   :  { %582 = vmatprep.mubr.bf16.mxu0 %v22562_v0 }
  0x6b   :  { %11885 = vmatmul.mubr.msk.bf16.gmra.mxu0 %vm406_vm1, %v13566_v18 }
  0x6c   :  { %592 = vmatprep.mubr.bf16.mxu0 %v22562_v0 }
  0x73   :  { %11886 = vmatmul.mubr.msk.bf16.gmra.mxu0 %vm406_vm1, %v13567_v19 }
  0x74   :  { %602 = vmatprep.mubr.bf16.mxu0 %v22562_v0 }
  0x7b   :  { %11887 = vmatmul.mubr.msk.bf16.gmra.mxu0 %vm406_vm1, %v13568_v20 }
  0x7c   :  { %612 = vmatprep.mubr.bf16.mxu0 %v22562_v0 }
  0x83   :  { %11888 = vmatmul.mubr.msk.bf16.gmra.mxu0 %vm406_vm1, %v13569_v21 }
  0x84   :  { %622 = vmatprep.mubr.bf16.mxu0 %v22562_v0 }
  0x8b   :  { %11889 = vmatmul.mubr.msk.bf16.gmra.mxu0 %vm406_vm1, %v13570_v22 }
  0x8c   :  { %632 = vmatprep.mubr.bf16.mxu0 %v22562_v0 }
  0x93   :  { %11890 = vmatmul.mubr.msk.bf16.gmra.mxu0 %vm406_vm1, %v13571_v23 }
  0x94   :  { %642 = vmatprep.mubr.bf16.mxu0 %v22562_v0 }
  0x9b   :  { %11891 = vmatmul.mubr.msk.bf16.gmra.mxu0 %vm406_vm1, %v13572_v24 }
  0x9c   :  { %652 = vmatprep.mubr.bf16.mxu0 %v22562_v0 }
  0xa3   :  { %11892 = vmatmul.mubr.msk.bf16.gmra.mxu0 %vm406_vm1, %v13573_v25 }
  0xa4   :  { %662 = vmatprep.mubr.bf16.mxu0 %v22562_v0 }
  0xab   :  { %11893 = vmatmul.mubr.msk.bf16.gmra.mxu0 %vm406_vm1, %v13574_v26  ;;  %v13589_v26 = vld [vmem:[%s22548_s0 + $0xd8] sm:$0xff]  }
  0xac   :  { %672 = vmatprep.mubr.bf16.mxu0 %v22562_v0 }
  0xb3   :  { %11894 = vmatmul.mubr.msk.bf16.gmra.mxu0 %vm406_vm1, %v13575_v27 }
  0xb4   :  { %682 = vmatprep.mubr.bf16.mxu0 %v22562_v0 }
  0xbb   :  { %11895 = vmatmul.mubr.msk.bf16.gmra.mxu0 %vm406_vm1, %v13576_v28 }
  0xbc   :  { %692 = vmatprep.mubr.bf16.mxu0 %v22562_v0 }
  0xc3   :  { %11896 = vmatmul.mubr.msk.bf16.gmra.mxu0 %vm406_vm1, %v13577_v29 }
  0xc4   :  { %702 = vmatprep.mubr.bf16.mxu0 %v22562_v0 }
  0xcb   :  { %11897 = vmatmul.mubr.msk.bf16.gmra.mxu0 %vm406_vm1, %v13578_v30 }
  0xcc   :  { %712 = vmatprep.mubr.bf16.mxu0 %v22562_v0 }
  0xd3   :  { %11898 = vmatmul.mubr.msk.bf16.gmra.mxu0 %vm406_vm1, %v13579_v31 }
  0xd4   :  { %722 = vmatprep.mubr.bf16.mxu0 %v22562_v0 }
  0xdb   :  { %11899 = vmatmul.mubr.msk.bf16.gmra.mxu0 %vm406_vm1, %v13580_v32 }
  0xdc   :  { %732 = vmatprep.mubr.bf16.mxu0 %v22562_v0 }
  0xe3   :  { %11900 = vmatmul.mubr.msk.bf16.gmra.mxu0 %vm406_vm1, %v13581_v33 }
  0xe4   :  { %742 = vmatprep.mubr.bf16.mxu0 %v22562_v0 }
  0xeb   :  { %11901 = vmatmul.mubr.msk.bf16.gmra.mxu0 %vm406_vm1, %v13582_v34 }
  0xec   :  { %752 = vmatprep.mubr.bf16.mxu0 %v22562_v0 }
  0xf3   :  { %11902 = vmatmul.mubr.msk.bf16.gmra.mxu0 %vm406_vm1, %v13583_v35 }
  0xf4   :  { %762 = vmatprep.mubr.bf16.mxu0 %v22562_v0 }
  0xfb   :  { %11903 = vmatmul.mubr.msk.bf16.gmra.mxu0 %vm406_vm1, %v13584_v36 }
  0xfc   :  { %772 = vmatprep.mubr.bf16.mxu0 %v22562_v0 }
 0x103   :  { %11904 = vmatmul.mubr.msk.bf16.gmra.mxu0 %vm406_vm1, %v13585_v38 }
 0x104   :  { %782 = vmatprep.mubr.bf16.mxu0 %v22562_v0 }
 0x10b   :  { %v544_v46 = vpop.f32.mrf.mxu0  ;;  %11905 = vmatmul.mubr.msk.bf16.gmra.mxu0 %vm406_vm1, %v13586_v42 }
 0x10c   :  { %v545_v47 = vadd.f32 %v544_v46, %v15225_v44  ;;  %792 = vmatprep.mubr.bf16.mxu0 %v22562_v0 }
 0x10d   :  { %v546_v48 = vpop.f32.mrf.mxu0 }
 0x10e   :  { %v547_v50 = vadd.f32 %v546_v48, %v15228_v45  ;;  %v863_v52 = vmax.f32 %v545_v47, 0.0 }
 0x10f   :  { %v548_v51 = vpop.f32.mrf.mxu0 }
 0x110   :  { %v549_v53 = vadd.f32 %v548_v51, %v15225_v44  ;;  %v864_v54 = vmax.f32 %v547_v50, 0.0  ;;  %v15241_v59 = vrot.slane %v863_v52, 1 }
 0x111   :  { %v550_v55 = vpop.f32.mrf.mxu0 }
 0x112   :  { %v865_v56 = vmax.f32 %v549_v53, 0.0  ;;  %v551_v57 = vadd.f32 %v550_v55, %v15228_v45  ;;  %22800 = vst [vmem:[#allocation15_spill] sm:$0xff] %v15241_v59  ;;  %v15245_v63 = vrot.slane %v864_v54, 1 }
 0x113   :  { %v554_v58 = vpop.f32.mrf.mxu0  ;;  %11906 = vmatmul.mubr.msk.bf16.gmra.mxu0 %vm406_vm1, %v13587_v49 }
 0x114   :  { %v993_v60 = vrot.slane %v865_v56, 1  ;;  %v866_v61 = vmax.f32 %v551_v57, 0.0  ;;  %v555_v62 = vadd.f32 %v554_v58, %v15225_v44  ;;  %802 = vmatprep.mubr.bf16.mxu0 %v22562_v0  ;;  %22801 = vst [vmem:[#allocation16_spill] sm:$0xff] %v15245_v63  ;;  %v13590_v57 = vld [vmem:[%s22548_s0 + $0xe0] sm:$0xff]  }
 0x115   :  { %v556_v1 = vpop.f32.mrf.mxu0 }
 0x116   :  { %v994_v3 = vrot.slane %v866_v61, 1  ;;  %v867_v4 = vmax.f32 %v555_v62, 0.0  ;;  %v557_v5 = vadd.f32 %v556_v1, %v15228_v45  ;;  %v1246_v6 = vsel %vm1121_vm2, %v15241_v59, %v993_v60 }
 0x117   :  { %v558_v7 = vpop.f32.mrf.mxu0  ;;  %v15254_v8 = vmax.f32 %v863_v52, %v1246_v6 }
 0x118   :  { %v995_v9 = vrot.slane %v867_v4, 1  ;;  %v868_v10 = vmax.f32 %v557_v5, 0.0  ;;  %v559_v11 = vadd.f32 %v558_v7, %v15225_v44  ;;  %v1247_v12 = vsel %vm1121_vm2, %v15245_v63, %v994_v3 }
 0x119   :  { %22802 = vst [vmem:[#allocation17_spill] sm:$0xff] %v15254_v8  ;;  %v560_v13 = vpop.f32.mrf.mxu0  ;;  %v15260_v14 = vmax.f32 %v864_v54, %v1247_v12 }
 0x11a   :  { %v996_v15 = vrot.slane %v868_v10, 1  ;;  %v869_v16 = vmax.f32 %v559_v11, 0.0  ;;  %v561_v17 = vadd.f32 %v560_v13, %v15228_v45  ;;  %v1244_v18 = vsel %vm1121_vm2, %v993_v60, %v995_v9  ;;  %v13591_v11 = vld [vmem:[%s22548_s0 + $0xe8] sm:$0xff]  }
 0x11b   :  { %22803 = vst [vmem:[#allocation18_spill] sm:$0xff] %v15260_v14  ;;  %v564_v19 = vpop.f32.mrf.mxu0  ;;  %11907 = vmatmul.mubr.msk.bf16.gmra.mxu0 %vm406_vm1, %v13588_v2  ;;  %v15266_v20 = vmax.f32 %v865_v56, %v1244_v18 }
 0x11c   :  { %v997_v21 = vrot.slane %v869_v16, 1  ;;  %v870_v22 = vmax.f32 %v561_v17, 0.0  ;;  %v565_v23 = vadd.f32 %v564_v19, %v15225_v44  ;;  %812 = vmatprep.mubr.bf16.mxu0 %v22562_v0  ;;  %v1245_v24 = vsel %vm1121_vm2, %v994_v3, %v996_v15 }
 0x11d   :  { %22804 = vst [vmem:[#allocation19_spill] sm:$0xff] %v15266_v20  ;;  %v566_v25 = vpop.f32.mrf.mxu0  ;;  %v15275_v27 = vmax.f32 %v866_v61, %v1245_v24 }
 0x11e   :  { %v998_v29 = vrot.slane %v870_v22, 1  ;;  %v871_v30 = vmax.f32 %v565_v23, 0.0  ;;  %v15280_v31 = vadd.f32 %v566_v25, %v15228_v45  ;;  %v1242_v32 = vsel %vm1121_vm2, %v995_v9, %v997_v21 }
 0x11f   :  { %22805 = vst [vmem:[#allocation20_spill] sm:$0xff] %v15275_v27  ;;  %v568_v33 = vpop.f32.mrf.mxu0  ;;  %v15284_v34 = vmax.f32 %v867_v4, %v1242_v32 }
 0x120   :  { %22806 = vst [vmem:[#allocation21_spill] sm:$0xff] %v15280_v31  ;;  %v999_v36 = vrot.slane %v871_v30, 1  ;;  %v22565_v38 = vmax.f32 %v15280_v31, 0.0  ;;  %v569_v40 = vadd.f32 %v568_v33, %v15225_v44  ;;  %v1243_v42 = vsel %vm1121_vm2, %v996_v15, %v998_v29 }
 0x121   :  { %22807 = vst [vmem:[#allocation22_spill] sm:$0xff] %v15284_v34  ;;  %v570_v46 = vpop.f32.mrf.mxu0  ;;  %v15292_v47 = vmax.f32 %v868_v10, %v1243_v42 }
 0x122   :  { %v15296_v48 = vrot.slane %v22565_v38, 1  ;;  %v873_v49 = vmax.f32 %v569_v40, 0.0  ;;  %v1240_v50 = vsel %vm1121_vm2, %v997_v21, %v999_v36  ;;  %v15341_v13 = vadd.f32 %v570_v46, %v15228_v45  ;;  %v13592_v40 = vld [vmem:[%s22548_s0 + $0xf0] sm:$0xff]  }
 0x123   :  { %22808 = vst [vmem:[#allocation23_spill] sm:$0xff] %v15292_v47  ;;  %v574_v51 = vpop.f32.mrf.mxu0  ;;  %11908 = vmatmul.mubr.msk.bf16.gmra.mxu0 %vm406_vm1, %v13589_v26  ;;  %v15301_v52 = vmax.f32 %v869_v16, %v1240_v50 }
 0x124   :  { %v1001_v53 = vrot.slane %v873_v49, 1  ;;  %v15304_v54 = vadd.f32 %v574_v51, %v15225_v44  ;;  %822 = vmatprep.mubr.bf16.mxu0 %v22562_v0  ;;  %v1241_v55 = vsel %vm1121_vm2, %v998_v29, %v15296_v48  ;;  %v22569_v18 = vmax.f32 %v15341_v13, 0.0 }
 0x125   :  { %22809 = vst [vmem:[#allocation24_spill] sm:$0xff] %v15301_v52  ;;  %v576_v56 = vpop.f32.mrf.mxu0  ;;  %v15313_v58 = vmax.f32 %v870_v22, %v1241_v55 }
 0x126   :  { %22810 = vst [vmem:[#allocation25_spill] sm:$0xff] %v15304_v54  ;;  %v22566_v61 = vmax.f32 %v15304_v54, 0.0  ;;  %v1238_v62 = vsel %vm1121_vm2, %v999_v36, %v1001_v53  ;;  %v15344_v15 = vadd.f32 %v576_v56, %v15228_v45  ;;  %v1002_v32 = vrot.slane %v22569_v18, 1 }
 0x127   :  { %22811 = vst [vmem:[#allocation26_spill] sm:$0xff] %v15313_v58  ;;  %v578_v1 = vpop.f32.mrf.mxu0  ;;  %v15320_v2 = vmax.f32 %v871_v30, %v1238_v62  ;;  %v13596_v30 = vld [vmem:[%s22551_s3 + $0x4] ss:$16 sps:$4 sm:$0xff]  }
 0x128   :  { %v15326_v4 = vrot.slane %v22566_v61, 1  ;;  %v22568_v19 = vmax.f32 %v15344_v15, 0.0  ;;  %v15350_v22 = vadd.f32 %v578_v1, %v15225_v44  ;;  %1858 = vmatprep.mubr.bf16.mxu1 %v13596_v30 }
 0x129   :  { %22812 = vst [vmem:[#allocation27_spill] sm:$0xff] %v15320_v2  ;;  %v580_v5 = vpop.f32.mrf.mxu0 }
 0x12a   :  { %v1236_v6 = vsel %vm1121_vm2, %v1001_v53, %v15326_v4  ;;  %22814 = vst [vmem:[#allocation29_spill] sm:$0xff] %v15350_v22  ;;  %v15353_v23 = vadd.f32 %v580_v5, %v15228_v45  ;;  %v1004_v33 = vrot.slane %v22568_v19, 1  ;;  %v22567_v42 = vmax.f32 %v15350_v22, 0.0 }
 0x12b   :  { %v584_v7 = vpop.f32.mrf.mxu0  ;;  %11909 = vmatmul.mubr.msk.bf16.gmra.mxu0 %vm406_vm1, %v13590_v57  ;;  %v15332_v9 = vmax.f32 %v873_v49, %v1236_v6 }
 0x12c   :  { %832 = vmatprep.mubr.bf16.mxu0 %v22562_v0  ;;  %v15357_v24 = vadd.f32 %v584_v7, %v15225_v44  ;;  %v22570_v46 = vmax.f32 %v15353_v23, 0.0  ;;  %v15386_v57 = vrot.slane %v22567_v42, 1 }
 0x12d   :  { %22813 = vst [vmem:[#allocation28_spill] sm:$0xff] %v15332_v9  ;;  %v586_v10 = vpop.f32.mrf.mxu0 }
 0x12e   :  { %v15360_v26 = vadd.f32 %v586_v10, %v15228_v45  ;;  %v22571_v49 = vmax.f32 %v15357_v24, 0.0  ;;  %v1006_v62 = vrot.slane %v22570_v46, 1 }
 0x12f   :  { %v588_v16 = vpop.f32.mrf.mxu0 }
 0x130   :  { %v15363_v29 = vadd.f32 %v588_v16, %v15225_v44  ;;  %v22573_v51 = vmax.f32 %v15360_v26, 0.0  ;;  %v1007_v7 = vrot.slane %v22571_v49, 1 }
 0x131   :  { %v590_v17 = vpop.f32.mrf.mxu0 }
 0x132   :  { %v22572_v53 = vmax.f32 %v15363_v29, 0.0  ;;  %v15381_v55 = vadd.f32 %v590_v17, %v15228_v45  ;;  %v1008_v10 = vrot.slane %v22573_v51, 1  ;;  %v13593_v17 = vld [vmem:[%s22548_s0 + $0xf8] sm:$0xff]  }
 0x133   :  { %v594_v21 = vpop.f32.mrf.mxu0  ;;  %11910 = vmatmul.mubr.msk.bf16.gmra.mxu0 %vm406_vm1, %v13591_v11 }
 0x134   :  { %842 = vmatprep.mubr.bf16.mxu0 %v22562_v0  ;;  %v15391_v1 = vadd.f32 %v594_v21, %v15225_v44  ;;  %v1009_v21 = vrot.slane %v22572_v53, 1  ;;  %v15453_v53 = vsel %vm1121_vm2, %v15296_v48, %v1002_v32 }
 0x135   :  { %v596_v25 = vpop.f32.mrf.mxu0  ;;  %22815 = vst [vmem:[#allocation30_spill] sm:$0xff] %v15453_v53 }
 0x136   :  { %v15394_v5 = vadd.f32 %v596_v25, %v15228_v45  ;;  %v882_v25 = vmax.f32 %v15381_v55, 0.0  ;;  %v15476_v43 = vsel %vm1121_vm2, %v1007_v7, %v1009_v21 }
 0x137   :  { %v598_v36 = vpop.f32.mrf.mxu0 }
 0x138   :  { %v15402_v11 = vadd.f32 %v598_v36, %v15225_v44  ;;  %v1010_v55 = vrot.slane %v882_v25, 1 }
 0x139   :  { %v600_v50 = vpop.f32.mrf.mxu0 }
 0x13a   :  { %v15405_v16 = vadd.f32 %v600_v50, %v15228_v45  ;;  %v22575_v50 = vmax.f32 %v15402_v11, 0.0  ;;  %v15485_v41 = vsel %vm1121_vm2, %v1008_v10, %v1010_v55 }
 0x13b   :  { %v604_v56 = vpop.f32.mrf.mxu0  ;;  %11911 = vmatmul.mubr.msk.bf16.gmra.mxu0 %vm406_vm1, %v13592_v40  ;;  %v22574_v40 = vmax.f32 %v15391_v1, 0.0 }
 0x13c   :  { %852 = vmatprep.mubr.bf16.mxu0 %v22562_v0  ;;  %v22576_v0 = vmax.f32 %v15394_v5, 0.0  ;;  %v15416_v36 = vadd.f32 %v604_v56, %v15225_v44  ;;  %v22577_v28 = vmax.f32 %v15405_v16, 0.0 }
 0x13d   :  { %v606_v6 = vpop.f32.mrf.mxu0  ;;  %v1011_v56 = vrot.slane %v22574_v40, 1  ;;  %v15463_v40 = vsel %vm1121_vm2, %v15386_v57, %v1007_v7 }
 0x13e   :  { %v15421_v35 = vadd.f32 %v606_v6, %v15228_v45  ;;  %v22578_v3 = vmax.f32 %v15416_v36, 0.0  ;;  %v1012_v61 = vrot.slane %v22576_v0, 1  ;;  %v1014_v19 = vrot.slane %v22577_v28, 1 }
 0x13f   :  { %v608_v30 = vpop.f32.mrf.mxu0  ;;  %v15491_v7 = vsel %vm1121_vm2, %v1009_v21, %v1011_v56 }
 0x140   :  { %v888_v42 = vmax.f32 %v15421_v35, 0.0  ;;  %v1015_v49 = vrot.slane %v22578_v3, 1  ;;  %v1227_v14 = vsel %vm1121_vm2, %v1012_v61, %v1014_v19 }
 0x141   :  { %v610_v37 = vpop.f32.mrf.mxu0 }
 0x142   :  { %v15426_v12 = vadd.f32 %v610_v37, %v15228_v45  ;;  %v15441_v37 = vadd.f32 %v608_v30, %v15225_v44 }
 0x143   :  { %v614_v60 = vpop.f32.mrf.mxu0  ;;  %11912 = vmatmul.mubr.msk.bf16.gmra.mxu0 %vm406_vm1, %v13593_v17  ;;  %v1013_v17 = vrot.slane %v22575_v50, 1 }
 0x144   :  { %v15444_v18 = vadd.f32 %v614_v60, %v15225_v44  ;;  %v890_v35 = vmax.f32 %v15426_v12, 0.0  ;;  %v15458_v60 = vsel %vm1121_vm2, %v1004_v33, %v1006_v62  ;;  %v15467_v12 = vsel %vm1121_vm2, %v1002_v32, %v1004_v33 }
 0x145   :  { %v616_v38 = vpop.f32.mrf.mxu0  ;;  %v889_v0 = vmax.f32 %v15441_v37, 0.0  ;;  %v15480_v32 = vsel %vm1121_vm2, %v1006_v62, %v1008_v10 }
 0x146   :  { %v15434_v6 = vadd.f32 %v616_v38, %v15228_v45  ;;  %v891_v28 = vmax.f32 %v15444_v18, 0.0  ;;  %v1018_v33 = vrot.slane %v890_v35, 1 }
 0x147   :  { %v618_v46 = vpop.f32.mrf.mxu0 }
 0x148   :  { %v619_v38 = vadd.f32 %v618_v46, %v15225_v44  ;;  %v892_v51 = vmax.f32 %v15434_v6, 0.0  ;;  %v1016_v46 = vrot.slane %v888_v42, 1  ;;  %v1229_v6 = vsel %vm1121_vm2, %v1010_v55, %v1012_v61 }
 0x149   :  { %v620_v30 = vpop.f32.mrf.mxu0  ;;  %v15487_v59 = vmax.f32 %v882_v25, %v1229_v6  ;;  %v1019_v10 = vrot.slane %v891_v28, 1  ;;  %v1224_v25 = vsel %vm1121_vm2, %v1013_v17, %v1015_v49 }
 0x14a   :  { %v893_v50 = vmax.f32 %v619_v38, 0.0  ;;  %v621_v48 = vadd.f32 %v620_v30, %v15228_v45  ;;  %v1020_v37 = vrot.slane %v892_v51, 1 }
 0x14b   :  { %v624_v3 = vpop.f32.mrf.mxu0 }
 0x14c   :  { %v894_v38 = vmax.f32 %v621_v48, 0.0  ;;  %v625_v30 = vadd.f32 %v624_v3, %v15225_v44  ;;  %v1021_v63 = vrot.slane %v893_v50, 1  ;;  %v15496_v3 = vsel %vm1121_vm2, %v1011_v56, %v1013_v17 }
 0x14d   :  { %v626_v18 = vpop.f32.mrf.mxu0  ;;  %v1017_v48 = vrot.slane %v889_v0, 1  ;;  %v1221_v61 = vsel %vm1121_vm2, %v1018_v33, %v1020_v37  ;;  %v1225_v17 = vsel %vm1121_vm2, %v1014_v19, %v1016_v46 }
 0x14e   :  { %v1022_v8 = vrot.slane %v894_v38, 1  ;;  %v895_v62 = vmax.f32 %v625_v30, 0.0  ;;  %v627_v20 = vadd.f32 %v626_v18, %v15228_v45  ;;  %v1223_v30 = vsel %vm1121_vm2, %v1016_v46, %v1018_v33 }
 0x14f   :  { %v628_v55 = vpop.f32.mrf.mxu0  ;;  %v1218_v34 = vsel %vm1121_vm2, %v1019_v10, %v1021_v63  ;;  %v1275_v9 = vmax.f32 %v888_v42, %v1223_v30  ;;  %v1220_v31 = vsel %vm1121_vm2, %v1017_v48, %v1019_v10  ;;  %v1222_v53 = vsel %vm1121_vm2, %v1015_v49, %v1017_v48 }
 0x150   :  { %v1023_v6 = vrot.slane %v895_v62, 1  ;;  %v896_v21 = vmax.f32 %v627_v20, 0.0  ;;  %v629_v27 = vadd.f32 %v628_v55, %v15225_v44  ;;  %v1219_v56 = vsel %vm1121_vm2, %v1020_v37, %v1022_v8 }
 0x151   :  { %v630_v18 = vpop.f32.mrf.mxu0  ;;  %v1277_v22 = vmax.f32 %v890_v35, %v1221_v61 }
 0x152   :  { %v1024_v52 = vrot.slane %v896_v21, 1  ;;  %v897_v20 = vmax.f32 %v629_v27, 0.0  ;;  %v631_v55 = vadd.f32 %v630_v18, %v15228_v45  ;;  %v1216_v47 = vsel %vm1121_vm2, %v1021_v63, %v1023_v6 }
 0x153   :  { %v634_v58 = vpop.f32.mrf.mxu0  ;;  %v1280_v2 = vmax.f32 %v893_v50, %v1216_v47  ;;  %v1279_v18 = vmax.f32 %v892_v51, %v1219_v56  ;;  %v1278_v63 = vmax.f32 %v891_v28, %v1218_v34  ;;  %v22817_v56 = vmax.f32 %v15416_v36, 0.0 }
 0x154   :  { %v1025_v33 = vrot.slane %v897_v20, 1  ;;  %v898_v37 = vmax.f32 %v631_v55, 0.0  ;;  %v635_v19 = vadd.f32 %v634_v58, %v15225_v44  ;;  %v1217_v27 = vsel %vm1121_vm2, %v1022_v8, %v1024_v52 }
 0x155   :  { %v636_v46 = vpop.f32.mrf.mxu0  ;;  %v1281_v54 = vmax.f32 %v894_v38, %v1217_v27  ;;  %v1456_v30 = vpack.c.bf16 %v1280_v2, %v1278_v63  ;;  %v1276_v58 = vmax.f32 %v889_v0, %v1220_v31  ;;  %v1455_v38 = vpack.c.bf16 %v1277_v22, %v1275_v9 }
 0x156   :  { %v1026_v47 = vrot.slane %v898_v37, 1  ;;  %v899_v42 = vmax.f32 %v635_v19, 0.0  ;;  %v15524_v50 = vadd.f32 %v636_v46, %v15228_v45  ;;  %v1214_v49 = vsel %vm1121_vm2, %v1023_v6, %v1025_v33 }
 0x157   :  { %v638_v48 = vpop.f32.mrf.mxu0  ;;  %v1457_v10 = vpack.c.bf16 %v1281_v54, %v1279_v18  ;;  %v15528_v55 = vmax.f32 %v895_v62, %v1214_v49  ;;  %v1274_v6 = vmax.f32 %v22817_v56, %v1222_v53  ;;  %v22818_v54 = vmax.f32 %v15405_v16, 0.0 }
 0x158   :  { %v1027_v8 = vrot.slane %v899_v42, 1  ;;  %v900_v51 = vmax.f32 %v15524_v50, 0.0  ;;  %v639_v28 = vadd.f32 %v638_v48, %v15225_v44  ;;  %v1215_v34 = vsel %vm1121_vm2, %v1024_v52, %v1026_v47  ;;  %v22842_v50 = vld [vmem:[#allocation21_spill] sm:$0xff] }
 0x159   :  { %22816 = vst [vmem:[#allocation31_spill] sm:$0xff] %v15528_v55  ;;  %v640_v35 = vpop.f32.mrf.mxu0  ;;  %1826 = vmatprep.subr.bf16.mxu1 %v1457_v10  ;;  %v1273_v2 = vmax.f32 %v22818_v54, %v1225_v17  ;;  %v15538_v0 = vmax.f32 %v896_v21, %v1215_v34  ;;  %v1454_v9 = vpack.c.bf16 %v1276_v58, %v1274_v6  ;;  %v22820_v22 = vmax.f32 %v15394_v5, 0.0 }
 0x15a   :  { %v1028_v31 = vrot.slane %v900_v51, 1  ;;  %v901_v62 = vmax.f32 %v639_v28, 0.0  ;;  %v641_v61 = vadd.f32 %v640_v35, %v15228_v45  ;;  %1827 = vmatpush1.bf16.msra.mxu1 %v1456_v30  ;;  %v1212_v52 = vsel %vm1121_vm2, %v1025_v33, %v1027_v8 }
 0x15b   :  { %22819 = vst [vmem:[#allocation32_spill] sm:$0xff] %v15538_v0  ;;  %v644_v19 = vpop.f32.mrf.mxu0  ;;  %1828 = vmatprep.subr.bf16.mxu1 %v1455_v38  ;;  %v1271_v53 = vmax.f32 %v22820_v22, %v1227_v14  ;;  %v22821_v16 = vmax.f32 %v15402_v11, 0.0  ;;  %v15549_v21 = vmax.f32 %v897_v20, %v1212_v52  ;;  %v22823_v49 = vmax.f32 %v15391_v1, 0.0 }
 0x15c   :  { %v1029_v17 = vrot.slane %v901_v62, 1  ;;  %v902_v27 = vmax.f32 %v641_v61, 0.0  ;;  %v645_v46 = vadd.f32 %v644_v19, %v15225_v44  ;;  %v1213_v18 = vsel %vm1121_vm2, %v1026_v47, %v1028_v31 }
 0x15d   :  { %v1272_v36 = vmax.f32 %v22821_v16, %v1224_v25  ;;  %22822 = vst [vmem:[#allocation33_spill] sm:$0xff] %v15549_v21  ;;  %v646_v63 = vpop.f32.mrf.mxu0  ;;  %v1453_v33 = vpack.c.bf16 %v1273_v2, %v1271_v53  ;;  %v1270_v48 = vmax.f32 %v22823_v49, %v15496_v3  ;;  %v15557_v5 = vmax.f32 %v898_v37, %v1213_v18 }
 0x15e   :  { %v1030_v11 = vrot.slane %v902_v27, 1  ;;  %v903_v25 = vmax.f32 %v645_v46, 0.0  ;;  %v15562_v20 = vadd.f32 %v646_v63, %v15228_v45  ;;  %1829 = vmatpush1.bf16.msra.mxu1 %v1454_v9  ;;  %v1210_v47 = vsel %vm1121_vm2, %v1027_v8, %v1029_v17 }
 0x15f   :  { %22824 = vst [vmem:[#allocation34_spill] sm:$0xff] %v15557_v5  ;;  %v648_v10 = vpop.f32.mrf.mxu0  ;;  %1830 = vmatprep.subr.bf16.mxu1 %v1453_v33  ;;  %v22826_v1 = vmax.f32 %v15360_v26, 0.0  ;;  %v22827_v37 = vmax.f32 %v15363_v29, 0.0  ;;  %v15572_v58 = vmax.f32 %v899_v42, %v1210_v47  ;;  %v1452_v38 = vpack.c.bf16 %v1272_v36, %v1270_v48  ;;  %v22839_v36 = vld [vmem:[#allocation25_spill] sm:$0xff]  ;;  %v22841_v33 = vld [vmem:[#allocation30_spill] sm:$0xff] }
 0x160   :  { %22825 = vst [vmem:[#allocation35_spill] sm:$0xff] %v15562_v20  ;;  %v1031_v34 = vrot.slane %v903_v25, 1  ;;  %v22598_v35 = vmax.f32 %v15562_v20, 0.0  ;;  %v649_v8 = vadd.f32 %v648_v10, %v15225_v44  ;;  %v22830_v29 = vmax.f32 %v15353_v23, 0.0 }
 0x161   :  { %v1267_v3 = vmax.f32 %v22826_v1, %v15485_v41  ;;  %v1268_v30 = vmax.f32 %v22827_v37, %v15491_v7  ;;  %22828 = vst [vmem:[#allocation36_spill] sm:$0xff] %v15572_v58  ;;  %v650_v56 = vpop.f32.mrf.mxu0  ;;  %v22829_v41 = vmax.f32 %v15357_v24, 0.0  ;;  %v22831_v42 = vmax.f32 %v15341_v13, 0.0 }
 0x162   :  { %v1265_v7 = vmax.f32 %v22830_v29, %v15480_v32  ;;  %v15590_v2 = vrot.slane %v22598_v35, 1  ;;  %v905_v61 = vmax.f32 %v649_v8, 0.0  ;;  %1831 = vmatpush1.bf16.msra.mxu1 %v1452_v38  ;;  %v22832_v23 = vmax.f32 %v15344_v15, 0.0  ;;  %v22846_v8 = vld [vmem:[#allocation28_spill] sm:$0xff]  ;;  %v22847_v38 = vld [vmem:[#allocation27_spill] sm:$0xff] }
 0x163   :  { %v1451_v6 = vpack.c.bf16 %v15487_v59, %v1267_v3  ;;  %v1266_v26 = vmax.f32 %v22829_v41, %v15476_v43  ;;  %v1261_v54 = vmax.f32 %v22831_v42, %v15467_v12  ;;  %v1211_v59 = vsel %vm1121_vm2, %v1028_v31, %v1030_v11  ;;  %v654_v24 = vpop.f32.mrf.mxu0  ;;  %v22833_v12 = vld [vmem:[#allocation29_spill] sm:$0xff]  ;;  %v22850_v29 = vld [vmem:[#allocation23_spill] sm:$0xff] }
 0x164   :  { %v1208_v43 = vsel %vm1121_vm2, %v1029_v17, %v1031_v34  ;;  %v1263_v32 = vmax.f32 %v22832_v23, %v15458_v60  ;;  %v1234_v13 = vsel %vm1121_vm2, %v15326_v4, %v15386_v57  ;;  %v22834_v52 = vmax.f32 %v22833_v12, 0.0  ;;  %v22855_v23 = vld [vmem:[#allocation20_spill] sm:$0xff] }
 0x165   :  { %1832 = vmatprep.subr.bf16.mxu1 %v1451_v6  ;;  %v15606_v9 = vmax.f32 %v901_v62, %v1208_v43  ;;  %v1033_v31 = vrot.slane %v905_v61, 1  ;;  %v15609_v22 = vadd.f32 %v654_v24, %v15225_v44  ;;  %v1450_v53 = vpack.c.bf16 %v1268_v30, %v1266_v26  ;;  %v656_v60 = vpop.f32.mrf.mxu0  ;;  %v22849_v26 = vld [vmem:[#allocation26_spill] sm:$0xff] }
 0x166   :  { %v1264_v19 = vmax.f32 %v22834_v52, %v15463_v40  ;;  %v1209_v15 = vsel %vm1121_vm2, %v1030_v11, %v15590_v2  ;;  %v1449_v16 = vpack.c.bf16 %v1265_v7, %v1263_v32  ;;  %v15616_v4 = vmax.f32 %v900_v51, %v1211_v59  ;;  %v22853_v59 = vld [vmem:[#allocation22_spill] sm:$0xff] }
 0x167   :  { %22835 = vst [vmem:[#allocation29_spill] sm:$0xff] %v15606_v9  ;;  %22836 = vst [vmem:[#allocation37_spill] sm:$0xff] %v15609_v22  ;;  %v15618_v57 = vmax.f32 %v902_v27, %v1209_v15  ;;  %v22599_v62 = vmax.f32 %v15609_v22, 0.0  ;;  %1833 = vmatpush1.bf16.msra.mxu1 %v1450_v53  ;;  %v22840_v17 = vmax.f32 %v22839_v36, 0.0  ;;  %v1206_v18 = vsel %vm1121_vm2, %v1031_v34, %v1033_v31  ;;  %v658_v63 = vpop.f32.mrf.mxu0  ;;  %v22856_v32 = vld [vmem:[#allocation18_spill] sm:$0xff]  ;;  %v22859_v15 = vld [vmem:[#allocation19_spill] sm:$0xff] }
 0x168   :  { %22837 = vst [vmem:[#allocation38_spill] sm:$0xff] %v15616_v4  ;;  %1834 = vmatprep.subr.bf16.mxu1 %v1449_v16  ;;  %v22843_v51 = vmax.f32 %v22842_v50, 0.0  ;;  %v15630_v27 = vmax.f32 %v903_v25, %v1206_v18  ;;  %v22848_v6 = vpack.c.bf16 %v22846_v8, %v22847_v38  ;;  %v22851_v7 = vpack.c.bf16 %v22849_v26, %v22850_v29  ;;  %v22860_v16 = vld [vmem:[#allocation17_spill] sm:$0xff] }
 0x169   :  { %22838 = vst [vmem:[#allocation39_spill] sm:$0xff] %v15618_v57  ;;  %v1262_v46 = vmax.f32 %v22840_v17, %v1234_v13  ;;  %v15636_v11 = vrot.slane %v22599_v62, 1  ;;  %v660_v10 = vpop.f32.mrf.mxu0  ;;  %v22857_v13 = vpack.c.bf16 %v22855_v23, %v22856_v32  ;;  %v15661_v12 = vadd.f32 %v656_v60, %v15228_v45 }
 0x16a   :  { %v1259_v49 = vmax.f32 %v22843_v51, %v22841_v33  ;;  %22844 = vst [vmem:[#allocation25_spill] sm:$0xff] %v15630_v27  ;;  %v15664_v52 = vadd.f32 %v658_v63, %v15225_v44  ;;  %v22861_v36 = vpack.c.bf16 %v22859_v15, %v22860_v16 }
 0x16b   :  { %v1448_v47 = vpack.c.bf16 %v1264_v19, %v1262_v46  ;;  %v1204_v3 = vsel %vm1121_vm2, %v1033_v31, %v15636_v11  ;;  %v664_v37 = vpop.f32.mrf.mxu0  ;;  %v15667_v19 = vadd.f32 %v660_v10, %v15228_v45  ;;  %v22601_v18 = vmax.f32 %v15661_v12, 0.0 }
 0x16c   :  { %v1447_v1 = vpack.c.bf16 %v1261_v54, %v1259_v49  ;;  %v15641_v30 = vmax.f32 %v905_v61, %v1204_v3  ;;  %v22852_v54 = vld [vmem:[#allocation24_spill] sm:$0xff]  ;;  %v15655_v61 = vadd.f32 %v650_v56, %v15228_v45  ;;  %22858 = vst [vmem:[#allocation21_spill] sm:$0xff] %v15664_v52  ;;  %v15670_v53 = vadd.f32 %v664_v37, %v15225_v44 }
 0x16d   :  { %1835 = vmatpush1.bf16.msra.mxu1 %v1448_v47  ;;  %v666_v25 = vpop.f32.mrf.mxu0  ;;  %v22854_v43 = vpack.c.bf16 %v22852_v54, %v22853_v59  ;;  %v22600_v63 = vmax.f32 %v15664_v52, 0.0  ;;  %v22603_v33 = vmax.f32 %v15667_v19, 0.0  ;;  %v1036_v37 = vrot.slane %v22601_v18, 1 }
 0x16e   :  { %1836 = vmatprep.subr.bf16.mxu1 %v1447_v1  ;;  %22845 = vst [vmem:[#allocation30_spill] sm:$0xff] %v15641_v30  ;;  %v15673_v56 = vadd.f32 %v666_v25, %v15228_v45  ;;  %v22602_v60 = vmax.f32 %v15655_v61, 0.0  ;;  %v22604_v51 = vmax.f32 %v15670_v53, 0.0 }
 0x16f   :  { %v668_v41 = vpop.f32.mrf.mxu0  ;;  %v15703_v38 = vrot.slane %v22600_v63, 1 }
 0x170   :  { %v15680_v17 = vadd.f32 %v668_v41, %v15225_v44  ;;  %v22606_v49 = vmax.f32 %v15673_v56, 0.0  ;;  %v1034_v3 = vrot.slane %v22602_v60, 1  ;;  %v1039_v26 = vrot.slane %v22604_v51, 1 }
 0x171   :  { %1837 = vmatpush1.bf16.msra.mxu1 %v22848_v6  ;;  %v670_v42 = vpop.f32.mrf.mxu0  ;;  %v1038_v6 = vrot.slane %v22603_v33, 1 }
 0x172   :  { %1838 = vmatprep.subr.bf16.mxu1 %v22851_v7  ;;  %v22605_v47 = vmax.f32 %v15680_v17, 0.0  ;;  %v15689_v10 = vadd.f32 %v670_v42, %v15228_v45  ;;  %v1040_v29 = vrot.slane %v22606_v49, 1  ;;  %v15758_v63 = vsel %vm1121_vm2, %v15590_v2, %v1034_v3 }
 0x173   :  { %v674_v24 = vpop.f32.mrf.mxu0  ;;  %22862 = vst [vmem:[#allocation28_spill] sm:$0xff] %v15758_v63  ;;  %v15768_v51 = vsel %vm1121_vm2, %v1034_v3, %v1036_v37  ;;  %v15784_v3 = vsel %vm1121_vm2, %v15703_v38, %v1039_v26 }
 0x174   :  { %v15696_v25 = vadd.f32 %v674_v24, %v15225_v44  ;;  %v1041_v54 = vrot.slane %v22605_v47, 1  ;;  %v914_v59 = vmax.f32 %v15689_v10, 0.0 }
 0x175   :  { %1839 = vmatpush1.bf16.msra.mxu1 %v22854_v43  ;;  %v676_v31 = vpop.f32.mrf.mxu0 }
 0x176   :  { %1840 = vmatprep.subr.bf16.mxu1 %v22857_v13  ;;  %v15699_v8 = vadd.f32 %v676_v31, %v15228_v45  ;;  %v22607_v24 = vmax.f32 %v15696_v25, 0.0  ;;  %v1042_v28 = vrot.slane %v914_v59, 1 }
 0x177   :  { %v678_v46 = vpop.f32.mrf.mxu0 }
 0x178   :  { %v15712_v7 = vadd.f32 %v678_v46, %v15225_v44  ;;  %v22609_v23 = vmax.f32 %v15699_v8, 0.0 }
 0x179   :  { %1841 = vmatpush1.bf16.msra.mxu1 %v22861_v36  ;;  %v680_v50 = vpop.f32.mrf.mxu0 }
 0x17a   :  { %v15715_v42 = vadd.f32 %v680_v50, %v15228_v45  ;;  %v22608_v15 = vmax.f32 %v15712_v7, 0.0 }
 0x17b   :  { %v684_v1 = vpop.f32.mrf.mxu0 }
 0x17c   :  { %v15723_v32 = vadd.f32 %v684_v1, %v15225_v44  ;;  %v22610_v16 = vmax.f32 %v15715_v42, 0.0  ;;  %v1044_v1 = vrot.slane %v22609_v23, 1  ;;  %v1045_v48 = vrot.slane %v22608_v15, 1 }
 0x17d   :  { %v686_v41 = vpop.f32.mrf.mxu0  ;;  %v15779_v23 = vsel %vm1121_vm2, %v1038_v6, %v1040_v29 }
 0x17e   :  { %v15726_v13 = vadd.f32 %v686_v41, %v15228_v45  ;;  %v22611_v50 = vmax.f32 %v15723_v32, 0.0  ;;  %v1046_v62 = vrot.slane %v22610_v16, 1  ;;  %v1197_v2 = vsel %vm1121_vm2, %v1042_v28, %v1044_v1 }
 0x17f   :  { %v688_v43 = vpop.f32.mrf.mxu0 }
 0x180   :  { %v920_v10 = vmax.f32 %v15726_v13, 0.0  ;;  %v15738_v41 = vadd.f32 %v688_v43, %v15225_v44  ;;  %v1047_v18 = vrot.slane %v22611_v50, 1  ;;  %v15793_v50 = vsel %vm1121_vm2, %v1040_v29, %v1042_v28 }
 0x181   :  { %v690_v31 = vpop.f32.mrf.mxu0  ;;  %v1195_v28 = vsel %vm1121_vm2, %v1044_v1, %v1046_v62 }
 0x182   :  { %v15731_v36 = vadd.f32 %v690_v31, %v15228_v45  ;;  %v1043_v31 = vrot.slane %v22607_v24, 1  ;;  %v1048_v60 = vrot.slane %v920_v10, 1  ;;  %v1192_v29 = vsel %vm1121_vm2, %v1045_v48, %v1047_v18 }
 0x183   :  { %v694_v46 = vpop.f32.mrf.mxu0 }
 0x184   :  { %v22612_v34 = vmax.f32 %v15731_v36, 0.0  ;;  %v15749_v13 = vadd.f32 %v694_v46, %v15225_v44  ;;  %v15764_v46 = vsel %vm1121_vm2, %v1036_v37, %v1038_v6  ;;  %v15795_v6 = vmax.f32 %v914_v59, %v1197_v2 }
 0x185   :  { %v696_v14 = vpop.f32.mrf.mxu0 }
 0x186   :  { %v15741_v40 = vadd.f32 %v696_v14, %v15228_v45  ;;  %v1050_v49 = vrot.slane %v22612_v34, 1  ;;  %v923_v24 = vmax.f32 %v15749_v13, 0.0  ;;  %v15799_v34 = vsel %vm1121_vm2, %v1041_v54, %v1043_v31 }
 0x187   :  { %v698_v35 = vpop.f32.mrf.mxu0 }
 0x188   :  { %v924_v43 = vmax.f32 %v15741_v40, 0.0  ;;  %v699_v14 = vadd.f32 %v698_v35, %v15225_v44  ;;  %v921_v35 = vmax.f32 %v15738_v41, 0.0  ;;  %v1051_v0 = vrot.slane %v923_v24, 1 }
 0x189   :  { %v700_v33 = vpop.f32.mrf.mxu0 }
 0x18a   :  { %v925_v40 = vmax.f32 %v699_v14, 0.0  ;;  %v701_v47 = vadd.f32 %v700_v33, %v15228_v45  ;;  %v1052_v37 = vrot.slane %v924_v43, 1  ;;  %v15789_v14 = vsel %vm1121_vm2, %v1039_v26, %v1041_v54 }
 0x18b   :  { %v704_v15 = vpop.f32.mrf.mxu0  ;;  %v15804_v26 = vsel %vm1121_vm2, %v1043_v31, %v1045_v48  ;;  %v1049_v21 = vrot.slane %v921_v35, 1  ;;  %v1193_v48 = vsel %vm1121_vm2, %v1046_v62, %v1048_v60 }
 0x18c   :  { %v926_v33 = vmax.f32 %v701_v47, 0.0  ;;  %v705_v41 = vadd.f32 %v704_v15, %v15225_v44  ;;  %v1053_v16 = vrot.slane %v925_v40, 1  ;;  %v1189_v1 = vsel %vm1121_vm2, %v1050_v49, %v1052_v37 }
 0x18d   :  { %v706_v13 = vpop.f32.mrf.mxu0  ;;  %v1188_v20 = vsel %vm1121_vm2, %v1049_v21, %v1051_v0  ;;  %v1190_v63 = vsel %vm1121_vm2, %v1047_v18, %v1049_v21 }
 0x18e   :  { %v1054_v55 = vrot.slane %v926_v33, 1  ;;  %v927_v47 = vmax.f32 %v705_v41, 0.0  ;;  %v707_v15 = vadd.f32 %v706_v13, %v15228_v45  ;;  %v1191_v41 = vsel %vm1121_vm2, %v1048_v60, %v1050_v49 }
 0x18f   :  { %v708_v5 = vpop.f32.mrf.mxu0  ;;  %v1186_v58 = vsel %vm1121_vm2, %v1051_v0, %v1053_v16  ;;  %v1307_v30 = vmax.f32 %v920_v10, %v1191_v41  ;;  %v1308_v52 = vmax.f32 %v921_v35, %v1188_v20 }
 0x190   :  { %v1055_v59 = vrot.slane %v927_v47, 1  ;;  %v928_v54 = vmax.f32 %v707_v15, 0.0  ;;  %v709_v2 = vadd.f32 %v708_v5, %v15225_v44  ;;  %v1187_v31 = vsel %vm1121_vm2, %v1052_v37, %v1054_v55 }
 0x191   :  { %v710_v13 = vpop.f32.mrf.mxu0 }
 0x192   :  { %v1056_v9 = vrot.slane %v928_v54, 1  ;;  %v929_v15 = vmax.f32 %v709_v2, 0.0  ;;  %v711_v5 = vadd.f32 %v710_v13, %v15228_v45  ;;  %v1184_v4 = vsel %vm1121_vm2, %v1053_v16, %v1055_v59 }
 0x193   :  { %v714_v57 = vpop.f32.mrf.mxu0  ;;  %v1312_v27 = vmax.f32 %v925_v40, %v1184_v4  ;;  %v1311_v13 = vmax.f32 %v924_v43, %v1187_v31  ;;  %v1310_v16 = vmax.f32 %v923_v24, %v1186_v58  ;;  %v22863_v4 = vmax.f32 %v15731_v36, 0.0 }
 0x194   :  { %v1057_v49 = vrot.slane %v929_v15, 1  ;;  %v930_v37 = vmax.f32 %v711_v5, 0.0  ;;  %v715_v62 = vadd.f32 %v714_v57, %v15225_v44  ;;  %v1185_v60 = vsel %vm1121_vm2, %v1054_v55, %v1056_v9 }
 0x195   :  { %v716_v2 = vpop.f32.mrf.mxu0  ;;  %v1313_v22 = vmax.f32 %v926_v33, %v1185_v60  ;;  %v1309_v10 = vmax.f32 %v22863_v4, %v1189_v1  ;;  %v1472_v55 = vpack.c.bf16 %v1312_v27, %v1310_v16  ;;  %v22865_v31 = vmax.f32 %v15723_v32, 0.0 }
 0x196   :  { %v1182_v0 = vsel %vm1121_vm2, %v1055_v59, %v1057_v49  ;;  %v1058_v40 = vrot.slane %v930_v37, 1  ;;  %v931_v41 = vmax.f32 %v715_v62, 0.0  ;;  %v15836_v21 = vadd.f32 %v716_v2, %v15228_v45 }
 0x197   :  { %v15838_v18 = vmax.f32 %v927_v47, %v1182_v0  ;;  %v718_v57 = vpop.f32.mrf.mxu0  ;;  %v1473_v5 = vpack.c.bf16 %v1313_v22, %v1311_v13  ;;  %v1471_v59 = vpack.c.bf16 %v1309_v10, %v1307_v30  ;;  %v1306_v1 = vmax.f32 %v22865_v31, %v1190_v63 }
 0x198   :  { %v1059_v43 = vrot.slane %v931_v41, 1  ;;  %v932_v58 = vmax.f32 %v15836_v21, 0.0  ;;  %v719_v24 = vadd.f32 %v718_v57, %v15225_v44  ;;  %v1183_v36 = vsel %vm1121_vm2, %v1056_v9, %v1058_v40  ;;  %v22891_v21 = vld [vmem:[#allocation28_spill] sm:$0xff] }
 0x199   :  { %22864 = vst [vmem:[#allocation27_spill] sm:$0xff] %v15838_v18  ;;  %v720_v33 = vpop.f32.mrf.mxu0  ;;  %1842 = vmatprep.subr.bf16.mxu1 %v1473_v5  ;;  %v22866_v47 = vmax.f32 %v15715_v42, 0.0  ;;  %v15848_v22 = vmax.f32 %v928_v54, %v1183_v36  ;;  %v1470_v63 = vpack.c.bf16 %v1308_v52, %v1306_v1  ;;  %v22869_v42 = vmax.f32 %v15699_v8, 0.0 }
 0x19a   :  { %v1180_v20 = vsel %vm1121_vm2, %v1057_v49, %v1059_v43  ;;  %v1060_v27 = vrot.slane %v932_v58, 1  ;;  %v933_v35 = vmax.f32 %v719_v24, 0.0  ;;  %v721_v9 = vadd.f32 %v720_v33, %v15228_v45  ;;  %1843 = vmatpush2.bf16.msra.mxu1 %v1472_v55 }
 0x19b   :  { %v1305_v62 = vmax.f32 %v22866_v47, %v1193_v48  ;;  %22867 = vst [vmem:[#allocation26_spill] sm:$0xff] %v15848_v22  ;;  %v15855_v60 = vmax.f32 %v929_v15, %v1180_v20  ;;  %v724_v30 = vpop.f32.mrf.mxu0  ;;  %1844 = vmatprep.subr.bf16.mxu1 %v1471_v59  ;;  %v1303_v32 = vmax.f32 %v22869_v42, %v1195_v28  ;;  %v22870_v54 = vmax.f32 %v15712_v7, 0.0 }
 0x19c   :  { %v1061_v2 = vrot.slane %v933_v35, 1  ;;  %v934_v49 = vmax.f32 %v721_v9, 0.0  ;;  %v725_v13 = vadd.f32 %v724_v30, %v15225_v44  ;;  %v1181_v16 = vsel %vm1121_vm2, %v1058_v40, %v1060_v27  ;;  %v22883_v9 = vld [vmem:[#allocation21_spill] sm:$0xff] }
 0x19d   :  { %22868 = vst [vmem:[#allocation23_spill] sm:$0xff] %v15855_v60  ;;  %v1304_v48 = vmax.f32 %v22870_v54, %v1192_v29  ;;  %v726_v4 = vpop.f32.mrf.mxu0  ;;  %v1469_v10 = vpack.c.bf16 %v1305_v62, %v1303_v32  ;;  %v22871_v15 = vmax.f32 %v15696_v25, 0.0  ;;  %v15867_v52 = vmax.f32 %v930_v37, %v1181_v16 }
 0x19e   :  { %v1178_v7 = vsel %vm1121_vm2, %v1059_v43, %v1061_v2  ;;  %v1062_v28 = vrot.slane %v934_v49, 1  ;;  %v935_v29 = vmax.f32 %v725_v13, 0.0  ;;  %v15874_v57 = vadd.f32 %v726_v4, %v15228_v45  ;;  %1845 = vmatpush2.bf16.msra.mxu1 %v1470_v63 }
 0x19f   :  { %v1302_v0 = vmax.f32 %v22871_v15, %v15804_v26  ;;  %22872 = vst [vmem:[#allocation24_spill] sm:$0xff] %v15867_v52  ;;  %v15876_v40 = vmax.f32 %v931_v41, %v1178_v7  ;;  %v728_v5 = vpop.f32.mrf.mxu0  ;;  %1846 = vmatprep.subr.bf16.mxu1 %v1469_v10  ;;  %v22875_v25 = vmax.f32 %v15673_v56, 0.0  ;;  %v22876_v37 = vmax.f32 %v15680_v17, 0.0 }
 0x1a0   :  { %22873 = vst [vmem:[#allocation22_spill] sm:$0xff] %v15874_v57  ;;  %v1063_v24 = vrot.slane %v935_v29, 1  ;;  %v22626_v36 = vmax.f32 %v15874_v57, 0.0  ;;  %v729_v33 = vadd.f32 %v728_v5, %v15225_v44  ;;  %v22877_v56 = vmax.f32 %v15670_v53, 0.0 }
 0x1a1   :  { %22874 = vst [vmem:[#allocation20_spill] sm:$0xff] %v15876_v40  ;;  %v1299_v26 = vmax.f32 %v22875_v25, %v15793_v50  ;;  %v1300_v55 = vmax.f32 %v22876_v37, %v15799_v34  ;;  %v1468_v41 = vpack.c.bf16 %v1304_v48, %v1302_v0  ;;  %v730_v59 = vpop.f32.mrf.mxu0  ;;  %v22878_v17 = vmax.f32 %v15667_v19, 0.0 }
 0x1a2   :  { %v1298_v50 = vmax.f32 %v22877_v56, %v15789_v14  ;;  %v22879_v1 = vmax.f32 %v15655_v61, 0.0  ;;  %v1176_v62 = vsel %vm1121_vm2, %v1061_v2, %v1063_v24  ;;  %v15902_v20 = vrot.slane %v22626_v36, 1  ;;  %v22888_v2 = vld [vmem:[#allocation37_spill] sm:$0xff]  ;;  %v13602_v36 = vld [vmem:[%s22551_s3 + $0x40] ss:$16 sps:$4 sm:$0xff]  }
 0x1a3   :  { %v1467_v31 = vpack.c.bf16 %v15795_v6, %v1299_v26  ;;  %v1297_v34 = vmax.f32 %v22878_v17, %v15779_v23  ;;  %v937_v6 = vmax.f32 %v729_v33, 0.0  ;;  %1847 = vmatpush2.bf16.msra.mxu1 %v1468_v41  ;;  %v1179_v53 = vsel %vm1121_vm2, %v1060_v27, %v1062_v28  ;;  %v734_v19 = vpop.f32.mrf.mxu0  ;;  %v22895_v33 = vld [vmem:[#allocation30_spill] sm:$0xff]  ;;  %v22896_v41 = vld [vmem:[#allocation25_spill] sm:$0xff] }
 0x1a4   :  { %v1293_v47 = vmax.f32 %v22879_v1, %v15768_v51  ;;  %22880 = vst [vmem:[#allocation18_spill] sm:$0xff] %v15902_v20  ;;  %v15906_v14 = vmax.f32 %v933_v35, %v1176_v62  ;;  %v22882_v61 = vmax.f32 %v15661_v12, 0.0  ;;  %v1202_v23 = vsel %vm1121_vm2, %v15636_v11, %v15703_v38  ;;  %v22899_v17 = vld [vmem:[#allocation38_spill] sm:$0xff] }
 0x1a5   :  { %1848 = vmatprep.subr.bf16.mxu1 %v1467_v31  ;;  %v22884_v30 = vmax.f32 %v22883_v9, 0.0  ;;  %v1065_v42 = vrot.slane %v937_v6, 1  ;;  %v15919_v27 = vadd.f32 %v734_v19, %v15225_v44  ;;  %v1466_v35 = vpack.c.bf16 %v1300_v55, %v1298_v50  ;;  %v736_v12 = vpop.f32.mrf.mxu0  ;;  %v22898_v50 = vld [vmem:[#allocation39_spill] sm:$0xff] }
 0x1a6   :  { %22881 = vst [vmem:[#allocation19_spill] sm:$0xff] %v15906_v14  ;;  %v1295_v51 = vmax.f32 %v22882_v61, %v15764_v46  ;;  %v1177_v32 = vsel %vm1121_vm2, %v1062_v28, %v15902_v20  ;;  %v15926_v54 = vmax.f32 %v932_v58, %v1179_v53  ;;  %v22889_v13 = vmax.f32 %v22888_v2, 0.0  ;;  %v22892_v58 = vld [vmem:[#allocation35_spill] sm:$0xff]  ;;  %v22904_v61 = vld [vmem:[#allocation29_spill] sm:$0xff] }
 0x1a7   :  { %v1296_v63 = vmax.f32 %v22884_v30, %v15784_v3  ;;  %22885 = vst [vmem:[#allocation17_spill] sm:$0xff] %v15919_v27  ;;  %v15928_v11 = vmax.f32 %v934_v49, %v1177_v32  ;;  %v1174_v3 = vsel %vm1121_vm2, %v1063_v24, %v1065_v42  ;;  %v22627_v48 = vmax.f32 %v15919_v27, 0.0  ;;  %1849 = vmatpush2.bf16.msra.mxu1 %v1466_v35  ;;  %v738_v10 = vpop.f32.mrf.mxu0  ;;  %v22908_v30 = vld [vmem:[#allocation32_spill] sm:$0xff] }
 0x1a8   :  { %v1465_v46 = vpack.c.bf16 %v1297_v34, %v1295_v51  ;;  %22886 = vst [vmem:[#allocation21_spill] sm:$0xff] %v15926_v54  ;;  %v1294_v16 = vmax.f32 %v22889_v13, %v1202_v23  ;;  %v15937_v4 = vmax.f32 %v935_v29, %v1174_v3  ;;  %v22893_v49 = vmax.f32 %v22892_v58, 0.0  ;;  %v22905_v51 = vld [vmem:[#allocation36_spill] sm:$0xff] }
 0x1a9   :  { %22887 = vst [vmem:[#allocation40_spill] sm:$0xff] %v15928_v11  ;;  %v15946_v7 = vrot.slane %v22627_v48, 1  ;;  %v740_v5 = vpop.f32.mrf.mxu0  ;;  %v22897_v31 = vpack.c.bf16 %v22895_v33, %v22896_v41  ;;  %v22900_v34 = vpack.c.bf16 %v22898_v50, %v22899_v17  ;;  %v15962_v1 = vadd.f32 %v730_v59, %v15228_v45  ;;  %v22907_v59 = vld [vmem:[#allocation34_spill] sm:$0xff] }
 0x1aa   :  { %22890 = vst [vmem:[#allocation37_spill] sm:$0xff] %v15937_v4  ;;  %1850 = vmatprep.subr.bf16.mxu1 %v1465_v46  ;;  %v1291_v15 = vmax.f32 %v22893_v49, %v22891_v21  ;;  %v1464_v28 = vpack.c.bf16 %v1296_v63, %v1294_v16  ;;  %v15968_v62 = vadd.f32 %v738_v10, %v15225_v44  ;;  %v22910_v49 = vld [vmem:[#allocation33_spill] sm:$0xff] }
 0x1ab   :  { %v1172_v29 = vsel %vm1121_vm2, %v1065_v42, %v15946_v7  ;;  %v744_v37 = vpop.f32.mrf.mxu0  ;;  %22901 = vst [vmem:[#allocation35_spill] sm:$0xff] %v15962_v1  ;;  %v22906_v23 = vpack.c.bf16 %v22904_v61, %v22905_v51  ;;  %v22909_v63 = vpack.c.bf16 %v22907_v59, %v22908_v30  ;;  %v13594_v42 = vld [vmem:[%s22551_s3] ss:$16 sps:$4 sm:$0xff]   ;;  %v22628_v35 = vmax.f32 %v15962_v1, 0.0  ;;  %v13600_v30 = vld [vmem:[%s22551_s3 + $0x44] ss:$16 sps:$4 sm:$0xff]  }
 0x1ac   :  { %v1463_v25 = vpack.c.bf16 %v1293_v47, %v1291_v15  ;;  %1851 = vmatpush2.bf16.msra.mxu1 %v1464_v28  ;;  %v15951_v26 = vmax.f32 %v937_v6, %v1172_v29  ;;  %v15965_v47 = vadd.f32 %v736_v12, %v15228_v45  ;;  %22903 = vst [vmem:[#allocation25_spill] sm:$0xff] %v15968_v62  ;;  %v13597_v12 = vld [vmem:[%s22551_s3 + $0x24] ss:$16 sps:$4 sm:$0xff]   ;;  %v22629_v46 = vmax.f32 %v15968_v62, 0.0  ;;  %v22911_v15 = vld [vmem:[#allocation31_spill] sm:$0xff] }
 0x1ad   :  { %v746_v55 = vpop.f32.mrf.mxu0  ;;  %v15971_v6 = vadd.f32 %v740_v5, %v15228_v45  ;;  %v15993_v2 = vadd.f32 %v744_v37, %v15225_v44  ;;  %v22912_v28 = vpack.c.bf16 %v22910_v49, %v22911_v15 }
 0x1ae   :  { %22894 = vst [vmem:[#allocation28_spill] sm:$0xff] %v15951_v26  ;;  %1852 = vmatprep.subr.bf16.mxu1 %v1463_v25  ;;  %22902 = vst [vmem:[#allocation30_spill] sm:$0xff] %v15965_v47  ;;  %v15974_v53 = vadd.f32 %v746_v55, %v15228_v45  ;;  %v22630_v32 = vmax.f32 %v15965_v47, 0.0  ;;  %v16010_v25 = vrot.slane %v22628_v35, 1  ;;  %v16024_v33 = vrot.slane %v22629_v46, 1 }
 0x1af   :  { %v748_v56 = vpop.f32.mrf.mxu0  ;;  %v22631_v3 = vmax.f32 %v15971_v6, 0.0  ;;  %v13603_v46 = vld [vmem:[%s22551_s3 + $0x64] ss:$16 sps:$4 sm:$0xff]  }
 0x1b0   :  { %1853 = vmatpush2.bf16.msra.mxu1 %v22897_v31  ;;  %v22633_v13 = vmax.f32 %v15974_v53, 0.0  ;;  %v15997_v10 = vadd.f32 %v748_v56, %v15225_v44  ;;  %v16014_v29 = vrot.slane %v22630_v32, 1 }
 0x1b1   :  { %1854 = vmatprep.subr.bf16.mxu1 %v22900_v34  ;;  %v750_v19 = vpop.f32.mrf.mxu0  ;;  %v16028_v41 = vrot.slane %v22631_v3, 1 }
 0x1b2   :  { %v16000_v21 = vadd.f32 %v750_v19, %v15228_v45  ;;  %v16033_v56 = vrot.slane %v22633_v13, 1  ;;  %v22632_v17 = vmax.f32 %v15997_v10, 0.0 }
 0x1b3   :  { %v754_v9 = vpop.f32.mrf.mxu0 }
 0x1b4   :  { %1855 = vmatpush2.bf16.msra.mxu1 %v22906_v23  ;;  %v16003_v58 = vadd.f32 %v754_v9, %v15225_v44  ;;  %v22635_v34 = vmax.f32 %v16000_v21, 0.0  ;;  %v13599_v23 = vld [vmem:[%s22551_s3 + $0x20] ss:$16 sps:$4 sm:$0xff]  }
 0x1b5   :  { %1856 = vmatprep.subr.bf16.mxu1 %v22909_v63  ;;  %v756_v16 = vpop.f32.mrf.mxu0 }
 0x1b6   :  { %v16017_v37 = vadd.f32 %v756_v16, %v15228_v45  ;;  %v22634_v19 = vmax.f32 %v16003_v58, 0.0 }
 0x1b7   :  { %v758_v5 = vpop.f32.mrf.mxu0 }
 0x1b8   :  { %1857 = vmatpush2.bf16.msra.mxu1 %v22912_v28  ;;  %v16020_v55 = vadd.f32 %v758_v5, %v15225_v44  ;;  %v22636_v9 = vmax.f32 %v16017_v37, 0.0  ;;  %v1074_v28 = vrot.slane %v22635_v34, 1  ;;  %v16064_v5 = vrot.slane %v22634_v19, 1 }
 0x1b9   :  { %v760_v50 = vpop.f32.mrf.mxu0 }
 0x1ba   :  { %v16039_v61 = vadd.f32 %v760_v50, %v15228_v45  ;;  %v22637_v59 = vmax.f32 %v16020_v55, 0.0  ;;  %v1076_v8 = vrot.slane %v22636_v9, 1 }
 0x1bb   :  { %1859 = vmatmul.mubr.bf16.vlgmr.msra.gmra.mxu1 %v13594_v42  ;;  %v764_v51 = vpop.f32.mrf.mxu0  ;;  %v16051_v42 = vrot.slane %v22632_v17, 1 }
 0x1bc   :  { %1868 = vmatprep.mubr.bf16.mxu1 %v13597_v12  ;;  %v22638_v12 = vmax.f32 %v16039_v61, 0.0  ;;  %v16055_v16 = vadd.f32 %v764_v51, %v15225_v44  ;;  %v16073_v51 = vrot.slane %v22637_v59, 1 }
 0x1bd   :  { %v766_v63 = vpop.f32.mrf.mxu0 }
 0x1be   :  { %v16058_v49 = vadd.f32 %v766_v63, %v15228_v45  ;;  %v1078_v43 = vrot.slane %v22638_v12, 1  ;;  %v22639_v38 = vmax.f32 %v16055_v16, 0.0 }
 0x1bf   :  { %v768_v15 = vpop.f32.mrf.mxu0 }
 0x1c0   :  { %v16067_v50 = vadd.f32 %v768_v15, %v15225_v44  ;;  %v952_v0 = vmax.f32 %v16058_v49, 0.0 }
 0x1c1   :  { %v770_v63 = vpop.f32.mrf.mxu0 }
 0x1c2   :  { %v16080_v24 = vadd.f32 %v770_v63, %v15228_v45  ;;  %v22640_v48 = vmax.f32 %v16067_v50, 0.0  ;;  %v1079_v63 = vrot.slane %v22639_v38, 1  ;;  %v1080_v17 = vrot.slane %v952_v0, 1 }
 0x1c3   :  { %1869 = vmatmul.mubr.bf16.gmra.mxu1 %v13599_v23  ;;  %v774_v15 = vpop.f32.mrf.mxu0 }
 0x1c4   :  { %1878 = vmatprep.mubr.bf16.mxu1 %v13600_v30  ;;  %v22641_v23 = vmax.f32 %v16080_v24, 0.0  ;;  %v775_v35 = vadd.f32 %v774_v15, %v15225_v44  ;;  %v1081_v34 = vrot.slane %v22640_v48, 1 }
 0x1c5   :  { %v776_v49 = vpop.f32.mrf.mxu0 }
 0x1c6   :  { %v955_v30 = vmax.f32 %v775_v35, 0.0  ;;  %v777_v32 = vadd.f32 %v776_v49, %v15228_v45  ;;  %v1082_v15 = vrot.slane %v22641_v23, 1  ;;  %v13606_v23 = vld [vmem:[%s22551_s3 + $0x84] ss:$16 sps:$4 sm:$0xff]  }
 0x1c7   :  { %v778_v3 = vpop.f32.mrf.mxu0 }
 0x1c8   :  { %v956_v13 = vmax.f32 %v777_v32, 0.0  ;;  %v779_v19 = vadd.f32 %v778_v3, %v15225_v44  ;;  %v1083_v59 = vrot.slane %v955_v30, 1  ;;  %v13605_v32 = vld [vmem:[%s22551_s3 + $0x60] ss:$16 sps:$4 sm:$0xff]   ;;  %v1159_v14 = vsel %vm1121_vm2, %v1080_v17, %v1082_v15 }
 0x1c9   :  { %v780_v9 = vpop.f32.mrf.mxu0 }
 0x1ca   :  { %v1084_v12 = vrot.slane %v956_v13, 1  ;;  %v957_v31 = vmax.f32 %v779_v19, 0.0  ;;  %v781_v35 = vadd.f32 %v780_v9, %v15228_v45  ;;  %v16117_v9 = vsel %vm1121_vm2, %v16051_v42, %v16064_v5 }
 0x1cb   :  { %1879 = vmatmul.mubr.bf16.gmra.mxu1 %v13602_v36  ;;  %v784_v49 = vpop.f32.mrf.mxu0  ;;  %v1156_v27 = vsel %vm1121_vm2, %v1081_v34, %v1083_v59 }
 0x1cc   :  { %1888 = vmatprep.mubr.bf16.mxu1 %v13603_v46  ;;  %v1085_v3 = vrot.slane %v957_v31, 1  ;;  %v958_v38 = vmax.f32 %v781_v35, 0.0  ;;  %v785_v48 = vadd.f32 %v784_v49, %v15225_v44  ;;  %v16111_v46 = vsel %vm1121_vm2, %v16033_v56, %v1074_v28 }
 0x1cd   :  { %v786_v36 = vpop.f32.mrf.mxu0  ;;  %v16122_v35 = vsel %vm1121_vm2, %v16073_v51, %v1079_v63  ;;  %v1157_v26 = vsel %vm1121_vm2, %v1082_v15, %v1084_v12 }
 0x1ce   :  { %v1086_v18 = vrot.slane %v958_v38, 1  ;;  %v959_v60 = vmax.f32 %v785_v48, 0.0  ;;  %v787_v19 = vadd.f32 %v786_v36, %v15228_v45  ;;  %v16126_v48 = vsel %vm1121_vm2, %v1076_v8, %v1078_v43 }
 0x1cf   :  { %v788_v49 = vpop.f32.mrf.mxu0  ;;  %v16130_v36 = vsel %vm1121_vm2, %v1074_v28, %v1076_v8  ;;  %v1154_v54 = vsel %vm1121_vm2, %v1083_v59, %v1085_v3  ;;  %v1161_v8 = vsel %vm1121_vm2, %v1078_v43, %v1080_v17  ;;  %v13608_v43 = vld [vmem:[%s22551_s3 + $0x80] ss:$16 sps:$4 sm:$0xff]   ;;  %v1339_v17 = vmax.f32 %v952_v0, %v1159_v14 }
 0x1d0   :  { %v1087_v22 = vrot.slane %v959_v60, 1  ;;  %v960_v52 = vmax.f32 %v787_v19, 0.0  ;;  %v789_v40 = vadd.f32 %v788_v49, %v15225_v44  ;;  %v1155_v4 = vsel %vm1121_vm2, %v1084_v12, %v1086_v18 }
 0x1d1   :  { %v790_v11 = vpop.f32.mrf.mxu0 }
 0x1d2   :  { %v1152_v28 = vsel %vm1121_vm2, %v1085_v3, %v1087_v22  ;;  %v1088_v19 = vrot.slane %v960_v52, 1  ;;  %v961_v49 = vmax.f32 %v789_v40, 0.0  ;;  %v791_v57 = vadd.f32 %v790_v11, %v15228_v45 }
 0x1d3   :  { %1889 = vmatmul.mubr.bf16.gmra.mxu1 %v13605_v32  ;;  %v1158_v32 = vsel %vm1121_vm2, %v1079_v63, %v1081_v34  ;;  %v1344_v1 = vmax.f32 %v957_v31, %v1152_v28  ;;  %v794_v20 = vpop.f32.mrf.mxu0  ;;  %v1342_v63 = vmax.f32 %v955_v30, %v1154_v54  ;;  %v1343_v31 = vmax.f32 %v956_v13, %v1155_v4 }
 0x1d4   :  { %1898 = vmatprep.mubr.bf16.mxu1 %v13606_v23  ;;  %v1089_v12 = vrot.slane %v961_v49, 1  ;;  %v962_v15 = vmax.f32 %v791_v57, 0.0  ;;  %v795_v40 = vadd.f32 %v794_v20, %v15225_v44  ;;  %v1153_v11 = vsel %vm1121_vm2, %v1086_v18, %v1088_v19  ;;  %v13609_v23 = vld [vmem:[%s22551_s3 + $0xa4] ss:$16 sps:$4 sm:$0xff]  }
 0x1d5   :  { %v796_v34 = vpop.f32.mrf.mxu0  ;;  %v1345_v59 = vmax.f32 %v958_v38, %v1153_v11  ;;  %v22913_v3 = vmax.f32 %v16080_v24, 0.0  ;;  %v22914_v18 = vmax.f32 %v16067_v50, 0.0  ;;  %v1488_v4 = vpack.c.bf16 %v1344_v1, %v1342_v63 }
 0x1d6   :  { %v1150_v14 = vsel %vm1121_vm2, %v1087_v22, %v1089_v12  ;;  %v1090_v57 = vrot.slane %v962_v15, 1  ;;  %v963_v0 = vmax.f32 %v795_v40, 0.0  ;;  %v16164_v20 = vadd.f32 %v796_v34, %v15228_v45 }
 0x1d7   :  { %v1341_v28 = vmax.f32 %v22913_v3, %v1157_v26  ;;  %v1340_v62 = vmax.f32 %v22914_v18, %v1156_v27  ;;  %v16168_v47 = vmax.f32 %v959_v60, %v1150_v14  ;;  %v798_v54 = vpop.f32.mrf.mxu0  ;;  %v1489_v30 = vpack.c.bf16 %v1345_v59, %v1343_v31 }
 0x1d8   :  { %v1091_v38 = vrot.slane %v963_v0, 1  ;;  %v22658_v24 = vmax.f32 %v16164_v20, 0.0  ;;  %v799_v26 = vadd.f32 %v798_v54, %v15225_v44  ;;  %v1151_v22 = vsel %vm1121_vm2, %v1088_v19, %v1090_v57 }
 0x1d9   :  { %v22915_v13 = vmax.f32 %v15993_v2, 0.0  ;;  %v16176_v11 = vpop.f32.mrf.mxu0  ;;  %2019 = vmatprep.subr.bf16.mxu1 %v1489_v30  ;;  %v1487_v60 = vpack.c.bf16 %v1341_v28, %v1339_v17  ;;  %v22916_v27 = vmax.f32 %v16039_v61, 0.0  ;;  %v16180_v1 = vmax.f32 %v960_v52, %v1151_v22 }
 0x1da   :  { %v22917_v63 = vmax.f32 %v16055_v16, 0.0  ;;  %v1148_v31 = vsel %vm1121_vm2, %v1089_v12, %v1091_v38  ;;  %v16188_v19 = vrot.slane %v22658_v24, 1  ;;  %v965_v59 = vmax.f32 %v799_v26, 0.0  ;;  %2020 = vmatpush1.bf16.msra.mxu1 %v1488_v4  ;;  %v13611_v12 = vld [vmem:[%s22551_s3 + $0xa0] ss:$16 sps:$4 sm:$0xff]  }
 0x1db   :  { %v1071_v40 = vrot.slane %v22915_v13, 1  ;;  %1899 = vmatmul.mubr.bf16.gmra.mxu1 %v13608_v43  ;;  %v1337_v50 = vmax.f32 %v22916_v27, %v1161_v8  ;;  %v1162_v61 = vsel %vm1121_vm2, %v16064_v5, %v16073_v51  ;;  %v22918_v52 = vmax.f32 %v16020_v55, 0.0  ;;  %2021 = vmatprep.subr.bf16.mxu1 %v1487_v60  ;;  %v13612_v55 = vld [vmem:[%s22551_s3 + $0xc4] ss:$16 sps:$4 sm:$0xff]  }
 0x1dc   :  { %v1338_v34 = vmax.f32 %v22917_v63, %v1158_v32  ;;  %1908 = vmatprep.mubr.bf16.mxu1 %v13609_v23  ;;  %v16197_v8 = vmax.f32 %v961_v49, %v1148_v31  ;;  %v804_v32 = vpop.f32.mrf.mxu0  ;;  %v22919_v43 = vmax.f32 %v16017_v37, 0.0  ;;  %v1093_v23 = vrot.slane %v965_v59, 1  ;;  %v22926_v63 = vld [vmem:[#allocation30_spill] sm:$0xff] }
 0x1dd   :  { %v1336_v16 = vmax.f32 %v22918_v52, %v16122_v35  ;;  %v16206_v3 = vadd.f32 %v804_v32, %v15225_v44  ;;  %v1149_v51 = vsel %vm1121_vm2, %v1090_v57, %v16188_v19  ;;  %v22921_v14 = vmax.f32 %v16003_v58, 0.0 }
 0x1de   :  { %v1335_v17 = vmax.f32 %v22919_v43, %v16126_v48  ;;  %v1486_v5 = vpack.c.bf16 %v1340_v62, %v1338_v34  ;;  %v16214_v35 = vpop.f32.mrf.mxu0  ;;  %v22920_v48 = vmax.f32 %v16000_v21, 0.0  ;;  %v16219_v28 = vmax.f32 %v962_v15, %v1149_v51  ;;  %v22930_v43 = vld [vmem:[#allocation18_spill] sm:$0xff] }
 0x1df   :  { %v1334_v18 = vmax.f32 %v22921_v14, %v1162_v61  ;;  %v1146_v54 = vsel %vm1121_vm2, %v1091_v38, %v1093_v23  ;;  %v22659_v57 = vmax.f32 %v16206_v3, 0.0  ;;  %v1169_v21 = vsel %vm1121_vm2, %v16028_v41, %v16033_v56  ;;  %v22928_v61 = vld [vmem:[#allocation25_spill] sm:$0xff]  ;;  %v22935_v14 = vld [vmem:[#allocation22_spill] sm:$0xff]  ;;  %v22953_v38 = vld [vmem:[#allocation16_spill] sm:$0xff] }
 0x1e0   :  { %v1485_v37 = vpack.c.bf16 %v1337_v50, %v1335_v17  ;;  %v1333_v49 = vmax.f32 %v22920_v48, %v16130_v36  ;;  %2022 = vmatpush1.bf16.msra.mxu1 %v1486_v5  ;;  %v1166_v36 = vsel %vm1121_vm2, %v1071_v40, %v16051_v42  ;;  %v16235_v15 = vmax.f32 %v963_v0, %v1146_v54  ;;  %v16237_v30 = vpop.f32.mrf.mxu0  ;;  %v22931_v17 = vld [vmem:[#allocation35_spill] sm:$0xff]  ;;  %v13615_v48 = vld [vmem:[%s22551_s3 + $0xe4] ss:$16 sps:$4 sm:$0xff]  }
 0x1e1   :  { %v22922_v58 = vmax.f32 %v15974_v53, 0.0  ;;  %v22923_v26 = vmax.f32 %v15997_v10, 0.0  ;;  %v16249_v22 = vrot.slane %v22659_v57, 1  ;;  %v1484_v42 = vpack.c.bf16 %v1336_v16, %v1334_v18 }
 0x1e2   :  { %2023 = vmatprep.subr.bf16.mxu1 %v1485_v37  ;;  %v1171_v0 = vsel %vm1121_vm2, %v16014_v29, %v16028_v41  ;;  %v1168_v53 = vsel %vm1121_vm2, %v16024_v33, %v1071_v40  ;;  %v22924_v10 = vmax.f32 %v15971_v6, 0.0  ;;  %v22925_v60 = vmax.f32 %v15993_v2, 0.0 }
 0x1e3   :  { %v1331_v4 = vmax.f32 %v22922_v58, %v16111_v46  ;;  %v1332_v56 = vmax.f32 %v22923_v26, %v16117_v9  ;;  %v810_v46 = vpop.f32.mrf.mxu0  ;;  %1909 = vmatmul.mubr.bf16.gmra.mxu1 %v13611_v12  ;;  %v1144_v50 = vsel %vm1121_vm2, %v1093_v23, %v16249_v22  ;;  %v1173_v41 = vsel %vm1121_vm2, %v16010_v25, %v16014_v29  ;;  %v13614_v29 = vld [vmem:[%s22551_s3 + $0xc0] ss:$16 sps:$4 sm:$0xff]  }
 0x1e4   :  { %v1329_v9 = vmax.f32 %v22924_v10, %v1169_v21  ;;  %v1330_v27 = vmax.f32 %v22925_v60, %v1166_v36  ;;  %2024 = vmatpush1.bf16.msra.mxu1 %v1484_v42  ;;  %1918 = vmatprep.mubr.bf16.mxu1 %v13612_v55  ;;  %v1170_v6 = vsel %vm1121_vm2, %v15946_v7, %v16024_v33  ;;  %v22927_v34 = vmax.f32 %v22926_v63, 0.0  ;;  %v22933_v55 = vld [vmem:[#allocation17_spill] sm:$0xff]  ;;  %v13617_v26 = vld [vmem:[%s22551_s3 + $0xe0] ss:$16 sps:$4 sm:$0xff]  }
 0x1e5   :  { %v1483_v13 = vpack.c.bf16 %v1333_v49, %v1331_v4  ;;  %v16273_v40 = vmax.f32 %v965_v59, %v1144_v50  ;;  %v814_v2 = vpop.f32.mrf.mxu0  ;;  %v22929_v52 = vmax.f32 %v22928_v61, 0.0  ;;  %v1175_v7 = vsel %vm1121_vm2, %v22930_v43, %v16010_v25  ;;  %v22938_v42 = vld [vmem:[#allocation37_spill] sm:$0xff]  ;;  %v22940_v10 = vld [vmem:[#allocation40_spill] sm:$0xff]  ;;  %v22943_v50 = vld [vmem:[#allocation19_spill] sm:$0xff] }
 0x1e6   :  { %v1327_v31 = vmax.f32 %v22927_v34, %v1171_v0  ;;  %v1482_v32 = vpack.c.bf16 %v1332_v56, %v1330_v27  ;;  %v22932_v12 = vmax.f32 %v22931_v17, 0.0  ;;  %v22934_v51 = vmax.f32 %v22933_v55, 0.0  ;;  %v22937_v56 = vld [vmem:[#allocation28_spill] sm:$0xff] }
 0x1e7   :  { %2025 = vmatprep.subr.bf16.mxu1 %v1483_v13  ;;  %v1328_v16 = vmax.f32 %v22929_v52, %v1168_v53  ;;  %v816_v33 = vpop.f32.mrf.mxu0  ;;  %v22936_v25 = vmax.f32 %v22935_v14, 0.0  ;;  %v22939_v0 = vpack.c.bf16 %v22937_v56, %v22938_v42  ;;  %v13618_v53 = vld [vmem:[%s22551_s3 + $0x104] ss:$16 sps:$4 sm:$0xff]   ;;  %v13623_v55 = vld [vmem:[%s22551_s3 + $0x120] ss:$16 sps:$4 sm:$0xff]   ;;  %v16335_v14 = vadd.f32 %v810_v46, %v15228_v45 }
 0x1e8   :  { %v1481_v59 = vpack.c.bf16 %v1329_v9, %v1327_v31  ;;  %v1325_v23 = vmax.f32 %v22932_v12, %v1173_v41  ;;  %v1326_v37 = vmax.f32 %v22934_v51, %v1170_v6  ;;  %2026 = vmatpush1.bf16.msra.mxu1 %v1482_v32  ;;  %v22941_v9 = vld [vmem:[#allocation21_spill] sm:$0xff]  ;;  %v22944_v41 = vld [vmem:[#allocation20_spill] sm:$0xff]  ;;  %v22947_v31 = vld [vmem:[#allocation26_spill] sm:$0xff]  ;;  %v16352_v46 = vadd.f32 %v16214_v35, %v15228_v45 }
 0x1e9   :  { %v818_v49 = vpop.f32.mrf.mxu0  ;;  %v1323_v18 = vmax.f32 %v22936_v25, %v1175_v7  ;;  %v22942_v60 = vpack.c.bf16 %v22940_v10, %v22941_v9  ;;  %v22945_v6 = vpack.c.bf16 %v22943_v50, %v22944_v41  ;;  %v22946_v34 = vld [vmem:[#allocation24_spill] sm:$0xff]  ;;  %v22949_v32 = vld [vmem:[#allocation23_spill] sm:$0xff]  ;;  %v16338_v25 = vadd.f32 %v814_v2, %v15225_v44 }
 0x1ea   :  { %2027 = vmatprep.subr.bf16.mxu1 %v1481_v59  ;;  %v1480_v54 = vpack.c.bf16 %v1328_v16, %v1326_v37  ;;  %v22948_v61 = vpack.c.bf16 %v22946_v34, %v22947_v31  ;;  %v13620_v16 = vld [vmem:[%s22551_s3 + $0x100] ss:$16 sps:$4 sm:$0xff]   ;;  %v13621_v7 = vld [vmem:[%s22551_s3 + $0x124] ss:$16 sps:$4 sm:$0xff]   ;;  %v16332_v37 = vadd.f32 %v16176_v11, %v15228_v45  ;;  %v16356_v2 = vadd.f32 %v16237_v30, %v15225_v44 }
 0x1eb   :  { %v820_v21 = vpop.f32.mrf.mxu0  ;;  %1919 = vmatmul.mubr.bf16.gmra.mxu1 %v13614_v29  ;;  %v1479_v36 = vpack.c.bf16 %v1325_v23, %v1323_v18  ;;  %v22950_v29 = vld [vmem:[#allocation27_spill] sm:$0xff]  ;;  %v13624_v51 = vld [vmem:[%s22551_s3 + $0x144] ss:$16 sps:$4 sm:$0xff]   ;;  %v13626_v30 = vld [vmem:[%s22551_s3 + $0x140] ss:$16 sps:$4 sm:$0xff]  }
 0x1ec   :  { %2028 = vmatpush1.bf16.msra.mxu1 %v1480_v54  ;;  %1928 = vmatprep.mubr.bf16.mxu1 %v13615_v48  ;;  %v22951_v43 = vpack.c.bf16 %v22949_v32, %v22950_v29  ;;  %v16341_v54 = vadd.f32 %v820_v21, %v15228_v45  ;;  %v970_v21 = vmax.f32 %v16335_v14, 0.0 }
 0x1ed   :  { %v824_v58 = vpop.f32.mrf.mxu0  ;;  %2029 = vmatprep.subr.bf16.mxu1 %v1479_v36 }
 0x1ee   :  { %v16344_v36 = vadd.f32 %v824_v58, %v15225_v44  ;;  %v974_v9 = vmax.f32 %v16341_v54, 0.0  ;;  %v22955_v54 = vmax.f32 %v16332_v37, 0.0  ;;  %v22960_v37 = vpack.c.bf16 %v16273_v40, %v16235_v15  ;;  %v13645_v15 = vld [vmem:[%s22551_s3 + $0x2c] ss:$16 sps:$4 sm:$0xff]   ;;  %v13650_v40 = vld [vmem:[%s22551_s3 + $0x48] ss:$16 sps:$4 sm:$0xff]  }
 0x1ef   :  { %v826_v4 = vpop.f32.mrf.mxu0 }
 0x1f0   :  { %2030 = vmatpush1.bf16.msra.mxu1 %v22939_v0  ;;  %v16362_v0 = vadd.f32 %v816_v33, %v15228_v45  ;;  %v16376_v50 = vadd.f32 %v826_v4, %v15228_v45 }
 0x1f1   :  { %v828_v13 = vpop.f32.mrf.mxu0  ;;  %2031 = vmatprep.subr.bf16.mxu1 %v22942_v60  ;;  %v975_v60 = vmax.f32 %v16344_v36, 0.0 }
 0x1f2   :  { %v976_v42 = vmax.f32 %v16376_v50, 0.0 }
 0x1f3   :  { %v830_v27 = vpop.f32.mrf.mxu0  ;;  %1929 = vmatmul.mubr.bf16.gmra.mxu1 %v13617_v26 }
 0x1f4   :  { %2032 = vmatpush1.bf16.msra.mxu1 %v22945_v6  ;;  %1938 = vmatprep.mubr.bf16.mxu1 %v13618_v53  ;;  %v16365_v53 = vadd.f32 %v818_v49, %v15225_v44  ;;  %v13627_v49 = vld [vmem:[%s22551_s3 + $0x164] ss:$16 sps:$4 sm:$0xff]   ;;  %v16391_v4 = vadd.f32 %v830_v27, %v15228_v45  ;;  %v16405_v27 = vadd.f32 %v828_v13, %v15225_v44 }
 0x1f5   :  { %v834_v63 = vpop.f32.mrf.mxu0  ;;  %2033 = vmatprep.subr.bf16.mxu1 %v22948_v61 }
 0x1f7   :  { %v836_v52 = vpop.f32.mrf.mxu0 }
 0x1f8   :  { %2034 = vmatpush1.bf16.msra.mxu1 %v22951_v43  ;;  %v16395_v43 = vadd.f32 %v834_v63, %v15225_v44 }
 0x1f9   :  { %v838_v59 = vpop.f32.mrf.mxu0 }
 0x1fb   :  { %v840_v17 = vpop.f32.mrf.mxu0  ;;  %1939 = vmatmul.mubr.bf16.gmra.mxu1 %v13620_v16 }
 0x1fc   :  { %1948 = vmatprep.mubr.bf16.mxu1 %v13621_v7  ;;  %v16383_v41 = vadd.f32 %v840_v17, %v15228_v45  ;;  %v16398_v7 = vadd.f32 %v836_v52, %v15228_v45  ;;  %v16401_v17 = vadd.f32 %v838_v59, %v15225_v44  ;;  %v978_v59 = vmax.f32 %v16391_v4, 0.0 }
 0x1fd   :  { %v844_v12 = vpop.f32.mrf.mxu0 }
 0x1fe   :  { %v16386_v6 = vadd.f32 %v844_v12, %v15225_v44  ;;  %v982_v63 = vmax.f32 %v16383_v41, 0.0  ;;  %v981_v13 = vmax.f32 %v16401_v17, 0.0 }
 0x1ff   :  { %v846_v23 = vpop.f32.mrf.mxu0 }
 0x200   :  { %v16368_v10 = vadd.f32 %v846_v23, %v15228_v45  ;;  %v983_v52 = vmax.f32 %v16386_v6, 0.0 }
 0x201   :  { %v848_v48 = vpop.f32.mrf.mxu0 }
 0x202   :  { %v849_v34 = vadd.f32 %v848_v48, %v15225_v44  ;;  %v984_v12 = vmax.f32 %v16368_v10, 0.0 }
 0x203   :  { %v850_v18 = vpop.f32.mrf.mxu0  ;;  %1949 = vmatmul.mubr.bf16.gmra.mxu1 %v13623_v55 }
 0x204   :  { %1958 = vmatprep.mubr.bf16.mxu1 %v13624_v51  ;;  %v16348_v11 = vadd.f32 %v850_v18, %v15228_v45  ;;  %v985_v18 = vmax.f32 %v849_v34, 0.0 }
 0x205   :  { %v854_v56 = vpop.f32.mrf.mxu0 }
 0x206   :  { %v855_v58 = vadd.f32 %v854_v56, %v15225_v44  ;;  %v986_v31 = vmax.f32 %v16348_v11, 0.0  ;;  %v1113_v17 = vrot.slane %v985_v18, 1 }
 0x207   :  { %v856_v35 = vpop.f32.mrf.mxu0 }
 0x208   :  { %v857_v33 = vadd.f32 %v856_v35, %v15228_v45  ;;  %v987_v16 = vmax.f32 %v855_v58, 0.0  ;;  %v1114_v11 = vrot.slane %v986_v31, 1  ;;  %v979_v35 = vmax.f32 %v16395_v43, 0.0 }
 0x209   :  { %v858_v61 = vpop.f32.mrf.mxu0 }
 0x20a   :  { %v988_v32 = vmax.f32 %v857_v33, 0.0  ;;  %v859_v29 = vadd.f32 %v858_v61, %v15225_v44  ;;  %v1115_v56 = vrot.slane %v987_v16, 1  ;;  %v980_v44 = vmax.f32 %v16398_v7, 0.0  ;;  %v13630_v61 = vld [vmem:[%s22551_s3 + $0x184] ss:$16 sps:$4 sm:$0xff]  }
 0x20b   :  { %v860_v23 = vpop.f32.mrf.mxu0  ;;  %1959 = vmatmul.mubr.bf16.gmra.mxu1 %v13626_v30  ;;  %v1112_v30 = vrot.slane %v984_v12, 1  ;;  %v1111_v7 = vrot.slane %v983_v52, 1 }
 0x20c   :  { %v1116_v55 = vrot.slane %v988_v32, 1  ;;  %v989_v51 = vmax.f32 %v859_v29, 0.0  ;;  %v861_v48 = vadd.f32 %v860_v23, %v15228_v45  ;;  %1968 = vmatprep.mubr.bf16.mxu1 %v13627_v49  ;;  %v13629_v45 = vld [vmem:[%s22551_s3 + $0x160] ss:$16 sps:$4 sm:$0xff]   ;;  %v22952_v49 = vld [vmem:[#allocation15_spill] sm:$0xff]  ;;  %v1110_v29 = vrot.slane %v982_v63, 1 }
 0x20d   :  { %v1127_v23 = vsel %vm1121_vm2, %v1112_v30, %v1114_v11  ;;  %v1124_v5 = vsel %vm1121_vm2, %v1113_v17, %v1115_v56 }
 0x20e   :  { %v1117_v58 = vrot.slane %v989_v51, 1  ;;  %v990_v10 = vmax.f32 %v861_v48, 0.0  ;;  %v1125_v34 = vsel %vm1121_vm2, %v1114_v11, %v1116_v55  ;;  %v977_v11 = vmax.f32 %v16405_v27, 0.0 }
 0x20f   :  { %v1373_v26 = vmax.f32 %v986_v31, %v1125_v34  ;;  %v1107_v27 = vrot.slane %v979_v35, 1 }
 0x210   :  { %v1122_v33 = vsel %vm1121_vm2, %v1115_v56, %v1117_v58  ;;  %v1248_v41 = vsel %vm1121_vm2, %v1117_v58, %v22952_v49  ;;  %v1118_v6 = vrot.slane %v990_v10, 1  ;;  %v1106_v56 = vrot.slane %v978_v59, 1 }
 0x211   :  { %v1374_v48 = vmax.f32 %v987_v16, %v1122_v33  ;;  %v1376_v62 = vmax.f32 %v989_v51, %v1248_v41  ;;  %v1108_v16 = vrot.slane %v980_v44, 1  ;;  %v1129_v51 = vsel %vm1121_vm2, %v1110_v29, %v1112_v30 }
 0x212   :  { %v1249_v58 = vsel %vm1121_vm2, %v1118_v6, %v22953_v38  ;;  %v1123_v49 = vsel %vm1121_vm2, %v1116_v55, %v1118_v6  ;;  %v1109_v38 = vrot.slane %v981_v13, 1  ;;  %v1126_v55 = vsel %vm1121_vm2, %v1111_v7, %v1113_v17 }
 0x213   :  { %v1377_v24 = vmax.f32 %v990_v10, %v1249_v58  ;;  %1969 = vmatmul.mubr.bf16.gmra.mxu1 %v13629_v45  ;;  %v1375_v57 = vmax.f32 %v988_v32, %v1123_v49  ;;  %v1371_v41 = vmax.f32 %v984_v12, %v1127_v23  ;;  %v1372_v32 = vmax.f32 %v985_v18, %v1124_v5  ;;  %v13633_v45 = vld [vmem:[%s22551_s3 + $0x1a4] ss:$16 sps:$4 sm:$0xff]  }
 0x214   :  { %1978 = vmatprep.mubr.bf16.mxu1 %v13630_v61  ;;  %v1504_v31 = vpack.c.bf16 %v1376_v62, %v1374_v48  ;;  %v1131_v50 = vsel %vm1121_vm2, %v1108_v16, %v1110_v29  ;;  %v1128_v10 = vsel %vm1121_vm2, %v1109_v38, %v1111_v7  ;;  %v972_v12 = vmax.f32 %v16362_v0, 0.0 }
 0x215   :  { %v1505_v33 = vpack.c.bf16 %v1377_v24, %v1375_v57  ;;  %v1503_v30 = vpack.c.bf16 %v1373_v26, %v1371_v41  ;;  %v13632_v24 = vld [vmem:[%s22551_s3 + $0x180] ss:$16 sps:$4 sm:$0xff]   ;;  %v1369_v57 = vmax.f32 %v982_v63, %v1129_v51  ;;  %v1104_v5 = vrot.slane %v976_v42, 1 }
 0x216   :  { %v1370_v62 = vmax.f32 %v983_v52, %v1126_v55  ;;  %v1133_v18 = vsel %vm1121_vm2, %v1106_v56, %v1108_v16  ;;  %v973_v6 = vmax.f32 %v16365_v53, 0.0  ;;  %v1105_v26 = vrot.slane %v977_v11, 1  ;;  %v13635_v41 = vld [vmem:[%s22551_s3 + $0x1a0] ss:$16 sps:$4 sm:$0xff]  }
 0x217   :  { %2035 = vmatprep.subr.bf16.mxu1 %v1505_v33  ;;  %v1130_v34 = vsel %vm1121_vm2, %v1107_v27, %v1109_v38  ;;  %v1367_v63 = vmax.f32 %v980_v44, %v1131_v50  ;;  %v1102_v0 = vrot.slane %v974_v9, 1  ;;  %v1368_v52 = vmax.f32 %v981_v13, %v1128_v10 }
 0x218   :  { %2036 = vmatpush2.bf16.msra.mxu1 %v1504_v31  ;;  %v1502_v61 = vpack.c.bf16 %v1372_v32, %v1370_v62  ;;  %v1135_v29 = vsel %vm1121_vm2, %v1104_v5, %v1106_v56  ;;  %v1103_v7 = vrot.slane %v975_v60, 1  ;;  %v1132_v53 = vsel %vm1121_vm2, %v1105_v26, %v1107_v27  ;;  %v13636_v31 = vld [vmem:[%s22551_s3 + $0x1c4] ss:$16 sps:$4 sm:$0xff]   ;;  %v13685_v62 = vld [vmem:[%s22552_s4 + $0x38] sm:$0xff]  }
 0x219   :  { %2037 = vmatprep.subr.bf16.mxu1 %v1503_v30  ;;  %v1501_v17 = vpack.c.bf16 %v1369_v57, %v1367_v63  ;;  %v1365_v23 = vmax.f32 %v978_v59, %v1133_v18  ;;  %v968_v44 = vmax.f32 %v16352_v46, 0.0  ;;  %v1100_v48 = vrot.slane %v972_v12, 1 }
 0x21a   :  { %v1366_v13 = vmax.f32 %v979_v35, %v1130_v34  ;;  %v1137_v58 = vsel %vm1121_vm2, %v1102_v0, %v1104_v5  ;;  %v969_v49 = vmax.f32 %v16356_v2, 0.0  ;;  %v1101_v16 = vrot.slane %v973_v6, 1 }
 0x21b   :  { %1979 = vmatmul.mubr.bf16.gmra.mxu1 %v13632_v24  ;;  %v1134_v51 = vsel %vm1121_vm2, %v1103_v7, %v1105_v26  ;;  %v1363_v4 = vmax.f32 %v976_v42, %v1135_v29  ;;  %v1098_v46 = vrot.slane %v970_v21, 1  ;;  %v1364_v59 = vmax.f32 %v977_v11, %v1132_v53 }
 0x21c   :  { %2038 = vmatpush2.bf16.msra.mxu1 %v1502_v61  ;;  %1988 = vmatprep.mubr.bf16.mxu1 %v13633_v45  ;;  %v1500_v38 = vpack.c.bf16 %v1368_v52, %v1366_v13  ;;  %v1139_v43 = vsel %vm1121_vm2, %v1100_v48, %v1102_v0  ;;  %v22954_v35 = vmax.f32 %v16338_v25, 0.0  ;;  %v1136_v2 = vsel %vm1121_vm2, %v1101_v16, %v1103_v7  ;;  %v13638_v0 = vld [vmem:[%s22551_s3 + $0x1c0] ss:$16 sps:$4 sm:$0xff]   ;;  %v13639_v7 = vld [vmem:[%s22551_s3 + $0x1e4] ss:$16 sps:$4 sm:$0xff]  }
 0x21d   :  { %2039 = vmatprep.subr.bf16.mxu1 %v1501_v17  ;;  %v1499_v33 = vpack.c.bf16 %v1365_v23, %v1363_v4  ;;  %v1361_v42 = vmax.f32 %v974_v9, %v1137_v58  ;;  %v1096_v56 = vrot.slane %v968_v44, 1  ;;  %v1362_v11 = vmax.f32 %v975_v60, %v1134_v51  ;;  %v13642_v13 = vld [vmem:[%s22551_s3 + $0x8] ss:$16 sps:$4 sm:$0xff]   ;;  %v13651_v58 = vld [vmem:[%s22551_s3 + $0x6c] ss:$16 sps:$4 sm:$0xff]  }
 0x21e   :  { %v1099_v55 = vrot.slane %v22954_v35, 1  ;;  %v1141_v32 = vsel %vm1121_vm2, %v1098_v46, %v1100_v48  ;;  %v1097_v50 = vrot.slane %v969_v49, 1  ;;  %v1359_v10 = vmax.f32 %v972_v12, %v1139_v43  ;;  %v13684_v12 = vld [vmem:[%s22552_s4 + $0x78] sm:$0xff]   ;;  %v13695_v43 = vld [vmem:[%s22552_s4 + $0x28] sm:$0xff]  }
 0x21f   :  { %v1094_v9 = vrot.slane %v22955_v54, 1  ;;  %v1360_v30 = vmax.f32 %v973_v6, %v1136_v2  ;;  %v1498_v36 = vpack.c.bf16 %v1364_v59, %v1362_v11  ;;  %v1143_v60 = vsel %vm1121_vm2, %v1096_v56, %v1098_v46  ;;  %12850 = vmatprep.subr.bf16.mxu0 %v13684_v12  ;;  %v13656_v51 = vld [vmem:[%s22551_s3 + $0x88] ss:$16 sps:$4 sm:$0xff]   ;;  %v13657_v4 = vld [vmem:[%s22551_s3 + $0xac] ss:$16 sps:$4 sm:$0xff]  }
 0x220   :  { %2040 = vmatpush2.bf16.msra.mxu1 %v1500_v38  ;;  %v1138_v27 = vsel %vm1121_vm2, %v1099_v55, %v1101_v16  ;;  %v1140_v24 = vsel %vm1121_vm2, %v1097_v50, %v1099_v55  ;;  %v1497_v57 = vpack.c.bf16 %v1361_v42, %v1359_v10  ;;  %v1357_v5 = vmax.f32 %v970_v21, %v1141_v32  ;;  %v13654_v16 = vld [vmem:[%s22551_s3 + $0x8c] ss:$16 sps:$4 sm:$0xff]   ;;  %v13659_v46 = vld [vmem:[%s22551_s3 + $0xa8] ss:$16 sps:$4 sm:$0xff]  }
 0x221   :  { %2041 = vmatprep.subr.bf16.mxu1 %v1499_v33  ;;  %v22956_v18 = vmov %v22954_v35  ;;  %v1145_v6 = vsel %vm1121_vm2, %v1094_v9, %v1096_v56  ;;  %v1142_v14 = vsel %vm1121_vm2, %v16249_v22, %v1097_v50  ;;  %v1355_v21 = vmax.f32 %v968_v44, %v1143_v60  ;;  %12851 = vmatpush3.bf16.msra.mxu0 %v13685_v62  ;;  %v13644_v44 = vld [vmem:[%s22551_s3 + $0xc] ss:$16 sps:$4 sm:$0xff]   ;;  %v13662_v35 = vld [vmem:[%s22551_s3 + $0xc8] ss:$16 sps:$4 sm:$0xff]  }
 0x222   :  { %v1358_v45 = vmax.f32 %v22956_v18, %v1138_v27  ;;  %v1356_v26 = vmax.f32 %v969_v49, %v1140_v24  ;;  %v1147_v63 = vsel %vm1121_vm2, %v16188_v19, %v1094_v9  ;;  %v22957_v52 = vmov %v22955_v54  ;;  %v13653_v49 = vld [vmem:[%s22551_s3 + $0x68] ss:$16 sps:$4 sm:$0xff]   ;;  %v13660_v59 = vld [vmem:[%s22551_s3 + $0xcc] ss:$16 sps:$4 sm:$0xff]   ;;  %v13696_v54 = vld [vmem:[%s22552_s4 + $0x60] sm:$0xff]  }
 0x223   :  { %1989 = vmatmul.mubr.bf16.gmra.mxu1 %v13635_v41  ;;  %v1495_v25 = vpack.c.bf16 %v1357_v5, %v1355_v21  ;;  %v1353_v61 = vmax.f32 %v22957_v52, %v1145_v6  ;;  %v22958_v22 = vmax.f32 %v16206_v3, 0.0  ;;  %v22959_v19 = vmax.f32 %v16164_v20, 0.0  ;;  %v13641_v3 = vld [vmem:[%s22551_s3 + $0x1e0] ss:$16 sps:$4 sm:$0xff]   ;;  %v13694_v38 = vld [vmem:[%s22552_s4 + $0x68] sm:$0xff]  }
 0x224   :  { %2042 = vmatpush2.bf16.msra.mxu1 %v1498_v36  ;;  %1998 = vmatprep.mubr.bf16.mxu1 %v13636_v31  ;;  %v1496_v34 = vpack.c.bf16 %v1360_v30, %v1358_v45  ;;  %v22961_v20 = vpack.c.bf16 %v16219_v28, %v16180_v1  ;;  %v22962_v48 = vpack.c.bf16 %v16197_v8, %v16168_v47  ;;  %v13647_v1 = vld [vmem:[%s22551_s3 + $0x28] ss:$16 sps:$4 sm:$0xff]   ;;  %v13648_v47 = vld [vmem:[%s22551_s3 + $0x4c] ss:$16 sps:$4 sm:$0xff]   ;;  %v13692_v8 = vld [vmem:[%s22552_s4 + $0x70] sm:$0xff]  }
 0x225   :  { %2043 = vmatprep.subr.bf16.mxu1 %v1497_v57  ;;  %v1354_v29 = vmax.f32 %v22958_v22, %v1142_v14  ;;  %v1351_v53 = vmax.f32 %v22959_v19, %v1147_v63  ;;  %v13693_v28 = vld [vmem:[%s22552_s4 + $0x30] sm:$0xff]   ;;  %12852 = vmatprep.subr.bf16.mxu0 %v13692_v8  ;;  %v13663_v55 = vld [vmem:[%s22551_s3 + $0xec] ss:$16 sps:$4 sm:$0xff]   ;;  %v13665_v2 = vld [vmem:[%s22551_s3 + $0xe8] ss:$16 sps:$4 sm:$0xff]  }
 0x226   :  { %12853 = vmatpush3.bf16.msra.mxu0 %v13693_v28  ;;  %v13666_v33 = vld [vmem:[%s22551_s3 + $0x10c] ss:$16 sps:$4 sm:$0xff]   ;;  %v13668_v41 = vld [vmem:[%s22551_s3 + $0x108] ss:$16 sps:$4 sm:$0xff]   ;;  %v13697_v9 = vld [vmem:[%s22552_s4 + $0x20] sm:$0xff]  }
 0x227   :  { %v1494_v17 = vpack.c.bf16 %v1356_v26, %v1354_v29  ;;  %v1493_v23 = vpack.c.bf16 %v1353_v61, %v1351_v53  ;;  %12854 = vmatprep.subr.bf16.mxu0 %v13694_v38  ;;  %v13669_v42 = vld [vmem:[%s22551_s3 + $0x12c] ss:$16 sps:$4 sm:$0xff]   ;;  %v13671_v31 = vld [vmem:[%s22551_s3 + $0x128] ss:$16 sps:$4 sm:$0xff]   ;;  %v13701_v38 = vld [vmem:[%s22552_s4 + $0x10] sm:$0xff]  }
 0x228   :  { %2044 = vmatpush2.bf16.msra.mxu1 %v1496_v34  ;;  %v13672_v50 = vld [vmem:[%s22551_s3 + $0x14c] ss:$16 sps:$4 sm:$0xff]   ;;  %v13674_v60 = vld [vmem:[%s22551_s3 + $0x148] ss:$16 sps:$4 sm:$0xff]  }
 0x229   :  { %2045 = vmatprep.subr.bf16.mxu1 %v1495_v25  ;;  %v13675_v24 = vld [vmem:[%s22551_s3 + $0x16c] ss:$16 sps:$4 sm:$0xff]   ;;  %v13677_v18 = vld [vmem:[%s22551_s3 + $0x168] ss:$16 sps:$4 sm:$0xff]  }
 0x22a   :  { %12855 = vmatpush3.bf16.msra.mxu0 %v13695_v43  ;;  %v13680_v45 = vld [vmem:[%s22551_s3 + $0x18c] ss:$16 sps:$4 sm:$0xff]   ;;  %v13678_v34 = vld [vmem:[%s22551_s3 + $0x188] ss:$16 sps:$4 sm:$0xff]  }
 0x22b   :  { %1999 = vmatmul.mubr.bf16.gmra.mxu1 %v13638_v0  ;;  %12856 = vmatprep.subr.bf16.mxu0 %v13696_v54  ;;  %v13683_v63 = vld [vmem:[%s22551_s3 + $0x1ac] ss:$16 sps:$4 sm:$0xff]   ;;  %v13681_v22 = vld [vmem:[%s22551_s3 + $0x1a8] ss:$16 sps:$4 sm:$0xff]  }
 0x22c   :  { %2046 = vmatpush2.bf16.msra.mxu1 %v1494_v17  ;;  %2008 = vmatprep.mubr.bf16.mxu1 %v13639_v7  ;;  %v13688_v29 = vld [vmem:[%s22551_s3 + $0x1cc] ss:$16 sps:$4 sm:$0xff]  }
 0x22d   :  { %2047 = vmatprep.subr.bf16.mxu1 %v1493_v23  ;;  %v13698_v53 = vld [vmem:[%s22552_s4 + $0x58] sm:$0xff]  }
 0x22e   :  { %12857 = vmatpush3.bf16.msra.mxu0 %v13697_v9  ;;  %v13699_v17 = vld [vmem:[%s22552_s4 + $0x18] sm:$0xff]  }
 0x22f   :  { %12858 = vmatprep.subr.bf16.mxu0 %v13698_v53 }
 0x230   :  { %2048 = vmatpush2.bf16.msra.mxu1 %v22960_v37  ;;  %v13686_v37 = vld [vmem:[%s22551_s3 + $0x1c8] ss:$16 sps:$4 sm:$0xff]  }
 0x231   :  { %2049 = vmatprep.subr.bf16.mxu1 %v22961_v20 }
 0x232   :  { %12859 = vmatpush3.bf16.msra.mxu0 %v13699_v17 }
 0x233   :  { %2009 = vmatmul.mubr.bf16.gmra.mxu1 %v13641_v3 }
 0x234   :  { %2050 = vmatpush2.bf16.msra.mxu1 %v22962_v48  ;;  %2051 = vmatprep.mubr.bf16.mxu1 %v13644_v44  ;;  %v13691_v44 = vld [vmem:[%s22551_s3 + $0x1ec] ss:$16 sps:$4 sm:$0xff]  }
 0x23b   :  { %2052 = vmatmul.mubr.bf16.vlgmr.msra.gmra.mxu1 %v13642_v13 }
 0x23c   :  { %2061 = vmatprep.mubr.bf16.mxu1 %v13645_v15 }
 0x243   :  { %2062 = vmatmul.mubr.bf16.gmra.mxu1 %v13647_v1  ;;  %v13689_v1 = vld [vmem:[%s22551_s3 + $0x1e8] ss:$16 sps:$4 sm:$0xff]  }
 0x244   :  { %2071 = vmatprep.mubr.bf16.mxu1 %v13648_v47 }
 0x24b   :  { %2072 = vmatmul.mubr.bf16.gmra.mxu1 %v13650_v40 }
 0x24c   :  { %2081 = vmatprep.mubr.bf16.mxu1 %v13651_v58 }
 0x253   :  { %2082 = vmatmul.mubr.bf16.gmra.mxu1 %v13653_v49 }
 0x254   :  { %2091 = vmatprep.mubr.bf16.mxu1 %v13654_v16 }
 0x25b   :  { %2092 = vmatmul.mubr.bf16.gmra.mxu1 %v13656_v51 }
 0x25c   :  { %2101 = vmatprep.mubr.bf16.mxu1 %v13657_v4 }
 0x263   :  { %2102 = vmatmul.mubr.bf16.gmra.mxu1 %v13659_v46 }
 0x264   :  { %2111 = vmatprep.mubr.bf16.mxu1 %v13660_v59  ;;  %v13700_v59 = vld [vmem:[%s22552_s4 + $0x50] sm:$0xff]  }
 0x265   :  { %12860 = vmatprep.subr.bf16.mxu0 %v13700_v59 }
 0x266   :  { %12861 = vmatpush3.bf16.msra.mxu0 %v13701_v38 }
 0x26b   :  { %2112 = vmatmul.mubr.bf16.gmra.mxu1 %v13662_v35 }
 0x26c   :  { %2121 = vmatprep.mubr.bf16.mxu1 %v13663_v55 }
 0x273   :  { %2122 = vmatmul.mubr.bf16.gmra.mxu1 %v13665_v2 }
 0x274   :  { %2131 = vmatprep.mubr.bf16.mxu1 %v13666_v33 }
 0x27b   :  { %v16619_v56 = vpop.f32.mrf.mxu1  ;;  %2132 = vmatmul.mubr.bf16.gmra.mxu1 %v13668_v41 }
 0x27c   :  { %2141 = vmatprep.mubr.bf16.mxu1 %v13669_v42 }
 0x27d   :  { %v16621_v11 = vpop.f32.mrf.mxu1 }
 0x27f   :  { %v16623_v32 = vpop.f32.mrf.mxu1 }
 0x281   :  { %v16631_v27 = vpop.f32.mrf.mxu1 }
 0x283   :  { %v16633_v10 = vpop.f32.mrf.mxu1  ;;  %2142 = vmatmul.mubr.bf16.gmra.mxu1 %v13671_v31 }
 0x284   :  { %2151 = vmatprep.mubr.bf16.mxu1 %v13672_v50 }
 0x285   :  { %v16641_v30 = vpop.f32.mrf.mxu1 }
 0x287   :  { %v16643_v36 = vpop.f32.mrf.mxu1 }
 0x289   :  { %v16651_v57 = vpop.f32.mrf.mxu1 }
 0x28b   :  { %v16653_v5 = vpop.f32.mrf.mxu1  ;;  %2152 = vmatmul.mubr.bf16.gmra.mxu1 %v13674_v60 }
 0x28c   :  { %2161 = vmatprep.mubr.bf16.mxu1 %v13675_v24 }
 0x28d   :  { %v16655_v12 = vpop.f32.mrf.mxu1 }
 0x28f   :  { %v16657_v62 = vpop.f32.mrf.mxu1 }
 0x291   :  { %v16665_v6 = vpop.f32.mrf.mxu1 }
 0x293   :  { %v16667_v14 = vpop.f32.mrf.mxu1  ;;  %2162 = vmatmul.mubr.bf16.gmra.mxu1 %v13677_v18 }
 0x294   :  { %2171 = vmatprep.mubr.bf16.mxu1 %v13680_v45 }
 0x295   :  { %v16669_v21 = vpop.f32.mrf.mxu1 }
 0x297   :  { %v16671_v26 = vpop.f32.mrf.mxu1 }
 0x299   :  { %v16679_v25 = vpop.f32.mrf.mxu1 }
 0x29b   :  { %v16681_v0 = vpop.f32.mrf.mxu1  ;;  %2172 = vmatmul.mubr.bf16.gmra.mxu1 %v13678_v34 }
 0x29c   :  { %2181 = vmatprep.mubr.bf16.mxu1 %v13683_v63  ;;  %v13702_v63 = vld [vmem:[%s22552_s4 + $0x48] sm:$0xff]  }
 0x29d   :  { %v16683_v52 = vpop.f32.mrf.mxu1  ;;  %12862 = vmatprep.subr.bf16.mxu0 %v13702_v63 }
 0x29f   :  { %v16685_v61 = vpop.f32.mrf.mxu1 }
 0x2a1   :  { %v16693_v7 = vpop.f32.mrf.mxu1 }
 0x2a3   :  { %v16695_v19 = vpop.f32.mrf.mxu1  ;;  %2182 = vmatmul.mubr.bf16.gmra.mxu1 %v13681_v22  ;;  %v13703_v22 = vld [vmem:[%s22552_s4 + $0x8] sm:$0xff]  }
 0x2a4   :  { %2191 = vmatprep.mubr.bf16.mxu1 %v13688_v29  ;;  %12863 = vmatpush3.bf16.msra.mxu0 %v13703_v22 }
 0x2a5   :  { %v16703_v23 = vpop.f32.mrf.mxu1 }
 0x2a7   :  { %v16705_v3 = vpop.f32.mrf.mxu1 }
 0x2a9   :  { %v16713_v20 = vpop.f32.mrf.mxu1 }
 0x2ab   :  { %v16715_v48 = vpop.f32.mrf.mxu1  ;;  %2192 = vmatmul.mubr.bf16.gmra.mxu1 %v13686_v37 }
 0x2ac   :  { %2201 = vmatprep.mubr.bf16.mxu1 %v13691_v44 }
 0x2ad   :  { %v16717_v13 = vpop.f32.mrf.mxu1 }
 0x2af   :  { %v16719_v15 = vpop.f32.mrf.mxu1 }
 0x2b1   :  { %v16724_v47 = vpop.f32.mrf.mxu1 }
 0x2b3   :  { %v16726_v8 = vpop.f32.mrf.mxu1  ;;  %2202 = vmatmul.mubr.bf16.gmra.mxu1 %v13689_v1 }
 0x2b5   :  { %v16728_v28 = vpop.f32.mrf.mxu1 }
 0x2b7   :  { %v16730_v40 = vpop.f32.mrf.mxu1 }
 0x2b9   :  { %v16732_v58 = vpop.f32.mrf.mxu1 }
 0x2bb   :  { %v16734_v49 = vpop.f32.mrf.mxu1 }
 0x2bd   :  { %v16736_v16 = vpop.f32.mrf.mxu1 }
 0x2bf   :  { %v16738_v51 = vpop.f32.mrf.mxu1 }
 0x2c1   :  { %v16740_v4 = vpop.f32.mrf.mxu1 }
 0x2c3   :  { %v16742_v46 = vpop.f32.mrf.mxu1 }
 0x2c5   :  { %v16750_v43 = vpop.f32.mrf.mxu1 }
 0x2c7   :  { %v16752_v35 = vpop.f32.mrf.mxu1 }
 0x2c9   :  { %v16754_v55 = vpop.f32.mrf.mxu1 }
 0x2cb   :  { %v16756_v2 = vpop.f32.mrf.mxu1 }
 0x2cd   :  { %v16758_v33 = vpop.f32.mrf.mxu1 }
 0x2cf   :  { %v16760_v41 = vpop.f32.mrf.mxu1 }
 0x2d1   :  { %v16762_v42 = vpop.f32.mrf.mxu1 }
 0x2d3   :  { %v16764_v31 = vpop.f32.mrf.mxu1 }
 0x2d5   :  { %v16766_v50 = vpop.f32.mrf.mxu1 }
 0x2d7   :  { %v16768_v54 = vpop.f32.mrf.mxu1 }
 0x2d9   :  { %v16770_v9 = vpop.f32.mrf.mxu1 }
 0x2db   :  { %v16772_v60 = vpop.f32.mrf.mxu1 }
 0x2dd   :  { %v16774_v24 = vpop.f32.mrf.mxu1 }
 0x2df   :  { %v16776_v18 = vpop.f32.mrf.mxu1 }
 0x2e1   :  { %v16778_v45 = vpop.f32.mrf.mxu1 }
 0x2e3   :  { %v16780_v34 = vpop.f32.mrf.mxu1 }
 0x2e4   :  { %22963 = vst [vmem:[#allocation39_spill] sm:$0xff] %v16780_v34 }
 0x2e5   :  { %v16788_v29 = vpop.f32.mrf.mxu1 }
 0x2e6   :  { %22964 = vst [vmem:[#allocation38_spill] sm:$0xff] %v16788_v29 }
 0x2e7   :  { %v16790_v53 = vpop.f32.mrf.mxu1 }
 0x2e8   :  { %22965 = vst [vmem:[#allocation29_spill] sm:$0xff] %v16790_v53 }
 0x2e9   :  { %v16792_v17 = vpop.f32.mrf.mxu1 }
 0x2ea   :  { %22966 = vst [vmem:[#allocation36_spill] sm:$0xff] %v16792_v17 }
 0x2eb   :  { %v16794_v37 = vpop.f32.mrf.mxu1 }
 0x2ec   :  { %22967 = vst [vmem:[#allocation34_spill] sm:$0xff] %v16794_v37  ;;  %v13704_v37 = vld [vmem:[%s22552_s4 + $0x40] sm:$0xff]  }
 0x2ed   :  { %v16796_v44 = vpop.f32.mrf.mxu1  ;;  %12864 = vmatprep.subr.bf16.mxu0 %v13704_v37 }
 0x2ee   :  { %22968 = vst [vmem:[#allocation32_spill] sm:$0xff] %v16796_v44  ;;  %v13705_v44 = vld [vmem:[%s22552_s4] sm:$0xff]   ;;  %s15002_s4 = smov 120  }
 0x2ef   :  { %v16798_v1 = vpop.f32.mrf.mxu1  ;;  %12865 = vmatpush3.bf16.msra.mxu0 %v13705_v44 }
 0x2f0   :  { %22969 = vst [vmem:[#allocation33_spill] sm:$0xff] %v16798_v1 }
 0x2f1   :  { %v16800_v59 = vpop.f32.mrf.mxu1 }
 0x2f2   :  { %22970 = vst [vmem:[#allocation31_spill] sm:$0xff] %v16800_v59 }
 0x2f3   :  { %v16802_v38 = vpop.f32.mrf.mxu1 }
 0x2f4   :  { %22971 = vst [vmem:[#allocation30_spill] sm:$0xff] %v16802_v38 }
 0x2f5   :  { %v16804_v39 = vpop.f32.mrf.mxu1 }
 0x2f6   :  { %22972 = vst [vmem:[#allocation25_spill] sm:$0xff] %v16804_v39 }
 0x2f7   :  { %v16806_v34 = vpop.f32.mrf.mxu1 }
 0x2f8   :  { %22973 = vst [vmem:[#allocation18_spill] sm:$0xff] %v16806_v34 }
 0x2f9   :  { %v16808_v63 = vpop.f32.mrf.mxu1 }
 0x2fa   :  { %22974 = vst [vmem:[#allocation35_spill] sm:$0xff] %v16808_v63 }
 0x2fb   :  { %v2053_v29 = vpop.f32.mrf.mxu1 }
 0x2fc   :  { %v16817_v38 = vadd.f32 %v2053_v29, %v16619_v56 }
 0x2fd   :  { %v2055_v22 = vpop.f32.mrf.mxu1 }
 0x2fe   :  { %v16828_v53 = vadd.f32 %v2055_v22, %v16621_v11 }
 0x2ff   :  { %v2057_v1 = vpop.f32.mrf.mxu1 }
 0x300   :  { %v16820_v39 = vadd.f32 %v2057_v1, %v16623_v32 }
 0x301   :  { %v2059_v63 = vpop.f32.mrf.mxu1 }
 0x302   :  { %v16823_v34 = vadd.f32 %v2059_v63, %v16631_v27  ;;  %v13224_v59 = vpack.i.bf16 %v16820_v39, %v16817_v38 }
 0x303   :  { %v2063_v17 = vpop.f32.mrf.mxu1 }
 0x304   :  { %13225 = vrot.lane.b32.xlu0 %v13224_v59, %s15002_s4  ;;  %v13229_v32 = vpack.i.bf16 %v16823_v34, %v16828_v53  ;;  %v16834_v37 = vadd.f32 %v2063_v17, %v16633_v10 }
 0x305   :  { %v2065_v56 = vpop.f32.mrf.mxu1 }
 0x306   :  { %v16846_v63 = vadd.f32 %v2065_v56, %v16641_v30 }
 0x307   :  { %v2067_v29 = vpop.f32.mrf.mxu1 }
 0x308   :  { %v16837_v27 = vadd.f32 %v2067_v29, %v16643_v36  ;;  %13230 = vrot.lane.b32.xlu0 %v13229_v32, %s15002_s4 }
 0x309   :  { %v2069_v44 = vpop.f32.mrf.mxu1 }
 0x30a   :  { %v16841_v11 = vadd.f32 %v2069_v44, %v16651_v57  ;;  %v13234_v1 = vpack.i.bf16 %v16837_v27, %v16834_v37 }
 0x30b   :  { %v2073_v59 = vpop.f32.mrf.mxu1 }
 0x30c   :  { %13235 = vrot.lane.b32.xlu1 %v13234_v1, %s15002_s4  ;;  %v13239_v36 = vpack.i.bf16 %v16841_v11, %v16846_v63  ;;  %v16852_v22 = vadd.f32 %v2073_v59, %v16653_v5 }
 0x30d   :  { %v2075_v10 = vpop.f32.mrf.mxu1 }
 0x30e   :  { %v16859_v29 = vadd.f32 %v2075_v10, %v16655_v12 }
 0x30f   :  { %v2077_v17 = vpop.f32.mrf.mxu1 }
 0x310   :  { %v16855_v57 = vadd.f32 %v2077_v17, %v16657_v62  ;;  %13240 = vrot.lane.b32.xlu1 %v13239_v36, %s15002_s4 }
 0x311   :  { %v2079_v32 = vpop.f32.mrf.mxu1 }
 0x312   :  { %v13244_v30 = vpack.i.bf16 %v16855_v57, %v16852_v22  ;;  %v16864_v56 = vadd.f32 %v2079_v32, %v16665_v6 }
 0x313   :  { %v2083_v44 = vpop.f32.mrf.mxu1 }
 0x314   :  { %v13249_v5 = vpack.i.bf16 %v16864_v56, %v16859_v29  ;;  %13245 = vrot.lane.b32.xlu0 %v13244_v30, %s15002_s4  ;;  %v16871_v59 = vadd.f32 %v2083_v44, %v16667_v14 }
 0x315   :  { %v2085_v62 = vpop.f32.mrf.mxu1 }
 0x316   :  { %13250 = vrot.lane.b32.xlu1 %v13249_v5, %s15002_s4  ;;  %v16877_v6 = vadd.f32 %v2085_v62, %v16669_v21 }
 0x317   :  { %v2087_v1 = vpop.f32.mrf.mxu1 }
 0x318   :  { %v16874_v12 = vadd.f32 %v2087_v1, %v16671_v26 }
 0x319   :  { %v2089_v10 = vpop.f32.mrf.mxu1 }
 0x31a   :  { %v13254_v36 = vpack.i.bf16 %v16874_v12, %v16871_v59  ;;  %v16882_v17 = vadd.f32 %v2089_v10, %v16679_v25 }
 0x31b   :  { %v2093_v32 = vpop.f32.mrf.mxu1 }
 0x31c   :  { %v13259_v30 = vpack.i.bf16 %v16882_v17, %v16877_v6  ;;  %13255 = vrot.lane.b32.xlu0 %v13254_v36, %s15002_s4  ;;  %v16889_v44 = vadd.f32 %v2093_v32, %v16681_v0 }
 0x31d   :  { %v2095_v14 = vpop.f32.mrf.mxu1 }
 0x31e   :  { %13260 = vrot.lane.b32.xlu1 %v13259_v30, %s15002_s4  ;;  %v16895_v25 = vadd.f32 %v2095_v14, %v16683_v52 }
 0x31f   :  { %v2097_v26 = vpop.f32.mrf.mxu1 }
 0x320   :  { %v16892_v21 = vadd.f32 %v2097_v26, %v16685_v61 }
 0x321   :  { %v2099_v5 = vpop.f32.mrf.mxu1 }
 0x322   :  { %v13264_v62 = vpack.i.bf16 %v16892_v21, %v16889_v44  ;;  %v16900_v1 = vadd.f32 %v2099_v5, %v16693_v7 }
 0x323   :  { %v2103_v10 = vpop.f32.mrf.mxu1 }
 0x324   :  { %v13269_v36 = vpack.i.bf16 %v16900_v1, %v16895_v25  ;;  %13265 = vrot.lane.b32.xlu0 %v13264_v62, %s15002_s4  ;;  %v16907_v32 = vadd.f32 %v2103_v10, %v16695_v19 }
 0x325   :  { %v2105_v0 = vpop.f32.mrf.mxu1 }
 0x326   :  { %13270 = vrot.lane.b32.xlu1 %v13269_v36, %s15002_s4  ;;  %v16913_v7 = vadd.f32 %v2105_v0, %v16703_v23 }
 0x327   :  { %v2107_v61 = vpop.f32.mrf.mxu1 }
 0x328   :  { %v16910_v52 = vadd.f32 %v2107_v61, %v16705_v3 }
 0x329   :  { %v2109_v30 = vpop.f32.mrf.mxu1 }
 0x32a   :  { %v13274_v14 = vpack.i.bf16 %v16910_v52, %v16907_v32  ;;  %v16918_v26 = vadd.f32 %v2109_v30, %v16713_v20 }
 0x32b   :  { %v2113_v5 = vpop.f32.mrf.mxu1 }
 0x32c   :  { %v13279_v62 = vpack.i.bf16 %v16918_v26, %v16913_v7  ;;  %13275 = vrot.lane.b32.xlu0 %v13274_v14, %s15002_s4  ;;  %v16925_v10 = vadd.f32 %v2113_v5, %v16715_v48 }
 0x32d   :  { %v2115_v19 = vpop.f32.mrf.mxu1 }
 0x32e   :  { %13280 = vrot.lane.b32.xlu1 %v13279_v62, %s15002_s4  ;;  %v16931_v20 = vadd.f32 %v2115_v19, %v16717_v13 }
 0x32f   :  { %v2117_v3 = vpop.f32.mrf.mxu1 }
 0x330   :  { %v16928_v23 = vadd.f32 %v2117_v3, %v16719_v15 }
 0x331   :  { %v2119_v36 = vpop.f32.mrf.mxu1 }
 0x332   :  { %v13284_v0 = vpack.i.bf16 %v16928_v23, %v16925_v10  ;;  %v16936_v61 = vadd.f32 %v2119_v36, %v16724_v47 }
 0x333   :  { %v2123_v30 = vpop.f32.mrf.mxu1 }
 0x334   :  { %v13289_v14 = vpack.i.bf16 %v16936_v61, %v16931_v20  ;;  %13285 = vrot.lane.b32.xlu0 %v13284_v0, %s15002_s4  ;;  %v16943_v5 = vadd.f32 %v2123_v30, %v16726_v8 }
 0x335   :  { %v2125_v48 = vpop.f32.mrf.mxu1 }
 0x336   :  { %13290 = vrot.lane.b32.xlu1 %v13289_v14, %s15002_s4  ;;  %v16949_v47 = vadd.f32 %v2125_v48, %v16728_v28 }
 0x337   :  { %v2127_v15 = vpop.f32.mrf.mxu1 }
 0x338   :  { %v16946_v13 = vadd.f32 %v2127_v15, %v16730_v40 }
 0x339   :  { %v2129_v62 = vpop.f32.mrf.mxu1 }
 0x33a   :  { %v13294_v19 = vpack.i.bf16 %v16946_v13, %v16943_v5  ;;  %v16954_v3 = vadd.f32 %v2129_v62, %v16732_v58 }
 0x33b   :  { %v2133_v36 = vpop.f32.mrf.mxu1 }
 0x33c   :  { %v13299_v0 = vpack.i.bf16 %v16954_v3, %v16949_v47  ;;  %13295 = vrot.lane.b32.xlu0 %v13294_v19, %s15002_s4  ;;  %v16961_v30 = vadd.f32 %v2133_v36, %v16734_v49 }
 0x33d   :  { %v2135_v8 = vpop.f32.mrf.mxu1 }
 0x33e   :  { %13300 = vrot.lane.b32.xlu1 %v13299_v0, %s15002_s4  ;;  %v16967_v58 = vadd.f32 %v2135_v8, %v16736_v16 }
 0x33f   :  { %v2137_v40 = vpop.f32.mrf.mxu1 }
 0x340   :  { %v16964_v28 = vadd.f32 %v2137_v40, %v16738_v51 }
 0x341   :  { %v2139_v14 = vpop.f32.mrf.mxu1 }
 0x342   :  { %v13304_v48 = vpack.i.bf16 %v16964_v28, %v16961_v30  ;;  %v16972_v15 = vadd.f32 %v2139_v14, %v16740_v4 }
 0x343   :  { %v2143_v62 = vpop.f32.mrf.mxu1 }
 0x344   :  { %v13309_v19 = vpack.i.bf16 %v16972_v15, %v16967_v58  ;;  %13305 = vrot.lane.b32.xlu0 %v13304_v48, %s15002_s4  ;;  %v16979_v36 = vadd.f32 %v2143_v62, %v16742_v46 }
 0x345   :  { %v2145_v49 = vpop.f32.mrf.mxu1 }
 0x346   :  { %13310 = vrot.lane.b32.xlu1 %v13309_v19, %s15002_s4  ;;  %v16985_v4 = vadd.f32 %v2145_v49, %v16750_v43 }
 0x347   :  { %v2147_v51 = vpop.f32.mrf.mxu1 }
 0x348   :  { %v16982_v16 = vadd.f32 %v2147_v51, %v16752_v35 }
 0x349   :  { %v2149_v0 = vpop.f32.mrf.mxu1 }
 0x34a   :  { %v13314_v8 = vpack.i.bf16 %v16982_v16, %v16979_v36  ;;  %v16990_v40 = vadd.f32 %v2149_v0, %v16754_v55 }
 0x34b   :  { %v2153_v14 = vpop.f32.mrf.mxu1 }
 0x34c   :  { %v13319_v48 = vpack.i.bf16 %v16990_v40, %v16985_v4  ;;  %13315 = vrot.lane.b32.xlu0 %v13314_v8, %s15002_s4  ;;  %v16997_v62 = vadd.f32 %v2153_v14, %v16756_v2 }
 0x34d   :  { %v2155_v46 = vpop.f32.mrf.mxu1 }
 0x34e   :  { %13320 = vrot.lane.b32.xlu1 %v13319_v48, %s15002_s4  ;;  %v17003_v55 = vadd.f32 %v2155_v46, %v16758_v33 }
 0x34f   :  { %v2157_v35 = vpop.f32.mrf.mxu1 }
 0x350   :  { %v17000_v43 = vadd.f32 %v2157_v35, %v16760_v41 }
 0x351   :  { %v2159_v19 = vpop.f32.mrf.mxu1 }
 0x352   :  { %v13324_v49 = vpack.i.bf16 %v17000_v43, %v16997_v62  ;;  %v17008_v51 = vadd.f32 %v2159_v19, %v16762_v42 }
 0x353   :  { %v2163_v0 = vpop.f32.mrf.mxu1 }
 0x354   :  { %v13329_v8 = vpack.i.bf16 %v17008_v51, %v17003_v55  ;;  %13325 = vrot.lane.b32.xlu0 %v13324_v49, %s15002_s4  ;;  %v17015_v14 = vadd.f32 %v2163_v0, %v16764_v31 }
 0x355   :  { %v2165_v2 = vpop.f32.mrf.mxu1 }
 0x356   :  { %13330 = vrot.lane.b32.xlu1 %v13329_v8, %s15002_s4  ;;  %v17021_v42 = vadd.f32 %v2165_v2, %v16766_v50 }
 0x357   :  { %v2167_v41 = vpop.f32.mrf.mxu1 }
 0x358   :  { %v17018_v33 = vadd.f32 %v2167_v41, %v16768_v54  ;;  %22975 = vst [vmem:[#allocation17_spill] sm:$0xff] %v17021_v42 }
 0x359   :  { %v2169_v48 = vpop.f32.mrf.mxu1 }
 0x35a   :  { %v13334_v46 = vpack.i.bf16 %v17018_v33, %v17015_v14  ;;  %v17026_v35 = vadd.f32 %v2169_v48, %v16770_v9 }
 0x35b   :  { %v2173_v19 = vpop.f32.mrf.mxu1 }
 0x35c   :  { %22976 = vst [vmem:[#allocation22_spill] sm:$0xff] %v17026_v35  ;;  %v13339_v49 = vpack.i.bf16 %v17026_v35, %v17021_v42  ;;  %13335 = vrot.lane.b32.xlu0 %v13334_v46, %s15002_s4  ;;  %v17033_v0 = vadd.f32 %v2173_v19, %v16772_v60  ;;  %v22981_v19 = vld [vmem:[#allocation39_spill] sm:$0xff] }
 0x35d   :  { %v2175_v31 = vpop.f32.mrf.mxu1 }
 0x35e   :  { %13340 = vrot.lane.b32.xlu1 %v13339_v49, %s15002_s4  ;;  %22977 = vst [vmem:[#allocation28_spill] sm:$0xff] %v17033_v0  ;;  %v17039_v9 = vadd.f32 %v2175_v31, %v16774_v24  ;;  %v22983_v24 = vld [vmem:[#allocation29_spill] sm:$0xff] }
 0x35f   :  { %v2177_v54 = vpop.f32.mrf.mxu1 }
 0x360   :  { %v17036_v50 = vadd.f32 %v2177_v54, %v16776_v18  ;;  %22979 = vst [vmem:[#allocation40_spill] sm:$0xff] %v17039_v9 }
 0x361   :  { %v2179_v8 = vpop.f32.mrf.mxu1 }
 0x362   :  { %22978 = vst [vmem:[#allocation37_spill] sm:$0xff] %v17036_v50  ;;  %v13344_v2 = vpack.i.bf16 %v17036_v50, %v17033_v0  ;;  %v17044_v41 = vadd.f32 %v2179_v8, %v16778_v45  ;;  %v22985_v50 = vld [vmem:[#allocation38_spill] sm:$0xff] }
 0x363   :  { %v2183_v48 = vpop.f32.mrf.mxu1 }
 0x364   :  { %22980 = vst [vmem:[#allocation21_spill] sm:$0xff] %v17044_v41  ;;  %v13349_v46 = vpack.i.bf16 %v17044_v41, %v17039_v9  ;;  %13345 = vrot.lane.b32.xlu0 %v13344_v2, %s15002_s4  ;;  %v17051_v49 = vadd.f32 %v2183_v48, %v22981_v19  ;;  %v22987_v41 = vld [vmem:[#allocation36_spill] sm:$0xff]  ;;  %v22989_v19 = vld [vmem:[#allocation34_spill] sm:$0xff] }
 0x365   :  { %v2185_v60 = vpop.f32.mrf.mxu1 }
 0x366   :  { %13350 = vrot.lane.b32.xlu1 %v13349_v46, %s15002_s4  ;;  %22982 = vst [vmem:[#allocation19_spill] sm:$0xff] %v17051_v49  ;;  %v17057_v45 = vadd.f32 %v2185_v60, %v22985_v50  ;;  %v22991_v50 = vld [vmem:[#allocation33_spill] sm:$0xff] }
 0x367   :  { %v2187_v18 = vpop.f32.mrf.mxu1 }
 0x368   :  { %v17054_v31 = vadd.f32 %v2187_v18, %v22983_v24  ;;  %22986 = vst [vmem:[#allocation24_spill] sm:$0xff] %v17057_v45 }
 0x369   :  { %v2189_v54 = vpop.f32.mrf.mxu1 }
 0x36a   :  { %22984 = vst [vmem:[#allocation20_spill] sm:$0xff] %v17054_v31  ;;  %v13354_v8 = vpack.i.bf16 %v17054_v31, %v17051_v49  ;;  %v17062_v9 = vadd.f32 %v2189_v54, %v22987_v41  ;;  %v22993_v49 = vld [vmem:[#allocation32_spill] sm:$0xff] }
 0x36b   :  { %v2193_v2 = vpop.f32.mrf.mxu1 }
 0x36c   :  { %22988 = vst [vmem:[#allocation26_spill] sm:$0xff] %v17062_v9  ;;  %v13359_v46 = vpack.i.bf16 %v17062_v9, %v17057_v45  ;;  %13355 = vrot.lane.b32.xlu0 %v13354_v8, %s15002_s4  ;;  %v17069_v24 = vadd.f32 %v2193_v2, %v22989_v19  ;;  %v22995_v9 = vld [vmem:[#allocation31_spill] sm:$0xff]  ;;  %v22997_v19 = vlaneseq }
 0x36d   :  { %v2195_v48 = vpop.f32.mrf.mxu1 }
 0x36e   :  { %13360 = vrot.lane.b32.xlu1 %v13359_v46, %s15002_s4  ;;  %22990 = vst [vmem:[#allocation23_spill] sm:$0xff] %v17069_v24  ;;  %v17075_v41 = vadd.f32 %v2195_v48, %v22993_v49  ;;  %v22999_v48 = vld [vmem:[#allocation30_spill] sm:$0xff] }
 0x36f   :  { %v2197_v18 = vpop.f32.mrf.mxu1 }
 0x370   :  { %v17072_v60 = vadd.f32 %v2197_v18, %v22991_v50  ;;  %22994 = vst [vmem:[#allocation15_spill] sm:$0xff] %v17075_v41  ;;  %v17087_v50 = vand.u32 127, %v22997_v19 }
 0x371   :  { %v2199_v31 = vpop.f32.mrf.mxu1 }
 0x372   :  { %22992 = vst [vmem:[#allocation27_spill] sm:$0xff] %v17072_v60  ;;  %v13364_v54 = vpack.i.bf16 %v17072_v60, %v17069_v24  ;;  %v17080_v45 = vadd.f32 %v2199_v31, %v22995_v9  ;;  %22998 = vst [vmem:[#allocation39_spill] sm:$0xff] %v17087_v50  ;;  %v23001_v60 = vld [vmem:[#allocation18_spill] sm:$0xff]  ;;  %v23003_v24 = vld [vmem:[#allocation25_spill] sm:$0xff]  ;;  %vm2342_vm3 = vcmp.lt.s32.totalorder %v17087_v50, 120 }
 0x373   :  { %v2203_v8 = vpop.f32.mrf.mxu1 }
 0x374   :  { %22996 = vst [vmem:[#allocation16_spill] sm:$0xff] %v17080_v45  ;;  %v13369_v46 = vpack.i.bf16 %v17080_v45, %v17075_v41  ;;  %13365 = vrot.lane.b32.xlu0 %v13364_v54, %s15002_s4  ;;  %v17090_v0 = vadd.f32 %v2203_v8, %v22999_v48  ;;  %v23005_v45 = vld [vmem:[#allocation35_spill] sm:$0xff] }
 0x375   :  { %v2205_v2 = vpop.f32.mrf.mxu1 }
 0x376   :  { %13370 = vrot.lane.b32.xlu1 %v13369_v46, %s15002_s4  ;;  %v13226_v18 = vpop.permute.xlu0 %13225  ;;  %23000 = vst [vmem:[#allocation29_spill] sm:$0xff] %v17090_v0  ;;  %v17096_v35 = vadd.f32 %v2205_v2, %v23003_v24 }
 0x377   :  { %v2207_v49 = vpop.f32.mrf.mxu1  ;;  %v13228_v41 = vunpack.i.h.bf16 %v13226_v18  ;;  %v13227_v42 = vunpack.i.l.bf16 %v13226_v18 }
 0x378   :  { %v17093_v9 = vadd.f32 %v2207_v49, %v23001_v60  ;;  %23004 = vst [vmem:[#allocation36_spill] sm:$0xff] %v17096_v35  ;;  %v13708_v60 = vld [vmem:[%s22553_s5 + $0x2e4] ss:$16 sps:$4 sm:$0xff]  }
 0x379   :  { %v2209_v31 = vpop.f32.mrf.mxu1  ;;  %3761 = vmatprep.subr.bf16.mxu0 %v13708_v60 }
 0x37a   :  { %23002 = vst [vmem:[#allocation38_spill] sm:$0xff] %v17093_v9  ;;  %v13374_v54 = vpack.i.bf16 %v17093_v9, %v17090_v0  ;;  %v17101_v46 = vadd.f32 %v2209_v31, %v23005_v45  ;;  %v13231_v19 = vpop.permute.xlu0 %13230 }
 0x37b   :  { %v13233_v8 = vunpack.i.h.bf16 %v13231_v19  ;;  %v13232_v48 = vunpack.i.l.bf16 %v13231_v19 }
 0x37c   :  { %23006 = vst [vmem:[#allocation34_spill] sm:$0xff] %v17101_v46  ;;  %v13379_v24 = vpack.i.bf16 %v17101_v46, %v17096_v35  ;;  %13375 = vrot.lane.b32.xlu0 %v13374_v54, %s15002_s4 }
 0x37d   :  { %v2343_v45 = vsel %vm2342_vm3, %v13227_v42, %v13232_v48  ;;  %v2344_v2 = vsel %vm2342_vm3, %v13228_v41, %v13233_v8  ;;  %v2375_v18 = vsel %vm2342_vm3, %v13232_v48, %v13227_v42  ;;  %v2376_v49 = vsel %vm2342_vm3, %v13233_v8, %v13228_v41  ;;  %v13706_v42 = vld [vmem:[%s22553_s5 + $0x2e0] ss:$16 sps:$4 sm:$0xff]   ;;  %v13711_v41 = vld [vmem:[%s22553_s5 + $0x2c4] ss:$16 sps:$4 sm:$0xff]  }
 0x37e   :  { %v2407_v31 = vmax.f32 %v16817_v38, %v2343_v45  ;;  %v2409_v19 = vmax.f32 %v16820_v39, %v2344_v2  ;;  %13380 = vrot.lane.b32.xlu1 %v13379_v24, %s15002_s4  ;;  %v13236_v54 = vpop.permute.xlu1 %13235  ;;  %v2408_v9 = vmax.f32 %v16828_v53, %v2375_v18  ;;  %v2410_v0 = vmax.f32 %v16823_v34, %v2376_v49  ;;  %v13709_v34 = vld [vmem:[%s22553_s5 + $0x2c0] ss:$16 sps:$4 sm:$0xff]  }
 0x37f   :  { %v13238_v39 = vunpack.i.h.bf16 %v13236_v54  ;;  %v13237_v8 = vunpack.i.l.bf16 %v13236_v54 }
 0x380   :  { %v2471_v46 = vpack.c.bf16 %v2409_v19, %v2407_v31  ;;  %v2472_v35 = vpack.c.bf16 %v2410_v0, %v2408_v9 }
 0x382   :  { %v13241_v38 = vpop.permute.xlu1 %13240  ;;  %2663 = vmatprep.mubr.bf16.mxu0 %v2472_v35 }
 0x383   :  { %v13243_v48 = vunpack.i.h.bf16 %v13241_v38  ;;  %v13242_v60 = vunpack.i.l.bf16 %v13241_v38  ;;  %2664 = vmatmul.mubr.bf16.vlgmr.msra.gmra.mxu0 %v2471_v46  ;;  %v13714_v46 = vld [vmem:[%s22553_s5 + $0x2a4] ss:$16 sps:$4 sm:$0xff]  }
 0x384   :  { %3762 = vmatpush1.bf16.msra.mxu0 %v13706_v42  ;;  %v13712_v42 = vld [vmem:[%s22553_s5 + $0x2a0] ss:$16 sps:$4 sm:$0xff]  }
 0x385   :  { %v2345_v53 = vsel %vm2342_vm3, %v13237_v8, %v13242_v60  ;;  %v2346_v0 = vsel %vm2342_vm3, %v13238_v39, %v13243_v48  ;;  %v2377_v9 = vsel %vm2342_vm3, %v13242_v60, %v13237_v8  ;;  %v2378_v35 = vsel %vm2342_vm3, %v13243_v48, %v13238_v39  ;;  %3763 = vmatprep.subr.bf16.mxu0 %v13711_v41 }
 0x386   :  { %v2411_v24 = vmax.f32 %v16834_v37, %v2345_v53  ;;  %v2413_v45 = vmax.f32 %v16837_v27, %v2346_v0  ;;  %v13246_v2 = vpop.permute.xlu0 %13245  ;;  %v2412_v18 = vmax.f32 %v16846_v63, %v2377_v9  ;;  %v2414_v49 = vmax.f32 %v16841_v11, %v2378_v35  ;;  %v13717_v37 = vld [vmem:[%s22553_s5 + $0x284] ss:$16 sps:$4 sm:$0xff]   ;;  %v13715_v9 = vld [vmem:[%s22553_s5 + $0x280] ss:$16 sps:$4 sm:$0xff]  }
 0x387   :  { %v13248_v41 = vunpack.i.h.bf16 %v13246_v2  ;;  %v13247_v38 = vunpack.i.l.bf16 %v13246_v2  ;;  %v13720_v35 = vld [vmem:[%s22553_s5 + $0x264] ss:$16 sps:$4 sm:$0xff]  }
 0x388   :  { %v13251_v31 = vpop.permute.xlu1 %13250  ;;  %v2474_v19 = vpack.c.bf16 %v2414_v49, %v2412_v18  ;;  %v2473_v54 = vpack.c.bf16 %v2413_v45, %v2411_v24  ;;  %3764 = vmatpush1.bf16.msra.mxu0 %v13709_v34  ;;  %v13723_v49 = vld [vmem:[%s22553_s5 + $0x244] ss:$16 sps:$4 sm:$0xff]  }
 0x389   :  { %v13253_v39 = vunpack.i.h.bf16 %v13251_v31  ;;  %v13252_v8 = vunpack.i.l.bf16 %v13251_v31  ;;  %3765 = vmatprep.subr.bf16.mxu0 %v13714_v46 }
 0x38a   :  { %2671 = vmatprep.mubr.bf16.mxu0 %v2474_v19 }
 0x38b   :  { %v2347_v27 = vsel %vm2342_vm3, %v13247_v38, %v13252_v8  ;;  %v2348_v11 = vsel %vm2342_vm3, %v13248_v41, %v13253_v39  ;;  %v2379_v63 = vsel %vm2342_vm3, %v13252_v8, %v13247_v38  ;;  %v2380_v48 = vsel %vm2342_vm3, %v13253_v39, %v13248_v41  ;;  %2672 = vmatmul.mubr.bf16.gmra.mxu0 %v2473_v54 }
 0x38c   :  { %v2415_v60 = vmax.f32 %v16852_v22, %v2347_v27  ;;  %v2417_v34 = vmax.f32 %v16855_v57, %v2348_v11  ;;  %v2416_v53 = vmax.f32 %v16859_v29, %v2379_v63  ;;  %v2418_v0 = vmax.f32 %v16864_v56, %v2380_v48  ;;  %3766 = vmatpush1.bf16.msra.mxu0 %v13712_v42  ;;  %v13718_v57 = vld [vmem:[%s22553_s5 + $0x260] ss:$16 sps:$4 sm:$0xff]  }
 0x38d   :  { %3767 = vmatprep.subr.bf16.mxu0 %v13717_v37  ;;  %v13721_v37 = vld [vmem:[%s22553_s5 + $0x240] ss:$16 sps:$4 sm:$0xff]  }
 0x38e   :  { %v13256_v46 = vpop.permute.xlu0 %13255  ;;  %v2476_v24 = vpack.c.bf16 %v2418_v0, %v2416_v53  ;;  %v2475_v22 = vpack.c.bf16 %v2417_v34, %v2415_v60 }
 0x38f   :  { %v13258_v29 = vunpack.i.h.bf16 %v13256_v46  ;;  %v13257_v56 = vunpack.i.l.bf16 %v13256_v46 }
 0x390   :  { %v13261_v45 = vpop.permute.xlu1 %13260  ;;  %2679 = vmatprep.mubr.bf16.mxu0 %v2476_v24  ;;  %3768 = vmatpush1.bf16.msra.mxu0 %v13715_v9 }
 0x391   :  { %v13263_v2 = vunpack.i.h.bf16 %v13261_v45  ;;  %v13262_v18 = vunpack.i.l.bf16 %v13261_v45  ;;  %3769 = vmatprep.subr.bf16.mxu0 %v13720_v35 }
 0x393   :  { %v2349_v31 = vsel %vm2342_vm3, %v13257_v56, %v13262_v18  ;;  %v2350_v19 = vsel %vm2342_vm3, %v13258_v29, %v13263_v2  ;;  %v2381_v54 = vsel %vm2342_vm3, %v13262_v18, %v13257_v56  ;;  %v2382_v42 = vsel %vm2342_vm3, %v13263_v2, %v13258_v29  ;;  %2680 = vmatmul.mubr.bf16.gmra.mxu0 %v2475_v22 }
 0x394   :  { %v2419_v41 = vmax.f32 %v16871_v59, %v2349_v31  ;;  %v2421_v38 = vmax.f32 %v16874_v12, %v2350_v19  ;;  %v2420_v39 = vmax.f32 %v16877_v6, %v2381_v54  ;;  %v2422_v8 = vmax.f32 %v16882_v17, %v2382_v42  ;;  %3770 = vmatpush1.bf16.msra.mxu0 %v13718_v57 }
 0x395   :  { %3771 = vmatprep.subr.bf16.mxu0 %v13723_v49 }
 0x396   :  { %v13266_v27 = vpop.permute.xlu0 %13265  ;;  %v2478_v11 = vpack.c.bf16 %v2422_v8, %v2420_v39  ;;  %v2477_v48 = vpack.c.bf16 %v2421_v38, %v2419_v41 }
 0x397   :  { %v13268_v60 = vunpack.i.h.bf16 %v13266_v27  ;;  %v13267_v59 = vunpack.i.l.bf16 %v13266_v27 }
 0x398   :  { %v13271_v63 = vpop.permute.xlu1 %13270  ;;  %2687 = vmatprep.mubr.bf16.mxu0 %v2478_v11  ;;  %3772 = vmatpush1.bf16.msra.mxu0 %v13721_v37 }
 0x399   :  { %v13273_v34 = vunpack.i.h.bf16 %v13271_v63  ;;  %v13272_v12 = vunpack.i.l.bf16 %v13271_v63 }
 0x39b   :  { %v2351_v6 = vsel %vm2342_vm3, %v13267_v59, %v13272_v12  ;;  %v2352_v17 = vsel %vm2342_vm3, %v13268_v60, %v13273_v34  ;;  %v2383_v53 = vsel %vm2342_vm3, %v13272_v12, %v13267_v59  ;;  %v2384_v0 = vsel %vm2342_vm3, %v13273_v34, %v13268_v60  ;;  %2688 = vmatmul.mubr.bf16.gmra.mxu0 %v2477_v48 }
 0x39c   :  { %v2423_v9 = vmax.f32 %v16889_v44, %v2351_v6  ;;  %v2425_v35 = vmax.f32 %v16892_v21, %v2352_v17  ;;  %v2424_v46 = vmax.f32 %v16895_v25, %v2383_v53  ;;  %v2426_v24 = vmax.f32 %v16900_v1, %v2384_v0 }
 0x39e   :  { %v13276_v45 = vpop.permute.xlu0 %13275  ;;  %v2480_v22 = vpack.c.bf16 %v2426_v24, %v2424_v46  ;;  %v2479_v29 = vpack.c.bf16 %v2425_v35, %v2423_v9 }
 0x39f   :  { %v13278_v56 = vunpack.i.h.bf16 %v13276_v45  ;;  %v13277_v2 = vunpack.i.l.bf16 %v13276_v45 }
 0x3a0   :  { %v13281_v57 = vpop.permute.xlu1 %13280  ;;  %2695 = vmatprep.mubr.bf16.mxu0 %v2480_v22 }
 0x3a1   :  { %v13283_v18 = vunpack.i.h.bf16 %v13281_v57  ;;  %v13282_v49 = vunpack.i.l.bf16 %v13281_v57 }
 0x3a3   :  { %v2353_v31 = vsel %vm2342_vm3, %v13277_v2, %v13282_v49  ;;  %v2354_v44 = vsel %vm2342_vm3, %v13278_v56, %v13283_v18  ;;  %v2385_v21 = vsel %vm2342_vm3, %v13282_v49, %v13277_v2  ;;  %v2386_v25 = vsel %vm2342_vm3, %v13283_v18, %v13278_v56  ;;  %2696 = vmatmul.mubr.bf16.gmra.mxu0 %v2479_v29 }
 0x3a4   :  { %v2427_v1 = vmax.f32 %v16907_v32, %v2353_v31  ;;  %v2429_v19 = vmax.f32 %v16910_v52, %v2354_v44  ;;  %v2428_v54 = vmax.f32 %v16913_v7, %v2385_v21  ;;  %v2430_v42 = vmax.f32 %v16918_v26, %v2386_v25 }
 0x3a6   :  { %v13286_v41 = vpop.permute.xlu0 %13285  ;;  %v2482_v38 = vpack.c.bf16 %v2430_v42, %v2428_v54  ;;  %v2481_v8 = vpack.c.bf16 %v2429_v19, %v2427_v1 }
 0x3a7   :  { %v13288_v37 = vunpack.i.h.bf16 %v13286_v41  ;;  %v13287_v27 = vunpack.i.l.bf16 %v13286_v41 }
 0x3a8   :  { %v13291_v39 = vpop.permute.xlu1 %13290  ;;  %2703 = vmatprep.mubr.bf16.mxu0 %v2482_v38 }
 0x3a9   :  { %v13293_v11 = vunpack.i.h.bf16 %v13291_v39  ;;  %v13292_v63 = vunpack.i.l.bf16 %v13291_v39 }
 0x3ab   :  { %v2355_v48 = vsel %vm2342_vm3, %v13287_v27, %v13292_v63  ;;  %v2356_v32 = vsel %vm2342_vm3, %v13288_v37, %v13293_v11  ;;  %v2387_v52 = vsel %vm2342_vm3, %v13292_v63, %v13287_v27  ;;  %v2388_v7 = vsel %vm2342_vm3, %v13293_v11, %v13288_v37  ;;  %2704 = vmatmul.mubr.bf16.gmra.mxu0 %v2481_v8 }
 0x3ac   :  { %v2431_v26 = vmax.f32 %v16925_v10, %v2355_v48  ;;  %v2433_v60 = vmax.f32 %v16928_v23, %v2356_v32  ;;  %v2432_v59 = vmax.f32 %v16931_v20, %v2387_v52  ;;  %v2434_v34 = vmax.f32 %v16936_v61, %v2388_v7  ;;  %v13726_v7 = vld [vmem:[%s22553_s5 + $0x224] ss:$16 sps:$4 sm:$0xff]  }
 0x3ad   :  { %3773 = vmatprep.subr.bf16.mxu0 %v13726_v7 }
 0x3ae   :  { %v13296_v12 = vpop.permute.xlu0 %13295  ;;  %v2484_v6 = vpack.c.bf16 %v2434_v34, %v2432_v59  ;;  %v2483_v53 = vpack.c.bf16 %v2433_v60, %v2431_v26  ;;  %v13724_v26 = vld [vmem:[%s22553_s5 + $0x220] ss:$16 sps:$4 sm:$0xff]  }
 0x3af   :  { %v13298_v0 = vunpack.i.h.bf16 %v13296_v12  ;;  %v13297_v9 = vunpack.i.l.bf16 %v13296_v12  ;;  %3774 = vmatpush1.bf16.msra.mxu0 %v13724_v26 }
 0x3b0   :  { %v13301_v17 = vpop.permute.xlu1 %13300  ;;  %2711 = vmatprep.mubr.bf16.mxu0 %v2484_v6 }
 0x3b1   :  { %v13303_v35 = vunpack.i.h.bf16 %v13301_v17  ;;  %v13302_v46 = vunpack.i.l.bf16 %v13301_v17  ;;  %v13727_v17 = vld [vmem:[%s22553_s5 + $0x200] ss:$16 sps:$4 sm:$0xff]  }
 0x3b3   :  { %v2357_v24 = vsel %vm2342_vm3, %v13297_v9, %v13302_v46  ;;  %v2358_v10 = vsel %vm2342_vm3, %v13298_v0, %v13303_v35  ;;  %v2389_v23 = vsel %vm2342_vm3, %v13302_v46, %v13297_v9  ;;  %v2390_v20 = vsel %vm2342_vm3, %v13303_v35, %v13298_v0  ;;  %2712 = vmatmul.mubr.bf16.gmra.mxu0 %v2483_v53 }
 0x3b4   :  { %v2435_v61 = vmax.f32 %v16943_v5, %v2357_v24  ;;  %v2437_v45 = vmax.f32 %v16946_v13, %v2358_v10  ;;  %v2436_v22 = vmax.f32 %v16949_v47, %v2389_v23  ;;  %v2438_v57 = vmax.f32 %v16954_v3, %v2390_v20 }
 0x3b6   :  { %v13306_v29 = vpop.permute.xlu0 %13305  ;;  %v2486_v56 = vpack.c.bf16 %v2438_v57, %v2436_v22  ;;  %v2485_v18 = vpack.c.bf16 %v2437_v45, %v2435_v61 }
 0x3b7   :  { %v13308_v49 = vunpack.i.h.bf16 %v13306_v29  ;;  %v13307_v31 = vunpack.i.l.bf16 %v13306_v29 }
 0x3b8   :  { %v13311_v2 = vpop.permute.xlu1 %13310  ;;  %2719 = vmatprep.mubr.bf16.mxu0 %v2486_v56 }
 0x3b9   :  { %v13313_v44 = vunpack.i.h.bf16 %v13311_v2  ;;  %v13312_v21 = vunpack.i.l.bf16 %v13311_v2 }
 0x3bb   :  { %v2359_v25 = vsel %vm2342_vm3, %v13307_v31, %v13312_v21  ;;  %v2360_v5 = vsel %vm2342_vm3, %v13308_v49, %v13313_v44  ;;  %v2391_v13 = vsel %vm2342_vm3, %v13312_v21, %v13307_v31  ;;  %v2392_v47 = vsel %vm2342_vm3, %v13313_v44, %v13308_v49  ;;  %2720 = vmatmul.mubr.bf16.gmra.mxu0 %v2485_v18  ;;  %v23007_v31 = vld [vmem:[#allocation17_spill] sm:$0xff]  ;;  %v23008_v21 = vld [vmem:[#allocation22_spill] sm:$0xff] }
 0x3bc   :  { %v2439_v3 = vmax.f32 %v16961_v30, %v2359_v25  ;;  %v2441_v1 = vmax.f32 %v16964_v28, %v2360_v5  ;;  %v2440_v19 = vmax.f32 %v16967_v58, %v2391_v13  ;;  %v2442_v54 = vmax.f32 %v16972_v15, %v2392_v47 }
 0x3be   :  { %v13316_v42 = vpop.permute.xlu0 %13315  ;;  %v2488_v41 = vpack.c.bf16 %v2442_v54, %v2440_v19  ;;  %v2487_v39 = vpack.c.bf16 %v2441_v1, %v2439_v3 }
 0x3bf   :  { %v13318_v8 = vunpack.i.h.bf16 %v13316_v42  ;;  %v13317_v37 = vunpack.i.l.bf16 %v13316_v42 }
 0x3c0   :  { %v13321_v38 = vpop.permute.xlu1 %13320  ;;  %2727 = vmatprep.mubr.bf16.mxu0 %v2488_v41 }
 0x3c1   :  { %v13323_v27 = vunpack.i.h.bf16 %v13321_v38  ;;  %v13322_v11 = vunpack.i.l.bf16 %v13321_v38 }
 0x3c3   :  { %v2361_v63 = vsel %vm2342_vm3, %v13317_v37, %v13322_v11  ;;  %v2362_v30 = vsel %vm2342_vm3, %v13318_v8, %v13323_v27  ;;  %v2393_v28 = vsel %vm2342_vm3, %v13322_v11, %v13317_v37  ;;  %v2394_v58 = vsel %vm2342_vm3, %v13323_v27, %v13318_v8  ;;  %2728 = vmatmul.mubr.bf16.gmra.mxu0 %v2487_v39  ;;  %v23009_v39 = vld [vmem:[#allocation28_spill] sm:$0xff]  ;;  %v23010_v37 = vld [vmem:[#allocation37_spill] sm:$0xff] }
 0x3c4   :  { %v2443_v15 = vmax.f32 %v16979_v36, %v2361_v63  ;;  %v2445_v48 = vmax.f32 %v16982_v16, %v2362_v30  ;;  %v2444_v32 = vmax.f32 %v16985_v4, %v2393_v28  ;;  %v2446_v52 = vmax.f32 %v16990_v40, %v2394_v58  ;;  %v13729_v16 = vld [vmem:[%s22553_s5 + $0x204] ss:$16 sps:$4 sm:$0xff]   ;;  %v23012_v30 = vld [vmem:[#allocation21_spill] sm:$0xff] }
 0x3c5   :  { %3775 = vmatprep.subr.bf16.mxu0 %v13729_v16  ;;  %v23011_v11 = vld [vmem:[#allocation40_spill] sm:$0xff] }
 0x3c6   :  { %v13326_v60 = vpop.permute.xlu0 %13325  ;;  %v2490_v59 = vpack.c.bf16 %v2446_v52, %v2444_v32  ;;  %v2489_v36 = vpack.c.bf16 %v2445_v48, %v2443_v15  ;;  %3776 = vmatpush1.bf16.msra.mxu0 %v13727_v17  ;;  %v23015_v17 = vld [vmem:[#allocation24_spill] sm:$0xff] }
 0x3c7   :  { %v13328_v4 = vunpack.i.h.bf16 %v13326_v60  ;;  %v13327_v40 = vunpack.i.l.bf16 %v13326_v60 }
 0x3c8   :  { %v13331_v34 = vpop.permute.xlu1 %13330  ;;  %2735 = vmatprep.mubr.bf16.mxu0 %v2490_v59 }
 0x3c9   :  { %v13333_v12 = vunpack.i.h.bf16 %v13331_v34  ;;  %v13332_v6 = vunpack.i.l.bf16 %v13331_v34 }
 0x3cb   :  { %v2363_v53 = vsel %vm2342_vm3, %v13327_v40, %v13332_v6  ;;  %v2364_v0 = vsel %vm2342_vm3, %v13328_v4, %v13333_v12  ;;  %v2395_v9 = vsel %vm2342_vm3, %v13332_v6, %v13327_v40  ;;  %v2396_v35 = vsel %vm2342_vm3, %v13333_v12, %v13328_v4  ;;  %2736 = vmatmul.mubr.bf16.gmra.mxu0 %v2489_v36  ;;  %v23013_v4 = vld [vmem:[#allocation19_spill] sm:$0xff]  ;;  %v23014_v12 = vld [vmem:[#allocation20_spill] sm:$0xff] }
 0x3cc   :  { %v2447_v46 = vmax.f32 %v16997_v62, %v2363_v53  ;;  %v2449_v24 = vmax.f32 %v17000_v43, %v2364_v0  ;;  %v2448_v10 = vmax.f32 %v17003_v55, %v2395_v9  ;;  %v2450_v23 = vmax.f32 %v17008_v51, %v2396_v35  ;;  %v23016_v0 = vld [vmem:[#allocation26_spill] sm:$0xff] }
 0x3ce   :  { %v13336_v20 = vpop.permute.xlu0 %13335  ;;  %v2492_v61 = vpack.c.bf16 %v2450_v23, %v2448_v10  ;;  %v2491_v22 = vpack.c.bf16 %v2449_v24, %v2447_v46 }
 0x3cf   :  { %v13338_v57 = vunpack.i.h.bf16 %v13336_v20  ;;  %v13337_v29 = vunpack.i.l.bf16 %v13336_v20 }
 0x3d0   :  { %v13341_v45 = vpop.permute.xlu1 %13340  ;;  %2743 = vmatprep.mubr.bf16.mxu0 %v2492_v61 }
 0x3d1   :  { %v13343_v56 = vunpack.i.h.bf16 %v13341_v45  ;;  %v13342_v2 = vunpack.i.l.bf16 %v13341_v45 }
 0x3d3   :  { %v2365_v18 = vsel %vm2342_vm3, %v13337_v29, %v13342_v2  ;;  %v2366_v62 = vsel %vm2342_vm3, %v13338_v57, %v13343_v56  ;;  %v2397_v43 = vsel %vm2342_vm3, %v13342_v2, %v13337_v29  ;;  %v2398_v55 = vsel %vm2342_vm3, %v13343_v56, %v13338_v57  ;;  %2744 = vmatmul.mubr.bf16.gmra.mxu0 %v2491_v22  ;;  %v23017_v2 = vld [vmem:[#allocation23_spill] sm:$0xff] }
 0x3d4   :  { %v2451_v51 = vmax.f32 %v17015_v14, %v2365_v18  ;;  %v2453_v49 = vmax.f32 %v17018_v33, %v2366_v62  ;;  %v2452_v44 = vmax.f32 %v23007_v31, %v2397_v43  ;;  %v2454_v25 = vmax.f32 %v23008_v21, %v2398_v55  ;;  %v23018_v62 = vld [vmem:[#allocation27_spill] sm:$0xff]  ;;  %v13732_v21 = vld [vmem:[%s22553_s5 + $0xe4] ss:$16 sps:$4 sm:$0xff]  }
 0x3d5   :  { %v23019_v55 = vld [vmem:[#allocation15_spill] sm:$0xff]  ;;  %3568 = vmatprep.subr.bf16.mxu1 %v13732_v21 }
 0x3d6   :  { %v13346_v5 = vpop.permute.xlu0 %13345  ;;  %v2494_v13 = vpack.c.bf16 %v2454_v25, %v2452_v44  ;;  %v2493_v3 = vpack.c.bf16 %v2453_v49, %v2451_v51  ;;  %v23020_v49 = vld [vmem:[#allocation16_spill] sm:$0xff] }
 0x3d7   :  { %v13348_v1 = vunpack.i.h.bf16 %v13346_v5  ;;  %v13347_v19 = vunpack.i.l.bf16 %v13346_v5  ;;  %v13730_v44 = vld [vmem:[%s22553_s5 + $0xe0] ss:$16 sps:$4 sm:$0xff]  }
 0x3d8   :  { %v13351_v47 = vpop.permute.xlu1 %13350  ;;  %2751 = vmatprep.mubr.bf16.mxu0 %v2494_v13  ;;  %3569 = vmatpush1.bf16.msra.mxu1 %v13730_v44  ;;  %v23026_v44 = vld [vmem:[#allocation12_spill] sm:$0xff] }
 0x3d9   :  { %v13353_v54 = vunpack.i.h.bf16 %v13351_v47  ;;  %v13352_v42 = vunpack.i.l.bf16 %v13351_v47  ;;  %vm2824_vm4 = vcmp.lt.s32.totalorder %v23026_v44, 2  ;;  %vm2889_vm5 = vcmp.lt.s32.totalorder %v23026_v44, 1 }
 0x3db   :  { %v2367_v41 = vsel %vm2342_vm3, %v13347_v19, %v13352_v42  ;;  %v2368_v14 = vsel %vm2342_vm3, %v13348_v1, %v13353_v54  ;;  %v2399_v33 = vsel %vm2342_vm3, %v13352_v42, %v13347_v19  ;;  %v2400_v38 = vsel %vm2342_vm3, %v13353_v54, %v13348_v1  ;;  %2752 = vmatmul.mubr.bf16.gmra.mxu0 %v2493_v3 }
 0x3dc   :  { %v2455_v8 = vmax.f32 %v23009_v39, %v2367_v41  ;;  %v2457_v27 = vmax.f32 %v23010_v37, %v2368_v14  ;;  %v2456_v63 = vmax.f32 %v23011_v11, %v2399_v33  ;;  %v2458_v28 = vmax.f32 %v23012_v30, %v2400_v38  ;;  %v23021_v38 = vld [vmem:[#allocation36_spill] sm:$0xff] }
 0x3dd   :  { %v13735_v11 = vld [vmem:[%s22553_s5 + $0xc4] ss:$16 sps:$4 sm:$0xff]  }
 0x3de   :  { %v13356_v58 = vpop.permute.xlu0 %13355  ;;  %v2496_v15 = vpack.c.bf16 %v2458_v28, %v2456_v63  ;;  %v2495_v32 = vpack.c.bf16 %v2457_v27, %v2455_v8  ;;  %v23022_v8 = vld [vmem:[#allocation34_spill] sm:$0xff]  ;;  %v23023_v63 = vld [vmem:[#allocation29_spill] sm:$0xff]  ;;  %3570 = vmatprep.subr.bf16.mxu1 %v13735_v11 }
 0x3df   :  { %v13358_v52 = vunpack.i.h.bf16 %v13356_v58  ;;  %v13357_v7 = vunpack.i.l.bf16 %v13356_v58  ;;  %v13733_v27 = vld [vmem:[%s22553_s5 + $0xc0] ss:$16 sps:$4 sm:$0xff]  }
 0x3e0   :  { %v13361_v48 = vpop.permute.xlu1 %13360  ;;  %2759 = vmatprep.mubr.bf16.mxu0 %v2496_v15  ;;  %v23024_v28 = vld [vmem:[#allocation38_spill] sm:$0xff]  ;;  %3571 = vmatpush1.bf16.msra.mxu1 %v13733_v27 }
 0x3e1   :  { %v13363_v26 = vunpack.i.h.bf16 %v13361_v48  ;;  %v13362_v60 = vunpack.i.l.bf16 %v13361_v48 }
 0x3e3   :  { %v2369_v59 = vsel %vm2342_vm3, %v13357_v7, %v13362_v60  ;;  %v2370_v34 = vsel %vm2342_vm3, %v13358_v52, %v13363_v26  ;;  %v2401_v36 = vsel %vm2342_vm3, %v13362_v60, %v13357_v7  ;;  %v2402_v16 = vsel %vm2342_vm3, %v13363_v26, %v13358_v52  ;;  %2760 = vmatmul.mubr.bf16.gmra.mxu0 %v2495_v32  ;;  %v13736_v52 = vld [vmem:[%s22553_s5 + $0xa0] ss:$16 sps:$4 sm:$0xff]   ;;  %v13738_v7 = vld [vmem:[%s22553_s5 + $0xa4] ss:$16 sps:$4 sm:$0xff]  }
 0x3e4   :  { %v2459_v40 = vmax.f32 %v23013_v4, %v2369_v59  ;;  %v2461_v6 = vmax.f32 %v23014_v12, %v2370_v34  ;;  %v2460_v53 = vmax.f32 %v23015_v17, %v2401_v36  ;;  %v2462_v9 = vmax.f32 %v23016_v0, %v2402_v16  ;;  %3572 = vmatprep.subr.bf16.mxu1 %v13738_v7  ;;  %v13739_v26 = vld [vmem:[%s22553_s5 + $0x80] ss:$16 sps:$4 sm:$0xff]   ;;  %v13741_v60 = vld [vmem:[%s22553_s5 + $0x84] ss:$16 sps:$4 sm:$0xff]  }
 0x3e5   :  { %v23025_v32 = vmov 0   ;;  %3573 = vmatpush1.bf16.msra.mxu1 %v13736_v52  ;;  %v13742_v59 = vld [vmem:[%s22553_s5 + $0x60] ss:$16 sps:$4 sm:$0xff]   ;;  %v13744_v34 = vld [vmem:[%s22553_s5 + $0x64] ss:$16 sps:$4 sm:$0xff]  }
 0x3e6   :  { %v13366_v35 = vpop.permute.xlu0 %13365  ;;  %v2498_v46 = vpack.c.bf16 %v2462_v9, %v2460_v53  ;;  %v2497_v10 = vpack.c.bf16 %v2461_v6, %v2459_v40  ;;  %3574 = vmatprep.subr.bf16.mxu1 %v13741_v60  ;;  %v13745_v36 = vld [vmem:[%s22553_s5 + $0x40] ss:$16 sps:$4 sm:$0xff]   ;;  %v13747_v16 = vld [vmem:[%s22553_s5 + $0x44] ss:$16 sps:$4 sm:$0xff]   ;;  %v13762_v9 = vld [vmem:[%s22553_s5 + $0x2ec] ss:$16 sps:$4 sm:$0xff]  }
 0x3e7   :  { %v13368_v23 = vunpack.i.h.bf16 %v13366_v35  ;;  %v13367_v20 = vunpack.i.l.bf16 %v13366_v35  ;;  %v13748_v4 = vld [vmem:[%s22553_s5 + $0x20] ss:$16 sps:$4 sm:$0xff]   ;;  %v13750_v40 = vld [vmem:[%s22553_s5 + $0x24] ss:$16 sps:$4 sm:$0xff]   ;;  %4147 = vmatprep.subr.bf16.mxu0 %v13762_v9  ;;  %v13780_v52 = vld [vmem:[%s22553_s5 + $0x28c] ss:$16 sps:$4 sm:$0xff]  }
 0x3e8   :  { %v13371_v24 = vpop.permute.xlu1 %13370  ;;  %2767 = vmatprep.mubr.bf16.mxu0 %v2498_v46  ;;  %v13751_v12 = vld [vmem:[%s22553_s5] ss:$16 sps:$4 sm:$0xff]   ;;  %v13753_v6 = vld [vmem:[%s22553_s5 + $0x4] ss:$16 sps:$4 sm:$0xff]  }
 0x3e9   :  { %v13373_v61 = vunpack.i.h.bf16 %v13371_v24  ;;  %v13372_v45 = vunpack.i.l.bf16 %v13371_v24  ;;  %3575 = vmatpush1.bf16.msra.mxu1 %v13739_v26  ;;  %v13756_v17 = vld [vmem:[%s22553_s5 + $0x1e4] ss:$16 sps:$4 sm:$0xff]   ;;  %v13754_v53 = vld [vmem:[%s22553_s5 + $0x1e0] ss:$16 sps:$4 sm:$0xff]  }
 0x3ea   :  { %3576 = vmatprep.subr.bf16.mxu1 %v13744_v34  ;;  %v13759_v0 = vld [vmem:[%s22553_s5 + $0x1c4] ss:$16 sps:$4 sm:$0xff]   ;;  %v13757_v35 = vld [vmem:[%s22553_s5 + $0x1c0] ss:$16 sps:$4 sm:$0xff]  }
 0x3eb   :  { %v2371_v22 = vsel %vm2342_vm3, %v13367_v20, %v13372_v45  ;;  %v2372_v57 = vsel %vm2342_vm3, %v13368_v23, %v13373_v61  ;;  %v2403_v29 = vsel %vm2342_vm3, %v13372_v45, %v13367_v20  ;;  %v2404_v56 = vsel %vm2342_vm3, %v13373_v61, %v13368_v23  ;;  %2768 = vmatmul.mubr.bf16.gmra.mxu0 %v2497_v10  ;;  %v13765_v46 = vld [vmem:[%s22553_s5 + $0x1a4] ss:$16 sps:$4 sm:$0xff]   ;;  %v13763_v24 = vld [vmem:[%s22553_s5 + $0x1a0] ss:$16 sps:$4 sm:$0xff]  }
 0x3ec   :  { %v2463_v18 = vmax.f32 %v23017_v2, %v2371_v22  ;;  %v2465_v43 = vmax.f32 %v23018_v62, %v2372_v57  ;;  %v2464_v51 = vmax.f32 %v23019_v55, %v2403_v29  ;;  %v2466_v31 = vmax.f32 %v23020_v49, %v2404_v56  ;;  %v13771_v10 = vld [vmem:[%s22553_s5 + $0x184] ss:$16 sps:$4 sm:$0xff]   ;;  %v13769_v23 = vld [vmem:[%s22553_s5 + $0x180] ss:$16 sps:$4 sm:$0xff]  }
 0x3ed   :  { %3577 = vmatpush1.bf16.msra.mxu1 %v13742_v59  ;;  %v13777_v20 = vld [vmem:[%s22553_s5 + $0x164] ss:$16 sps:$4 sm:$0xff]   ;;  %v13775_v61 = vld [vmem:[%s22553_s5 + $0x160] ss:$16 sps:$4 sm:$0xff]  }
 0x3ee   :  { %v13376_v25 = vpop.permute.xlu0 %13375  ;;  %v2500_v5 = vpack.c.bf16 %v2466_v31, %v2464_v51  ;;  %v2499_v47 = vpack.c.bf16 %v2465_v43, %v2463_v18  ;;  %3578 = vmatprep.subr.bf16.mxu1 %v13747_v16  ;;  %v13783_v45 = vld [vmem:[%s22553_s5 + $0x144] ss:$16 sps:$4 sm:$0xff]   ;;  %v13781_v22 = vld [vmem:[%s22553_s5 + $0x140] ss:$16 sps:$4 sm:$0xff]  }
 0x3ef   :  { %v13378_v3 = vunpack.i.h.bf16 %v13376_v25  ;;  %v13377_v1 = vunpack.i.l.bf16 %v13376_v25  ;;  %v13789_v57 = vld [vmem:[%s22553_s5 + $0x124] ss:$16 sps:$4 sm:$0xff]   ;;  %v13787_v29 = vld [vmem:[%s22553_s5 + $0x120] ss:$16 sps:$4 sm:$0xff]   ;;  %v13760_v25 = vld [vmem:[%s22553_s5 + $0x2e8] ss:$16 sps:$4 sm:$0xff]  }
 0x3f0   :  { %v13381_v13 = vpop.permute.xlu1 %13380  ;;  %2775 = vmatprep.mubr.bf16.mxu0 %v2500_v5  ;;  %v13795_v2 = vld [vmem:[%s22553_s5 + $0x104] ss:$16 sps:$4 sm:$0xff]   ;;  %v13793_v62 = vld [vmem:[%s22553_s5 + $0x100] ss:$16 sps:$4 sm:$0xff]  }
 0x3f1   :  { %v13383_v19 = vunpack.i.h.bf16 %v13381_v13  ;;  %v13382_v54 = vunpack.i.l.bf16 %v13381_v13  ;;  %3579 = vmatpush1.bf16.msra.mxu1 %v13745_v36  ;;  %v13778_v36 = vld [vmem:[%s22553_s5 + $0x288] ss:$16 sps:$4 sm:$0xff]  }
 0x3f2   :  { %3580 = vmatprep.subr.bf16.mxu1 %v13750_v40 }
 0x3f3   :  { %v2373_v42 = vsel %vm2342_vm3, %v13377_v1, %v13382_v54  ;;  %v2374_v41 = vsel %vm2342_vm3, %v13378_v3, %v13383_v19  ;;  %v2405_v14 = vsel %vm2342_vm3, %v13382_v54, %v13377_v1  ;;  %v2406_v33 = vsel %vm2342_vm3, %v13383_v19, %v13378_v3  ;;  %2776 = vmatmul.mubr.bf16.gmra.mxu0 %v2499_v47  ;;  %v13768_v1 = vld [vmem:[%s22553_s5 + $0x2cc] ss:$16 sps:$4 sm:$0xff]  }
 0x3f4   :  { %v2468_v39 = vmax.f32 %v23021_v38, %v2405_v14  ;;  %v2470_v37 = vmax.f32 %v23022_v8, %v2406_v33  ;;  %v2467_v30 = vmax.f32 %v23023_v63, %v2373_v42  ;;  %v2469_v58 = vmax.f32 %v23024_v28, %v2374_v41  ;;  %v13766_v33 = vld [vmem:[%s22553_s5 + $0x2c8] ss:$16 sps:$4 sm:$0xff]   ;;  %v13774_v8 = vld [vmem:[%s22553_s5 + $0x2ac] ss:$16 sps:$4 sm:$0xff]  }
 0x3f5   :  { %3581 = vmatpush1.bf16.msra.mxu1 %v13748_v4  ;;  %v13772_v28 = vld [vmem:[%s22553_s5 + $0x2a8] ss:$16 sps:$4 sm:$0xff]  }
 0x3f6   :  { %v2502_v15 = vpack.c.bf16 %v2470_v37, %v2468_v39  ;;  %v2501_v48 = vpack.c.bf16 %v2469_v58, %v2467_v30  ;;  %3582 = vmatprep.subr.bf16.mxu1 %v13753_v6  ;;  %v13786_v6 = vld [vmem:[%s22553_s5 + $0x26c] ss:$16 sps:$4 sm:$0xff]  }
 0x3f8   :  { %2783 = vmatprep.mubr.bf16.mxu0 %v2502_v15 }
 0x3f9   :  { %3583 = vmatpush1.bf16.msra.mxu1 %v13751_v12 }
 0x3fa   :  { %3584 = vmatprep.subr.bf16.mxu1 %v13756_v17 }
 0x3fb   :  { %2784 = vmatmul.mubr.bf16.gmra.mxu0 %v2501_v48 }
 0x3fc   :  { %3793 = vmatprep.mubr.bf16.mxu0 %v23025_v32 }
 0x3fd   :  { %3585 = vmatpush2.bf16.msra.mxu1 %v13754_v53 }
 0x3fe   :  { %3586 = vmatprep.subr.bf16.mxu1 %v13759_v0 }
 0x401   :  { %3587 = vmatpush2.bf16.msra.mxu1 %v13757_v35 }
 0x402   :  { %3588 = vmatprep.subr.bf16.mxu1 %v13765_v46  ;;  %v13784_v46 = vld [vmem:[%s22553_s5 + $0x268] ss:$16 sps:$4 sm:$0xff]  }
 0x405   :  { %3589 = vmatpush2.bf16.msra.mxu1 %v13763_v24 }
 0x406   :  { %3590 = vmatprep.subr.bf16.mxu1 %v13771_v10 }
 0x409   :  { %3591 = vmatpush2.bf16.msra.mxu1 %v13769_v23 }
 0x40a   :  { %3592 = vmatprep.subr.bf16.mxu1 %v13777_v20  ;;  %v13792_v20 = vld [vmem:[%s22553_s5 + $0x24c] ss:$16 sps:$4 sm:$0xff]  }
 0x40d   :  { %3593 = vmatpush2.bf16.msra.mxu1 %v13775_v61 }
 0x40e   :  { %3594 = vmatprep.subr.bf16.mxu1 %v13783_v45 }
 0x411   :  { %3595 = vmatpush2.bf16.msra.mxu1 %v13781_v22 }
 0x412   :  { %3596 = vmatprep.subr.bf16.mxu1 %v13789_v57 }
 0x415   :  { %3597 = vmatpush2.bf16.msra.mxu1 %v13787_v29 }
 0x416   :  { %3598 = vmatprep.subr.bf16.mxu1 %v13795_v2 }
 0x419   :  { %3599 = vmatpush2.bf16.msra.mxu1 %v13793_v62 }
 0x443   :  { %v12866_v56 = vpop.f32.mrf.mxu0 }
 0x445   :  { %v12867_v18 = vpop.f32.mrf.mxu0 }
 0x446   :  { %v17448_v43 = vadd.f32 %v12867_v18, %v12866_v56  ;;  %v13790_v56 = vld [vmem:[%s22553_s5 + $0x248] ss:$16 sps:$4 sm:$0xff]  }
 0x447   :  { %v12869_v55 = vpop.f32.mrf.mxu0 }
 0x448   :  { %v22681_v31 = vrot.slane %v17448_v43, 6  ;;  %v22680_v5 = vrot.slane %v17448_v43, 7 }
 0x449   :  { %v12870_v51 = vpop.f32.mrf.mxu0 }
 0x44a   :  { %v12871_v49 = vadd.f32 %v12870_v51, %v12869_v55  ;;  %v13798_v51 = vld [vmem:[%s22553_s5 + $0x22c] ss:$16 sps:$4 sm:$0xff]  }
 0x44b   :  { %v12872_v21 = vpop.f32.mrf.mxu0 }
 0x44c   :  { %v2793_v13 = vrot.slane %v12871_v49, 6  ;;  %v2858_v47 = vrot.slane %v12871_v49, 7  ;;  %v17458_v3 = vpack.c.bf16 %v12871_v49, %v17448_v43 }
 0x44d   :  { %v12873_v19 = vpop.f32.mrf.mxu0 }
 0x44e   :  { %v17467_v54 = vsel %vm2824_vm4, %v22681_v31, %v2793_v13  ;;  %v12874_v42 = vadd.f32 %v12873_v19, %v12872_v21  ;;  %3794 = vmatmul.mubr.bf16.vlgmr.msra.gmra.mxu0 %v17458_v3  ;;  %v17474_v41 = vsel %vm2889_vm5, %v22680_v5, %v2858_v47 }
 0x44f   :  { %v12875_v14 = vpop.f32.mrf.mxu0  ;;  %3803 = vmatprep.mubr.bf16.mxu0 %v23025_v32  ;;  %4148 = vmatpush1.bf16.msra.mxu0 %v13760_v25 }
 0x450   :  { %v2794_v38 = vrot.slane %v12874_v42, 6  ;;  %v2859_v39 = vrot.slane %v12874_v42, 7  ;;  %4149 = vmatprep.subr.bf16.mxu0 %v13768_v1  ;;  %v13796_v1 = vld [vmem:[%s22553_s5 + $0x228] ss:$16 sps:$4 sm:$0xff]  }
 0x451   :  { %v12876_v37 = vpop.f32.mrf.mxu0 }
 0x452   :  { %v12877_v27 = vadd.f32 %v12876_v37, %v12875_v14  ;;  %v2919_v11 = vsel %vm2889_vm5, %v2858_v47, %v2859_v39  ;;  %v2854_v63 = vsel %vm2824_vm4, %v2793_v13, %v2794_v38 }
 0x453   :  { %v12878_v30 = vpop.f32.mrf.mxu0  ;;  %4150 = vmatpush1.bf16.msra.mxu0 %v13766_v33  ;;  %v13801_v33 = vld [vmem:[%s22553_s5 + $0x20c] ss:$16 sps:$4 sm:$0xff]  }
 0x454   :  { %v2795_v58 = vrot.slane %v12877_v27, 6  ;;  %v2860_v15 = vrot.slane %v12877_v27, 7  ;;  %v17490_v48 = vpack.c.bf16 %v12877_v27, %v12874_v42  ;;  %4151 = vmatprep.subr.bf16.mxu0 %v13774_v8 }
 0x455   :  { %v12879_v7 = vpop.f32.mrf.mxu0 }
 0x456   :  { %v12880_v26 = vadd.f32 %v12879_v7, %v12878_v30  ;;  %3804 = vmatmul.mubr.bf16.gmra.mxu0 %v17490_v48  ;;  %v2918_v60 = vsel %vm2889_vm5, %v2859_v39, %v2860_v15  ;;  %v2853_v59 = vsel %vm2824_vm4, %v2794_v38, %v2795_v58 }
 0x457   :  { %v12881_v34 = vpop.f32.mrf.mxu0  ;;  %3813 = vmatprep.mubr.bf16.mxu0 %v23025_v32  ;;  %4152 = vmatpush1.bf16.msra.mxu0 %v13772_v28  ;;  %v17504_v16 = vpack.c.bf16 %v2918_v60, %v2919_v11  ;;  %v17506_v4 = vpack.c.bf16 %v2853_v59, %v2854_v63  ;;  %v13799_v11 = vld [vmem:[%s22553_s5 + $0x208] ss:$16 sps:$4 sm:$0xff]   ;;  %v13804_v60 = vld [vmem:[%s22553_s5 + $0xec] ss:$16 sps:$4 sm:$0xff]  }
 0x458   :  { %v2796_v40 = vrot.slane %v12880_v26, 6  ;;  %v2861_v12 = vrot.slane %v12880_v26, 7  ;;  %4153 = vmatprep.subr.bf16.mxu0 %v13780_v52  ;;  %3954 = vmatprep.subr.bf16.mxu1 %v13804_v60 }
 0x459   :  { %v12882_v17 = vpop.f32.mrf.mxu0 }
 0x45a   :  { %v12883_v53 = vadd.f32 %v12882_v17, %v12881_v34  ;;  %v2917_v0 = vsel %vm2889_vm5, %v2860_v15, %v2861_v12  ;;  %v2852_v9 = vsel %vm2824_vm4, %v2795_v58, %v2796_v40 }
 0x45b   :  { %v12884_v35 = vpop.f32.mrf.mxu0  ;;  %4154 = vmatpush1.bf16.msra.mxu0 %v13778_v36 }
 0x45c   :  { %v2797_v24 = vrot.slane %v12883_v53, 6  ;;  %v2862_v10 = vrot.slane %v12883_v53, 7  ;;  %v17518_v23 = vpack.c.bf16 %v12883_v53, %v12880_v26  ;;  %4155 = vmatprep.subr.bf16.mxu0 %v13786_v6 }
 0x45d   :  { %v12885_v61 = vpop.f32.mrf.mxu0 }
 0x45e   :  { %v12886_v45 = vadd.f32 %v12885_v61, %v12884_v35  ;;  %3814 = vmatmul.mubr.bf16.gmra.mxu0 %v17518_v23  ;;  %v2916_v22 = vsel %vm2889_vm5, %v2861_v12, %v2862_v10  ;;  %v2851_v57 = vsel %vm2824_vm4, %v2796_v40, %v2797_v24 }
 0x45f   :  { %v12887_v29 = vpop.f32.mrf.mxu0  ;;  %3823 = vmatprep.mubr.bf16.mxu0 %v23025_v32  ;;  %4156 = vmatpush1.bf16.msra.mxu0 %v13784_v46  ;;  %v17532_v2 = vpack.c.bf16 %v2916_v22, %v2917_v0  ;;  %v17534_v18 = vpack.c.bf16 %v2851_v57, %v2852_v9 }
 0x460   :  { %v2798_v62 = vrot.slane %v12886_v45, 6  ;;  %v2863_v55 = vrot.slane %v12886_v45, 7  ;;  %4157 = vmatprep.subr.bf16.mxu0 %v13792_v20 }
 0x461   :  { %v12888_v49 = vpop.f32.mrf.mxu0 }
 0x462   :  { %v12889_v21 = vadd.f32 %v12888_v49, %v12887_v29  ;;  %v2915_v25 = vsel %vm2889_vm5, %v2862_v10, %v2863_v55  ;;  %v2850_v13 = vsel %vm2824_vm4, %v2797_v24, %v2798_v62 }
 0x463   :  { %v12890_v47 = vpop.f32.mrf.mxu0  ;;  %4158 = vmatpush1.bf16.msra.mxu0 %v13790_v56 }
 0x464   :  { %v2799_v19 = vrot.slane %v12889_v21, 6  ;;  %v2864_v42 = vrot.slane %v12889_v21, 7  ;;  %v17546_v14 = vpack.c.bf16 %v12889_v21, %v12886_v45  ;;  %4159 = vmatprep.subr.bf16.mxu0 %v13798_v51 }
 0x465   :  { %v12891_v38 = vpop.f32.mrf.mxu0 }
 0x466   :  { %v12892_v39 = vadd.f32 %v12891_v38, %v12890_v47  ;;  %3824 = vmatmul.mubr.bf16.gmra.mxu0 %v17546_v14  ;;  %v2914_v8 = vsel %vm2889_vm5, %v2863_v55, %v2864_v42  ;;  %v2849_v37 = vsel %vm2824_vm4, %v2798_v62, %v2799_v19 }
 0x467   :  { %v12893_v27 = vpop.f32.mrf.mxu0  ;;  %3833 = vmatprep.mubr.bf16.mxu0 %v23025_v32  ;;  %4160 = vmatpush1.bf16.msra.mxu0 %v13796_v1  ;;  %v17560_v63 = vpack.c.bf16 %v2914_v8, %v2915_v25  ;;  %v17562_v30 = vpack.c.bf16 %v2849_v37, %v2850_v13 }
 0x468   :  { %v2800_v28 = vrot.slane %v12892_v39, 6  ;;  %v2865_v58 = vrot.slane %v12892_v39, 7  ;;  %4161 = vmatprep.subr.bf16.mxu0 %v13801_v33 }
 0x469   :  { %v12894_v15 = vpop.f32.mrf.mxu0 }
 0x46a   :  { %v12895_v52 = vadd.f32 %v12894_v15, %v12893_v27  ;;  %v2913_v7 = vsel %vm2889_vm5, %v2864_v42, %v2865_v58  ;;  %v2848_v26 = vsel %vm2824_vm4, %v2799_v19, %v2800_v28 }
 0x46b   :  { %v12896_v59 = vpop.f32.mrf.mxu0  ;;  %4162 = vmatpush1.bf16.msra.mxu0 %v13799_v11 }
 0x46c   :  { %v2801_v34 = vrot.slane %v12895_v52, 6  ;;  %v2866_v36 = vrot.slane %v12895_v52, 7  ;;  %v17571_v40 = vpack.c.bf16 %v12895_v52, %v12892_v39 }
 0x46d   :  { %v12897_v12 = vpop.f32.mrf.mxu0 }
 0x46e   :  { %v12898_v6 = vadd.f32 %v12897_v12, %v12896_v59  ;;  %3834 = vmatmul.mubr.bf16.gmra.mxu0 %v17571_v40  ;;  %v2912_v17 = vsel %vm2889_vm5, %v2865_v58, %v2866_v36  ;;  %v2847_v53 = vsel %vm2824_vm4, %v2800_v28, %v2801_v34 }
 0x46f   :  { %v12899_v0 = vpop.f32.mrf.mxu0  ;;  %3843 = vmatprep.mubr.bf16.mxu0 %v23025_v32  ;;  %v17579_v9 = vpack.c.bf16 %v2912_v17, %v2913_v7  ;;  %v17581_v35 = vpack.c.bf16 %v2847_v53, %v2848_v26 }
 0x470   :  { %v2802_v46 = vrot.slane %v12898_v6, 6  ;;  %v2867_v24 = vrot.slane %v12898_v6, 7 }
 0x471   :  { %v12900_v10 = vpop.f32.mrf.mxu0 }
 0x472   :  { %v12901_v20 = vadd.f32 %v12900_v10, %v12899_v0  ;;  %v2911_v61 = vsel %vm2889_vm5, %v2866_v36, %v2867_v24  ;;  %v2846_v45 = vsel %vm2824_vm4, %v2801_v34, %v2802_v46 }
 0x473   :  { %v12902_v22 = vpop.f32.mrf.mxu0 }
 0x474   :  { %v2803_v57 = vrot.slane %v12901_v20, 6  ;;  %v2868_v29 = vrot.slane %v12901_v20, 7  ;;  %v17587_v56 = vpack.c.bf16 %v12901_v20, %v12898_v6 }
 0x475   :  { %v12903_v62 = vpop.f32.mrf.mxu0 }
 0x476   :  { %v12904_v55 = vadd.f32 %v12903_v62, %v12902_v22  ;;  %3844 = vmatmul.mubr.bf16.gmra.mxu0 %v17587_v56  ;;  %v2910_v51 = vsel %vm2889_vm5, %v2867_v24, %v2868_v29  ;;  %v2845_v49 = vsel %vm2824_vm4, %v2802_v46, %v2803_v57 }
 0x477   :  { %v12905_v21 = vpop.f32.mrf.mxu0  ;;  %3853 = vmatprep.mubr.bf16.mxu0 %v23025_v32  ;;  %v17595_v25 = vpack.c.bf16 %v2910_v51, %v2911_v61  ;;  %v17597_v13 = vpack.c.bf16 %v2845_v49, %v2846_v45 }
 0x478   :  { %v2804_v47 = vrot.slane %v12904_v55, 6  ;;  %v2869_v1 = vrot.slane %v12904_v55, 7 }
 0x479   :  { %v12906_v19 = vpop.f32.mrf.mxu0 }
 0x47a   :  { %v12907_v42 = vadd.f32 %v12906_v19, %v12905_v21  ;;  %v2909_v33 = vsel %vm2889_vm5, %v2868_v29, %v2869_v1  ;;  %v2844_v38 = vsel %vm2824_vm4, %v2803_v57, %v2804_v47 }
 0x47b   :  { %v12908_v39 = vpop.f32.mrf.mxu0 }
 0x47c   :  { %v2805_v8 = vrot.slane %v12907_v42, 6  ;;  %v2870_v37 = vrot.slane %v12907_v42, 7  ;;  %v17603_v27 = vpack.c.bf16 %v12907_v42, %v12904_v55 }
 0x47d   :  { %v12909_v11 = vpop.f32.mrf.mxu0 }
 0x47e   :  { %v12910_v28 = vadd.f32 %v12909_v11, %v12908_v39  ;;  %3854 = vmatmul.mubr.bf16.gmra.mxu0 %v17603_v27  ;;  %v2908_v58 = vsel %vm2889_vm5, %v2869_v1, %v2870_v37  ;;  %v2843_v15 = vsel %vm2824_vm4, %v2804_v47, %v2805_v8 }
 0x47f   :  { %v12911_v52 = vpop.f32.mrf.mxu0  ;;  %3863 = vmatprep.mubr.bf16.mxu0 %v23025_v32  ;;  %v17611_v7 = vpack.c.bf16 %v2908_v58, %v2909_v33  ;;  %v17613_v26 = vpack.c.bf16 %v2843_v15, %v2844_v38 }
 0x480   :  { %v2806_v60 = vrot.slane %v12910_v28, 6  ;;  %v2871_v59 = vrot.slane %v12910_v28, 7 }
 0x481   :  { %v12912_v34 = vpop.f32.mrf.mxu0 }
 0x482   :  { %v12913_v36 = vadd.f32 %v12912_v34, %v12911_v52  ;;  %v2907_v12 = vsel %vm2889_vm5, %v2870_v37, %v2871_v59  ;;  %v2842_v6 = vsel %vm2824_vm4, %v2805_v8, %v2806_v60 }
 0x483   :  { %v12914_v17 = vpop.f32.mrf.mxu0 }
 0x484   :  { %v2807_v53 = vrot.slane %v12913_v36, 6  ;;  %v2872_v0 = vrot.slane %v12913_v36, 7  ;;  %v17619_v46 = vpack.c.bf16 %v12913_v36, %v12910_v28 }
 0x485   :  { %v12915_v24 = vpop.f32.mrf.mxu0 }
 0x486   :  { %v12916_v10 = vadd.f32 %v12915_v24, %v12914_v17  ;;  %3864 = vmatmul.mubr.bf16.gmra.mxu0 %v17619_v46  ;;  %v2906_v20 = vsel %vm2889_vm5, %v2871_v59, %v2872_v0  ;;  %v2841_v61 = vsel %vm2824_vm4, %v2806_v60, %v2807_v53 }
 0x487   :  { %v12917_v45 = vpop.f32.mrf.mxu0  ;;  %3873 = vmatprep.mubr.bf16.mxu0 %v23025_v32  ;;  %v17627_v22 = vpack.c.bf16 %v2906_v20, %v2907_v12  ;;  %v17629_v57 = vpack.c.bf16 %v2841_v61, %v2842_v6 }
 0x488   :  { %v2808_v29 = vrot.slane %v12916_v10, 6  ;;  %v2873_v62 = vrot.slane %v12916_v10, 7 }
 0x489   :  { %v12918_v55 = vpop.f32.mrf.mxu0 }
 0x48a   :  { %v12919_v51 = vadd.f32 %v12918_v55, %v12917_v45  ;;  %v2905_v49 = vsel %vm2889_vm5, %v2872_v0, %v2873_v62  ;;  %v2840_v21 = vsel %vm2824_vm4, %v2807_v53, %v2808_v29 }
 0x48b   :  { %v12920_v47 = vpop.f32.mrf.mxu0 }
 0x48c   :  { %v2809_v1 = vrot.slane %v12919_v51, 6  ;;  %v2874_v19 = vrot.slane %v12919_v51, 7  ;;  %v17635_v42 = vpack.c.bf16 %v12919_v51, %v12916_v10 }
 0x48d   :  { %v12921_v33 = vpop.f32.mrf.mxu0 }
 0x48e   :  { %v12922_v38 = vadd.f32 %v12921_v33, %v12920_v47  ;;  %3874 = vmatmul.mubr.bf16.gmra.mxu0 %v17635_v42  ;;  %v2904_v39 = vsel %vm2889_vm5, %v2873_v62, %v2874_v19  ;;  %v2839_v8 = vsel %vm2824_vm4, %v2808_v29, %v2809_v1 }
 0x48f   :  { %v12923_v37 = vpop.f32.mrf.mxu0  ;;  %3883 = vmatprep.mubr.bf16.mxu0 %v23025_v32  ;;  %v17643_v11 = vpack.c.bf16 %v2904_v39, %v2905_v49  ;;  %v17645_v28 = vpack.c.bf16 %v2839_v8, %v2840_v21 }
 0x490   :  { %v2810_v58 = vrot.slane %v12922_v38, 6  ;;  %v2875_v15 = vrot.slane %v12922_v38, 7 }
 0x491   :  { %v12924_v52 = vpop.f32.mrf.mxu0 }
 0x492   :  { %v12925_v60 = vadd.f32 %v12924_v52, %v12923_v37  ;;  %v2903_v59 = vsel %vm2889_vm5, %v2874_v19, %v2875_v15  ;;  %v2838_v34 = vsel %vm2824_vm4, %v2809_v1, %v2810_v58 }
 0x493   :  { %v12926_v36 = vpop.f32.mrf.mxu0 }
 0x494   :  { %v2811_v12 = vrot.slane %v12925_v60, 6  ;;  %v2876_v6 = vrot.slane %v12925_v60, 7  ;;  %v17651_v17 = vpack.c.bf16 %v12925_v60, %v12922_v38 }
 0x495   :  { %v12927_v53 = vpop.f32.mrf.mxu0 }
 0x496   :  { %v12928_v0 = vadd.f32 %v12927_v53, %v12926_v36  ;;  %3884 = vmatmul.mubr.bf16.gmra.mxu0 %v17651_v17  ;;  %v2902_v24 = vsel %vm2889_vm5, %v2875_v15, %v2876_v6  ;;  %v2837_v10 = vsel %vm2824_vm4, %v2810_v58, %v2811_v12 }
 0x497   :  { %v12929_v20 = vpop.f32.mrf.mxu0  ;;  %3893 = vmatprep.mubr.bf16.mxu0 %v23025_v32  ;;  %v17659_v61 = vpack.c.bf16 %v2902_v24, %v2903_v59  ;;  %v17661_v45 = vpack.c.bf16 %v2837_v10, %v2838_v34 }
 0x498   :  { %v2812_v29 = vrot.slane %v12928_v0, 6  ;;  %v2877_v62 = vrot.slane %v12928_v0, 7 }
 0x499   :  { %v12930_v55 = vpop.f32.mrf.mxu0 }
 0x49a   :  { %v12931_v51 = vadd.f32 %v12930_v55, %v12929_v20  ;;  %v2901_v49 = vsel %vm2889_vm5, %v2876_v6, %v2877_v62  ;;  %v2836_v21 = vsel %vm2824_vm4, %v2811_v12, %v2812_v29 }
 0x49b   :  { %v12932_v47 = vpop.f32.mrf.mxu0 }
 0x49c   :  { %v2813_v1 = vrot.slane %v12931_v51, 6  ;;  %v2878_v19 = vrot.slane %v12931_v51, 7  ;;  %v17667_v33 = vpack.c.bf16 %v12931_v51, %v12928_v0 }
 0x49d   :  { %v12933_v38 = vpop.f32.mrf.mxu0 }
 0x49e   :  { %v12934_v39 = vadd.f32 %v12933_v38, %v12932_v47  ;;  %3894 = vmatmul.mubr.bf16.gmra.mxu0 %v17667_v33  ;;  %v2900_v8 = vsel %vm2889_vm5, %v2877_v62, %v2878_v19  ;;  %v2835_v37 = vsel %vm2824_vm4, %v2812_v29, %v2813_v1 }
 0x49f   :  { %v12935_v58 = vpop.f32.mrf.mxu0  ;;  %3903 = vmatprep.mubr.bf16.mxu0 %v23025_v32  ;;  %v17675_v15 = vpack.c.bf16 %v2900_v8, %v2901_v49  ;;  %v17677_v52 = vpack.c.bf16 %v2835_v37, %v2836_v21 }
 0x4a0   :  { %v2814_v60 = vrot.slane %v12934_v39, 6  ;;  %v2879_v59 = vrot.slane %v12934_v39, 7 }
 0x4a1   :  { %v12936_v34 = vpop.f32.mrf.mxu0 }
 0x4a2   :  { %v12937_v36 = vadd.f32 %v12936_v34, %v12935_v58  ;;  %v2899_v12 = vsel %vm2889_vm5, %v2878_v19, %v2879_v59  ;;  %v2834_v6 = vsel %vm2824_vm4, %v2813_v1, %v2814_v60 }
 0x4a3   :  { %v12938_v53 = vpop.f32.mrf.mxu0 }
 0x4a4   :  { %v2815_v0 = vrot.slane %v12937_v36, 6  ;;  %v2880_v24 = vrot.slane %v12937_v36, 7  ;;  %v17683_v10 = vpack.c.bf16 %v12937_v36, %v12934_v39 }
 0x4a5   :  { %v12939_v20 = vpop.f32.mrf.mxu0 }
 0x4a6   :  { %v12940_v29 = vadd.f32 %v12939_v20, %v12938_v53  ;;  %3904 = vmatmul.mubr.bf16.gmra.mxu0 %v17683_v10  ;;  %v2898_v62 = vsel %vm2889_vm5, %v2879_v59, %v2880_v24  ;;  %v2833_v55 = vsel %vm2824_vm4, %v2814_v60, %v2815_v0 }
 0x4a7   :  { %v12941_v51 = vpop.f32.mrf.mxu0  ;;  %3913 = vmatprep.mubr.bf16.mxu0 %v23025_v32  ;;  %v17691_v49 = vpack.c.bf16 %v2898_v62, %v2899_v12  ;;  %v17693_v21 = vpack.c.bf16 %v2833_v55, %v2834_v6 }
 0x4a8   :  { %v2816_v47 = vrot.slane %v12940_v29, 6  ;;  %v2881_v1 = vrot.slane %v12940_v29, 7 }
 0x4a9   :  { %v12942_v19 = vpop.f32.mrf.mxu0 }
 0x4aa   :  { %v12943_v38 = vadd.f32 %v12942_v19, %v12941_v51  ;;  %v2897_v39 = vsel %vm2889_vm5, %v2880_v24, %v2881_v1  ;;  %v2832_v8 = vsel %vm2824_vm4, %v2815_v0, %v2816_v47 }
 0x4ab   :  { %v12944_v37 = vpop.f32.mrf.mxu0 }
 0x4ac   :  { %v2817_v58 = vrot.slane %v12943_v38, 6  ;;  %v2882_v60 = vrot.slane %v12943_v38, 7  ;;  %v17699_v59 = vpack.c.bf16 %v12943_v38, %v12940_v29 }
 0x4ad   :  { %v12945_v34 = vpop.f32.mrf.mxu0 }
 0x4ae   :  { %v12946_v36 = vadd.f32 %v12945_v34, %v12944_v37  ;;  %3914 = vmatmul.mubr.bf16.gmra.mxu0 %v17699_v59  ;;  %v2896_v12 = vsel %vm2889_vm5, %v2881_v1, %v2882_v60  ;;  %v2831_v6 = vsel %vm2824_vm4, %v2816_v47, %v2817_v58 }
 0x4af   :  { %v12947_v53 = vpop.f32.mrf.mxu0  ;;  %3923 = vmatprep.mubr.bf16.mxu0 %v23025_v32  ;;  %v17707_v24 = vpack.c.bf16 %v2896_v12, %v2897_v39  ;;  %v17709_v0 = vpack.c.bf16 %v2831_v6, %v2832_v8 }
 0x4b0   :  { %v2818_v20 = vrot.slane %v12946_v36, 6  ;;  %v2883_v29 = vrot.slane %v12946_v36, 7 }
 0x4b1   :  { %v12948_v62 = vpop.f32.mrf.mxu0 }
 0x4b2   :  { %v12949_v55 = vadd.f32 %v12948_v62, %v12947_v53  ;;  %v2895_v51 = vsel %vm2889_vm5, %v2882_v60, %v2883_v29  ;;  %v2830_v1 = vsel %vm2824_vm4, %v2817_v58, %v2818_v20 }
 0x4b3   :  { %v12950_v19 = vpop.f32.mrf.mxu0 }
 0x4b4   :  { %v2819_v38 = vrot.slane %v12949_v55, 6  ;;  %v2884_v47 = vrot.slane %v12949_v55, 7  ;;  %v17715_v37 = vpack.c.bf16 %v12949_v55, %v12946_v36 }
 0x4b5   :  { %v12951_v34 = vpop.f32.mrf.mxu0 }
 0x4b6   :  { %23027 = vst [vmem:[#allocation33_spill] sm:$0xff] %v17715_v37  ;;  %v12952_v39 = vadd.f32 %v12951_v34, %v12950_v19  ;;  %3924 = vmatmul.mubr.bf16.gmra.mxu0 %v17715_v37  ;;  %v2894_v8 = vsel %vm2889_vm5, %v2883_v29, %v2884_v47  ;;  %v2829_v12 = vsel %vm2824_vm4, %v2818_v20, %v2819_v38  ;;  %v23029_v37 = vrot.slane %v17448_v43, 6 }
 0x4b7   :  { %v12953_v6 = vpop.f32.mrf.mxu0  ;;  %3933 = vmatprep.mubr.bf16.mxu0 %v23025_v32  ;;  %v17723_v60 = vpack.c.bf16 %v2894_v8, %v2895_v51  ;;  %v17725_v58 = vpack.c.bf16 %v2829_v12, %v2830_v1 }
 0x4b8   :  { %v2820_v53 = vrot.slane %v12952_v39, 6  ;;  %v2885_v36 = vrot.slane %v12952_v39, 7 }
 0x4b9   :  { %v12954_v62 = vpop.f32.mrf.mxu0 }
 0x4ba   :  { %v12955_v55 = vadd.f32 %v12954_v62, %v12953_v6  ;;  %v2893_v19 = vsel %vm2889_vm5, %v2884_v47, %v2885_v36  ;;  %v2828_v29 = vsel %vm2824_vm4, %v2819_v38, %v2820_v53 }
 0x4bb   :  { %v12956_v34 = vpop.f32.mrf.mxu0 }
 0x4bc   :  { %v2821_v5 = vrot.slane %v12955_v55, 6  ;;  %v2886_v20 = vrot.slane %v12955_v55, 7  ;;  %v17731_v31 = vpack.c.bf16 %v12955_v55, %v12952_v39 }
 0x4bd   :  { %v12957_v50 = vpop.f32.mrf.mxu0 }
 0x4be   :  { %23028 = vst [vmem:[#allocation32_spill] sm:$0xff] %v17731_v31  ;;  %v12958_v51 = vadd.f32 %v12957_v50, %v12956_v34  ;;  %3934 = vmatmul.mubr.bf16.gmra.mxu0 %v17731_v31  ;;  %v2892_v1 = vsel %vm2889_vm5, %v2885_v36, %v2886_v20  ;;  %v2827_v8 = vsel %vm2824_vm4, %v2820_v53, %v2821_v5 }
 0x4bf   :  { %v12959_v12 = vpop.f32.mrf.mxu0  ;;  %3943 = vmatprep.mubr.bf16.mxu0 %v23025_v32  ;;  %v17739_v47 = vpack.c.bf16 %v2892_v1, %v2893_v19  ;;  %v17741_v38 = vpack.c.bf16 %v2827_v8, %v2828_v29  ;;  %v23030_v29 = vrot.slane %v17448_v43, 7  ;;  %v13802_v43 = vld [vmem:[%s22553_s5 + $0xe8] ss:$16 sps:$4 sm:$0xff]  }
 0x4c0   :  { %v2822_v6 = vrot.slane %v12958_v51, 6  ;;  %v2887_v39 = vrot.slane %v12958_v51, 7 }
 0x4c1   :  { %v12960_v62 = vpop.f32.mrf.mxu0 }
 0x4c2   :  { %v12961_v55 = vadd.f32 %v12960_v62, %v12959_v12  ;;  %v2891_v50 = vsel %vm2889_vm5, %v2886_v20, %v2887_v39  ;;  %v2826_v36 = vsel %vm2824_vm4, %v2821_v5, %v2822_v6  ;;  %v13816_v62 = vld [vmem:[%s22553_s5 + $0x6c] ss:$16 sps:$4 sm:$0xff]  }
 0x4c4   :  { %v2823_v34 = vrot.slane %v12961_v55, 6  ;;  %v2888_v31 = vrot.slane %v12961_v55, 7  ;;  %v17747_v53 = vpack.c.bf16 %v12961_v55, %v12958_v51  ;;  %v13814_v55 = vld [vmem:[%s22553_s5 + $0x68] ss:$16 sps:$4 sm:$0xff]  }
 0x4c6   :  { %v2856_v19 = vsel %vm2824_vm4, %v2823_v34, %v23029_v37  ;;  %3944 = vmatmul.mubr.bf16.gmra.mxu0 %v17747_v53  ;;  %v2921_v1 = vsel %vm2889_vm5, %v2888_v31, %v23030_v29  ;;  %v2890_v20 = vsel %vm2889_vm5, %v2887_v39, %v2888_v31  ;;  %v2825_v5 = vsel %vm2824_vm4, %v2822_v6, %v2823_v34  ;;  %v13807_v31 = vld [vmem:[%s22553_s5 + $0xcc] ss:$16 sps:$4 sm:$0xff]   ;;  %v13808_v6 = vld [vmem:[%s22553_s5 + $0xa8] ss:$16 sps:$4 sm:$0xff]  }
 0x4c7   :  { %v17763_v51 = vpack.c.bf16 %v17467_v54, %v2856_v19  ;;  %v17766_v8 = vpack.c.bf16 %v17474_v41, %v2921_v1  ;;  %4179 = vmatprep.mubr.bf16.mxu0 %v23025_v32  ;;  %v17772_v37 = vpack.c.bf16 %v2890_v20, %v2891_v50  ;;  %v17774_v12 = vpack.c.bf16 %v2825_v5, %v2826_v36  ;;  %v13805_v54 = vld [vmem:[%s22553_s5 + $0xc8] ss:$16 sps:$4 sm:$0xff]   ;;  %v13810_v41 = vld [vmem:[%s22553_s5 + $0xac] ss:$16 sps:$4 sm:$0xff]  }
 0x4c8   :  { %v13813_v39 = vld [vmem:[%s22553_s5 + $0x8c] ss:$16 sps:$4 sm:$0xff]   ;;  %v13820_v34 = vld [vmem:[%s22553_s5 + $0x28] ss:$16 sps:$4 sm:$0xff]  }
 0x4c9   :  { %3600 = vmatprep.mubr.bf16.mxu1 %v17766_v8  ;;  %v13819_v50 = vld [vmem:[%s22553_s5 + $0x4c] ss:$16 sps:$4 sm:$0xff]   ;;  %v13826_v1 = vld [vmem:[%s22553_s5 + $0x1e8] ss:$16 sps:$4 sm:$0xff]  }
 0x4ca   :  { %3601 = vmatmul.mubr.bf16.vlgmr.msra.gmra.mxu1 %v17763_v51  ;;  %v13822_v36 = vld [vmem:[%s22553_s5 + $0x2c] ss:$16 sps:$4 sm:$0xff]  }
 0x4cb   :  { %3610 = vmatprep.mubr.bf16.mxu1 %v17504_v16  ;;  %3955 = vmatpush1.bf16.msra.mxu1 %v13802_v43  ;;  %v13825_v19 = vld [vmem:[%s22553_s5 + $0xc] ss:$16 sps:$4 sm:$0xff]   ;;  %v13832_v43 = vld [vmem:[%s22553_s5 + $0x1a8] ss:$16 sps:$4 sm:$0xff]  }
 0x4cc   :  { %3956 = vmatprep.subr.bf16.mxu1 %v13807_v31  ;;  %v13828_v29 = vld [vmem:[%s22553_s5 + $0x1ec] ss:$16 sps:$4 sm:$0xff]  }
 0x4cd   :  { %v13831_v20 = vld [vmem:[%s22553_s5 + $0x1cc] ss:$16 sps:$4 sm:$0xff]  }
 0x4ce   :  { %4180 = vmatmul.mubr.bf16.vlgmr.msra.gmra.mxu0 %v17458_v3  ;;  %v13811_v3 = vld [vmem:[%s22553_s5 + $0x88] ss:$16 sps:$4 sm:$0xff]   ;;  %v13834_v5 = vld [vmem:[%s22553_s5 + $0x1ac] ss:$16 sps:$4 sm:$0xff]  }
 0x4cf   :  { %4189 = vmatprep.mubr.bf16.mxu0 %v23025_v32  ;;  %3957 = vmatpush1.bf16.msra.mxu1 %v13805_v54  ;;  %v13837_v31 = vld [vmem:[%s22553_s5 + $0x18c] ss:$16 sps:$4 sm:$0xff]  }
 0x4d0   :  { %3958 = vmatprep.subr.bf16.mxu1 %v13810_v41  ;;  %v13840_v54 = vld [vmem:[%s22553_s5 + $0x16c] ss:$16 sps:$4 sm:$0xff]   ;;  %v13838_v41 = vld [vmem:[%s22553_s5 + $0x168] ss:$16 sps:$4 sm:$0xff]  }
 0x4d2   :  { %3611 = vmatmul.mubr.bf16.gmra.mxu1 %v17506_v4 }
 0x4d3   :  { %3620 = vmatprep.mubr.bf16.mxu1 %v17532_v2  ;;  %3959 = vmatpush1.bf16.msra.mxu1 %v13808_v6  ;;  %v13843_v6 = vld [vmem:[%s22553_s5 + $0x14c] ss:$16 sps:$4 sm:$0xff]  }
 0x4d4   :  { %3960 = vmatprep.subr.bf16.mxu1 %v13813_v39  ;;  %v13846_v39 = vld [vmem:[%s22553_s5 + $0x12c] ss:$16 sps:$4 sm:$0xff]  }
 0x4d6   :  { %4190 = vmatmul.mubr.bf16.gmra.mxu0 %v17490_v48  ;;  %v13817_v48 = vld [vmem:[%s22553_s5 + $0x48] ss:$16 sps:$4 sm:$0xff]  }
 0x4d7   :  { %4199 = vmatprep.mubr.bf16.mxu0 %v23025_v32  ;;  %3961 = vmatpush1.bf16.msra.mxu1 %v13811_v3  ;;  %v13844_v3 = vld [vmem:[%s22553_s5 + $0x128] ss:$16 sps:$4 sm:$0xff]  }
 0x4d8   :  { %3962 = vmatprep.subr.bf16.mxu1 %v13816_v62  ;;  %v13849_v62 = vld [vmem:[%s22553_s5 + $0x10c] ss:$16 sps:$4 sm:$0xff]  }
 0x4da   :  { %3621 = vmatmul.mubr.bf16.gmra.mxu1 %v17534_v18 }
 0x4db   :  { %3630 = vmatprep.mubr.bf16.mxu1 %v17560_v63  ;;  %3963 = vmatpush1.bf16.msra.mxu1 %v13814_v55 }
 0x4dc   :  { %3964 = vmatprep.subr.bf16.mxu1 %v13819_v50 }
 0x4de   :  { %4200 = vmatmul.mubr.bf16.gmra.mxu0 %v17518_v23  ;;  %v13823_v23 = vld [vmem:[%s22553_s5 + $0x8] ss:$16 sps:$4 sm:$0xff]  }
 0x4df   :  { %4209 = vmatprep.mubr.bf16.mxu0 %v23025_v32  ;;  %3965 = vmatpush1.bf16.msra.mxu1 %v13817_v48 }
 0x4e0   :  { %3966 = vmatprep.subr.bf16.mxu1 %v13822_v36 }
 0x4e2   :  { %3631 = vmatmul.mubr.bf16.gmra.mxu1 %v17562_v30 }
 0x4e3   :  { %3640 = vmatprep.mubr.bf16.mxu1 %v17579_v9  ;;  %3967 = vmatpush1.bf16.msra.mxu1 %v13820_v34 }
 0x4e4   :  { %3968 = vmatprep.subr.bf16.mxu1 %v13825_v19 }
 0x4e6   :  { %4210 = vmatmul.mubr.bf16.gmra.mxu0 %v17546_v14  ;;  %v13829_v14 = vld [vmem:[%s22553_s5 + $0x1c8] ss:$16 sps:$4 sm:$0xff]  }
 0x4e7   :  { %4219 = vmatprep.mubr.bf16.mxu0 %v23025_v32  ;;  %3969 = vmatpush1.bf16.msra.mxu1 %v13823_v23 }
 0x4e8   :  { %3970 = vmatprep.subr.bf16.mxu1 %v13828_v29 }
 0x4ea   :  { %3641 = vmatmul.mubr.bf16.gmra.mxu1 %v17581_v35 }
 0x4eb   :  { %3650 = vmatprep.mubr.bf16.mxu1 %v17595_v25  ;;  %3971 = vmatpush2.bf16.msra.mxu1 %v13826_v1 }
 0x4ec   :  { %3972 = vmatprep.subr.bf16.mxu1 %v13831_v20 }
 0x4ee   :  { %4220 = vmatmul.mubr.bf16.gmra.mxu0 %v17571_v40  ;;  %v13835_v40 = vld [vmem:[%s22553_s5 + $0x188] ss:$16 sps:$4 sm:$0xff]  }
 0x4ef   :  { %4229 = vmatprep.mubr.bf16.mxu0 %v23025_v32  ;;  %3973 = vmatpush2.bf16.msra.mxu1 %v13829_v14 }
 0x4f0   :  { %3974 = vmatprep.subr.bf16.mxu1 %v13834_v5 }
 0x4f2   :  { %3651 = vmatmul.mubr.bf16.gmra.mxu1 %v17597_v13 }
 0x4f3   :  { %3660 = vmatprep.mubr.bf16.mxu1 %v17611_v7  ;;  %3975 = vmatpush2.bf16.msra.mxu1 %v13832_v43 }
 0x4f4   :  { %3976 = vmatprep.subr.bf16.mxu1 %v13837_v31 }
 0x4f6   :  { %4230 = vmatmul.mubr.bf16.gmra.mxu0 %v17587_v56  ;;  %v13841_v56 = vld [vmem:[%s22553_s5 + $0x148] ss:$16 sps:$4 sm:$0xff]  }
 0x4f7   :  { %4239 = vmatprep.mubr.bf16.mxu0 %v23025_v32  ;;  %3977 = vmatpush2.bf16.msra.mxu1 %v13835_v40 }
 0x4f8   :  { %3978 = vmatprep.subr.bf16.mxu1 %v13840_v54 }
 0x4fa   :  { %3661 = vmatmul.mubr.bf16.gmra.mxu1 %v17613_v26 }
 0x4fb   :  { %3670 = vmatprep.mubr.bf16.mxu1 %v17627_v22  ;;  %3979 = vmatpush2.bf16.msra.mxu1 %v13838_v41  ;;  %v23031_v41 = vld [vmem:[#allocation33_spill] sm:$0xff] }
 0x4fc   :  { %3980 = vmatprep.subr.bf16.mxu1 %v13843_v6 }
 0x4fe   :  { %4240 = vmatmul.mubr.bf16.gmra.mxu0 %v17603_v27  ;;  %v13847_v27 = vld [vmem:[%s22553_s5 + $0x108] ss:$16 sps:$4 sm:$0xff]  }
 0x4ff   :  { %4249 = vmatprep.mubr.bf16.mxu0 %v23025_v32  ;;  %3981 = vmatpush2.bf16.msra.mxu1 %v13841_v56 }
 0x500   :  { %3982 = vmatprep.subr.bf16.mxu1 %v13846_v39 }
 0x502   :  { %3671 = vmatmul.mubr.bf16.gmra.mxu1 %v17629_v57 }
 0x503   :  { %3680 = vmatprep.mubr.bf16.mxu1 %v17643_v11  ;;  %3983 = vmatpush2.bf16.msra.mxu1 %v13844_v3  ;;  %v23035_v3 = vld [vmem:[#allocation32_spill] sm:$0xff] }
 0x504   :  { %3984 = vmatprep.subr.bf16.mxu1 %v13849_v62 }
 0x506   :  { %4250 = vmatmul.mubr.bf16.gmra.mxu0 %v17619_v46 }
 0x507   :  { %4259 = vmatprep.mubr.bf16.mxu0 %v23025_v32  ;;  %3985 = vmatpush2.bf16.msra.mxu1 %v13847_v27 }
 0x50a   :  { %3681 = vmatmul.mubr.bf16.gmra.mxu1 %v17645_v28 }
 0x50b   :  { %3690 = vmatprep.mubr.bf16.mxu1 %v17659_v61 }
 0x50e   :  { %v17901_v55 = vpop.f32.mrf.mxu0  ;;  %4260 = vmatmul.mubr.bf16.gmra.mxu0 %v17635_v42 }
 0x50f   :  { %4269 = vmatprep.mubr.bf16.mxu0 %v23025_v32 }
 0x510   :  { %v17905_v50 = vpop.f32.mrf.mxu0 }
 0x512   :  { %3691 = vmatmul.mubr.bf16.gmra.mxu1 %v17661_v45  ;;  %v17908_v48 = vpop.f32.mrf.mxu0 }
 0x513   :  { %3700 = vmatprep.mubr.bf16.mxu1 %v17675_v15 }
 0x514   :  { %v17911_v46 = vpop.f32.mrf.mxu0 }
 0x516   :  { %v17913_v36 = vpop.f32.mrf.mxu0  ;;  %4270 = vmatmul.mubr.bf16.gmra.mxu0 %v17651_v17 }
 0x517   :  { %4279 = vmatprep.mubr.bf16.mxu0 %v23025_v32 }
 0x518   :  { %v17917_v34 = vpop.f32.mrf.mxu0 }
 0x51a   :  { %3701 = vmatmul.mubr.bf16.gmra.mxu1 %v17677_v52  ;;  %v17920_v42 = vpop.f32.mrf.mxu0 }
 0x51b   :  { %3710 = vmatprep.mubr.bf16.mxu1 %v17691_v49 }
 0x51c   :  { %v17923_v19 = vpop.f32.mrf.mxu0 }
 0x51e   :  { %v17925_v23 = vpop.f32.mrf.mxu0  ;;  %4280 = vmatmul.mubr.bf16.gmra.mxu0 %v17667_v33 }
 0x51f   :  { %4289 = vmatprep.mubr.bf16.mxu0 %v23025_v32 }
 0x520   :  { %v17929_v29 = vpop.f32.mrf.mxu0 }
 0x522   :  { %3711 = vmatmul.mubr.bf16.gmra.mxu1 %v17693_v21  ;;  %v17932_v17 = vpop.f32.mrf.mxu0 }
 0x523   :  { %3720 = vmatprep.mubr.bf16.mxu1 %v17707_v24 }
 0x524   :  { %v17935_v1 = vpop.f32.mrf.mxu0 }
 0x526   :  { %v17937_v20 = vpop.f32.mrf.mxu0  ;;  %4290 = vmatmul.mubr.bf16.gmra.mxu0 %v17683_v10 }
 0x527   :  { %4299 = vmatprep.mubr.bf16.mxu0 %v23025_v32 }
 0x528   :  { %v17941_v14 = vpop.f32.mrf.mxu0 }
 0x52a   :  { %3721 = vmatmul.mubr.bf16.gmra.mxu1 %v17709_v0  ;;  %v17944_v33 = vpop.f32.mrf.mxu0 }
 0x52b   :  { %3730 = vmatprep.mubr.bf16.mxu1 %v17723_v60 }
 0x52c   :  { %v17947_v5 = vpop.f32.mrf.mxu0 }
 0x52e   :  { %v17949_v43 = vpop.f32.mrf.mxu0  ;;  %4300 = vmatmul.mubr.bf16.gmra.mxu0 %v17699_v59 }
 0x52f   :  { %4309 = vmatprep.mubr.bf16.mxu0 %v23025_v32 }
 0x530   :  { %v17953_v31 = vpop.f32.mrf.mxu0 }
 0x532   :  { %3731 = vmatmul.mubr.bf16.gmra.mxu1 %v17725_v58  ;;  %v17956_v10 = vpop.f32.mrf.mxu0 }
 0x533   :  { %3740 = vmatprep.mubr.bf16.mxu1 %v17739_v47 }
 0x534   :  { %v17959_v40 = vpop.f32.mrf.mxu0 }
 0x536   :  { %v17961_v54 = vpop.f32.mrf.mxu0  ;;  %4310 = vmatmul.mubr.bf16.gmra.mxu0 %v23031_v41 }
 0x537   :  { %4319 = vmatprep.mubr.bf16.mxu0 %v23025_v32 }
 0x538   :  { %v17965_v6 = vpop.f32.mrf.mxu0 }
 0x53a   :  { %3741 = vmatmul.mubr.bf16.gmra.mxu1 %v17741_v38  ;;  %v17968_v59 = vpop.f32.mrf.mxu0 }
 0x53b   :  { %23032 = vst [vmem:[#allocation31_spill] sm:$0xff] %v17968_v59  ;;  %3750 = vmatprep.mubr.bf16.mxu1 %v17772_v37 }
 0x53c   :  { %v17971_v56 = vpop.f32.mrf.mxu0 }
 0x53d   :  { %23033 = vst [vmem:[#allocation30_spill] sm:$0xff] %v17971_v56 }
 0x53e   :  { %v17973_v39 = vpop.f32.mrf.mxu0  ;;  %4320 = vmatmul.mubr.bf16.gmra.mxu0 %v23035_v3 }
 0x53f   :  { %23034 = vst [vmem:[#allocation18_spill] sm:$0xff] %v17973_v39  ;;  %4329 = vmatprep.mubr.bf16.mxu0 %v23025_v32 }
 0x540   :  { %v17977_v62 = vpop.f32.mrf.mxu0 }
 0x542   :  { %3751 = vmatmul.mubr.bf16.gmra.mxu1 %v17774_v12  ;;  %v17980_v27 = vpop.f32.mrf.mxu0 }
 0x543   :  { %23036 = vst [vmem:[#allocation25_spill] sm:$0xff] %v17980_v27  ;;  %3986 = vmatprep.mubr.bf16.mxu1 %v17766_v8 }
 0x544   :  { %v17983_v41 = vpop.f32.mrf.mxu0 }
 0x546   :  { %v17985_v59 = vpop.f32.mrf.mxu0  ;;  %4330 = vmatmul.mubr.bf16.gmra.mxu0 %v17747_v53 }
 0x547   :  { %23037 = vst [vmem:[#allocation35_spill] sm:$0xff] %v17985_v59 }
 0x548   :  { %v17988_v56 = vpop.f32.mrf.mxu0 }
 0x54a   :  { %v17990_v39 = vpop.f32.mrf.mxu0  ;;  %3987 = vmatmul.mubr.bf16.vlgmr.msra.gmra.mxu1 %v17763_v51 }
 0x54b   :  { %23038 = vst [vmem:[#allocation17_spill] sm:$0xff] %v17990_v39  ;;  %3996 = vmatprep.mubr.bf16.mxu1 %v17504_v16 }
 0x54c   :  { %v17994_v32 = vpop.f32.mrf.mxu0 }
 0x54e   :  { %v17996_v3 = vpop.f32.mrf.mxu0 }
 0x550   :  { %v17998_v27 = vpop.f32.mrf.mxu0 }
 0x551   :  { %23039 = vst [vmem:[#allocation22_spill] sm:$0xff] %v17998_v27 }
 0x552   :  { %v18000_v8 = vpop.f32.mrf.mxu0  ;;  %3997 = vmatmul.mubr.bf16.gmra.mxu1 %v17506_v4 }
 0x553   :  { %23040 = vst [vmem:[#allocation28_spill] sm:$0xff] %v18000_v8  ;;  %4006 = vmatprep.mubr.bf16.mxu1 %v17532_v2 }
 0x554   :  { %v18004_v53 = vpop.f32.mrf.mxu0 }
 0x556   :  { %v18006_v59 = vpop.f32.mrf.mxu0 }
 0x558   :  { %v18008_v39 = vpop.f32.mrf.mxu0 }
 0x559   :  { %23041 = vst [vmem:[#allocation37_spill] sm:$0xff] %v18008_v39 }
 0x55a   :  { %v18010_v51 = vpop.f32.mrf.mxu0  ;;  %4007 = vmatmul.mubr.bf16.gmra.mxu1 %v17534_v18 }
 0x55b   :  { %23042 = vst [vmem:[#allocation40_spill] sm:$0xff] %v18010_v51  ;;  %4016 = vmatprep.mubr.bf16.mxu1 %v17560_v63 }
 0x55c   :  { %v18014_v16 = vpop.f32.mrf.mxu0 }
 0x55d   :  { %23043 = vst [vmem:[#allocation21_spill] sm:$0xff] %v18014_v16 }
 0x55e   :  { %v18016_v27 = vpop.f32.mrf.mxu0 }
 0x560   :  { %v18018_v8 = vpop.f32.mrf.mxu0 }
 0x561   :  { %23044 = vst [vmem:[#allocation19_spill] sm:$0xff] %v18018_v8 }
 0x562   :  { %v18020_v4 = vpop.f32.mrf.mxu0  ;;  %4017 = vmatmul.mubr.bf16.gmra.mxu1 %v17562_v30 }
 0x563   :  { %4026 = vmatprep.mubr.bf16.mxu1 %v17579_v9 }
 0x564   :  { %v18024_v2 = vpop.f32.mrf.mxu0 }
 0x565   :  { %23045 = vst [vmem:[#allocation20_spill] sm:$0xff] %v18024_v2 }
 0x566   :  { %v18026_v39 = vpop.f32.mrf.mxu0 }
 0x567   :  { %23046 = vst [vmem:[#allocation24_spill] sm:$0xff] %v18026_v39 }
 0x568   :  { %v18028_v51 = vpop.f32.mrf.mxu0 }
 0x569   :  { %23047 = vst [vmem:[#allocation26_spill] sm:$0xff] %v18028_v51 }
 0x56a   :  { %v18030_v18 = vpop.f32.mrf.mxu0  ;;  %4027 = vmatmul.mubr.bf16.gmra.mxu1 %v17581_v35 }
 0x56b   :  { %23048 = vst [vmem:[#allocation23_spill] sm:$0xff] %v18030_v18  ;;  %4036 = vmatprep.mubr.bf16.mxu1 %v17595_v25 }
 0x56c   :  { %v18034_v63 = vpop.f32.mrf.mxu0 }
 0x56d   :  { %23049 = vst [vmem:[#allocation27_spill] sm:$0xff] %v18034_v63 }
 0x56e   :  { %v18036_v8 = vpop.f32.mrf.mxu0 }
 0x56f   :  { %23050 = vst [vmem:[#allocation15_spill] sm:$0xff] %v18036_v8 }
 0x570   :  { %v18038_v16 = vpop.f32.mrf.mxu0 }
 0x571   :  { %23051 = vst [vmem:[#allocation16_spill] sm:$0xff] %v18038_v16 }
 0x572   :  { %v18040_v30 = vpop.f32.mrf.mxu0  ;;  %4037 = vmatmul.mubr.bf16.gmra.mxu1 %v17597_v13 }
 0x573   :  { %23052 = vst [vmem:[#allocation36_spill] sm:$0xff] %v18040_v30  ;;  %4046 = vmatprep.mubr.bf16.mxu1 %v17611_v7 }
 0x574   :  { %v18044_v9 = vpop.f32.mrf.mxu0 }
 0x575   :  { %23053 = vst [vmem:[#allocation34_spill] sm:$0xff] %v18044_v9 }
 0x576   :  { %v18046_v51 = vpop.f32.mrf.mxu0 }
 0x577   :  { %23054 = vst [vmem:[#allocation29_spill] sm:$0xff] %v18046_v51 }
 0x578   :  { %v18048_v18 = vpop.f32.mrf.mxu0 }
 0x579   :  { %23055 = vst [vmem:[#allocation38_spill] sm:$0xff] %v18048_v18 }
 0x57a   :  { %v18050_v35 = vpop.f32.mrf.mxu0  ;;  %4047 = vmatmul.mubr.bf16.gmra.mxu1 %v17613_v26  ;;  %v18069_v26 = vld [vmem:[%s22554_s6] sm:$0xf]  ;;  %s15003_s6 = smov 96  }
 0x57b   :  { %23056 = vst [vmem:[#allocation33_spill] sm:$0xff] %v18050_v35  ;;  %4056 = vmatprep.mubr.bf16.mxu1 %v17627_v22  ;;  %23062 = vst [vmem:[#allocation45_spill] sm:$0xff] %v18069_v26 }
 0x57c   :  { %v18054_v25 = vpop.f32.mrf.mxu0 }
 0x57d   :  { %23057 = vst [vmem:[#allocation32_spill] sm:$0xff] %v18054_v25  ;;  %v23064_v25 = vld [vmem:[#allocation13_spill] sm:$0xff] }
 0x57e   :  { %v18056_v16 = vpop.f32.mrf.mxu0 }
 0x57f   :  { %23058 = vst [vmem:[#allocation41_spill] sm:$0xff] %v18056_v16  ;;  %v18075_v16 = vrot.slane %v18069_v26, %v23064_v25 }
 0x580   :  { %v18058_v30 = vpop.f32.mrf.mxu0 }
 0x581   :  { %23059 = vst [vmem:[#allocation42_spill] sm:$0xff] %v18058_v30 }
 0x582   :  { %v18060_v13 = vpop.f32.mrf.mxu0  ;;  %4057 = vmatmul.mubr.bf16.gmra.mxu1 %v17629_v57 }
 0x583   :  { %23060 = vst [vmem:[#allocation43_spill] sm:$0xff] %v18060_v13  ;;  %4066 = vmatprep.mubr.bf16.mxu1 %v17643_v11  ;;  %v23066_v13 = vld [vmem:[#allocation14_spill] sm:$0xff] }
 0x584   :  { %v18064_v7 = vpop.f32.mrf.mxu0  ;;  %v18081_v57 = vrot.slane %v18069_v26, %v23066_v13 }
 0x585   :  { %23061 = vst [vmem:[#allocation44_spill] sm:$0xff] %v18064_v7 }
 0x586   :  { %v18071_v22 = vpop.f32.mrf.mxu0  ;;  %23067 = vst [vmem:[#allocation48_spill] sm:$0xff] %v18081_v57 }
 0x587   :  { %23063 = vst [vmem:[#allocation46_spill] sm:$0xff] %v18071_v22 }
 0x588   :  { %v18077_v30 = vpop.f32.mrf.mxu0 }
 0x589   :  { %23065 = vst [vmem:[#allocation47_spill] sm:$0xff] %v18077_v30 }
 0x58a   :  { %v3602_v11 = vpop.f32.mrf.mxu1  ;;  %v18083_v35 = vpop.f32.mrf.mxu0  ;;  %4067 = vmatmul.mubr.bf16.gmra.mxu1 %v17645_v28 }
 0x58b   :  { %23068 = vst [vmem:[#allocation49_spill] sm:$0xff] %v18083_v35  ;;  %v3603_v7 = vadd.f32 %v3602_v11, %v18075_v16  ;;  %4076 = vmatprep.mubr.bf16.mxu1 %v17659_v61 }
 0x58c   :  { %v3604_v22 = vpop.f32.mrf.mxu1  ;;  %v18088_v18 = vpop.f32.mrf.mxu0 }
 0x58d   :  { %23069 = vst [vmem:[#allocation50_spill] sm:$0xff] %v18088_v18  ;;  %v3796_v25 = vadd.f32 %v17901_v55, %v3603_v7  ;;  %v3605_v30 = vadd.f32 %v3604_v22, %v18081_v57 }
 0x58e   :  { %v3606_v51 = vpop.f32.mrf.mxu1  ;;  %v18092_v9 = vpop.f32.mrf.mxu0 }
 0x58f   :  { %23070 = vst [vmem:[#allocation51_spill] sm:$0xff] %v18092_v9  ;;  %v3798_v13 = vadd.f32 %v17905_v50, %v3605_v30  ;;  %v3607_v35 = vadd.f32 %v3606_v51, %v18075_v16  ;;  %v4340_v26 = vmax.f32 %v3796_v25, 0.0 }
 0x590   :  { %v3608_v28 = vpop.f32.mrf.mxu1  ;;  %v18098_v63 = vpop.f32.mrf.mxu0 }
 0x591   :  { %v3800_v11 = vadd.f32 %v17908_v48, %v3607_v35  ;;  %v3609_v61 = vadd.f32 %v3608_v28, %v18081_v57  ;;  %v4341_v8 = vmax.f32 %v3798_v13, 0.0  ;;  %23071 = vst [vmem:[#allocation52_spill] sm:$0xff] %v18098_v63  ;;  %v18104_v50 = vrot.slane %v4340_v26, 1 }
 0x592   :  { %v3612_v18 = vpop.f32.mrf.mxu1  ;;  %4077 = vmatmul.mubr.bf16.gmra.mxu1 %v17661_v45  ;;  %v18110_v28 = vpop.f32.mrf.mxu0 }
 0x593   :  { %v4344_v55 = vmax.f32 %v3800_v11, 0.0  ;;  %v3802_v7 = vadd.f32 %v17911_v46, %v3609_v61  ;;  %v3613_v22 = vadd.f32 %v3612_v18, %v18075_v16  ;;  %4086 = vmatprep.mubr.bf16.mxu1 %v17675_v15  ;;  %23072 = vst [vmem:[#allocation53_spill] sm:$0xff] %v18104_v50  ;;  %v18108_v13 = vrot.slane %v4341_v8, 1  ;;  %23074 = vst [vmem:[#allocation55_spill] sm:$0xff] %v18110_v28 }
 0x594   :  { %v3614_v51 = vpop.f32.mrf.mxu1  ;;  %v18123_v9 = vpop.f32.mrf.mxu0 }
 0x595   :  { %v4472_v30 = vrot.slane %v4344_v55, 1  ;;  %v4345_v48 = vmax.f32 %v3802_v7, 0.0  ;;  %v3806_v35 = vadd.f32 %v17913_v36, %v3613_v22  ;;  %v3615_v25 = vadd.f32 %v3614_v51, %v18081_v57  ;;  %23073 = vst [vmem:[#allocation54_spill] sm:$0xff] %v18108_v13  ;;  %23076 = vst [vmem:[#allocation57_spill] sm:$0xff] %v18123_v9 }
 0x596   :  { %v3616_v45 = vpop.f32.mrf.mxu1 }
 0x597   :  { %v4716_v46 = vsel %vm1121_vm2, %v18104_v50, %v4472_v30  ;;  %v4473_v18 = vrot.slane %v4345_v48, 1  ;;  %v4348_v15 = vmax.f32 %v3806_v35, 0.0  ;;  %v3808_v11 = vadd.f32 %v17917_v34, %v3615_v25 }
 0x598   :  { %v3617_v61 = vadd.f32 %v3616_v45, %v18075_v16  ;;  %v3618_v7 = vpop.f32.mrf.mxu1  ;;  %v18117_v63 = vmax.f32 %v4340_v26, %v4716_v46 }
 0x599   :  { %v4476_v36 = vrot.slane %v4348_v15, 1  ;;  %v4349_v22 = vmax.f32 %v3808_v11, 0.0  ;;  %v3619_v51 = vadd.f32 %v3618_v7, %v18081_v57  ;;  %v4717_v28 = vsel %vm1121_vm2, %v18108_v13, %v4473_v18 }
 0x59a   :  { %23075 = vst [vmem:[#allocation56_spill] sm:$0xff] %v18117_v63  ;;  %v3810_v50 = vadd.f32 %v17920_v42, %v3617_v61  ;;  %v3622_v35 = vpop.f32.mrf.mxu1  ;;  %4087 = vmatmul.mubr.bf16.gmra.mxu1 %v17677_v52  ;;  %v18127_v34 = vmax.f32 %v4341_v8, %v4717_v28  ;;  %v18140_v28 = vpop.f32.mrf.mxu0 }
 0x59b   :  { %v4712_v26 = vsel %vm1121_vm2, %v4472_v30, %v4476_v36  ;;  %v4477_v25 = vrot.slane %v4349_v22, 1  ;;  %v3812_v45 = vadd.f32 %v17923_v19, %v3619_v51  ;;  %v3623_v46 = vadd.f32 %v3622_v35, %v18075_v16  ;;  %4096 = vmatprep.mubr.bf16.mxu1 %v17691_v49  ;;  %23079 = vst [vmem:[#allocation60_spill] sm:$0xff] %v18140_v28 }
 0x59c   :  { %23077 = vst [vmem:[#allocation58_spill] sm:$0xff] %v18127_v34  ;;  %v4352_v11 = vmax.f32 %v3810_v50, 0.0  ;;  %v3624_v7 = vpop.f32.mrf.mxu1  ;;  %v18134_v9 = vmax.f32 %v4344_v55, %v4712_v26 }
 0x59d   :  { %v4353_v42 = vmax.f32 %v3812_v45, 0.0  ;;  %v3816_v61 = vadd.f32 %v17925_v23, %v3623_v46  ;;  %v3625_v52 = vadd.f32 %v3624_v7, %v18081_v57  ;;  %v4713_v8 = vsel %vm1121_vm2, %v4473_v18, %v4477_v25 }
 0x59e   :  { %23078 = vst [vmem:[#allocation59_spill] sm:$0xff] %v18134_v9  ;;  %v4480_v30 = vrot.slane %v4352_v11, 1  ;;  %v3626_v19 = vpop.f32.mrf.mxu1  ;;  %v18142_v51 = vmax.f32 %v4345_v48, %v4713_v8  ;;  %v18156_v8 = vpop.f32.mrf.mxu0 }
 0x59f   :  { %v4481_v50 = vrot.slane %v4353_v42, 1  ;;  %v4356_v55 = vmax.f32 %v3816_v61, 0.0  ;;  %v18147_v35 = vadd.f32 %v17929_v29, %v3625_v52  ;;  %v3627_v23 = vadd.f32 %v3626_v19, %v18075_v16  ;;  %23082 = vst [vmem:[#allocation63_spill] sm:$0xff] %v18156_v8  ;;  %v23108_v8 = vld [vmem:[#allocation18_spill] sm:$0xff] }
 0x5a0   :  { %23080 = vst [vmem:[#allocation61_spill] sm:$0xff] %v18142_v51  ;;  %v4708_v26 = vsel %vm1121_vm2, %v4476_v36, %v4480_v30  ;;  %v3628_v18 = vpop.f32.mrf.mxu1  ;;  %v23120_v51 = vld [vmem:[#allocation17_spill] sm:$0xff] }
 0x5a1   :  { %23081 = vst [vmem:[#allocation62_spill] sm:$0xff] %v18147_v35  ;;  %v4484_v46 = vrot.slane %v4356_v55, 1  ;;  %v22689_v48 = vmax.f32 %v18147_v35, 0.0  ;;  %v3820_v7 = vadd.f32 %v17932_v17, %v3627_v23  ;;  %v4709_v29 = vsel %vm1121_vm2, %v4477_v25, %v4481_v50 }
 0x5a2   :  { %v3632_v61 = vpop.f32.mrf.mxu1  ;;  %4097 = vmatmul.mubr.bf16.gmra.mxu1 %v17693_v21  ;;  %v18161_v52 = vmax.f32 %v4348_v15, %v4708_v26  ;;  %v18171_v45 = vmax.f32 %v4349_v22, %v4709_v29 }
 0x5a3   :  { %v4704_v36 = vsel %vm1121_vm2, %v4480_v30, %v4484_v46  ;;  %v18167_v19 = vrot.slane %v22689_v48, 1  ;;  %v4360_v49 = vmax.f32 %v3820_v7, 0.0  ;;  %4106 = vmatprep.mubr.bf16.mxu1 %v17707_v24  ;;  %v3633_v17 = vadd.f32 %v3632_v61, %v18075_v16  ;;  %v18178_v30 = vpop.f32.mrf.mxu0 }
 0x5a4   :  { %23083 = vst [vmem:[#allocation64_spill] sm:$0xff] %v18161_v52  ;;  %v3634_v23 = vpop.f32.mrf.mxu1  ;;  %23085 = vst [vmem:[#allocation66_spill] sm:$0xff] %v18171_v45  ;;  %v18173_v21 = vmax.f32 %v4352_v11, %v4704_v36 }
 0x5a5   :  { %23084 = vst [vmem:[#allocation65_spill] sm:$0xff] %v18167_v19  ;;  %v4488_v25 = vrot.slane %v4360_v49, 1  ;;  %v4705_v15 = vsel %vm1121_vm2, %v4481_v50, %v18167_v19  ;;  %23087 = vst [vmem:[#allocation68_spill] sm:$0xff] %v18178_v30  ;;  %v18181_v26 = vadd.f32 %v17937_v20, %v3633_v17  ;;  %v18194_v36 = vpop.f32.mrf.mxu0 }
 0x5a6   :  { %23086 = vst [vmem:[#allocation67_spill] sm:$0xff] %v18173_v21  ;;  %v3636_v7 = vpop.f32.mrf.mxu1  ;;  %v18183_v48 = vmax.f32 %v4353_v42, %v4705_v15  ;;  %23091 = vst [vmem:[#allocation72_spill] sm:$0xff] %v18194_v36 }
 0x5a7   :  { %23088 = vst [vmem:[#allocation69_spill] sm:$0xff] %v18181_v26  ;;  %v4700_v22 = vsel %vm1121_vm2, %v4484_v46, %v4488_v25  ;;  %v22690_v11 = vmax.f32 %v18181_v26, 0.0  ;;  %v18205_v17 = vpop.f32.mrf.mxu0 }
 0x5a8   :  { %23089 = vst [vmem:[#allocation70_spill] sm:$0xff] %v18183_v48  ;;  %v3638_v61 = vpop.f32.mrf.mxu1  ;;  %v18190_v29 = vmax.f32 %v4356_v55, %v4700_v22  ;;  %23093 = vst [vmem:[#allocation74_spill] sm:$0xff] %v18205_v17 }
 0x5a9   :  { %v18198_v20 = vrot.slane %v22690_v11, 1  ;;  %v18211_v11 = vpop.f32.mrf.mxu0  ;;  %v3639_v17 = vadd.f32 %v3638_v61, %v18081_v57 }
 0x5aa   :  { %23090 = vst [vmem:[#allocation71_spill] sm:$0xff] %v18190_v29  ;;  %v3642_v42 = vpop.f32.mrf.mxu1  ;;  %4107 = vmatmul.mubr.bf16.gmra.mxu1 %v17709_v0  ;;  %23095 = vst [vmem:[#allocation76_spill] sm:$0xff] %v18211_v11  ;;  %v3629_v0 = vadd.f32 %v3628_v18, %v18081_v57 }
 0x5ab   :  { %23092 = vst [vmem:[#allocation73_spill] sm:$0xff] %v18198_v20  ;;  %4116 = vmatprep.mubr.bf16.mxu1 %v17723_v60  ;;  %v4696_v46 = vsel %vm1121_vm2, %v4488_v25, %v18198_v20  ;;  %v3635_v60 = vadd.f32 %v3634_v23, %v18081_v57  ;;  %v18231_v61 = vadd.f32 %v17947_v5, %v3639_v17 }
 0x5ac   :  { %v3644_v55 = vpop.f32.mrf.mxu1  ;;  %v18207_v22 = vmax.f32 %v4360_v49, %v4696_v46  ;;  %v18218_v49 = vpop.f32.mrf.mxu0  ;;  %v3637_v46 = vadd.f32 %v3636_v7, %v18075_v16  ;;  %v18223_v11 = vadd.f32 %v17935_v1, %v3629_v0 }
 0x5ad   :  { %23096 = vst [vmem:[#allocation77_spill] sm:$0xff] %v18218_v49  ;;  %v3645_v50 = vadd.f32 %v3644_v55, %v18081_v57  ;;  %v18227_v18 = vadd.f32 %v17941_v14, %v3635_v60 }
 0x5ae   :  { %v3646_v15 = vpop.f32.mrf.mxu1  ;;  %23094 = vst [vmem:[#allocation75_spill] sm:$0xff] %v18207_v22  ;;  %23097 = vst [vmem:[#allocation78_spill] sm:$0xff] %v18223_v11  ;;  %v18234_v7 = vpop.f32.mrf.mxu0  ;;  %v18237_v55 = vadd.f32 %v17944_v33, %v3637_v46  ;;  %v22691_v14 = vmax.f32 %v18223_v11, 0.0 }
 0x5af   :  { %23098 = vst [vmem:[#allocation79_spill] sm:$0xff] %v18227_v18  ;;  %23099 = vst [vmem:[#allocation80_spill] sm:$0xff] %v18234_v7  ;;  %v18240_v1 = vadd.f32 %v17953_v31, %v3645_v50  ;;  %v22692_v5 = vmax.f32 %v18227_v18, 0.0  ;;  %v22693_v31 = vmax.f32 %v18231_v61, 0.0 }
 0x5b0   :  { %v3648_v24 = vpop.f32.mrf.mxu1  ;;  %23100 = vst [vmem:[#allocation81_spill] sm:$0xff] %v18237_v55  ;;  %v18259_v0 = vpop.f32.mrf.mxu0 }
 0x5b1   :  { %v3649_v49 = vadd.f32 %v3648_v24, %v18081_v57  ;;  %23101 = vst [vmem:[#allocation82_spill] sm:$0xff] %v18259_v0  ;;  %v4497_v46 = vrot.slane %v22693_v31, 1 }
 0x5b2   :  { %v3652_v36 = vpop.f32.mrf.mxu1  ;;  %4117 = vmatmul.mubr.bf16.gmra.mxu1 %v17725_v58  ;;  %v3647_v58 = vadd.f32 %v3646_v15, %v18075_v16 }
 0x5b3   :  { %4126 = vmatprep.mubr.bf16.mxu1 %v17739_v47  ;;  %v3643_v47 = vadd.f32 %v3642_v42, %v18075_v16  ;;  %v3653_v33 = vadd.f32 %v3652_v36, %v18075_v16  ;;  %v18255_v50 = vadd.f32 %v17959_v40, %v3649_v49  ;;  %v18265_v36 = vrot.slane %v22691_v14, 1 }
 0x5b4   :  { %v3654_v25 = vpop.f32.mrf.mxu1  ;;  %v18245_v42 = vadd.f32 %v17956_v10, %v3647_v58  ;;  %v18272_v58 = vrot.slane %v22692_v5, 1  ;;  %v23102_v5 = vmax.f32 %v18237_v55, 0.0 }
 0x5b5   :  { %v18250_v24 = vadd.f32 %v17949_v43, %v3643_v47  ;;  %v18290_v47 = vpop.f32.mrf.mxu0 }
 0x5b6   :  { %v3656_v30 = vpop.f32.mrf.mxu1  ;;  %v18288_v7 = vrot.slane %v23102_v5, 1  ;;  %23103 = vst [vmem:[#allocation83_spill] sm:$0xff] %v18290_v47 }
 0x5b7   :  { %v3657_v40 = vadd.f32 %v3656_v30, %v18075_v16 }
 0x5b8   :  { %v3658_v23 = vpop.f32.mrf.mxu1 }
 0x5b9   :  { %v3659_v60 = vadd.f32 %v3658_v23, %v18081_v57  ;;  %v18276_v23 = vadd.f32 %v17961_v54, %v3653_v33  ;;  %v23104_v54 = vmax.f32 %v18240_v1, 0.0 }
 0x5ba   :  { %v3662_v15 = vpop.f32.mrf.mxu1  ;;  %4127 = vmatmul.mubr.bf16.gmra.mxu1 %v17741_v38  ;;  %v3655_v38 = vadd.f32 %v3654_v25, %v18081_v57  ;;  %v13852_v25 = vld [vmem:[#allocation4 + $0x4] ss:$8 sps:$4 sm:$0xff]  }
 0x5bb   :  { %4136 = vmatprep.mubr.bf16.mxu1 %v17772_v37  ;;  %v3663_v49 = vadd.f32 %v3662_v15, %v18075_v16  ;;  %v4501_v33 = vrot.slane %v23104_v54, 1 }
 0x5bc   :  { %v3664_v17 = vpop.f32.mrf.mxu1  ;;  %v18283_v15 = vadd.f32 %v17965_v6, %v3655_v38  ;;  %v23106_v6 = vmax.f32 %v18245_v42, 0.0  ;;  %v23107_v38 = vld [vmem:[#allocation31_spill] sm:$0xff] }
 0x5bd   :  { %v3665_v37 = vadd.f32 %v3664_v17, %v18081_v57  ;;  %v23105_v17 = vld [vmem:[#allocation30_spill] sm:$0xff]  ;;  %v18304_v5 = vadd.f32 %v23107_v38, %v3657_v40  ;;  %v18307_v47 = vadd.f32 %v23108_v8, %v3663_v49  ;;  %v23110_v38 = vmax.f32 %v18255_v50, 0.0 }
 0x5be   :  { %v3666_v43 = vpop.f32.mrf.mxu1  ;;  %v18295_v0 = vadd.f32 %v23105_v17, %v3659_v60  ;;  %v23109_v60 = vmax.f32 %v18250_v24, 0.0  ;;  %v23116_v9 = vmax.f32 %v18283_v15, 0.0 }
 0x5bf   :  { %v3667_v31 = vadd.f32 %v3666_v43, %v18075_v16  ;;  %v18318_v17 = vadd.f32 %v17977_v62, %v3665_v37  ;;  %v4505_v8 = vrot.slane %v23110_v38, 1  ;;  %v23113_v37 = vld [vmem:[#allocation25_spill] sm:$0xff]  ;;  %v18339_v38 = vsel %vm1121_vm2, %v4497_v46, %v4501_v33 }
 0x5c0   :  { %v3668_v14 = vpop.f32.mrf.mxu1  ;;  %v18314_v43 = vrot.slane %v23109_v60, 1  ;;  %v4509_v49 = vrot.slane %v23116_v9, 1  ;;  %v23121_v62 = vmax.f32 %v18304_v5, 0.0 }
 0x5c1   :  { %v3669_v10 = vadd.f32 %v3668_v14, %v18081_v57  ;;  %v18301_v14 = vrot.slane %v23106_v6, 1  ;;  %v18334_v60 = vadd.f32 %v23113_v37, %v3667_v31  ;;  %v23114_v37 = vmax.f32 %v18276_v23, 0.0 }
 0x5c2   :  { %v3672_v30 = vpop.f32.mrf.mxu1  ;;  %4137 = vmatmul.mubr.bf16.gmra.mxu1 %v17774_v12 }
 0x5c3   :  { %v18310_v54 = vadd.f32 %v17983_v41, %v3669_v10  ;;  %5044 = vmatprep.mubr.bf16.mxu1 %v13852_v25  ;;  %v3673_v6 = vadd.f32 %v3672_v30, %v18075_v16  ;;  %v18328_v10 = vsel %vm1121_vm2, %v18272_v58, %v4497_v46  ;;  %v18330_v25 = vpop.f32.mrf.mxu0  ;;  %v18354_v30 = vrot.slane %v23114_v37, 1 }
 0x5c4   :  { %v3674_v40 = vpop.f32.mrf.mxu1  ;;  %23111 = vst [vmem:[#allocation30_spill] sm:$0xff] %v18328_v10  ;;  %23112 = vst [vmem:[#allocation31_spill] sm:$0xff] %v18330_v25  ;;  %v4389_v46 = vmax.f32 %v18318_v17, 0.0  ;;  %v23115_v25 = vld [vmem:[#allocation35_spill] sm:$0xff]  ;;  %v23118_v17 = vmax.f32 %v18295_v0, 0.0 }
 0x5c5   :  { %v3675_v41 = vadd.f32 %v3674_v40, %v18081_v57  ;;  %v18345_v40 = vsel %vm1121_vm2, %v18314_v43, %v18301_v14  ;;  %v18358_v28 = vadd.f32 %v23115_v25, %v3673_v6  ;;  %v18369_v37 = vpop.f32.mrf.mxu0  ;;  %v23129_v20 = vmax.f32 %v18310_v54, 0.0 }
 0x5c6   :  { %v3676_v12 = vpop.f32.mrf.mxu1  ;;  %23117 = vst [vmem:[#allocation18_spill] sm:$0xff] %v18369_v37  ;;  %v4513_v6 = vrot.slane %v23118_v17, 1  ;;  %v4517_v17 = vrot.slane %v4389_v46, 1 }
 0x5c7   :  { %v18350_v31 = vadd.f32 %v17988_v56, %v3675_v41  ;;  %v3677_v13 = vadd.f32 %v3676_v12, %v18075_v16  ;;  %v18367_v41 = vsel %vm1121_vm2, %v4501_v33, %v4505_v8  ;;  %v23119_v12 = vmax.f32 %v18310_v54, 0.0  ;;  %v23132_v54 = vld [vmem:[#allocation37_spill] sm:$0xff] }
 0x5c8   :  { %v3678_v63 = vpop.f32.mrf.mxu1  ;;  %v23122_v33 = vmax.f32 %v18307_v47, 0.0  ;;  %v4396_v25 = vmax.f32 %v18358_v28, 0.0 }
 0x5c9   :  { %v3679_v56 = vadd.f32 %v3678_v63, %v18081_v57  ;;  %v4521_v34 = vrot.slane %v23119_v12, 1  ;;  %v3870_v9 = vadd.f32 %v23120_v51, %v3677_v13  ;;  %v18379_v63 = vrot.slane %v23121_v62, 1 }
 0x5ca   :  { %v3682_v52 = vpop.f32.mrf.mxu1  ;;  %v4516_v21 = vrot.slane %v23122_v33, 1  ;;  %v23123_v45 = vmax.f32 %v18350_v31, 0.0  ;;  %v18392_v33 = vsel %vm1121_vm2, %v4505_v8, %v4509_v49 }
 0x5cb   :  { %v3872_v37 = vadd.f32 %v17994_v32, %v3679_v56  ;;  %v3683_v2 = vadd.f32 %v3682_v52, %v18075_v16  ;;  %v4400_v48 = vmax.f32 %v3870_v9, 0.0  ;;  %v18394_v32 = vpop.f32.mrf.mxu0  ;;  %v23125_v52 = vmax.f32 %v18334_v60, 0.0  ;;  %v23126_v9 = vld [vmem:[#allocation22_spill] sm:$0xff] }
 0x5cc   :  { %v4525_v12 = vrot.slane %v23123_v45, 1  ;;  %v3684_v13 = vpop.f32.mrf.mxu1  ;;  %23124 = vst [vmem:[#allocation25_spill] sm:$0xff] %v18394_v32  ;;  %v4669_v45 = vsel %vm1121_vm2, %v4517_v17, %v4521_v34  ;;  %v18409_v32 = vsel %vm1121_vm2, %v18379_v63, %v4516_v21 }
 0x5cd   :  { %v4401_v51 = vmax.f32 %v3872_v37, 0.0  ;;  %v3876_v29 = vadd.f32 %v17996_v3, %v3683_v2  ;;  %v3685_v62 = vadd.f32 %v3684_v13, %v18081_v57  ;;  %v4520_v56 = vrot.slane %v23125_v52, 1 }
 0x5ce   :  { %v4528_v28 = vrot.slane %v4400_v48, 1  ;;  %v3686_v22 = vpop.f32.mrf.mxu1  ;;  %v18402_v37 = vsel %vm1121_vm2, %v4509_v49, %v4513_v6  ;;  %v4524_v52 = vrot.slane %v4396_v25, 1  ;;  %v4665_v26 = vsel %vm1121_vm2, %v4521_v34, %v4525_v12 }
 0x5cf   :  { %v4529_v3 = vrot.slane %v4401_v51, 1  ;;  %v4404_v2 = vmax.f32 %v3876_v29, 0.0  ;;  %v3878_v13 = vadd.f32 %v23126_v9, %v3685_v62  ;;  %v3687_v8 = vadd.f32 %v3686_v22, %v18075_v16  ;;  %v23127_v29 = vld [vmem:[#allocation28_spill] sm:$0xff]  ;;  %v18419_v62 = vpop.f32.mrf.mxu0 }
 0x5d0   :  { %v3688_v35 = vpop.f32.mrf.mxu1  ;;  %v4673_v49 = vsel %vm1121_vm2, %v4513_v6, %v4517_v17  ;;  %23128 = vst [vmem:[#allocation35_spill] sm:$0xff] %v18419_v62  ;;  %v4668_v9 = vsel %vm1121_vm2, %v4516_v21, %v4520_v56  ;;  %v4660_v39 = vsel %vm1121_vm2, %v4524_v52, %v4528_v28  ;;  %v4773_v6 = vmax.f32 %v4389_v46, %v4669_v45 }
 0x5d1   :  { %v4532_v11 = vrot.slane %v4404_v2, 1  ;;  %v4405_v19 = vmax.f32 %v3878_v13, 0.0  ;;  %v18416_v55 = vadd.f32 %v23127_v29, %v3687_v8  ;;  %v3689_v22 = vadd.f32 %v3688_v35, %v18081_v57 }
 0x5d2   :  { %v3692_v18 = vpop.f32.mrf.mxu1  ;;  %v4661_v34 = vsel %vm1121_vm2, %v4525_v12, %v4529_v3  ;;  %v4664_v21 = vsel %vm1121_vm2, %v4520_v56, %v4524_v52  ;;  %v4777_v12 = vmax.f32 %v23129_v20, %v4665_v26 }
 0x5d3   :  { %v4656_v17 = vsel %vm1121_vm2, %v4528_v28, %v4532_v11  ;;  %v4533_v13 = vrot.slane %v4405_v19, 1  ;;  %v4408_v8 = vmax.f32 %v18416_v55, 0.0  ;;  %v18431_v35 = vadd.f32 %v18004_v53, %v3689_v22  ;;  %v18442_v53 = vpop.f32.mrf.mxu0 }
 0x5d4   :  { %v3693_v29 = vadd.f32 %v3692_v18, %v18075_v16  ;;  %v3694_v62 = vpop.f32.mrf.mxu1  ;;  %v4784_v10 = vmax.f32 %v4400_v48, %v4656_v17  ;;  %23130 = vst [vmem:[#allocation17_spill] sm:$0xff] %v18442_v53  ;;  %v23131_v18 = vmax.f32 %v18350_v31, 0.0  ;;  %v4780_v17 = vmax.f32 %v4396_v25, %v4660_v39  ;;  %v23136_v25 = vld [vmem:[#allocation40_spill] sm:$0xff] }
 0x5d5   :  { %v4536_v46 = vrot.slane %v4408_v8, 1  ;;  %v4409_v45 = vmax.f32 %v18431_v35, 0.0  ;;  %v3695_v28 = vadd.f32 %v3694_v62, %v18081_v57  ;;  %v4657_v55 = vsel %vm1121_vm2, %v4529_v3, %v4533_v13 }
 0x5d6   :  { %v3886_v22 = vadd.f32 %v18006_v59, %v3693_v29  ;;  %v3696_v56 = vpop.f32.mrf.mxu1  ;;  %v4781_v52 = vmax.f32 %v23131_v18, %v4661_v34  ;;  %v4785_v48 = vmax.f32 %v4401_v51, %v4657_v55  ;;  %v23134_v59 = vmax.f32 %v18334_v60, 0.0 }
 0x5d7   :  { %v4652_v26 = vsel %vm1121_vm2, %v4532_v11, %v4536_v46  ;;  %v4537_v20 = vrot.slane %v4409_v45, 1  ;;  %v18450_v35 = vadd.f32 %v23132_v54, %v3695_v28  ;;  %v3697_v62 = vadd.f32 %v3696_v56, %v18075_v16  ;;  %v18465_v28 = vpop.f32.mrf.mxu0 }
 0x5d8   :  { %v4412_v3 = vmax.f32 %v3886_v22, 0.0  ;;  %v18453_v57 = vpop.f32.mrf.mxu1  ;;  %v4897_v53 = vpack.c.bf16 %v4785_v48, %v4781_v52  ;;  %v4776_v29 = vmax.f32 %v23134_v59, %v4664_v21  ;;  %v18457_v31 = vmax.f32 %v4404_v2, %v4652_v26  ;;  %23137 = vst [vmem:[#allocation37_spill] sm:$0xff] %v18465_v28 }
 0x5d9   :  { %23133 = vst [vmem:[#allocation22_spill] sm:$0xff] %v18450_v35  ;;  %v22716_v39 = vmax.f32 %v18450_v35, 0.0  ;;  %v18461_v51 = vadd.f32 %v23136_v25, %v3697_v62  ;;  %v4896_v11 = vpack.c.bf16 %v4784_v10, %v4780_v17  ;;  %v4653_v34 = vsel %vm1121_vm2, %v4533_v13, %v4537_v20 }
 0x5da   :  { %23135 = vst [vmem:[#allocation28_spill] sm:$0xff] %v18457_v31  ;;  %v4540_v55 = vrot.slane %v4412_v3, 1  ;;  %v3702_v22 = vpop.f32.mrf.mxu1  ;;  %5012 = vmatprep.subr.bf16.mxu1 %v4897_v53  ;;  %v4893_v56 = vpack.c.bf16 %v4777_v12, %v4773_v6  ;;  %v23138_v60 = vmax.f32 %v18295_v0, 0.0  ;;  %v18469_v2 = vmax.f32 %v4405_v19, %v4653_v34 }
 0x5db   :  { %v18473_v18 = vrot.slane %v22716_v39, 1  ;;  %v4416_v10 = vmax.f32 %v18461_v51, 0.0  ;;  %v3703_v52 = vadd.f32 %v3702_v22, %v18075_v16  ;;  %5013 = vmatpush1.bf16.msra.mxu1 %v4896_v11  ;;  %v23141_v13 = vmax.f32 %v18307_v47, 0.0  ;;  %v23209_v39 = vld [vmem:[#allocation32_spill] sm:$0xff] }
 0x5dc   :  { %v4769_v21 = vmax.f32 %v23138_v60, %v4673_v49  ;;  %23139 = vst [vmem:[#allocation40_spill] sm:$0xff] %v18469_v2  ;;  %v4680_v0 = vsel %vm1121_vm2, %v18301_v14, %v18354_v30  ;;  %v4676_v19 = vsel %vm1121_vm2, %v18354_v30, %v18379_v63  ;;  %v4648_v49 = vsel %vm1121_vm2, %v4536_v46, %v4540_v55  ;;  %v18489_v6 = vpop.f32.mrf.mxu1  ;;  %v18500_v30 = vpop.f32.mrf.mxu0 }
 0x5dd   :  { %23140 = vst [vmem:[#allocation84_spill] sm:$0xff] %v18473_v18  ;;  %v4772_v48 = vmax.f32 %v23141_v13, %v4668_v9  ;;  %5014 = vmatprep.subr.bf16.mxu1 %v4893_v56  ;;  %v23142_v47 = vmax.f32 %v18283_v15, 0.0  ;;  %v4544_v12 = vrot.slane %v4416_v10, 1  ;;  %v18495_v53 = vadd.f32 %v18016_v27, %v3703_v52  ;;  %23144 = vst [vmem:[#allocation85_spill] sm:$0xff] %v18500_v30  ;;  %v23222_v30 = vld [vmem:[#allocation46_spill] sm:$0xff] }
 0x5de   :  { %v23143_v17 = vmax.f32 %v18304_v5, 0.0  ;;  %v3706_v63 = vpop.f32.mrf.mxu1  ;;  %v23145_v54 = vmax.f32 %v18255_v50, 0.0  ;;  %v4649_v15 = vsel %vm1121_vm2, %v4537_v20, %v18473_v18  ;;  %v23153_v56 = vmax.f32 %v18231_v61, 0.0  ;;  %v23155_v61 = vld [vmem:[#allocation73_spill] sm:$0xff] }
 0x5df   :  { %v4765_v9 = vmax.f32 %v23142_v47, %v18402_v37  ;;  %v4892_v14 = vpack.c.bf16 %v4776_v29, %v4772_v48  ;;  %v18508_v37 = vmax.f32 %v4408_v8, %v4648_v49  ;;  %v4644_v27 = vsel %vm1121_vm2, %v4540_v55, %v4544_v12  ;;  %v18531_v55 = vpop.f32.mrf.mxu0  ;;  %v23157_v49 = vld [vmem:[#allocation79_spill] sm:$0xff] }
 0x5e0   :  { %v4768_v26 = vmax.f32 %v23143_v17, %v18409_v32  ;;  %v4761_v62 = vmax.f32 %v23145_v54, %v18392_v33  ;;  %v4420_v5 = vmax.f32 %v18495_v53, 0.0  ;;  %v23147_v32 = vmax.f32 %v18276_v23, 0.0  ;;  %v3708_v25 = vpop.f32.mrf.mxu1  ;;  %23152 = vst [vmem:[#allocation89_spill] sm:$0xff] %v18531_v55 }
 0x5e1   :  { %v4889_v46 = vpack.c.bf16 %v4769_v21, %v4765_v9  ;;  %23146 = vst [vmem:[#allocation86_spill] sm:$0xff] %v18508_v37  ;;  %5015 = vmatpush1.bf16.msra.mxu1 %v4892_v14  ;;  %v23148_v29 = vmax.f32 %v18240_v1, 0.0  ;;  %v3707_v33 = vadd.f32 %v3706_v63, %v18075_v16  ;;  %v18519_v20 = vmax.f32 %v4412_v3, %v4644_v27  ;;  %v23161_v14 = vld [vmem:[#allocation81_spill] sm:$0xff]  ;;  %v18567_v63 = vpop.f32.mrf.mxu0 }
 0x5e2   :  { %v4764_v59 = vmax.f32 %v23147_v32, %v4676_v19  ;;  %v18521_v8 = vmax.f32 %v4409_v45, %v4649_v15  ;;  %v4688_v23 = vsel %vm1121_vm2, %v18288_v7, %v18314_v43  ;;  %v4548_v11 = vrot.slane %v4420_v5, 1  ;;  %v3712_v22 = vpop.f32.mrf.mxu1  ;;  %v23156_v19 = vld [vmem:[#allocation30_spill] sm:$0xff]  ;;  %v23208_v32 = vld [vmem:[#allocation33_spill] sm:$0xff] }
 0x5e3   :  { %v4757_v50 = vmax.f32 %v23148_v29, %v18367_v41  ;;  %5016 = vmatprep.subr.bf16.mxu1 %v4889_v46  ;;  %23149 = vst [vmem:[#allocation87_spill] sm:$0xff] %v18519_v20  ;;  %v23151_v1 = vmax.f32 %v18245_v42, 0.0  ;;  %v3900_v3 = vadd.f32 %v18020_v4, %v3707_v33  ;;  %v4753_v60 = vmax.f32 %v23153_v56, %v18339_v38  ;;  %v23165_v15 = vld [vmem:[#allocation78_spill] sm:$0xff]  ;;  %v23167_v29 = vld [vmem:[#allocation69_spill] sm:$0xff] }
 0x5e4   :  { %23150 = vst [vmem:[#allocation88_spill] sm:$0xff] %v18521_v8  ;;  %v4888_v34 = vpack.c.bf16 %v4768_v26, %v4764_v59  ;;  %v4640_v43 = vsel %vm1121_vm2, %v4544_v12, %v4548_v11  ;;  %v3713_v52 = vadd.f32 %v3712_v22, %v18075_v16  ;;  %v23154_v42 = vmax.f32 %v18250_v24, 0.0  ;;  %v23160_v24 = vld [vmem:[#allocation24_spill] sm:$0xff]  ;;  %v23163_v26 = vld [vmem:[#allocation65_spill] sm:$0xff]  ;;  %23164 = vst [vmem:[#allocation30_spill] sm:$0xff] %v18567_v63 }
 0x5e5   :  { %v4760_v41 = vmax.f32 %v23151_v1, %v4680_v0  ;;  %v4885_v45 = vpack.c.bf16 %v4761_v62, %v4757_v50  ;;  %v4697_v4 = vsel %vm1121_vm2, %v18265_v36, %v18272_v58  ;;  %v4692_v38 = vsel %vm1121_vm2, %v23155_v61, %v18288_v7  ;;  %v3714_v0 = vpop.f32.mrf.mxu1 }
 0x5e6   :  { %5017 = vmatpush1.bf16.msra.mxu1 %v4888_v34  ;;  %v4756_v13 = vmax.f32 %v23154_v42, %v18345_v40  ;;  %v4424_v48 = vmax.f32 %v3900_v3, 0.0  ;;  %v23158_v47 = vmax.f32 %v23157_v49, 0.0  ;;  %v18556_v12 = vmax.f32 %v4416_v10, %v4640_v43  ;;  %v23169_v34 = vld [vmem:[#allocation62_spill] sm:$0xff] }
 0x5e7   :  { %5018 = vmatprep.subr.bf16.mxu1 %v4885_v45  ;;  %v18559_v40 = vadd.f32 %v23160_v24, %v3713_v52  ;;  %v23162_v58 = vmax.f32 %v23161_v14, 0.0  ;;  %v4701_v7 = vsel %vm1121_vm2, %v23163_v26, %v18265_v36  ;;  %v3716_v54 = vpop.f32.mrf.mxu1  ;;  %v23166_v10 = vmax.f32 %v23165_v15, 0.0  ;;  %v18584_v45 = vpop.f32.mrf.mxu0  ;;  %v23179_v14 = vld [vmem:[#allocation70_spill] sm:$0xff]  ;;  %v23183_v26 = vld [vmem:[#allocation20_spill] sm:$0xff] }
 0x5e8   :  { %v4749_v9 = vmax.f32 %v23158_v47, %v23156_v19  ;;  %23159 = vst [vmem:[#allocation73_spill] sm:$0xff] %v18556_v12  ;;  %v4884_v53 = vpack.c.bf16 %v4760_v41, %v4756_v13  ;;  %v4552_v46 = vrot.slane %v4424_v48, 1  ;;  %v23168_v50 = vmax.f32 %v23167_v29, 0.0  ;;  %23171 = vst [vmem:[#allocation79_spill] sm:$0xff] %v18584_v45  ;;  %v23176_v47 = vld [vmem:[#allocation75_spill] sm:$0xff] }
 0x5e9   :  { %v4752_v17 = vmax.f32 %v23162_v58, %v4688_v23  ;;  %v4745_v27 = vmax.f32 %v23166_v10, %v4697_v4  ;;  %v22719_v59 = vmax.f32 %v18559_v40, 0.0  ;;  %v3718_v23 = vpop.f32.mrf.mxu1  ;;  %v23170_v1 = vmax.f32 %v23169_v34, 0.0  ;;  %v18593_v13 = vpop.f32.mrf.mxu0  ;;  %v23175_v4 = vld [vmem:[#allocation48_spill] sm:$0xff]  ;;  %v23180_v58 = vld [vmem:[#allocation66_spill] sm:$0xff]  ;;  %v23186_v10 = vld [vmem:[#allocation19_spill] sm:$0xff] }
 0x5ea   :  { %v4881_v62 = vpack.c.bf16 %v4753_v60, %v4749_v9  ;;  %5019 = vmatpush1.bf16.msra.mxu1 %v4884_v53  ;;  %v4748_v33 = vmax.f32 %v23168_v50, %v4692_v38  ;;  %v4636_v36 = vsel %vm1121_vm2, %v4548_v11, %v4552_v46  ;;  %23174 = vst [vmem:[#allocation65_spill] sm:$0xff] %v18593_v13  ;;  %v23177_v9 = vld [vmem:[#allocation71_spill] sm:$0xff]  ;;  %v23190_v34 = vld [vmem:[#allocation26_spill] sm:$0xff] }
 0x5eb   :  { %v4741_v41 = vmax.f32 %v23170_v1, %v4701_v7  ;;  %v18582_v3 = vrot.slane %v22719_v59, 1  ;;  %v3722_v56 = vpop.f32.mrf.mxu1  ;;  %v18586_v43 = vmax.f32 %v4420_v5, %v4636_v36  ;;  %v3709_v61 = vadd.f32 %v3708_v25, %v23175_v4  ;;  %v23187_v50 = vld [vmem:[#allocation67_spill] sm:$0xff] }
 0x5ec   :  { %5020 = vmatprep.subr.bf16.mxu1 %v4881_v62  ;;  %v4880_v22 = vpack.c.bf16 %v4752_v17, %v4748_v33  ;;  %v3699_v5 = vadd.f32 %v18453_v57, %v23175_v4  ;;  %v3705_v49 = vadd.f32 %v18489_v6, %v23175_v4  ;;  %v23178_v24 = vpack.c.bf16 %v23176_v47, %v23177_v9  ;;  %v18609_v17 = vpop.f32.mrf.mxu0  ;;  %v23184_v62 = vld [vmem:[#allocation21_spill] sm:$0xff]  ;;  %v23188_v33 = vld [vmem:[#allocation64_spill] sm:$0xff]  ;;  %v23196_v47 = vld [vmem:[#allocation27_spill] sm:$0xff] }
 0x5ed   :  { %v4877_v60 = vpack.c.bf16 %v4745_v27, %v4741_v41  ;;  %23172 = vst [vmem:[#allocation24_spill] sm:$0xff] %v18586_v43  ;;  %v4632_v11 = vsel %vm1121_vm2, %v4552_v46, %v18582_v3  ;;  %v3724_v52 = vpop.f32.mrf.mxu1  ;;  %v23181_v25 = vpack.c.bf16 %v23179_v14, %v23180_v58  ;;  %23182 = vst [vmem:[#allocation78_spill] sm:$0xff] %v18609_v17  ;;  %v23191_v41 = vld [vmem:[#allocation61_spill] sm:$0xff]  ;;  %v23231_v12 = vld [vmem:[#allocation51_spill] sm:$0xff] }
 0x5ee   :  { %5021 = vmatpush1.bf16.msra.mxu1 %v4880_v22  ;;  %v18591_v42 = vmax.f32 %v4424_v48, %v4632_v11  ;;  %v3715_v48 = vadd.f32 %v3714_v0, %v23175_v4  ;;  %v18612_v7 = vadd.f32 %v23183_v26, %v3709_v61  ;;  %v3717_v57 = vadd.f32 %v3716_v54, %v18075_v16  ;;  %v23192_v22 = vld [vmem:[#allocation58_spill] sm:$0xff]  ;;  %v18636_v61 = vpop.f32.mrf.mxu0 }
 0x5ef   :  { %5022 = vmatprep.subr.bf16.mxu1 %v4877_v60  ;;  %v3726_v38 = vpop.f32.mrf.mxu1  ;;  %v3719_v6 = vadd.f32 %v3718_v23, %v23175_v4  ;;  %v18617_v15 = vadd.f32 %v23184_v62, %v3699_v5  ;;  %v18620_v0 = vadd.f32 %v23186_v10, %v3705_v49  ;;  %v3723_v27 = vadd.f32 %v3722_v56, %v18075_v16  ;;  %v23195_v5 = vld [vmem:[#allocation23_spill] sm:$0xff]  ;;  %v23200_v10 = vld [vmem:[#allocation56_spill] sm:$0xff] }
 0x5f0   :  { %23173 = vst [vmem:[#allocation81_spill] sm:$0xff] %v18591_v42  ;;  %v3725_v29 = vadd.f32 %v3724_v52, %v23175_v4  ;;  %v23189_v36 = vpack.c.bf16 %v23187_v50, %v23188_v33  ;;  %v18628_v1 = vadd.f32 %v23190_v34, %v3715_v48  ;;  %v3727_v54 = vadd.f32 %v3726_v38, %v18075_v16  ;;  %v23199_v62 = vld [vmem:[#allocation59_spill] sm:$0xff]  ;;  %v23202_v50 = vld [vmem:[#allocation36_spill] sm:$0xff] }
 0x5f1   :  { %v3728_v53 = vpop.f32.mrf.mxu1  ;;  %23185 = vst [vmem:[#allocation69_spill] sm:$0xff] %v18617_v15  ;;  %v23193_v60 = vpack.c.bf16 %v23191_v41, %v23192_v22  ;;  %v22715_v56 = vsub.s32 2, %v23026_v44  ;;  %23194 = vst [vmem:[#allocation62_spill] sm:$0xff] %v18636_v61  ;;  %v22720_v52 = vmax.f32 %v18612_v7, 0.0  ;;  %v18640_v49 = vadd.f32 %v23195_v5, %v3717_v57  ;;  %v23203_v22 = vld [vmem:[#allocation34_spill] sm:$0xff]  ;;  %v23204_v5 = vld [vmem:[#allocation45_spill] sm:$0xff] }
 0x5f2   :  { %5023 = vmatpush1.bf16.msra.mxu1 %v23178_v24  ;;  %v3729_v11 = vadd.f32 %v3728_v53, %v23175_v4  ;;  %v18643_v9 = vadd.f32 %v23196_v47, %v3719_v6  ;;  %v22714_v24 = vsub.s32 3, %v23026_v44  ;;  %v22717_v48 = vmax.f32 %v18617_v15, 0.0  ;;  %v23197_v53 = vld [vmem:[#allocation15_spill] sm:$0xff] }
 0x5f3   :  { %5024 = vmatprep.subr.bf16.mxu1 %v23181_v25  ;;  %v3732_v46 = vpop.f32.mrf.mxu1  ;;  %v22718_v14 = vmax.f32 %v18620_v0, 0.0  ;;  %v18649_v58 = vadd.f32 %v23197_v53, %v3723_v27  ;;  %v23198_v25 = vld [vmem:[#allocation16_spill] sm:$0xff]  ;;  %v23201_v57 = vpack.c.bf16 %v23199_v62, %v23200_v10  ;;  %v22722_v6 = vmax.f32 %v18628_v1, 0.0  ;;  %v18673_v53 = vpop.f32.mrf.mxu0  ;;  %v23215_v61 = vld [vmem:[#allocation43_spill] sm:$0xff] }
 0x5f4   :  { %v18652_v26 = vadd.f32 %v23198_v25, %v3725_v29  ;;  %v18659_v33 = vadd.f32 %v23202_v50, %v3727_v54  ;;  %v18664_v27 = vadd.f32 %v23203_v22, %v3729_v11  ;;  %v18671_v47 = vrot.slane %v23204_v5, %v22715_v56  ;;  %23205 = vst [vmem:[#allocation48_spill] sm:$0xff] %v18673_v53  ;;  %v23206_v22 = vld [vmem:[#allocation29_spill] sm:$0xff] }
 0x5f5   :  { %v3734_v23 = vpop.f32.mrf.mxu1  ;;  %v22721_v54 = vmax.f32 %v18640_v49, 0.0  ;;  %v18686_v25 = vrot.slane %v22717_v48, 1  ;;  %v18690_v62 = vrot.slane %v22718_v14, 1  ;;  %v22724_v10 = vmax.f32 %v18649_v58, 0.0  ;;  %v18711_v59 = vpop.f32.mrf.mxu0 }
 0x5f6   :  { %5025 = vmatpush1.bf16.msra.mxu1 %v23189_v36  ;;  %v3733_v36 = vadd.f32 %v3732_v46, %v18075_v16  ;;  %v3735_v34 = vadd.f32 %v3734_v23, %v23175_v4  ;;  %v4553_v46 = vrot.slane %v22720_v52, 1  ;;  %v22723_v23 = vmax.f32 %v18643_v9, 0.0  ;;  %23210 = vst [vmem:[#allocation75_spill] sm:$0xff] %v18711_v59 }
 0x5f7   :  { %5026 = vmatprep.subr.bf16.mxu1 %v23193_v60  ;;  %v3736_v38 = vpop.f32.mrf.mxu1  ;;  %v4557_v50 = vrot.slane %v22722_v6, 1  ;;  %v18744_v59 = vpop.f32.mrf.mxu0 }
 0x5f8   :  { %v3737_v29 = vadd.f32 %v3736_v38, %v18075_v16  ;;  %v18682_v38 = vrot.slane %v23204_v5, %v22714_v24  ;;  %v18698_v5 = vadd.f32 %v23206_v22, %v3733_v36  ;;  %v23207_v24 = vld [vmem:[#allocation38_spill] sm:$0xff]  ;;  %v4560_v36 = vrot.slane %v22721_v54, 1  ;;  %23213 = vst [vmem:[#allocation71_spill] sm:$0xff] %v18744_v59 }
 0x5f9   :  { %v3738_v41 = vpop.f32.mrf.mxu1  ;;  %v18701_v56 = vadd.f32 %v23207_v24, %v3735_v34  ;;  %v4561_v24 = vrot.slane %v22723_v23, 1  ;;  %v18737_v21 = vsel %vm1121_vm2, %v4553_v46, %v4557_v50 }
 0x5fa   :  { %5027 = vmatpush1.bf16.msra.mxu1 %v23201_v57  ;;  %v3739_v60 = vadd.f32 %v3738_v41, %v23175_v4  ;;  %v22725_v57 = vmax.f32 %v18652_v26, 0.0  ;;  %v22726_v41 = vmax.f32 %v18659_v33, 0.0  ;;  %v18705_v19 = vadd.f32 %v23208_v32, %v3737_v29  ;;  %v23211_v29 = vld [vmem:[#allocation42_spill] sm:$0xff] }
 0x5fb   :  { %v3742_v11 = vpop.f32.mrf.mxu1  ;;  %v18721_v32 = vsel %vm1121_vm2, %v18690_v62, %v4553_v46  ;;  %v4444_v54 = vmax.f32 %v18698_v5, 0.0  ;;  %v18749_v5 = vsel %vm1121_vm2, %v18582_v3, %v4560_v36 }
 0x5fc   :  { %v18708_v48 = vadd.f32 %v23209_v39, %v3739_v60  ;;  %v3743_v34 = vadd.f32 %v3742_v11, %v18075_v16  ;;  %v4564_v39 = vrot.slane %v22724_v10, 1  ;;  %v4568_v11 = vrot.slane %v22726_v41, 1  ;;  %v23214_v41 = vld [vmem:[#allocation41_spill] sm:$0xff] }
 0x5fd   :  { %v3744_v51 = vpop.f32.mrf.mxu1  ;;  %v23212_v10 = vmax.f32 %v18664_v27, 0.0 }
 0x5fe   :  { %v3745_v14 = vadd.f32 %v3744_v51, %v23175_v4  ;;  %v4565_v51 = vrot.slane %v22725_v57, 1  ;;  %v18752_v6 = vadd.f32 %v23214_v41, %v3743_v34  ;;  %v18769_v41 = vsel %vm1121_vm2, %v4557_v50, %v4561_v24 }
 0x5ff   :  { %v3746_v22 = vpop.f32.mrf.mxu1  ;;  %v4569_v57 = vrot.slane %v23212_v10, 1  ;;  %v18773_v34 = vsel %vm1121_vm2, %v4564_v39, %v4568_v11  ;;  %v23219_v17 = vmax.f32 %v18708_v48, 0.0 }
 0x600   :  { %v18728_v60 = vadd.f32 %v23211_v29, %v3745_v14  ;;  %v3747_v52 = vadd.f32 %v3746_v22, %v18075_v16  ;;  %v18760_v29 = vsel %vm1121_vm2, %v4560_v36, %v4564_v39  ;;  %v4625_v3 = vsel %vm1121_vm2, %v4561_v24, %v4565_v51  ;;  %v18785_v39 = vpop.f32.mrf.mxu0 }
 0x601   :  { %v3748_v23 = vpop.f32.mrf.mxu1  ;;  %v4577_v63 = vrot.slane %v23219_v17, 1  ;;  %v4621_v24 = vsel %vm1121_vm2, %v4565_v51, %v4569_v57  ;;  %23220 = vst [vmem:[#allocation70_spill] sm:$0xff] %v18785_v39  ;;  %v23223_v17 = vld [vmem:[#allocation47_spill] sm:$0xff]  ;;  %v23224_v51 = vmax.f32 %v18643_v9, 0.0  ;;  %v23226_v9 = vld [vmem:[#allocation49_spill] sm:$0xff] }
 0x602   :  { %v3749_v22 = vadd.f32 %v3748_v23, %v23175_v4  ;;  %v18756_v10 = vadd.f32 %v23215_v61, %v3747_v52  ;;  %v23216_v23 = vld [vmem:[#allocation44_spill] sm:$0xff]  ;;  %v4572_v61 = vrot.slane %v4444_v54, 1  ;;  %v23217_v52 = vmax.f32 %v18701_v56, 0.0 }
 0x603   :  { %v3752_v14 = vpop.f32.mrf.mxu1  ;;  %v18797_v37 = vmax.f32 %v23224_v51, %v4625_v3 }
 0x604   :  { %v18763_v59 = vadd.f32 %v23216_v23, %v3749_v22  ;;  %v4573_v46 = vrot.slane %v23217_v52, 1  ;;  %v3753_v36 = vadd.f32 %v3752_v14, %v18075_v16  ;;  %v23218_v22 = vmax.f32 %v18705_v19, 0.0 }
 0x605   :  { %v3754_v53 = vpop.f32.mrf.mxu1  ;;  %v23221_v52 = vmax.f32 %v18728_v60, 0.0  ;;  %v22729_v14 = vmax.f32 %v18756_v10, 0.0  ;;  %v18801_v13 = vsel %vm1121_vm2, %v4568_v11, %v4572_v61 }
 0x606   :  { %v4576_v23 = vrot.slane %v23218_v22, 1  ;;  %v3755_v50 = vadd.f32 %v3754_v53, %v23175_v4  ;;  %v3946_v55 = vadd.f32 %v23222_v30, %v3753_v36  ;;  %v4457_v28 = vmax.f32 %v18763_v59, 0.0 }
 0x607   :  { %v4581_v45 = vrot.slane %v23221_v52, 1  ;;  %v3756_v22 = vpop.f32.mrf.mxu1  ;;  %v4617_v30 = vsel %vm1121_vm2, %v4569_v57, %v4573_v46  ;;  %v23225_v36 = vmax.f32 %v18652_v26, 0.0  ;;  %v4584_v57 = vrot.slane %v22729_v14, 1 }
 0x608   :  { %v3948_v31 = vadd.f32 %v23223_v17, %v3755_v50  ;;  %v3757_v53 = vadd.f32 %v3756_v22, %v18075_v16  ;;  %v4460_v52 = vmax.f32 %v3946_v55, 0.0  ;;  %v4612_v16 = vsel %vm1121_vm2, %v4572_v61, %v4576_v23  ;;  %v18813_v17 = vpop.f32.mrf.mxu0 }
 0x609   :  { %v3758_v39 = vpop.f32.mrf.mxu1  ;;  %v18807_v59 = vmax.f32 %v23225_v36, %v4621_v24  ;;  %23227 = vst [vmem:[#allocation66_spill] sm:$0xff] %v18813_v17  ;;  %v23228_v55 = vmax.f32 %v18752_v6, 0.0  ;;  %v4609_v26 = vsel %vm1121_vm2, %v4577_v63, %v4581_v45  ;;  %v4613_v61 = vsel %vm1121_vm2, %v4573_v46, %v4577_v63 }
 0x60a   :  { %v4461_v50 = vmax.f32 %v3948_v31, 0.0  ;;  %v3950_v3 = vadd.f32 %v23226_v9, %v3757_v53  ;;  %v3759_v22 = vadd.f32 %v3758_v39, %v23175_v4  ;;  %v4585_v31 = vrot.slane %v4457_v28, 1  ;;  %v23229_v53 = vld [vmem:[#allocation50_spill] sm:$0xff]  ;;  %v18835_v46 = vpop.f32.mrf.mxu0 }
 0x60b   :  { %v4580_v11 = vrot.slane %v23228_v55, 1  ;;  %v3988_v51 = vpop.f32.mrf.mxu1  ;;  %v4588_v39 = vrot.slane %v4460_v52, 1  ;;  %v18825_v55 = vmax.f32 %v4444_v54, %v4612_v16  ;;  %v23230_v14 = vmax.f32 %v18664_v27, 0.0  ;;  %23232 = vst [vmem:[#allocation20_spill] sm:$0xff] %v18835_v46 }
 0x60c   :  { %v4464_v24 = vmax.f32 %v3950_v3, 0.0  ;;  %v3952_v36 = vadd.f32 %v23229_v53, %v3759_v22  ;;  %v3989_v4 = vadd.f32 %v3988_v51, %v18671_v47  ;;  %v4589_v9 = vrot.slane %v4461_v50, 1 }
 0x60d   :  { %v3990_v17 = vpop.f32.mrf.mxu1  ;;  %v18829_v2 = vmax.f32 %v23230_v14, %v4617_v30  ;;  %v4608_v3 = vsel %vm1121_vm2, %v4576_v23, %v4580_v11  ;;  %v4604_v54 = vsel %vm1121_vm2, %v4580_v11, %v4584_v57  ;;  %v23233_v27 = vmax.f32 %v18701_v56, 0.0 }
 0x60e   :  { %v4592_v8 = vrot.slane %v4464_v24, 1  ;;  %v4465_v20 = vmax.f32 %v3952_v36, 0.0  ;;  %v18832_v43 = vadd.f32 %v23231_v12, %v3989_v4  ;;  %v3991_v63 = vadd.f32 %v3990_v17, %v18682_v38  ;;  %v23235_v17 = vld [vmem:[#allocation53_spill] sm:$0xff] }
 0x60f   :  { %v3992_v16 = vpop.f32.mrf.mxu1  ;;  %v18843_v14 = vmax.f32 %v23233_v27, %v4613_v61  ;;  %v23234_v30 = vmax.f32 %v18708_v48, 0.0  ;;  %v4605_v11 = vsel %vm1121_vm2, %v4581_v45, %v4585_v31  ;;  %v4600_v56 = vsel %vm1121_vm2, %v4584_v57, %v4588_v39  ;;  %v23236_v61 = vld [vmem:[#allocation52_spill] sm:$0xff]  ;;  %v23237_v45 = vld [vmem:[#allocation54_spill] sm:$0xff] }
 0x610   :  { %v4596_v12 = vsel %vm1121_vm2, %v4588_v39, %v4592_v8  ;;  %v4720_v51 = vsel %vm1121_vm2, %v4592_v8, %v23235_v17  ;;  %v4593_v23 = vrot.slane %v4465_v20, 1  ;;  %v18859_v53 = vadd.f32 %v23236_v61, %v3991_v63  ;;  %v18871_v39 = vpop.f32.mrf.mxu0 }
 0x611   :  { %v18847_v22 = vmax.f32 %v23234_v30, %v4609_v26  ;;  %v3993_v48 = vadd.f32 %v3992_v16, %v18671_v47  ;;  %v3994_v26 = vpop.f32.mrf.mxu1  ;;  %v4601_v36 = vsel %vm1121_vm2, %v4585_v31, %v4589_v9  ;;  %v4342_v4 = vmax.f32 %v18832_v43, 0.0  ;;  %v23238_v16 = vld [vmem:[#allocation55_spill] sm:$0xff]  ;;  %v23239_v31 = vld [vmem:[#allocation57_spill] sm:$0xff] }
 0x612   :  { %v3995_v8 = vadd.f32 %v3994_v26, %v18682_v38  ;;  %v4597_v27 = vsel %vm1121_vm2, %v4589_v9, %v4593_v23  ;;  %v4721_v57 = vsel %vm1121_vm2, %v4593_v23, %v23237_v45  ;;  %v4844_v63 = vmax.f32 %v4460_v52, %v4596_v12 }
 0x613   :  { %v4848_v30 = vmax.f32 %v4464_v24, %v4720_v51  ;;  %v4186_v17 = vadd.f32 %v23238_v16, %v3993_v48  ;;  %v3998_v61 = vpop.f32.mrf.mxu1  ;;  %v4845_v46 = vmax.f32 %v4461_v50, %v4597_v27  ;;  %v4849_v26 = vmax.f32 %v4465_v20, %v4721_v57  ;;  %v23242_v51 = vld [vmem:[#allocation60_spill] sm:$0xff]  ;;  %v18883_v27 = vpop.f32.mrf.mxu0 }
 0x614   :  { %v4188_v42 = vadd.f32 %v23239_v31, %v3995_v8  ;;  %v3999_v43 = vadd.f32 %v3998_v61, %v18671_v47  ;;  %v4841_v35 = vmax.f32 %v4457_v28, %v4601_v36  ;;  %v4343_v9 = vmax.f32 %v18859_v53, 0.0 }
 0x615   :  { %v4346_v15 = vmax.f32 %v4186_v17, 0.0  ;;  %v4000_v18 = vpop.f32.mrf.mxu1  ;;  %v23240_v23 = vmax.f32 %v18728_v60, 0.0  ;;  %v23241_v52 = vmax.f32 %v18756_v10, 0.0  ;;  %v4929_v8 = vpack.c.bf16 %v4849_v26, %v4845_v46 }
 0x616   :  { %v4347_v12 = vmax.f32 %v4188_v42, 0.0  ;;  %v4192_v48 = vadd.f32 %v23242_v51, %v3999_v43  ;;  %v4001_v50 = vadd.f32 %v4000_v18, %v18682_v38  ;;  %v4928_v20 = vpack.c.bf16 %v4848_v30, %v4844_v63  ;;  %v23248_v43 = vld [vmem:[#allocation68_spill] sm:$0xff] }
 0x617   :  { %v4837_v45 = vmax.f32 %v23240_v23, %v4605_v11  ;;  %v4840_v24 = vmax.f32 %v23241_v52, %v4600_v56  ;;  %v18885_v28 = vrot.slane %v4342_v4, 1  ;;  %v4474_v53 = vrot.slane %v4346_v15, 1  ;;  %v4002_v36 = vpop.f32.mrf.mxu1  ;;  %v23244_v11 = vld [vmem:[#allocation63_spill] sm:$0xff]  ;;  %5028 = vmatprep.subr.bf16.mxu1 %v4929_v8  ;;  %v23250_v8 = vld [vmem:[#allocation72_spill] sm:$0xff] }
 0x618   :  { %v4475_v16 = vrot.slane %v4347_v12, 1  ;;  %v4350_v60 = vmax.f32 %v4192_v48, 0.0  ;;  %v18888_v17 = vadd.f32 %v23244_v11, %v4001_v50  ;;  %v4003_v42 = vadd.f32 %v4002_v36, %v18671_v47  ;;  %5029 = vmatpush2.bf16.msra.mxu1 %v4928_v20 }
 0x619   :  { %23243 = vst [vmem:[#allocation21_spill] sm:$0xff] %v18885_v28  ;;  %v4925_v57 = vpack.c.bf16 %v4841_v35, %v4837_v45  ;;  %v18891_v10 = vrot.slane %v4343_v9, 1  ;;  %v4718_v18 = vsel %vm1121_vm2, %v18885_v28, %v4474_v53  ;;  %v4004_v46 = vpop.f32.mrf.mxu1  ;;  %v23246_v56 = vmax.f32 %v18752_v6, 0.0  ;;  %v18905_v45 = vpop.f32.mrf.mxu0  ;;  %v23327_v28 = vld [vmem:[#allocation62_spill] sm:$0xff] }
 0x61a   :  { %v23247_v35 = vmax.f32 %v18705_v19, 0.0  ;;  %v4478_v61 = vrot.slane %v4350_v60, 1  ;;  %v4351_v31 = vmax.f32 %v18888_v17, 0.0  ;;  %v18902_v26 = vadd.f32 %v23248_v43, %v4003_v42  ;;  %v23309_v17 = vld [vmem:[#allocation31_spill] sm:$0xff] }
 0x61b   :  { %23245 = vst [vmem:[#allocation19_spill] sm:$0xff] %v18891_v10  ;;  %v4836_v63 = vmax.f32 %v23246_v56, %v4604_v54  ;;  %v4005_v23 = vadd.f32 %v4004_v46, %v18682_v38  ;;  %5030 = vmatprep.subr.bf16.mxu1 %v4925_v57  ;;  %v4008_v52 = vpop.f32.mrf.mxu1  ;;  %v4921_v6 = vpack.c.bf16 %v18847_v22, %v18843_v14  ;;  %v18933_v46 = vpop.f32.mrf.mxu0  ;;  %v23253_v56 = vld [vmem:[#allocation74_spill] sm:$0xff] }
 0x61c   :  { %v4832_v30 = vmax.f32 %v23247_v35, %v4608_v3  ;;  %v4719_v19 = vsel %vm1121_vm2, %v18891_v10, %v4475_v16  ;;  %v18912_v3 = vmax.f32 %v4342_v4, %v4718_v18  ;;  %v4714_v54 = vsel %vm1121_vm2, %v4474_v53, %v4478_v61 }
 0x61d   :  { %v4924_v51 = vpack.c.bf16 %v4840_v24, %v4836_v63  ;;  %v4479_v48 = vrot.slane %v4351_v31, 1  ;;  %v4354_v50 = vmax.f32 %v18902_v26, 0.0  ;;  %v18920_v20 = vadd.f32 %v23250_v8, %v4005_v23  ;;  %v4010_v14 = vpop.f32.mrf.mxu1 }
 0x61e   :  { %23249 = vst [vmem:[#allocation67_spill] sm:$0xff] %v18912_v3  ;;  %v4009_v24 = vadd.f32 %v4008_v52, %v18671_v47  ;;  %v4920_v22 = vpack.c.bf16 %v4832_v30, %v18825_v55  ;;  %v23251_v4 = vmax.f32 %v18659_v33, 0.0  ;;  %v18927_v57 = vmax.f32 %v4346_v15, %v4714_v54  ;;  %v23256_v30 = vld [vmem:[#allocation76_spill] sm:$0xff]  ;;  %v23260_v54 = vld [vmem:[#allocation77_spill] sm:$0xff] }
 0x61f   :  { %5031 = vmatpush2.bf16.msra.mxu1 %v4924_v51  ;;  %v4482_v53 = vrot.slane %v4354_v50, 1  ;;  %v4355_v11 = vmax.f32 %v18920_v20, 0.0  ;;  %v4011_v42 = vadd.f32 %v4010_v14, %v18682_v38  ;;  %v4715_v18 = vsel %vm1121_vm2, %v4475_v16, %v4479_v48  ;;  %v4012_v55 = vpop.f32.mrf.mxu1  ;;  %v18964_v20 = vpop.f32.mrf.mxu0 }
 0x620   :  { %v4824_v36 = vmax.f32 %v23251_v4, %v18801_v13  ;;  %23252 = vst [vmem:[#allocation64_spill] sm:$0xff] %v18927_v57  ;;  %5032 = vmatprep.subr.bf16.mxu1 %v4921_v6  ;;  %v4202_v63 = vadd.f32 %v23253_v56, %v4009_v24  ;;  %v18936_v35 = vmax.f32 %v4343_v9, %v4719_v19  ;;  %v23308_v13 = vld [vmem:[#allocation37_spill] sm:$0xff] }
 0x621   :  { %v18938_v33 = vmax.f32 %v4347_v12, %v4715_v18  ;;  %v4710_v15 = vsel %vm1121_vm2, %v4478_v61, %v4482_v53  ;;  %v18945_v43 = vadd.f32 %v23256_v30, %v4011_v42  ;;  %v4013_v16 = vadd.f32 %v4012_v55, %v18671_v47  ;;  %v18950_v9 = vpop.f32.mrf.mxu1  ;;  %v18995_v30 = vpop.f32.mrf.mxu0 }
 0x622   :  { %23254 = vst [vmem:[#allocation26_spill] sm:$0xff] %v18936_v35  ;;  %v4917_v26 = vpack.c.bf16 %v18829_v2, %v18807_v59  ;;  %v4358_v23 = vmax.f32 %v4202_v63, 0.0  ;;  %v23258_v12 = vmax.f32 %v18649_v58, 0.0  ;;  %v18955_v51 = vmax.f32 %v4350_v60, %v4710_v15  ;;  %v23266_v63 = vld [vmem:[#allocation82_spill] sm:$0xff] }
 0x623   :  { %23255 = vst [vmem:[#allocation61_spill] sm:$0xff] %v18938_v33  ;;  %23257 = vst [vmem:[#allocation58_spill] sm:$0xff] %v18945_v43  ;;  %5033 = vmatpush2.bf16.msra.mxu1 %v4920_v22  ;;  %v4483_v6 = vrot.slane %v4355_v11, 1  ;;  %v22739_v19 = vmax.f32 %v18945_v43, 0.0  ;;  %v4206_v8 = vadd.f32 %v23260_v54, %v4013_v16  ;;  %v23261_v2 = vmax.f32 %v18628_v1, 0.0  ;;  %v4018_v58 = vpop.f32.mrf.mxu1  ;;  %v23269_v16 = vld [vmem:[#allocation84_spill] sm:$0xff] }
 0x624   :  { %v4820_v52 = vmax.f32 %v23258_v12, %v18773_v34  ;;  %23259 = vst [vmem:[#allocation23_spill] sm:$0xff] %v18955_v51  ;;  %5034 = vmatprep.subr.bf16.mxu1 %v4917_v26  ;;  %v4486_v24 = vrot.slane %v4358_v23, 1  ;;  %v23262_v60 = vmax.f32 %v18640_v49, 0.0  ;;  %v23263_v22 = vmax.f32 %v18612_v7, 0.0  ;;  %v19229_v33 = vld [vmem:[#allocation4 + $0x44] ss:$8 sps:$4 sm:$0xff]  }
 0x625   :  { %v4813_v59 = vmax.f32 %v23261_v2, %v18769_v41  ;;  %v18974_v42 = vrot.slane %v22739_v19, 1  ;;  %v4362_v18 = vmax.f32 %v4206_v8, 0.0  ;;  %v4019_v1 = vadd.f32 %v4018_v58, %v18671_v47  ;;  %v4020_v56 = vpop.f32.mrf.mxu1  ;;  %v23277_v58 = vld [vmem:[#allocation22_spill] sm:$0xff]  ;;  %23342 = vst [vmem:[#allocation63_spill] sm:$0xff] %v19229_v33 }
 0x626   :  { %v4916_v34 = vpack.c.bf16 %v4824_v36, %v4820_v52  ;;  %v4816_v14 = vmax.f32 %v23262_v60, %v18760_v29  ;;  %v4809_v4 = vmax.f32 %v23263_v22, %v18737_v21  ;;  %v4706_v36 = vsel %vm1121_vm2, %v4482_v53, %v4486_v24  ;;  %v23271_v52 = vld [vmem:[#allocation69_spill] sm:$0xff] }
 0x627   :  { %23264 = vst [vmem:[#allocation27_spill] sm:$0xff] %v18974_v42  ;;  %v4913_v41 = vpack.c.bf16 %v18797_v37, %v4813_v59  ;;  %v23265_v49 = vmax.f32 %v18559_v40, 0.0  ;;  %v4641_v21 = vsel %vm1121_vm2, %v18686_v25, %v18690_v62  ;;  %v4490_v7 = vrot.slane %v4362_v18, 1  ;;  %v4022_v40 = vpop.f32.mrf.mxu1  ;;  %v23280_v22 = vld [vmem:[#allocation81_spill] sm:$0xff] }
 0x628   :  { %5035 = vmatpush2.bf16.msra.mxu1 %v4916_v34  ;;  %v18988_v55 = vadd.f32 %v23266_v63, %v4019_v1  ;;  %v23268_v37 = vmax.f32 %v18620_v0, 0.0  ;;  %v4711_v15 = vsel %vm1121_vm2, %v4479_v48, %v4483_v6  ;;  %v4645_v62 = vsel %vm1121_vm2, %v23269_v16, %v18686_v25  ;;  %v23284_v63 = vld [vmem:[#allocation73_spill] sm:$0xff] }
 0x629   :  { %v4812_v29 = vmax.f32 %v23265_v49, %v18749_v5  ;;  %5036 = vmatprep.subr.bf16.mxu1 %v4913_v41  ;;  %v4707_v26 = vsel %vm1121_vm2, %v4483_v6, %v18974_v42  ;;  %v19004_v12 = vmax.f32 %v4354_v50, %v4706_v36  ;;  %v4702_v0 = vsel %vm1121_vm2, %v4486_v24, %v4490_v7  ;;  %v4024_v2 = vpop.f32.mrf.mxu1 }
 0x62a   :  { %23267 = vst [vmem:[#allocation15_spill] sm:$0xff] %v18988_v55  ;;  %v4805_v53 = vmax.f32 %v23268_v37, %v18721_v32  ;;  %v22740_v32 = vmax.f32 %v18988_v55, 0.0  ;;  %v23272_v54 = vmax.f32 %v23271_v52, 0.0  ;;  %v19011_v59 = vmax.f32 %v4358_v23, %v4702_v0  ;;  %v23285_v37 = vld [vmem:[#allocation87_spill] sm:$0xff]  ;;  %v23293_v52 = vld [vmem:[#allocation28_spill] sm:$0xff] }
 0x62b   :  { %v4912_v5 = vpack.c.bf16 %v4816_v14, %v4812_v29  ;;  %23270 = vst [vmem:[#allocation16_spill] sm:$0xff] %v19004_v12  ;;  %v19015_v25 = vmax.f32 %v4351_v31, %v4711_v15  ;;  %v19017_v6 = vmax.f32 %v4355_v11, %v4707_v26  ;;  %v23278_v34 = vmax.f32 %v23277_v58, 0.0  ;;  %v19027_v14 = vpop.f32.mrf.mxu0  ;;  %v4028_v23 = vpop.f32.mrf.mxu1  ;;  %v23287_v15 = vld [vmem:[#allocation88_spill] sm:$0xff]  ;;  %v19058_v58 = vld [vmem:[#allocation4 + $0x14] ss:$8 sps:$4 sm:$0xff]  }
 0x62c   :  { %v4909_v48 = vpack.c.bf16 %v4809_v4, %v4805_v53  ;;  %v4801_v8 = vmax.f32 %v23272_v54, %v4641_v21  ;;  %23273 = vst [vmem:[#allocation59_spill] sm:$0xff] %v19011_v59  ;;  %v19023_v24 = vrot.slane %v22740_v32, 1  ;;  %23279 = vst [vmem:[#allocation45_spill] sm:$0xff] %v19027_v14  ;;  %v23281_v4 = vld [vmem:[#allocation24_spill] sm:$0xff]  ;;  %v23286_v53 = vpack.c.bf16 %v23284_v63, %v23285_v37 }
 0x62d   :  { %5037 = vmatpush2.bf16.msra.mxu1 %v4912_v5  ;;  %23274 = vst [vmem:[#allocation56_spill] sm:$0xff] %v19015_v25  ;;  %23275 = vst [vmem:[#allocation36_spill] sm:$0xff] %v19017_v6  ;;  %v4797_v60 = vmax.f32 %v23278_v34, %v4645_v62  ;;  %v23282_v1 = vpack.c.bf16 %v23280_v22, %v23281_v4  ;;  %v4030_v41 = vpop.f32.mrf.mxu1  ;;  %v19039_v49 = vpop.f32.mrf.mxu0  ;;  %v23288_v5 = vld [vmem:[#allocation40_spill] sm:$0xff]  ;;  %v4015_v0 = vadd.f32 %v18950_v9, %v18682_v38 }
 0x62e   :  { %23276 = vst [vmem:[#allocation34_spill] sm:$0xff] %v19023_v24  ;;  %5038 = vmatprep.subr.bf16.mxu1 %v4909_v48  ;;  %v4698_v31 = vsel %vm1121_vm2, %v4490_v7, %v19023_v24  ;;  %v23289_v16 = vpack.c.bf16 %v23287_v15, %v23288_v5  ;;  %v19051_v26 = vld [vmem:[#allocation4] ss:$8 sps:$4 sm:$0xff]   ;;  %v23292_v48 = vld [vmem:[#allocation86_spill] sm:$0xff]  ;;  %23295 = vst [vmem:[#allocation32_spill] sm:$0xff] %v19058_v58  ;;  %v4021_v9 = vadd.f32 %v4020_v56, %v18682_v38 }
 0x62f   :  { %v4905_v11 = vpack.c.bf16 %v4801_v8, %v4797_v60  ;;  %v19037_v36 = vmax.f32 %v4362_v18, %v4698_v31  ;;  %v4032_v29 = vpop.f32.mrf.mxu1  ;;  %v19049_v62 = vpop.f32.mrf.mxu0  ;;  %23291 = vst [vmem:[#allocation33_spill] sm:$0xff] %v19051_v26  ;;  %v23294_v54 = vpack.c.bf16 %v23292_v48, %v23293_v52  ;;  %v4025_v31 = vadd.f32 %v4024_v2, %v18682_v38  ;;  %v23300_v2 = vld [vmem:[#allocation18_spill] sm:$0xff]  ;;  %v19081_v56 = vld [vmem:[#allocation4 + $0x24] ss:$8 sps:$4 sm:$0xff]  }
 0x630   :  { %23290 = vst [vmem:[#allocation38_spill] sm:$0xff] %v19049_v62  ;;  %v4029_v63 = vadd.f32 %v4028_v23, %v18671_v47  ;;  %v4023_v15 = vadd.f32 %v4022_v40, %v18671_v47  ;;  %v4031_v48 = vadd.f32 %v4030_v41, %v18682_v38  ;;  %23303 = vst [vmem:[#allocation47_spill] sm:$0xff] %v19081_v56  ;;  %v23347_v59 = vld [vmem:[#allocation20_spill] sm:$0xff]  ;;  %v19293_v24 = vld [vmem:[#allocation4 + $0x54] ss:$8 sps:$4 sm:$0xff]  }
 0x631   :  { %5039 = vmatpush2.bf16.msra.mxu1 %v23282_v1  ;;  %23283 = vst [vmem:[#allocation29_spill] sm:$0xff] %v19037_v36  ;;  %v4034_v7 = vpop.f32.mrf.mxu1  ;;  %v19060_v34 = vpop.f32.mrf.mxu0  ;;  %v19075_v5 = vadd.f32 %v23300_v2, %v4025_v31  ;;  %v4033_v23 = vadd.f32 %v4032_v29, %v18671_v47  ;;  %v23306_v31 = vld [vmem:[#allocation25_spill] sm:$0xff] }
 0x632   :  { %5040 = vmatprep.subr.bf16.mxu1 %v4905_v11  ;;  %23296 = vst [vmem:[#allocation42_spill] sm:$0xff] %v19060_v34  ;;  %v23297_v11 = vld [vmem:[#allocation80_spill] sm:$0xff]  ;;  %v4035_v37 = vadd.f32 %v4034_v7, %v18682_v38  ;;  %v19091_v2 = vadd.f32 %v23306_v31, %v4029_v63  ;;  %v19098_v21 = vadd.f32 %v23309_v17, %v4023_v15  ;;  %v23313_v31 = vld [vmem:[#allocation89_spill] sm:$0xff] }
 0x633   :  { %v4038_v18 = vpop.f32.mrf.mxu1  ;;  %v19065_v22 = vadd.f32 %v23297_v11, %v4015_v0  ;;  %v19069_v1 = vpop.f32.mrf.mxu0  ;;  %23301 = vst [vmem:[#allocation44_spill] sm:$0xff] %v19075_v5 }
 0x634   :  { %23299 = vst [vmem:[#allocation43_spill] sm:$0xff] %v19069_v1  ;;  %23307 = vst [vmem:[#allocation50_spill] sm:$0xff] %v19091_v2  ;;  %v19094_v61 = vadd.f32 %v23308_v13, %v4035_v37  ;;  %v4039_v41 = vadd.f32 %v4038_v18, %v18671_v47  ;;  %v23311_v13 = vld [vmem:[#allocation35_spill] sm:$0xff] }
 0x635   :  { %5041 = vmatpush2.bf16.msra.mxu1 %v23286_v53  ;;  %v4040_v8 = vpop.f32.mrf.mxu1  ;;  %23298 = vst [vmem:[#allocation41_spill] sm:$0xff] %v19065_v22  ;;  %v22741_v0 = vmax.f32 %v19065_v22, 0.0  ;;  %v19088_v40 = vpop.f32.mrf.mxu0  ;;  %v19109_v37 = vadd.f32 %v23311_v13, %v4031_v48  ;;  %v19141_v48 = vld [vmem:[#allocation4 + $0x20] ss:$8 sps:$4 sm:$0xff]  }
 0x636   :  { %5042 = vmatprep.subr.bf16.mxu1 %v23289_v16  ;;  %v19077_v16 = vld [vmem:[#allocation4 + $0x10] ss:$8 sps:$4 sm:$0xff]   ;;  %v4041_v7 = vadd.f32 %v4040_v8, %v18682_v38  ;;  %23305 = vst [vmem:[#allocation49_spill] sm:$0xff] %v19088_v40  ;;  %23319 = vst [vmem:[#allocation52_spill] sm:$0xff] %v19141_v48 }
 0x637   :  { %v4042_v60 = vpop.f32.mrf.mxu1  ;;  %23302 = vst [vmem:[#allocation46_spill] sm:$0xff] %v19077_v16  ;;  %v19106_v63 = vrot.slane %v22741_v0, 1  ;;  %v19122_v0 = vpop.f32.mrf.mxu0 }
 0x638   :  { %v4043_v18 = vadd.f32 %v4042_v60, %v18671_v47  ;;  %v19119_v19 = vadd.f32 %v23313_v31, %v4041_v7  ;;  %23314 = vst [vmem:[#allocation53_spill] sm:$0xff] %v19122_v0  ;;  %v23317_v31 = vld [vmem:[#allocation79_spill] sm:$0xff] }
 0x639   :  { %5043 = vmatpush2.bf16.msra.mxu1 %v23294_v54  ;;  %v4044_v4 = vpop.f32.mrf.mxu1  ;;  %v23304_v54 = vld [vmem:[#allocation83_spill] sm:$0xff]  ;;  %23310 = vst [vmem:[#allocation51_spill] sm:$0xff] %v19106_v63  ;;  %v19159_v10 = vpop.f32.mrf.mxu0 }
 0x63a   :  { %v19084_v11 = vadd.f32 %v23304_v54, %v4021_v9  ;;  %v4045_v29 = vadd.f32 %v4044_v4, %v18682_v38  ;;  %v23312_v54 = vld [vmem:[#allocation17_spill] sm:$0xff]  ;;  %23324 = vst [vmem:[#allocation55_spill] sm:$0xff] %v19159_v10 }
 0x63b   :  { %v4048_v53 = vpop.f32.mrf.mxu1 }
 0x63c   :  { %5045 = vmatmul.mubr.bf16.vlgmr.msra.gmra.mxu1 %v19051_v26  ;;  %v4049_v8 = vadd.f32 %v4048_v53, %v18671_v47  ;;  %v19116_v53 = vadd.f32 %v23312_v54, %v4033_v23  ;;  %v23316_v54 = vmax.f32 %v19075_v5, 0.0  ;;  %v19151_v26 = vld [vmem:[#allocation4 + $0x34] ss:$8 sps:$4 sm:$0xff]  }
 0x63d   :  { %5054 = vmatprep.mubr.bf16.mxu1 %v19058_v58  ;;  %v4050_v52 = vpop.f32.mrf.mxu1  ;;  %23322 = vst [vmem:[#allocation54_spill] sm:$0xff] %v19151_v26 }
 0x63e   :  { %v4051_v17 = vadd.f32 %v4050_v52, %v18682_v38  ;;  %v23315_v52 = vld [vmem:[#allocation85_spill] sm:$0xff]  ;;  %v19133_v7 = vrot.slane %v23316_v54, 1 }
 0x63f   :  { %v4052_v50 = vpop.f32.mrf.mxu1  ;;  %v19127_v13 = vadd.f32 %v23315_v52, %v4039_v41  ;;  %v23320_v52 = vld [vmem:[#allocation30_spill] sm:$0xff] }
 0x640   :  { %v4053_v9 = vadd.f32 %v4052_v50, %v18671_v47  ;;  %v19145_v60 = vadd.f32 %v23320_v52, %v4043_v18  ;;  %v23321_v50 = vld [vmem:[#allocation78_spill] sm:$0xff]  ;;  %v23325_v18 = vmax.f32 %v19091_v2, 0.0 }
 0x641   :  { %v4054_v15 = vpop.f32.mrf.mxu1  ;;  %v19148_v58 = vadd.f32 %v23321_v50, %v4051_v17  ;;  %v19196_v50 = vpop.f32.mrf.mxu0 }
 0x642   :  { %v4055_v32 = vadd.f32 %v4054_v15, %v18682_v38  ;;  %v19136_v15 = vadd.f32 %v23317_v31, %v4045_v29  ;;  %v19163_v17 = vrot.slane %v23325_v18, 1  ;;  %v19169_v29 = vadd.f32 %v23327_v28, %v4053_v9  ;;  %v23330_v9 = vld [vmem:[#allocation75_spill] sm:$0xff]  ;;  %23333 = vst [vmem:[#allocation57_spill] sm:$0xff] %v19196_v50 }
 0x643   :  { %v4058_v4 = vpop.f32.mrf.mxu1  ;;  %v23329_v18 = vmax.f32 %v19109_v37, 0.0  ;;  %v23341_v3 = vmax.f32 %v19148_v58, 0.0  ;;  %v19239_v12 = vpop.f32.mrf.mxu0  ;;  %v23350_v42 = vmax.f32 %v19148_v58, 0.0 }
 0x644   :  { %5055 = vmatmul.mubr.bf16.gmra.mxu1 %v19077_v16  ;;  %v4059_v23 = vadd.f32 %v4058_v4, %v18671_v47  ;;  %v23326_v4 = vmax.f32 %v19094_v61, 0.0  ;;  %23344 = vst [vmem:[#allocation68_spill] sm:$0xff] %v19239_v12 }
 0x645   :  { %5064 = vmatprep.mubr.bf16.mxu1 %v19081_v56  ;;  %v23318_v56 = vld [vmem:[#allocation65_spill] sm:$0xff]  ;;  %v4060_v54 = vpop.f32.mrf.mxu1  ;;  %v4519_v57 = vrot.slane %v23341_v3, 1  ;;  %v23345_v3 = vmax.f32 %v19169_v29, 0.0 }
 0x646   :  { %v19139_v16 = vadd.f32 %v23318_v56, %v4049_v8  ;;  %v23323_v8 = vld [vmem:[#allocation48_spill] sm:$0xff]  ;;  %v4061_v41 = vadd.f32 %v4060_v54, %v18682_v38  ;;  %v4507_v52 = vrot.slane %v23326_v4, 1  ;;  %v23328_v54 = vld [vmem:[#allocation71_spill] sm:$0xff]  ;;  %v19180_v4 = vrot.slane %v23329_v18, 1 }
 0x647   :  { %v19156_v31 = vadd.f32 %v23323_v8, %v4055_v32  ;;  %v4062_v56 = vpop.f32.mrf.mxu1  ;;  %v19185_v34 = vadd.f32 %v23330_v9, %v4059_v23  ;;  %v23334_v9 = vld [vmem:[#allocation70_spill] sm:$0xff] }
 0x648   :  { %v19174_v0 = vadd.f32 %v23328_v54, %v4061_v41  ;;  %v4063_v10 = vadd.f32 %v4062_v56, %v18671_v47  ;;  %v23331_v41 = vmax.f32 %v19116_v53, 0.0  ;;  %v23332_v56 = vmax.f32 %v19119_v19, 0.0  ;;  %v23338_v23 = vld [vmem:[#allocation66_spill] sm:$0xff] }
 0x649   :  { %v4064_v32 = vpop.f32.mrf.mxu1  ;;  %v23337_v28 = vmax.f32 %v19139_v16, 0.0  ;;  %v23351_v58 = vmax.f32 %v19156_v31, 0.0 }
 0x64a   :  { %v19190_v54 = vrot.slane %v23331_v41, 1  ;;  %v4511_v8 = vrot.slane %v23332_v56, 1  ;;  %v19201_v62 = vadd.f32 %v23334_v9, %v4063_v10  ;;  %v19206_v41 = vsel %vm1121_vm2, %v19180_v4, %v4507_v52  ;;  %v19219_v10 = vld [vmem:[#allocation4 + $0x30] ss:$8 sps:$4 sm:$0xff]  }
 0x64b   :  { %v23335_v56 = vmax.f32 %v19127_v13, 0.0  ;;  %v4518_v40 = vrot.slane %v23337_v28, 1  ;;  %23339 = vst [vmem:[#allocation60_spill] sm:$0xff] %v19219_v10  ;;  %v23340_v9 = vmax.f32 %v19145_v60, 0.0  ;;  %v23343_v28 = vmax.f32 %v19156_v31, 0.0 }
 0x64c   :  { %5065 = vmatmul.mubr.bf16.gmra.mxu1 %v19141_v48  ;;  %v4065_v48 = vadd.f32 %v4064_v32, %v18682_v38  ;;  %v23336_v32 = vmax.f32 %v19136_v15, 0.0  ;;  %v4402_v6 = vmax.f32 %v19201_v62, 0.0  ;;  %v23348_v62 = vmax.f32 %v19185_v34, 0.0 }
 0x64d   :  { %5074 = vmatprep.mubr.bf16.mxu1 %v19151_v26  ;;  %v4068_v26 = vpop.f32.mrf.mxu1  ;;  %v19210_v18 = vrot.slane %v23335_v56, 1  ;;  %v19223_v14 = vrot.slane %v23340_v9, 1  ;;  %v19237_v9 = vsel %vm1121_vm2, %v4507_v52, %v4511_v8  ;;  %v4522_v56 = vrot.slane %v23345_v3, 1 }
 0x64e   :  { %v4515_v50 = vrot.slane %v23336_v32, 1  ;;  %v19217_v1 = vadd.f32 %v23338_v23, %v4065_v48  ;;  %v4069_v35 = vadd.f32 %v4068_v26, %v18671_v47  ;;  %v4523_v48 = vrot.slane %v23343_v28, 1 }
 0x64f   :  { %v4070_v32 = vpop.f32.mrf.mxu1  ;;  %v23346_v26 = vmax.f32 %v19174_v0, 0.0 }
 0x650   :  { %v4403_v23 = vmax.f32 %v19217_v1, 0.0  ;;  %v4071_v51 = vadd.f32 %v4070_v32, %v18682_v38  ;;  %v4262_v28 = vadd.f32 %v23347_v59, %v4069_v35  ;;  %v19250_v1 = vsel %vm1121_vm2, %v19223_v14, %v4518_v40 }
 0x651   :  { %v4527_v25 = vrot.slane %v23346_v26, 1  ;;  %v4072_v36 = vpop.f32.mrf.mxu1  ;;  %v19256_v3 = vsel %vm1121_vm2, %v4511_v8, %v4515_v50  ;;  %v4526_v26 = vrot.slane %v23348_v62, 1  ;;  %v19263_v43 = vsel %vm1121_vm2, %v4515_v50, %v4519_v57 }
 0x652   :  { %v4264_v52 = vadd.f32 %v18871_v39, %v4071_v51  ;;  %v4073_v32 = vadd.f32 %v4072_v36, %v18671_v47  ;;  %v4531_v35 = vrot.slane %v4403_v23, 1  ;;  %v4406_v59 = vmax.f32 %v4262_v28, 0.0 }
 0x653   :  { %v4074_v12 = vpop.f32.mrf.mxu1  ;;  %v4671_v8 = vsel %vm1121_vm2, %v4519_v57, %v4523_v48  ;;  %v4670_v28 = vsel %vm1121_vm2, %v4518_v40, %v4522_v56  ;;  %v4530_v62 = vrot.slane %v4402_v6, 1  ;;  %v19283_v57 = vld [vmem:[#allocation4 + $0x40] ss:$8 sps:$4 sm:$0xff]  }
 0x654   :  { %5075 = vmatmul.mubr.bf16.gmra.mxu1 %v19219_v10  ;;  %v4407_v39 = vmax.f32 %v4264_v52, 0.0  ;;  %v19267_v51 = vadd.f32 %v18883_v27, %v4073_v32  ;;  %v4075_v36 = vadd.f32 %v4074_v12, %v18682_v38  ;;  %v19272_v10 = vpop.f32.mrf.mxu0  ;;  %v4534_v55 = vrot.slane %v4406_v59, 1 }
 0x655   :  { %5084 = vmatprep.mubr.bf16.mxu1 %v19229_v33  ;;  %23349 = vst [vmem:[#allocation72_spill] sm:$0xff] %v19272_v10  ;;  %v4078_v50 = vpop.f32.mrf.mxu1  ;;  %v4667_v33 = vsel %vm1121_vm2, %v4523_v48, %v4527_v25  ;;  %v4666_v10 = vsel %vm1121_vm2, %v4522_v56, %v4526_v26  ;;  %v4663_v48 = vsel %vm1121_vm2, %v4527_v25, %v4531_v35 }
 0x656   :  { %v4535_v52 = vrot.slane %v4407_v39, 1  ;;  %v4410_v27 = vmax.f32 %v19267_v51, 0.0  ;;  %v19280_v32 = vadd.f32 %v18905_v45, %v4075_v36  ;;  %v4079_v12 = vadd.f32 %v4078_v50, %v18671_v47  ;;  %v19300_v63 = vpop.f32.mrf.mxu0 }
 0x657   :  { %v4658_v40 = vsel %vm1121_vm2, %v4530_v62, %v4534_v55  ;;  %v4080_v22 = vpop.f32.mrf.mxu1  ;;  %v4775_v51 = vmax.f32 %v23350_v42, %v4671_v8  ;;  %v4662_v2 = vsel %vm1121_vm2, %v4526_v26, %v4530_v62  ;;  %v4779_v8 = vmax.f32 %v23351_v58, %v4667_v33 }
 0x658   :  { %v4538_v45 = vrot.slane %v4410_v27, 1  ;;  %v4411_v36 = vmax.f32 %v19280_v32, 0.0  ;;  %v19297_v50 = vadd.f32 %v18933_v46, %v4079_v12  ;;  %v4081_v56 = vadd.f32 %v4080_v22, %v18682_v38  ;;  %v19330_v58 = vpop.f32.mrf.mxu0 }
 0x659   :  { %v4082_v5 = vpop.f32.mrf.mxu1  ;;  %v4659_v25 = vsel %vm1121_vm2, %v4531_v35, %v4535_v52  ;;  %v4786_v42 = vmax.f32 %v4402_v6, %v4658_v40  ;;  %v23352_v6 = vmax.f32 %v19174_v0, 0.0  ;;  %v23353_v40 = vmax.f32 %v19185_v34, 0.0 }
 0x65a   :  { %v4654_v32 = vsel %vm1121_vm2, %v4534_v55, %v4538_v45  ;;  %v4539_v46 = vrot.slane %v4411_v36, 1  ;;  %v4414_v12 = vmax.f32 %v19297_v50, 0.0  ;;  %v19312_v22 = vadd.f32 %v18964_v20, %v4081_v56 }
 0x65b   :  { %v4083_v26 = vadd.f32 %v4082_v5, %v18671_v47  ;;  %v19316_v62 = vpop.f32.mrf.mxu1  ;;  %v4783_v35 = vmax.f32 %v23352_v6, %v4663_v48  ;;  %v4787_v31 = vmax.f32 %v4403_v23, %v4659_v25  ;;  %v19321_v33 = vmax.f32 %v4406_v59, %v4654_v32 }
 0x65c   :  { %5085 = vmatmul.mubr.bf16.gmra.mxu1 %v19283_v57  ;;  %v4542_v55 = vrot.slane %v4414_v12, 1  ;;  %v22770_v20 = vmax.f32 %v19312_v22, 0.0  ;;  %v4782_v56 = vmax.f32 %v23353_v40, %v4662_v2  ;;  %v4655_v5 = vsel %vm1121_vm2, %v4535_v52, %v4539_v46  ;;  %v19346_v40 = vld [vmem:[#allocation4 + $0x50] ss:$8 sps:$4 sm:$0xff]  }
 0x65d   :  { %5094 = vmatprep.mubr.bf16.mxu1 %v19293_v24  ;;  %v19333_v0 = vadd.f32 %v18995_v30, %v4083_v26  ;;  %v4088_v23 = vpop.f32.mrf.mxu1  ;;  %v4899_v48 = vpack.c.bf16 %v4787_v31, %v4783_v35  ;;  %v23354_v59 = vmax.f32 %v19169_v29, 0.0  ;;  %v19337_v32 = vmax.f32 %v4407_v39, %v4655_v5 }
 0x65e   :  { %v4650_v6 = vsel %vm1121_vm2, %v4538_v45, %v4542_v55  ;;  %v19343_v34 = vrot.slane %v22770_v20, 1  ;;  %v4089_v2 = vadd.f32 %v4088_v23, %v18671_v47  ;;  %v4898_v52 = vpack.c.bf16 %v4786_v42, %v4782_v56  ;;  %v19354_v45 = vld [vmem:[#allocation4 + $0x64] ss:$8 sps:$4 sm:$0xff]  }
 0x65f   :  { %v4778_v25 = vmax.f32 %v23354_v59, %v4666_v10  ;;  %v4418_v30 = vmax.f32 %v19333_v0, 0.0  ;;  %5125 = vmatprep.subr.bf16.mxu1 %v4899_v48  ;;  %v19349_v26 = vpop.f32.mrf.mxu1  ;;  %v4895_v29 = vpack.c.bf16 %v4779_v8, %v4775_v51  ;;  %v23355_v10 = vmax.f32 %v19136_v15, 0.0  ;;  %v19370_v15 = vpop.f32.mrf.mxu0 }
 0x660   :  { %v19356_v35 = vmax.f32 %v4410_v27, %v4650_v6  ;;  %v4678_v42 = vsel %vm1121_vm2, %v19210_v18, %v19223_v14  ;;  %v19363_v31 = vadd.f32 %v19039_v49, %v4089_v2  ;;  %5126 = vmatpush1.bf16.msra.mxu1 %v4898_v52  ;;  %v23356_v56 = vmax.f32 %v19139_v16, 0.0  ;;  %v23400_v16 = vld [vmem:[#allocation38_spill] sm:$0xff] }
 0x661   :  { %v4771_v39 = vmax.f32 %v23355_v10, %v19263_v43  ;;  %v4651_v43 = vsel %vm1121_vm2, %v4539_v46, %v19343_v34  ;;  %v4546_v27 = vrot.slane %v4418_v30, 1  ;;  %5127 = vmatprep.subr.bf16.mxu1 %v4895_v29  ;;  %v19372_v8 = vpop.f32.mrf.mxu1  ;;  %v23357_v14 = vmax.f32 %v19119_v19, 0.0 }
 0x662   :  { %v4774_v51 = vmax.f32 %v23356_v56, %v4670_v28  ;;  %v19377_v49 = vmax.f32 %v4411_v36, %v4651_v43  ;;  %v4682_v28 = vsel %vm1121_vm2, %v19190_v54, %v19210_v18  ;;  %v22771_v46 = vmax.f32 %v19363_v31, 0.0 }
 0x663   :  { %v4767_v5 = vmax.f32 %v23357_v14, %v19256_v3  ;;  %v23358_v23 = vmax.f32 %v19145_v60, 0.0  ;;  %v4646_v19 = vsel %vm1121_vm2, %v4542_v55, %v4546_v27  ;;  %v19392_v3 = vpop.f32.mrf.mxu1  ;;  %v23359_v59 = vmax.f32 %v19094_v61, 0.0 }
 0x664   :  { %v4894_v0 = vpack.c.bf16 %v4778_v25, %v4774_v51  ;;  %5095 = vmatmul.mubr.bf16.gmra.mxu1 %v19346_v40  ;;  %v23360_v60 = vmax.f32 %v19084_v11, 0.0  ;;  %v19404_v25 = vrot.slane %v22771_v46, 1  ;;  %v23361_v55 = vmax.f32 %v19127_v13, 0.0 }
 0x665   :  { %v4770_v48 = vmax.f32 %v23358_v23, %v19250_v1  ;;  %v4891_v36 = vpack.c.bf16 %v4771_v39, %v4767_v5  ;;  %v4763_v6 = vmax.f32 %v23359_v59, %v19237_v9  ;;  %5104 = vmatprep.mubr.bf16.mxu1 %v19354_v45  ;;  %v4691_v61 = vsel %vm1121_vm2, %v19133_v7, %v19180_v4  ;;  %v19412_v9 = vpop.f32.mrf.mxu0  ;;  %v19420_v39 = vpop.f32.mrf.mxu1  ;;  %v19437_v5 = vld [vmem:[#allocation4 + $0x60] ss:$8 sps:$4 sm:$0xff]   ;;  %v19446_v23 = vld [vmem:[#allocation4 + $0x74] ss:$8 sps:$4 sm:$0xff]  }
 0x666   :  { %v4495_v1 = vrot.slane %v23360_v60, 1  ;;  %5128 = vmatpush1.bf16.msra.mxu1 %v4894_v0  ;;  %v4766_v2 = vmax.f32 %v23361_v55, %v4678_v42  ;;  %v23362_v52 = vmax.f32 %v19098_v21, 0.0  ;;  %v4686_v10 = vsel %vm1121_vm2, %v19163_v17, %v19190_v54  ;;  %23365 = vst [vmem:[#allocation74_spill] sm:$0xff] %v19437_v5  ;;  %23368 = vst [vmem:[#allocation76_spill] sm:$0xff] %v19446_v23 }
 0x667   :  { %5129 = vmatprep.subr.bf16.mxu1 %v4891_v36  ;;  %v23363_v13 = vmax.f32 %v19109_v37, 0.0  ;;  %v19427_v4 = vmax.f32 %v4414_v12, %v4646_v19  ;;  %v4642_v56 = vsel %vm1121_vm2, %v4546_v27, %v19404_v25  ;;  %v23364_v43 = vmax.f32 %v19116_v53, 0.0  ;;  %v23366_v12 = vld [vmem:[#allocation44_spill] sm:$0xff]  ;;  %v23371_v19 = vld [vmem:[#allocation51_spill] sm:$0xff]  ;;  %v19455_v59 = vpop.f32.mrf.mxu0 }
 0x668   :  { %v4498_v29 = vrot.slane %v23362_v52, 1  ;;  %v4890_v51 = vpack.c.bf16 %v4770_v48, %v4766_v2  ;;  %v4695_v54 = vsel %vm1121_vm2, %v4495_v1, %v19133_v7  ;;  %v23367_v0 = vmax.f32 %v23366_v12, 0.0 }
 0x669   :  { %v4759_v42 = vmax.f32 %v23363_v13, %v19206_v41  ;;  %v4762_v14 = vmax.f32 %v23364_v43, %v4682_v28  ;;  %v19442_v41 = vpop.f32.mrf.mxu1  ;;  %v19448_v53 = vmax.f32 %v4418_v30, %v4642_v56  ;;  %v23369_v28 = vld [vmem:[#allocation50_spill] sm:$0xff]  ;;  %v4699_v36 = vsel %vm1121_vm2, %v23371_v19, %v4495_v1  ;;  %v23374_v1 = vld [vmem:[#allocation27_spill] sm:$0xff]  ;;  %v23375_v56 = vld [vmem:[#allocation41_spill] sm:$0xff]  ;;  %v19476_v21 = vpop.f32.mrf.mxu0 }
 0x66a   :  { %v4690_v37 = vsel %vm1121_vm2, %v4498_v29, %v19163_v17  ;;  %v4755_v27 = vmax.f32 %v23367_v0, %v4691_v61  ;;  %5130 = vmatpush1.bf16.msra.mxu1 %v4890_v51  ;;  %v23370_v48 = vmax.f32 %v23369_v28, 0.0  ;;  %v23372_v17 = vld [vmem:[#allocation34_spill] sm:$0xff]  ;;  %v23373_v55 = vmax.f32 %v19084_v11, 0.0  ;;  %v23377_v43 = vld [vmem:[#allocation15_spill] sm:$0xff] }
 0x66b   :  { %v4887_v50 = vpack.c.bf16 %v4763_v6, %v4759_v42  ;;  %v4694_v6 = vsel %vm1121_vm2, %v23372_v17, %v4498_v29  ;;  %v4102_v60 = vpop.f32.mrf.mxu1  ;;  %v4703_v13 = vsel %vm1121_vm2, %v23374_v1, %v23371_v19  ;;  %v23376_v51 = vmax.f32 %v23375_v56, 0.0  ;;  %v19482_v19 = vpop.f32.mrf.mxu0  ;;  %v23386_v1 = vld [vmem:[#allocation56_spill] sm:$0xff] }
 0x66c   :  { %v4758_v7 = vmax.f32 %v23370_v48, %v4686_v10  ;;  %v4751_v30 = vmax.f32 %v23373_v55, %v4695_v54  ;;  %v4754_v10 = vmax.f32 %v23362_v52, %v4690_v37  ;;  %5105 = vmatmul.mubr.bf16.gmra.mxu1 %v19437_v5  ;;  %v19480_v48 = vld [vmem:[#allocation4 + $0x70] ss:$8 sps:$4 sm:$0xff]   ;;  %v23382_v55 = vld [vmem:[#allocation29_spill] sm:$0xff] }
 0x66d   :  { %5131 = vmatprep.subr.bf16.mxu1 %v4887_v50  ;;  %v4104_v29 = vpop.f32.mrf.mxu1  ;;  %v4747_v11 = vmax.f32 %v23376_v51, %v4699_v36  ;;  %5114 = vmatprep.mubr.bf16.mxu1 %v19446_v23  ;;  %v23379_v50 = vld [vmem:[#allocation58_spill] sm:$0xff]  ;;  %23381 = vst [vmem:[#allocation77_spill] sm:$0xff] %v19480_v48  ;;  %v4323_v52 = vpop.f32.mrf.mxu0  ;;  %v23388_v51 = vld [vmem:[#allocation16_spill] sm:$0xff] }
 0x66e   :  { %v4886_v61 = vpack.c.bf16 %v4762_v14, %v4758_v7  ;;  %v4883_v42 = vpack.c.bf16 %v4755_v27, %v4751_v30  ;;  %v23378_v14 = vmax.f32 %v23377_v43, 0.0  ;;  %v23380_v12 = vmax.f32 %v23379_v50, 0.0  ;;  %v23383_v30 = vld [vmem:[#allocation59_spill] sm:$0xff]  ;;  %v23392_v50 = vld [vmem:[#allocation26_spill] sm:$0xff] }
 0x66f   :  { %v4108_v37 = vpop.f32.mrf.mxu1 }
 0x670   :  { %5132 = vmatpush1.bf16.msra.mxu1 %v4886_v61  ;;  %v4750_v54 = vmax.f32 %v23378_v14, %v4694_v6  ;;  %v4743_v0 = vmax.f32 %v23380_v12, %v4703_v13  ;;  %v14906_v6 = vld [vmem:[#allocation4 + $0x4] ss:$8 sps:$4 sm:$0xff]   ;;  %v23384_v61 = vpack.c.bf16 %v23382_v55, %v23383_v30  ;;  %v4325_v14 = vpop.f32.mrf.mxu0  ;;  %v23395_v30 = vld [vmem:[#allocation67_spill] sm:$0xff] }
 0x671   :  { %5133 = vmatprep.subr.bf16.mxu1 %v4883_v42  ;;  %v4110_v27 = vpop.f32.mrf.mxu1  ;;  %v23394_v55 = vld [vmem:[#allocation64_spill] sm:$0xff] }
 0x672   :  { %v4882_v28 = vpack.c.bf16 %v4754_v10, %v4750_v54  ;;  %v4879_v7 = vpack.c.bf16 %v4747_v11, %v4743_v0  ;;  %v23385_v10 = vld [vmem:[#allocation36_spill] sm:$0xff]  ;;  %v23389_v11 = vld [vmem:[#allocation23_spill] sm:$0xff]  ;;  %v23391_v54 = vld [vmem:[#allocation61_spill] sm:$0xff] }
 0x673   :  { %v19484_v36 = vpop.f32.mrf.mxu1  ;;  %v23387_v13 = vpack.c.bf16 %v23385_v10, %v23386_v1  ;;  %v23390_v43 = vpack.c.bf16 %v23388_v51, %v23389_v11  ;;  %v23393_v12 = vpack.c.bf16 %v23391_v54, %v23392_v50  ;;  %v4327_v10 = vpop.f32.mrf.mxu0  ;;  %v4099_v1 = vadd.f32 %v19420_v39, %v18671_v47  ;;  %v23397_v51 = vld [vmem:[#allocation45_spill] sm:$0xff]  ;;  %v23398_v50 = vld [vmem:[#allocation43_spill] sm:$0xff] }
 0x674   :  { %5134 = vmatpush1.bf16.msra.mxu1 %v4882_v28  ;;  %v4085_v28 = vadd.f32 %v19316_v62, %v18682_v38  ;;  %v4105_v62 = vadd.f32 %v4104_v29, %v18682_v38  ;;  %v23399_v39 = vld [vmem:[#allocation49_spill] sm:$0xff] }
 0x675   :  { %5135 = vmatprep.subr.bf16.mxu1 %v4879_v7  ;;  %5115 = vmatmul.mubr.bf16.gmra.mxu1 %v19480_v48  ;;  %v4114_v17 = vpop.f32.mrf.mxu1  ;;  %v23404_v29 = vld [vmem:[#allocation53_spill] sm:$0xff] }
 0x676   :  { %5157 = vmatprep.mubr.bf16.mxu1 %v14906_v6  ;;  %v4095_v6 = vadd.f32 %v19392_v3, %v18682_v38  ;;  %v19509_v11 = vadd.f32 %v23397_v51, %v4085_v28  ;;  %v4093_v3 = vadd.f32 %v19372_v8, %v18671_v47  ;;  %v4101_v28 = vadd.f32 %v19442_v41, %v18682_v38  ;;  %v23401_v8 = vld [vmem:[#allocation57_spill] sm:$0xff] }
 0x677   :  { %v4118_v42 = vpop.f32.mrf.mxu1  ;;  %v4115_v46 = vadd.f32 %v4114_v17, %v18682_v38 }
 0x678   :  { %5136 = vmatpush1.bf16.msra.mxu1 %v23384_v61  ;;  %v23396_v61 = vpack.c.bf16 %v23394_v55, %v23395_v30  ;;  %v4109_v55 = vadd.f32 %v4108_v37, %v18671_v47  ;;  %v4331_v30 = vpop.f32.mrf.mxu0  ;;  %v23402_v37 = vld [vmem:[#allocation42_spill] sm:$0xff]  ;;  %v4119_v48 = vadd.f32 %v4118_v42, %v18671_v47 }
 0x679   :  { %5137 = vmatprep.subr.bf16.mxu1 %v23387_v13  ;;  %v4120_v56 = vpop.f32.mrf.mxu1  ;;  %v19534_v2 = vadd.f32 %v23402_v37, %v4093_v3  ;;  %v23405_v3 = vld [vmem:[#allocation55_spill] sm:$0xff] }
 0x67b   :  { %v4122_v0 = vpop.f32.mrf.mxu1 }
 0x67c   :  { %5138 = vmatpush1.bf16.msra.mxu1 %v23390_v43  ;;  %v4091_v43 = vadd.f32 %v19349_v26, %v18682_v38  ;;  %v4103_v26 = vadd.f32 %v4102_v60, %v18671_v47  ;;  %v4333_v60 = vpop.f32.mrf.mxu0 }
 0x67d   :  { %5139 = vmatprep.subr.bf16.mxu1 %v23393_v12  ;;  %v4124_v7 = vpop.f32.mrf.mxu1  ;;  %v19517_v12 = vadd.f32 %v23398_v50, %v4095_v6  ;;  %v19531_v6 = vadd.f32 %v23401_v8, %v4105_v62 }
 0x67e   :  { %v19528_v18 = vadd.f32 %v23400_v16, %v4091_v43  ;;  %v19543_v16 = vadd.f32 %v23404_v29, %v4101_v28  ;;  %v4111_v43 = vadd.f32 %v4110_v27, %v18682_v38  ;;  %v19548_v37 = vadd.f32 %v23405_v3, %v4103_v26  ;;  %v4335_v3 = vpop.f32.mrf.mxu0 }
 0x67f   :  { %v4128_v13 = vpop.f32.mrf.mxu1  ;;  %v4121_v26 = vadd.f32 %v4120_v56, %v18682_v38 }
 0x680   :  { %5140 = vmatpush1.bf16.msra.mxu1 %v23396_v61  ;;  %v19521_v61 = vadd.f32 %v23399_v39, %v4099_v1  ;;  %v23403_v39 = vld [vmem:[#allocation68_spill] sm:$0xff]  ;;  %v4125_v1 = vadd.f32 %v4124_v7, %v18682_v38 }
 0x681   :  { %v4130_v54 = vpop.f32.mrf.mxu1  ;;  %v19538_v20 = vadd.f32 %v23403_v39, %v4109_v55  ;;  %v4129_v55 = vadd.f32 %v4128_v13, %v18671_v47  ;;  %v23406_v13 = vld [vmem:[#allocation72_spill] sm:$0xff] }
 0x682   :  { %v4131_v62 = vadd.f32 %v4130_v54, %v18682_v38  ;;  %v19561_v23 = vadd.f32 %v23406_v13, %v4111_v43 }
 0x683   :  { %v4132_v51 = vpop.f32.mrf.mxu1  ;;  %v4438_v54 = vmax.f32 %v19538_v20, 0.0  ;;  %v19570_v42 = vadd.f32 %v19482_v19, %v4129_v55  ;;  %v4337_v19 = vpop.f32.mrf.mxu0 }
 0x684   :  { %v4133_v28 = vadd.f32 %v4132_v51, %v18671_v47  ;;  %v4324_v39 = vadd.f32 %v4323_v52, %v4131_v62  ;;  %v19567_v51 = vadd.f32 %v19476_v21, %v4125_v1 }
 0x685   :  { %v4134_v50 = vpop.f32.mrf.mxu1 }
 0x686   :  { %v4135_v41 = vadd.f32 %v4134_v50, %v18682_v38  ;;  %v4326_v43 = vadd.f32 %v4325_v14, %v4133_v28  ;;  %v4451_v62 = vmax.f32 %v19567_v51, 0.0 }
 0x687   :  { %v4138_v8 = vpop.f32.mrf.mxu1 }
 0x688   :  { %v4139_v50 = vadd.f32 %v4138_v8, %v18671_v47  ;;  %v4328_v29 = vadd.f32 %v4327_v10, %v4135_v41  ;;  %v4123_v8 = vadd.f32 %v4122_v0, %v18671_v47  ;;  %v4113_v10 = vadd.f32 %v19484_v36, %v18671_v47 }
 0x689   :  { %v4140_v27 = vpop.f32.mrf.mxu1  ;;  %v19573_v41 = vadd.f32 %v19330_v58, %v4115_v46  ;;  %v19580_v36 = vadd.f32 %v19412_v9, %v4121_v26  ;;  %v4455_v58 = vmax.f32 %v4324_v39, 0.0  ;;  %v4458_v9 = vmax.f32 %v4326_v43, 0.0 }
 0x68a   :  { %v4141_v7 = vadd.f32 %v4140_v27, %v18682_v38  ;;  %v4332_v17 = vadd.f32 %v4331_v30, %v4139_v50  ;;  %v4459_v27 = vmax.f32 %v4328_v29, 0.0  ;;  %v19577_v30 = vadd.f32 %v19370_v15, %v4119_v48 }
 0x68b   :  { %v4142_v5 = vpop.f32.mrf.mxu1  ;;  %v19589_v48 = vadd.f32 %v19300_v63, %v4113_v10  ;;  %v4447_v39 = vmax.f32 %v19580_v36, 0.0  ;;  %v4583_v26 = vrot.slane %v4455_v58, 1  ;;  %v4579_v13 = vrot.slane %v4451_v62, 1 }
 0x68c   :  { %v4334_v56 = vadd.f32 %v4333_v60, %v4141_v7  ;;  %v4143_v0 = vadd.f32 %v4142_v5, %v18671_v47  ;;  %v19584_v60 = vadd.f32 %v19455_v59, %v4123_v8  ;;  %v4462_v46 = vmax.f32 %v4332_v17, 0.0 }
 0x68d   :  { %v4144_v52 = vpop.f32.mrf.mxu1  ;;  %v4454_v47 = vmax.f32 %v19570_v42, 0.0  ;;  %v4587_v55 = vrot.slane %v4459_v27, 1  ;;  %v4446_v59 = vmax.f32 %v19577_v30, 0.0  ;;  %v4586_v10 = vrot.slane %v4458_v9, 1  ;;  %v23407_v42 = vld [vmem:[#allocation21_spill] sm:$0xff]  ;;  %v23408_v30 = vld [vmem:[#allocation19_spill] sm:$0xff] }
 0x68e   :  { %v4463_v21 = vmax.f32 %v4334_v56, 0.0  ;;  %v4145_v1 = vadd.f32 %v4144_v52, %v18682_v38  ;;  %v4336_v14 = vadd.f32 %v4335_v3, %v4143_v0  ;;  %v4443_v38 = vmax.f32 %v19573_v41, 0.0 }
 0x68f   :  { %v4450_v29 = vmax.f32 %v19584_v60, 0.0  ;;  %v4590_v7 = vrot.slane %v4462_v46, 1  ;;  %v4582_v8 = vrot.slane %v4454_v47, 1  ;;  %v4607_v41 = vsel %vm1121_vm2, %v4583_v26, %v4587_v55 }
 0x690   :  { %v4591_v5 = vrot.slane %v4463_v21, 1  ;;  %v4338_v15 = vadd.f32 %v4337_v19, %v4145_v1  ;;  %v4466_v50 = vmax.f32 %v4336_v14, 0.0 }
 0x691   :  { %v4602_v1 = vsel %vm1121_vm2, %v4586_v10, %v4590_v7 }
 0x692   :  { %v4467_v28 = vmax.f32 %v4338_v15, 0.0  ;;  %v4594_v3 = vrot.slane %v4466_v50, 1  ;;  %v4603_v63 = vsel %vm1121_vm2, %v4587_v55, %v4591_v5  ;;  %v4439_v15 = vmax.f32 %v19561_v23, 0.0 }
 0x693   :  { %v4843_v14 = vmax.f32 %v4459_v27, %v4603_v63  ;;  %v4575_v55 = vrot.slane %v4447_v39, 1 }
 0x694   :  { %v4595_v17 = vrot.slane %v4467_v28, 1  ;;  %v4598_v51 = vsel %vm1121_vm2, %v4590_v7, %v4594_v3  ;;  %v4722_v56 = vsel %vm1121_vm2, %v4594_v3, %v23407_v42  ;;  %v4442_v3 = vmax.f32 %v19589_v48, 0.0 }
 0x695   :  { %v4846_v43 = vmax.f32 %v4462_v46, %v4598_v51  ;;  %v4850_v0 = vmax.f32 %v4466_v50, %v4722_v56  ;;  %v4611_v46 = vsel %vm1121_vm2, %v4579_v13, %v4583_v26  ;;  %v4578_v50 = vrot.slane %v4450_v29, 1 }
 0x696   :  { %v4599_v52 = vsel %vm1121_vm2, %v4591_v5, %v4595_v17  ;;  %v4723_v36 = vsel %vm1121_vm2, %v4595_v17, %v23408_v30  ;;  %v4606_v5 = vsel %vm1121_vm2, %v4582_v8, %v4586_v10  ;;  %v4839_v17 = vmax.f32 %v4455_v58, %v4607_v41 }
 0x697   :  { %v4847_v19 = vmax.f32 %v4463_v21, %v4599_v52  ;;  %v4851_v60 = vmax.f32 %v4467_v28, %v4723_v36  ;;  %v4571_v42 = vrot.slane %v4443_v38, 1  ;;  %v4930_v56 = vpack.c.bf16 %v4850_v0, %v4846_v43 }
 0x698   :  { %v4842_v7 = vmax.f32 %v4458_v9, %v4602_v1  ;;  %v4615_v27 = vsel %vm1121_vm2, %v4575_v55, %v4579_v13  ;;  %v4574_v21 = vrot.slane %v4446_v59, 1  ;;  %v4610_v23 = vsel %vm1121_vm2, %v4578_v50, %v4582_v8 }
 0x699   :  { %v4931_v51 = vpack.c.bf16 %v4851_v60, %v4847_v19  ;;  %v4927_v48 = vpack.c.bf16 %v4843_v14, %v4839_v17  ;;  %v4835_v28 = vmax.f32 %v4451_v62, %v4611_v46  ;;  %v4431_v26 = vmax.f32 %v19543_v16, 0.0 }
 0x69a   :  { %v4567_v63 = vrot.slane %v4439_v15, 1  ;;  %v4838_v10 = vmax.f32 %v4454_v47, %v4606_v5  ;;  %v4619_v58 = vsel %vm1121_vm2, %v4571_v42, %v4575_v55  ;;  %v4434_v9 = vmax.f32 %v19548_v37, 0.0 }
 0x69b   :  { %5141 = vmatprep.subr.bf16.mxu1 %v4931_v51  ;;  %v4570_v41 = vrot.slane %v4442_v3, 1  ;;  %v4614_v13 = vsel %vm1121_vm2, %v4574_v21, %v4578_v50  ;;  %v4831_v43 = vmax.f32 %v4447_v39, %v4615_v27  ;;  %v23409_v8 = vmax.f32 %v19531_v6, 0.0 }
 0x69c   :  { %5142 = vmatpush2.bf16.msra.mxu1 %v4930_v56  ;;  %v4926_v62 = vpack.c.bf16 %v4842_v7, %v4838_v10  ;;  %v4834_v52 = vmax.f32 %v4450_v29, %v4610_v23  ;;  %v4623_v16 = vsel %vm1121_vm2, %v4567_v63, %v4571_v42  ;;  %v4566_v47 = vrot.slane %v4438_v54, 1 }
 0x69d   :  { %5143 = vmatprep.subr.bf16.mxu1 %v4927_v48  ;;  %v4563_v0 = vrot.slane %v23409_v8, 1  ;;  %v4618_v37 = vsel %vm1121_vm2, %v4570_v41, %v4574_v21  ;;  %v4923_v30 = vpack.c.bf16 %v4835_v28, %v4831_v43  ;;  %v4827_v36 = vmax.f32 %v4443_v38, %v4619_v58 }
 0x69e   :  { %v4423_v1 = vmax.f32 %v19528_v18, 0.0  ;;  %v4559_v19 = vrot.slane %v4431_v26, 1  ;;  %v4830_v39 = vmax.f32 %v4446_v59, %v4614_v13  ;;  %v4426_v29 = vmax.f32 %v19534_v2, 0.0 }
 0x69f   :  { %v4627_v60 = vsel %vm1121_vm2, %v4563_v0, %v4567_v63  ;;  %v4562_v14 = vrot.slane %v4434_v9, 1  ;;  %v4622_v55 = vsel %vm1121_vm2, %v4566_v47, %v4570_v41  ;;  %v4823_v46 = vmax.f32 %v4439_v15, %v4623_v16 }
 0x6a0   :  { %5144 = vmatpush2.bf16.msra.mxu1 %v4926_v62  ;;  %v23410_v50 = vmax.f32 %v19517_v12, 0.0  ;;  %v4922_v38 = vpack.c.bf16 %v4834_v52, %v4830_v39  ;;  %v4826_v51 = vmax.f32 %v4442_v3, %v4618_v37  ;;  %v4631_v18 = vsel %vm1121_vm2, %v4559_v19, %v4563_v0 }
 0x6a1   :  { %5145 = vmatprep.subr.bf16.mxu1 %v4923_v30  ;;  %v23411_v59 = vmax.f32 %v19521_v61, 0.0  ;;  %v4626_v2 = vsel %vm1121_vm2, %v4562_v14, %v4566_v47  ;;  %v4919_v42 = vpack.c.bf16 %v4827_v36, %v4823_v46  ;;  %v23412_v56 = vmov %v23409_v8 }
 0x6a2   :  { %v4555_v5 = vrot.slane %v23410_v50, 1  ;;  %v4819_v7 = vmax.f32 %v23412_v56, %v4627_v60  ;;  %v4551_v27 = vrot.slane %v4423_v1, 1  ;;  %v4822_v15 = vmax.f32 %v4438_v54, %v4622_v55  ;;  %v23424_v60 = vld [vmem:[#allocation46_spill] sm:$0xff]  ;;  %v13877_v56 = vld [vmem:[#allocation6 + $0x60] ss:$8 sps:$4 sm:$0xff]  }
 0x6a3   :  { %v4558_v17 = vrot.slane %v23411_v59, 1  ;;  %v4554_v21 = vrot.slane %v4426_v29, 1  ;;  %v4815_v48 = vmax.f32 %v4431_v26, %v4631_v18  ;;  %v23413_v28 = vmax.f32 %v19509_v11, 0.0  ;;  %v23422_v11 = vld [vmem:[#allocation33_spill] sm:$0xff] }
 0x6a4   :  { %5146 = vmatpush2.bf16.msra.mxu1 %v4922_v38  ;;  %v4635_v3 = vsel %vm1121_vm2, %v4555_v5, %v4559_v19  ;;  %v4918_v10 = vpack.c.bf16 %v4826_v51, %v4822_v15  ;;  %v4818_v6 = vmax.f32 %v4434_v9, %v4626_v2  ;;  %v4639_v58 = vsel %vm1121_vm2, %v4551_v27, %v4555_v5 }
 0x6a5   :  { %v4630_v23 = vsel %vm1121_vm2, %v4558_v17, %v4562_v14  ;;  %5147 = vmatprep.subr.bf16.mxu1 %v4919_v42  ;;  %v4547_v63 = vrot.slane %v23413_v28, 1  ;;  %v4634_v20 = vsel %vm1121_vm2, %v4554_v21, %v4558_v17  ;;  %v4915_v54 = vpack.c.bf16 %v4819_v7, %v4815_v48  ;;  %v23426_v14 = vld [vmem:[#allocation52_spill] sm:$0xff]  ;;  %v13876_v17 = vld [vmem:[#allocation6 + $0x74] ss:$8 sps:$4 sm:$0xff]  }
 0x6a6   :  { %v23414_v41 = vmov %v23410_v50  ;;  %v23415_v43 = vmov %v23411_v59  ;;  %v4638_v9 = vsel %vm1121_vm2, %v19404_v25, %v4554_v21  ;;  %v4807_v0 = vmax.f32 %v4423_v1, %v4639_v58  ;;  %v13874_v59 = vld [vmem:[#allocation6 + $0x70] ss:$8 sps:$4 sm:$0xff]   ;;  %5911 = vmatprep.subr.bf16.mxu0 %v13876_v17  ;;  %v13879_v7 = vld [vmem:[#allocation6 + $0x64] ss:$8 sps:$4 sm:$0xff]   ;;  %v13882_v21 = vld [vmem:[#allocation6 + $0x54] ss:$8 sps:$4 sm:$0xff]  }
 0x6a7   :  { %v4811_v13 = vmax.f32 %v23414_v41, %v4635_v3  ;;  %v4814_v8 = vmax.f32 %v23415_v43, %v4630_v23  ;;  %v4643_v26 = vsel %vm1121_vm2, %v4547_v63, %v4551_v27  ;;  %v4810_v52 = vmax.f32 %v4426_v29, %v4634_v20  ;;  %v23425_v29 = vld [vmem:[#allocation47_spill] sm:$0xff]  ;;  %5912 = vmatpush1.bf16.msra.mxu0 %v13874_v59  ;;  %v13892_v43 = vld [vmem:[#allocation6 + $0x160] ss:$8 sps:$4 sm:$0xff]  }
 0x6a8   :  { %5148 = vmatpush2.bf16.msra.mxu1 %v4918_v10  ;;  %v4647_v12 = vsel %vm1121_vm2, %v19343_v34, %v4547_v63  ;;  %v23416_v47 = vmov %v23413_v28  ;;  %v23417_v37 = vmax.f32 %v19363_v31, 0.0  ;;  %v23418_v36 = vmax.f32 %v19312_v22, 0.0  ;;  %v23423_v22 = vld [vmem:[#allocation32_spill] sm:$0xff]  ;;  %5913 = vmatprep.subr.bf16.mxu0 %v13879_v7  ;;  %v13880_v3 = vld [vmem:[#allocation6 + $0x50] ss:$8 sps:$4 sm:$0xff]  }
 0x6a9   :  { %5149 = vmatprep.subr.bf16.mxu1 %v4915_v54  ;;  %v4914_v62 = vpack.c.bf16 %v4818_v6, %v4814_v8  ;;  %v4911_v16 = vpack.c.bf16 %v4811_v13, %v4807_v0  ;;  %v4803_v61 = vmax.f32 %v23416_v47, %v4643_v26  ;;  %v23419_v39 = vpack.c.bf16 %v19448_v53, %v19427_v4  ;;  %v23427_v4 = vld [vmem:[#allocation54_spill] sm:$0xff]  ;;  %v23428_v53 = vld [vmem:[#allocation60_spill] sm:$0xff] }
 0x6aa   :  { %v4806_v30 = vmax.f32 %v23417_v37, %v4638_v9  ;;  %v4799_v25 = vmax.f32 %v23418_v36, %v4647_v12  ;;  %v23420_v34 = vpack.c.bf16 %v19377_v49, %v19337_v32  ;;  %v23421_v31 = vpack.c.bf16 %v19356_v35, %v19321_v33  ;;  %v23429_v32 = vld [vmem:[#allocation63_spill] sm:$0xff]  ;;  %v23430_v33 = vld [vmem:[#allocation74_spill] sm:$0xff]  ;;  %v23431_v35 = vld [vmem:[#allocation76_spill] sm:$0xff] }
 0x6ab   :  { %v23432_v49 = vld [vmem:[#allocation77_spill] sm:$0xff]  ;;  %5914 = vmatpush1.bf16.msra.mxu0 %v13877_v56  ;;  %v13886_v58 = vld [vmem:[#allocation6 + $0x30] ss:$8 sps:$4 sm:$0xff]   ;;  %v13888_v20 = vld [vmem:[#allocation6 + $0x34] ss:$8 sps:$4 sm:$0xff]  }
 0x6ac   :  { %5150 = vmatpush2.bf16.msra.mxu1 %v4914_v62  ;;  %v4910_v19 = vpack.c.bf16 %v4810_v52, %v4806_v30  ;;  %v4907_v1 = vpack.c.bf16 %v4803_v61, %v4799_v25  ;;  %5915 = vmatprep.subr.bf16.mxu0 %v13882_v21  ;;  %v13883_v28 = vld [vmem:[#allocation6 + $0x40] ss:$8 sps:$4 sm:$0xff]   ;;  %v13885_v63 = vld [vmem:[#allocation6 + $0x44] ss:$8 sps:$4 sm:$0xff]   ;;  %v13889_v54 = vld [vmem:[#allocation6 + $0x170] ss:$8 sps:$4 sm:$0xff]  }
 0x6ad   :  { %5151 = vmatprep.subr.bf16.mxu1 %v4911_v16  ;;  %v13891_v41 = vld [vmem:[#allocation6 + $0x174] ss:$8 sps:$4 sm:$0xff]   ;;  %v13894_v8 = vld [vmem:[#allocation6 + $0x164] ss:$8 sps:$4 sm:$0xff]   ;;  %v13895_v9 = vld [vmem:[#allocation6 + $0x20] ss:$8 sps:$4 sm:$0xff]  }
 0x6ae   :  { %v13897_v0 = vld [vmem:[#allocation6 + $0x24] ss:$8 sps:$4 sm:$0xff]   ;;  %v13898_v62 = vld [vmem:[#allocation6 + $0x150] ss:$8 sps:$4 sm:$0xff]   ;;  %v13900_v52 = vld [vmem:[#allocation6 + $0x154] ss:$8 sps:$4 sm:$0xff]  }
 0x6af   :  { %5916 = vmatpush1.bf16.msra.mxu0 %v13880_v3  ;;  %v13903_v12 = vld [vmem:[#allocation6 + $0x144] ss:$8 sps:$4 sm:$0xff]   ;;  %v13906_v16 = vld [vmem:[#allocation6 + $0x14] ss:$8 sps:$4 sm:$0xff]   ;;  %v13904_v61 = vld [vmem:[#allocation6 + $0x10] ss:$8 sps:$4 sm:$0xff]  }
 0x6b0   :  { %5152 = vmatpush2.bf16.msra.mxu1 %v4910_v19  ;;  %5917 = vmatprep.subr.bf16.mxu0 %v13885_v63  ;;  %v13901_v37 = vld [vmem:[#allocation6 + $0x140] ss:$8 sps:$4 sm:$0xff]   ;;  %v13915_v30 = vld [vmem:[#allocation6 + $0x4] ss:$8 sps:$4 sm:$0xff]   ;;  %v13909_v36 = vld [vmem:[#allocation6 + $0x134] ss:$8 sps:$4 sm:$0xff]  }
 0x6b1   :  { %5153 = vmatprep.subr.bf16.mxu1 %v4907_v1  ;;  %v13913_v19 = vld [vmem:[#allocation6] ss:$8 sps:$4 sm:$0xff]   ;;  %v13907_v1 = vld [vmem:[#allocation6 + $0x130] ss:$8 sps:$4 sm:$0xff]   ;;  %v13927_v59 = vld [vmem:[#allocation6 + $0x1f4] ss:$8 sps:$4 sm:$0xff]  }
 0x6b2   :  { %v13940_v56 = vld [vmem:[#allocation6 + $0xc0] ss:$8 sps:$4 sm:$0xff]   ;;  %v13925_v7 = vld [vmem:[#allocation6 + $0x1f0] ss:$8 sps:$4 sm:$0xff]   ;;  %v13948_v3 = vld [vmem:[#allocation6 + $0xb4] ss:$8 sps:$4 sm:$0xff]  }
 0x6b3   :  { %5918 = vmatpush1.bf16.msra.mxu0 %v13883_v28  ;;  %v13933_v21 = vld [vmem:[#allocation6 + $0x1e4] ss:$8 sps:$4 sm:$0xff]   ;;  %v13946_v63 = vld [vmem:[#allocation6 + $0xb0] ss:$8 sps:$4 sm:$0xff]  }
 0x6b4   :  { %5154 = vmatpush2.bf16.msra.mxu1 %v23419_v39  ;;  %5919 = vmatprep.subr.bf16.mxu0 %v13888_v20  ;;  %v13924_v39 = vld [vmem:[#allocation6 + $0xf4] ss:$8 sps:$4 sm:$0xff]   ;;  %v13954_v20 = vld [vmem:[#allocation6 + $0xa4] ss:$8 sps:$4 sm:$0xff]  }
 0x6b5   :  { %5155 = vmatprep.subr.bf16.mxu1 %v23420_v34  ;;  %v13912_v34 = vld [vmem:[#allocation6 + $0x124] ss:$8 sps:$4 sm:$0xff]  }
 0x6b7   :  { %5920 = vmatpush1.bf16.msra.mxu0 %v13886_v58  ;;  %v13931_v58 = vld [vmem:[#allocation6 + $0x1e0] ss:$8 sps:$4 sm:$0xff]  }
 0x6b8   :  { %5156 = vmatpush2.bf16.msra.mxu1 %v23421_v31  ;;  %5921 = vmatprep.subr.bf16.mxu0 %v13897_v0 }
 0x6b9   :  { %6024 = vmatprep.subr.bf16.mxu1 %v13891_v41 }
 0x6bb   :  { %5158 = vmatmul.mubr.bf16.vlgmr.msra.gmra.mxu1 %v23422_v11  ;;  %5922 = vmatpush1.bf16.msra.mxu0 %v13895_v9  ;;  %v13922_v11 = vld [vmem:[#allocation6 + $0xf0] ss:$8 sps:$4 sm:$0xff]   ;;  %v13945_v9 = vld [vmem:[#allocation6 + $0x1c4] ss:$8 sps:$4 sm:$0xff]  }
 0x6bc   :  { %5167 = vmatprep.mubr.bf16.mxu1 %v23423_v22  ;;  %6025 = vmatpush1.bf16.msra.mxu1 %v13889_v54  ;;  %v13910_v22 = vld [vmem:[#allocation6 + $0x120] ss:$8 sps:$4 sm:$0xff]   ;;  %v13939_v54 = vld [vmem:[#allocation6 + $0x1d4] ss:$8 sps:$4 sm:$0xff]  }
 0x6bd   :  { %6026 = vmatprep.subr.bf16.mxu1 %v13894_v8  ;;  %5923 = vmatprep.subr.bf16.mxu0 %v13906_v16  ;;  %v13937_v8 = vld [vmem:[#allocation6 + $0x1d0] ss:$8 sps:$4 sm:$0xff]  }
 0x6be   :  { %v13949_v16 = vld [vmem:[#allocation6 + $0x1b0] ss:$8 sps:$4 sm:$0xff]  }
 0x6bf   :  { %5924 = vmatpush1.bf16.msra.mxu0 %v13904_v61  ;;  %v13957_v61 = vld [vmem:[#allocation6 + $0x1a4] ss:$8 sps:$4 sm:$0xff]  }
 0x6c0   :  { %6027 = vmatpush1.bf16.msra.mxu1 %v13892_v43  ;;  %5925 = vmatprep.subr.bf16.mxu0 %v13915_v30  ;;  %v13952_v43 = vld [vmem:[#allocation6 + $0xa0] ss:$8 sps:$4 sm:$0xff]  }
 0x6c1   :  { %6028 = vmatprep.subr.bf16.mxu1 %v13900_v52  ;;  %v13951_v52 = vld [vmem:[#allocation6 + $0x1b4] ss:$8 sps:$4 sm:$0xff]   ;;  %v13955_v30 = vld [vmem:[#allocation6 + $0x1a0] ss:$8 sps:$4 sm:$0xff]  }
 0x6c3   :  { %5168 = vmatmul.mubr.bf16.gmra.mxu1 %v23424_v60  ;;  %5926 = vmatpush1.bf16.msra.mxu0 %v13913_v19  ;;  %v13930_v60 = vld [vmem:[#allocation6 + $0xe4] ss:$8 sps:$4 sm:$0xff]   ;;  %v13958_v19 = vld [vmem:[#allocation6 + $0x90] ss:$8 sps:$4 sm:$0xff]  }
 0x6c4   :  { %5177 = vmatprep.mubr.bf16.mxu1 %v23425_v29  ;;  %6029 = vmatpush1.bf16.msra.mxu1 %v13898_v62  ;;  %v13918_v29 = vld [vmem:[#allocation6 + $0x114] ss:$8 sps:$4 sm:$0xff]   ;;  %v13943_v62 = vld [vmem:[#allocation6 + $0x1c0] ss:$8 sps:$4 sm:$0xff]  }
 0x6c5   :  { %6030 = vmatprep.subr.bf16.mxu1 %v13903_v12  ;;  %5927 = vmatprep.subr.bf16.mxu0 %v13924_v39 }
 0x6c7   :  { %5928 = vmatpush2.bf16.msra.mxu0 %v13922_v11  ;;  %v13963_v11 = vld [vmem:[#allocation6 + $0x194] ss:$8 sps:$4 sm:$0xff]  }
 0x6c8   :  { %6031 = vmatpush1.bf16.msra.mxu1 %v13901_v37  ;;  %5929 = vmatprep.subr.bf16.mxu0 %v13930_v60  ;;  %v13964_v60 = vld [vmem:[#allocation6 + $0x80] ss:$8 sps:$4 sm:$0xff]  }
 0x6c9   :  { %6032 = vmatprep.subr.bf16.mxu1 %v13909_v36 }
 0x6cb   :  { %5178 = vmatmul.mubr.bf16.gmra.mxu1 %v23426_v14 }
 0x6cc   :  { %5187 = vmatprep.mubr.bf16.mxu1 %v23427_v4  ;;  %6033 = vmatpush1.bf16.msra.mxu1 %v13907_v1  ;;  %v13928_v4 = vld [vmem:[#allocation6 + $0xe0] ss:$8 sps:$4 sm:$0xff]   ;;  %v13960_v1 = vld [vmem:[#allocation6 + $0x94] ss:$8 sps:$4 sm:$0xff]  }
 0x6cd   :  { %6034 = vmatprep.subr.bf16.mxu1 %v13912_v34  ;;  %5930 = vmatpush2.bf16.msra.mxu0 %v13928_v4 }
 0x6d0   :  { %6035 = vmatpush1.bf16.msra.mxu1 %v13910_v22  ;;  %v13961_v22 = vld [vmem:[#allocation6 + $0x190] ss:$8 sps:$4 sm:$0xff]  }
 0x6d1   :  { %6036 = vmatprep.subr.bf16.mxu1 %v13918_v29  ;;  %v13966_v29 = vld [vmem:[#allocation6 + $0x84] ss:$8 sps:$4 sm:$0xff]  }
 0x6d3   :  { %5188 = vmatmul.mubr.bf16.gmra.mxu1 %v23428_v53  ;;  %v13916_v53 = vld [vmem:[#allocation6 + $0x110] ss:$8 sps:$4 sm:$0xff]  }
 0x6d4   :  { %5197 = vmatprep.mubr.bf16.mxu1 %v23429_v32  ;;  %v13936_v32 = vld [vmem:[#allocation6 + $0xd4] ss:$8 sps:$4 sm:$0xff]   ;;  %6037 = vmatpush1.bf16.msra.mxu1 %v13916_v53  ;;  %v13967_v53 = vld [vmem:[#allocation6 + $0x180] ss:$8 sps:$4 sm:$0xff]  }
 0x6d5   :  { %5931 = vmatprep.subr.bf16.mxu0 %v13936_v32  ;;  %v13969_v32 = vld [vmem:[#allocation6 + $0x184] ss:$8 sps:$4 sm:$0xff]  }
 0x6db   :  { %5198 = vmatmul.mubr.bf16.gmra.mxu1 %v19283_v57 }
 0x6dc   :  { %5207 = vmatprep.mubr.bf16.mxu1 %v19293_v24 }
 0x6e3   :  { %5208 = vmatmul.mubr.bf16.gmra.mxu1 %v19346_v40 }
 0x6e4   :  { %5217 = vmatprep.mubr.bf16.mxu1 %v19354_v45 }
 0x6eb   :  { %5218 = vmatmul.mubr.bf16.gmra.mxu1 %v23430_v33  ;;  %v13921_v33 = vld [vmem:[#allocation6 + $0x104] ss:$8 sps:$4 sm:$0xff]  }
 0x6ec   :  { %5227 = vmatprep.mubr.bf16.mxu1 %v23431_v35  ;;  %6038 = vmatprep.subr.bf16.mxu1 %v13921_v33 }
 0x6f3   :  { %5228 = vmatmul.mubr.bf16.gmra.mxu1 %v23432_v49  ;;  %v13934_v49 = vld [vmem:[#allocation6 + $0xd0] ss:$8 sps:$4 sm:$0xff]  }
 0x6f4   :  { %5932 = vmatpush2.bf16.msra.mxu0 %v13934_v49 }
 0x6fc   :  { %v19705_v55 = vpop.f32.mrf.mxu1 }
 0x6fe   :  { %v19707_v46 = vpop.f32.mrf.mxu1 }
 0x700   :  { %v19709_v50 = vpop.f32.mrf.mxu1 }
 0x701   :  { %v13384_v57 = vpack.i.bf16 %v19709_v50, %v19705_v55 }
 0x702   :  { %v19713_v24 = vpop.f32.mrf.mxu1 }
 0x703   :  { %v13389_v40 = vpack.i.bf16 %v19713_v24, %v19707_v46  ;;  %13385 = vrot.lane.b32.xlu0 %v13384_v57, %s15003_s6  ;;  %v13919_v57 = vld [vmem:[#allocation6 + $0x100] ss:$8 sps:$4 sm:$0xff]  }
 0x704   :  { %v19719_v45 = vpop.f32.mrf.mxu1  ;;  %6039 = vmatpush1.bf16.msra.mxu1 %v13919_v57 }
 0x705   :  { %13390 = vrot.lane.b32.xlu1 %v13389_v40, %s15003_s6  ;;  %v13942_v40 = vld [vmem:[#allocation6 + $0xc4] ss:$8 sps:$4 sm:$0xff]   ;;  %6040 = vmatprep.subr.bf16.mxu1 %v13927_v59 }
 0x706   :  { %v19721_v5 = vpop.f32.mrf.mxu1  ;;  %5933 = vmatprep.subr.bf16.mxu0 %v13942_v40 }
 0x707   :  { %5934 = vmatpush2.bf16.msra.mxu0 %v13940_v56 }
 0x708   :  { %v19723_v38 = vpop.f32.mrf.mxu1  ;;  %6041 = vmatpush2.bf16.msra.mxu1 %v13925_v7  ;;  %5935 = vmatprep.subr.bf16.mxu0 %v13948_v3 }
 0x709   :  { %6042 = vmatprep.subr.bf16.mxu1 %v13933_v21  ;;  %v13399_v56 = vpack.i.bf16 %v19723_v38, %v19719_v45 }
 0x70a   :  { %v19725_v51 = vpop.f32.mrf.mxu1 }
 0x70b   :  { %5936 = vmatpush2.bf16.msra.mxu0 %v13946_v63  ;;  %v13409_v3 = vpack.i.bf16 %v19725_v51, %v19721_v5 }
 0x70c   :  { %v19727_v18 = vpop.f32.mrf.mxu1  ;;  %6043 = vmatpush2.bf16.msra.mxu1 %v13931_v58  ;;  %5937 = vmatprep.subr.bf16.mxu0 %v13954_v20 }
 0x70d   :  { %6044 = vmatprep.subr.bf16.mxu1 %v13939_v54 }
 0x70e   :  { %v19729_v2 = vpop.f32.mrf.mxu1 }
 0x70f   :  { %5938 = vmatpush2.bf16.msra.mxu0 %v13952_v43 }
 0x710   :  { %v19731_v42 = vpop.f32.mrf.mxu1  ;;  %6045 = vmatpush2.bf16.msra.mxu1 %v13937_v8  ;;  %5939 = vmatprep.subr.bf16.mxu0 %v13960_v1 }
 0x711   :  { %6046 = vmatprep.subr.bf16.mxu1 %v13945_v9 }
 0x712   :  { %v19733_v27 = vpop.f32.mrf.mxu1 }
 0x713   :  { %5940 = vmatpush2.bf16.msra.mxu0 %v13958_v19  ;;  %v13424_v43 = vpack.i.bf16 %v19733_v27, %v19729_v2 }
 0x714   :  { %v19735_v15 = vpop.f32.mrf.mxu1  ;;  %6047 = vmatpush2.bf16.msra.mxu1 %v13943_v62  ;;  %5941 = vmatprep.subr.bf16.mxu0 %v13966_v29  ;;  %v13434_v62 = vpack.i.bf16 %v19731_v42, %v19727_v18 }
 0x715   :  { %6048 = vmatprep.subr.bf16.mxu1 %v13951_v52 }
 0x716   :  { %v19737_v23 = vpop.f32.mrf.mxu1 }
 0x717   :  { %5942 = vmatpush2.bf16.msra.mxu0 %v13964_v60 }
 0x718   :  { %v19739_v48 = vpop.f32.mrf.mxu1  ;;  %6049 = vmatpush2.bf16.msra.mxu1 %v13949_v16 }
 0x719   :  { %6050 = vmatprep.subr.bf16.mxu1 %v13957_v61 }
 0x71a   :  { %v19741_v10 = vpop.f32.mrf.mxu1 }
 0x71c   :  { %v19743_v6 = vpop.f32.mrf.mxu1  ;;  %6051 = vmatpush2.bf16.msra.mxu1 %v13955_v30  ;;  %v13439_v30 = vpack.i.bf16 %v19741_v10, %v19737_v23 }
 0x71d   :  { %6052 = vmatprep.subr.bf16.mxu1 %v13963_v11  ;;  %v13449_v11 = vpack.i.bf16 %v19739_v48, %v19735_v15 }
 0x71e   :  { %v19745_v13 = vpop.f32.mrf.mxu1 }
 0x720   :  { %v19747_v26 = vpop.f32.mrf.mxu1  ;;  %6053 = vmatpush2.bf16.msra.mxu1 %v13961_v22 }
 0x721   :  { %6054 = vmatprep.subr.bf16.mxu1 %v13969_v32 }
 0x722   :  { %v19749_v47 = vpop.f32.mrf.mxu1 }
 0x724   :  { %v19751_v25 = vpop.f32.mrf.mxu1  ;;  %6055 = vmatpush2.bf16.msra.mxu1 %v13967_v53  ;;  %v13454_v53 = vpack.i.bf16 %v19749_v47, %v19745_v13 }
 0x726   :  { %v19753_v31 = vpop.f32.mrf.mxu1 }
 0x728   :  { %v19755_v14 = vpop.f32.mrf.mxu1 }
 0x72a   :  { %v19757_v35 = vpop.f32.mrf.mxu1 }
 0x72c   :  { %v19759_v17 = vpop.f32.mrf.mxu1 }
 0x72e   :  { %v19761_v28 = vpop.f32.mrf.mxu1 }
 0x730   :  { %v19763_v41 = vpop.f32.mrf.mxu1 }
 0x731   :  { %v13499_v44 = vpack.i.bf16 %v19763_v41, %v19759_v17 }
 0x732   :  { %v19765_v0 = vpop.f32.mrf.mxu1 }
 0x735   :  { %v19767_v12 = vpop.f32.mrf.mxu1 }
 0x737   :  { %v19769_v37 = vpop.f32.mrf.mxu1 }
 0x739   :  { %v19771_v36 = vpop.f32.mrf.mxu1 }
 0x73b   :  { %v19773_v39 = vpop.f32.mrf.mxu1 }
 0x73c   :  { %23433 = vst [vmem:[#allocation82_spill] sm:$0xff] %v19773_v39 }
 0x77b   :  { %v19775_v34 = vpop.f32.mrf.mxu1 }
 0x77d   :  { %v19777_v4 = vpop.f32.mrf.mxu1 }
 0x77f   :  { %v19779_v33 = vpop.f32.mrf.mxu1 }
 0x780   :  { %v13394_v49 = vpack.i.bf16 %v19779_v33, %v19775_v34 }
 0x781   :  { %v19783_v57 = vpop.f32.mrf.mxu1 }
 0x782   :  { %v13404_v40 = vpack.i.bf16 %v19783_v57, %v19777_v4  ;;  %13395 = vrot.lane.b32.xlu0 %v13394_v49, %s15003_s6 }
 0x783   :  { %v19788_v59 = vpop.f32.mrf.mxu1 }
 0x784   :  { %13405 = vrot.lane.b32.xlu1 %v13404_v40, %s15003_s6  ;;  %v13464_v40 = vpack.i.bf16 %v19747_v26, %v19743_v6 }
 0x785   :  { %v19793_v7 = vpop.f32.mrf.mxu1 }
 0x786   :  { %13400 = vrot.lane.b32.xlu0 %v13399_v56, %s15003_s6 }
 0x787   :  { %v19798_v21 = vpop.f32.mrf.mxu1 }
 0x788   :  { %v13414_v63 = vpack.i.bf16 %v19798_v21, %v19788_v59  ;;  %13410 = vrot.lane.b32.xlu1 %v13409_v3, %s15003_s6 }
 0x789   :  { %v19803_v58 = vpop.f32.mrf.mxu1 }
 0x78a   :  { %v13419_v20 = vpack.i.bf16 %v19803_v58, %v19793_v7  ;;  %13415 = vrot.lane.b32.xlu0 %v13414_v63, %s15003_s6 }
 0x78b   :  { %v19808_v54 = vpop.f32.mrf.mxu1 }
 0x78c   :  { %13420 = vrot.lane.b32.xlu1 %v13419_v20, %s15003_s6  ;;  %v13469_v20 = vpack.i.bf16 %v19757_v35, %v19753_v31 }
 0x78d   :  { %v19813_v8 = vpop.f32.mrf.mxu1 }
 0x78e   :  { %13425 = vrot.lane.b32.xlu0 %v13424_v43, %s15003_s6 }
 0x78f   :  { %v19816_v9 = vpop.f32.mrf.mxu1 }
 0x790   :  { %v13429_v52 = vpack.i.bf16 %v19816_v9, %v19808_v54 }
 0x791   :  { %v19822_v16 = vpop.f32.mrf.mxu1 }
 0x792   :  { %13435 = vrot.lane.b32.xlu0 %v13434_v62, %s15003_s6  ;;  %13430 = vrot.lane.b32.xlu1 %v13429_v52, %s15003_s6  ;;  %v13474_v52 = vpack.i.bf16 %v19755_v14, %v19751_v25 }
 0x793   :  { %v19826_v61 = vpop.f32.mrf.mxu1 }
 0x794   :  { %23434 = vst [vmem:[#allocation84_spill] sm:$0xff] %v19826_v61 }
 0x795   :  { %v19830_v19 = vpop.f32.mrf.mxu1 }
 0x796   :  { %23435 = vst [vmem:[#allocation69_spill] sm:$0xff] %v19830_v19  ;;  %13440 = vrot.lane.b32.xlu1 %v13439_v30, %s15003_s6 }
 0x797   :  { %v19833_v1 = vpop.f32.mrf.mxu1 }
 0x798   :  { %23436 = vst [vmem:[#allocation22_spill] sm:$0xff] %v19833_v1  ;;  %v13444_v22 = vpack.i.bf16 %v19833_v1, %v19826_v61 }
 0x799   :  { %v19839_v60 = vpop.f32.mrf.mxu1 }
 0x79a   :  { %23437 = vst [vmem:[#allocation81_spill] sm:$0xff] %v19839_v60  ;;  %13450 = vrot.lane.b32.xlu1 %v13449_v11, %s15003_s6  ;;  %13445 = vrot.lane.b32.xlu0 %v13444_v22, %s15003_s6  ;;  %v13484_v22 = vpack.i.bf16 %v19822_v16, %v19813_v8 }
 0x79b   :  { %v19843_v29 = vpop.f32.mrf.mxu1 }
 0x79c   :  { %23438 = vst [vmem:[#allocation24_spill] sm:$0xff] %v19843_v29 }
 0x79d   :  { %v19847_v32 = vpop.f32.mrf.mxu1 }
 0x79e   :  { %23439 = vst [vmem:[#allocation73_spill] sm:$0xff] %v19847_v32  ;;  %13455 = vrot.lane.b32.xlu0 %v13454_v53, %s15003_s6 }
 0x79f   :  { %v19850_v49 = vpop.f32.mrf.mxu1 }
 0x7a0   :  { %23440 = vst [vmem:[#allocation87_spill] sm:$0xff] %v19850_v49  ;;  %v13459_v56 = vpack.i.bf16 %v19850_v49, %v19843_v29 }
 0x7a1   :  { %v19856_v3 = vpop.f32.mrf.mxu1 }
 0x7a2   :  { %23441 = vst [vmem:[#allocation88_spill] sm:$0xff] %v19856_v3  ;;  %13465 = vrot.lane.b32.xlu0 %v13464_v40, %s15003_s6  ;;  %13460 = vrot.lane.b32.xlu1 %v13459_v56, %s15003_s6  ;;  %v13489_v40 = vpack.i.bf16 %v19765_v0, %v19761_v28 }
 0x7a3   :  { %v19860_v63 = vpop.f32.mrf.mxu1 }
 0x7a4   :  { %23442 = vst [vmem:[#allocation40_spill] sm:$0xff] %v19860_v63 }
 0x7a5   :  { %v19864_v43 = vpop.f32.mrf.mxu1 }
 0x7a6   :  { %23443 = vst [vmem:[#allocation86_spill] sm:$0xff] %v19864_v43  ;;  %13470 = vrot.lane.b32.xlu1 %v13469_v20, %s15003_s6 }
 0x7a7   :  { %v19867_v62 = vpop.f32.mrf.mxu1 }
 0x7a8   :  { %23444 = vst [vmem:[#allocation28_spill] sm:$0xff] %v19867_v62  ;;  %v13479_v30 = vpack.i.bf16 %v19867_v62, %v19860_v63 }
 0x7a9   :  { %v19873_v11 = vpop.f32.mrf.mxu1 }
 0x7aa   :  { %23445 = vst [vmem:[#allocation80_spill] sm:$0xff] %v19873_v11  ;;  %13475 = vrot.lane.b32.xlu1 %v13474_v52, %s15003_s6  ;;  %13480 = vrot.lane.b32.xlu0 %v13479_v30, %s15003_s6 }
 0x7ab   :  { %v19879_v53 = vpop.f32.mrf.mxu1 }
 0x7ac   :  { %23446 = vst [vmem:[#allocation18_spill] sm:$0xff] %v19879_v53 }
 0x7ad   :  { %v19883_v56 = vpop.f32.mrf.mxu1 }
 0x7ae   :  { %23447 = vst [vmem:[#allocation83_spill] sm:$0xff] %v19883_v56  ;;  %13490 = vrot.lane.b32.xlu1 %v13489_v40, %s15003_s6  ;;  %13485 = vrot.lane.b32.xlu0 %v13484_v22, %s15003_s6  ;;  %v13504_v40 = vpack.i.bf16 %v19773_v39, %v19769_v37 }
 0x7af   :  { %v19887_v20 = vpop.f32.mrf.mxu1 }
 0x7b0   :  { %23448 = vst [vmem:[#allocation25_spill] sm:$0xff] %v19887_v20  ;;  %v13494_v52 = vpack.i.bf16 %v19887_v20, %v19879_v53  ;;  %v13514_v53 = vpack.i.bf16 %v19771_v36, %v19767_v12 }
 0x7b1   :  { %v19893_v30 = vpop.f32.mrf.mxu1 }
 0x7b2   :  { %23449 = vst [vmem:[#allocation37_spill] sm:$0xff] %v19893_v30  ;;  %13500 = vrot.lane.b32.xlu1 %v13499_v44, %s15003_s6  ;;  %13495 = vrot.lane.b32.xlu0 %v13494_v52, %s15003_s6  ;;  %v13519_v44 = vpack.i.bf16 %v19839_v60, %v19830_v19  ;;  %v13524_v52 = vpack.i.bf16 %v19856_v3, %v19847_v32 }
 0x7b3   :  { %v19897_v63 = vpop.f32.mrf.mxu1  ;;  %v13534_v29 = vpack.i.bf16 %v19893_v30, %v19883_v56 }
 0x7b4   :  { %23450 = vst [vmem:[#allocation31_spill] sm:$0xff] %v19897_v63 }
 0x7b5   :  { %v19901_v22 = vpop.f32.mrf.mxu1 }
 0x7b6   :  { %23451 = vst [vmem:[#allocation35_spill] sm:$0xff] %v19901_v22  ;;  %13505 = vrot.lane.b32.xlu0 %v13504_v40, %s15003_s6  ;;  %v13529_v40 = vpack.i.bf16 %v19873_v11, %v19864_v43  ;;  %v23454_v11 = vld [vmem:[#allocation39_spill] sm:$0xff] }
 0x7b7   :  { %v19904_v62 = vpop.f32.mrf.mxu1  ;;  %vm5366_vm6 = vcmp.lt.s32.totalorder %v23454_v11, 96 }
 0x7b8   :  { %23452 = vst [vmem:[#allocation17_spill] sm:$0xff] %v19904_v62  ;;  %v13509_v20 = vpack.i.bf16 %v19904_v62, %v19897_v63  ;;  %v13391_v62 = vpop.permute.xlu1 %13390 }
 0x7b9   :  { %v19922_v63 = vpop.f32.mrf.mxu1  ;;  %v13392_v56 = vunpack.i.l.bf16 %v13391_v62 }
 0x7ba   :  { %13515 = vrot.lane.b32.xlu0 %v13514_v53, %s15003_s6  ;;  %13510 = vrot.lane.b32.xlu1 %v13509_v20, %s15003_s6  ;;  %23453 = vst [vmem:[#allocation89_spill] sm:$0xff] %v19922_v63  ;;  %v13539_v53 = vpack.i.bf16 %v19922_v63, %v19901_v22  ;;  %v13972_v20 = vld [vmem:[%s22557_s9 + $0x39c] ss:$20 sps:$4 sm:$0xff]  }
 0x7bb   :  { %6749 = vmatprep.subr.bf16.mxu0 %v13972_v20 }
 0x7be   :  { %13525 = vrot.lane.b32.xlu0 %v13524_v52, %s15003_s6  ;;  %13520 = vrot.lane.b32.xlu1 %v13519_v44, %s15003_s6  ;;  %v13975_v52 = vld [vmem:[%s22557_s9 + $0x3a4] ss:$20 sps:$4 sm:$0xff]   ;;  %v13386_v44 = vpop.permute.xlu0 %13385 }
 0x7bf   :  { %6792 = vmatprep.subr.bf16.mxu1 %v13975_v52  ;;  %v13387_v30 = vunpack.i.l.bf16 %v13386_v44 }
 0x7c1   :  { %v5399_v22 = vsel %vm5366_vm6, %v13387_v30, %v13392_v56 }
 0x7c2   :  { %13535 = vrot.lane.b32.xlu0 %v13534_v29, %s15003_s6  ;;  %13530 = vrot.lane.b32.xlu1 %v13529_v40, %s15003_s6  ;;  %v13388_v29 = vunpack.i.h.bf16 %v13386_v44  ;;  %v13393_v40 = vunpack.i.h.bf16 %v13391_v62  ;;  %v5431_v60 = vmax.f32 %v19705_v55, %v5399_v22 }
 0x7c6   :  { %13540 = vrot.lane.b32.xlu1 %v13539_v53, %s15003_s6  ;;  %v5400_v53 = vsel %vm5366_vm6, %v13388_v29, %v13393_v40 }
 0x7c7   :  { %v5435_v32 = vmax.f32 %v19709_v50, %v5400_v53 }
 0x7f4   :  { %v13396_v63 = vpop.permute.xlu0 %13395 }
 0x7f5   :  { %v13398_v43 = vunpack.i.h.bf16 %v13396_v63  ;;  %v13397_v49 = vunpack.i.l.bf16 %v13396_v63 }
 0x7f6   :  { %v13406_v3 = vpop.permute.xlu1 %13405 }
 0x7f7   :  { %v5384_v20 = vsel %vm5366_vm6, %v13393_v40, %v13398_v43  ;;  %v5383_v52 = vsel %vm5366_vm6, %v13392_v56, %v13397_v49  ;;  %v13408_v44 = vunpack.i.h.bf16 %v13406_v3  ;;  %v13407_v62 = vunpack.i.l.bf16 %v13406_v3 }
 0x7f8   :  { %v13401_v19 = vpop.permute.xlu0 %13400  ;;  %v5432_v61 = vmax.f32 %v19707_v46, %v5383_v52  ;;  %v5436_v1 = vmax.f32 %v19713_v24, %v5384_v20 }
 0x7f9   :  { %v5368_v63 = vsel %vm5366_vm6, %v13398_v43, %v13408_v44  ;;  %v5416_v40 = vsel %vm5366_vm6, %v13408_v44, %v13388_v29  ;;  %v5367_v56 = vsel %vm5366_vm6, %v13397_v49, %v13407_v62  ;;  %v5415_v3 = vsel %vm5366_vm6, %v13407_v62, %v13387_v30  ;;  %v13970_v29 = vld [vmem:[%s22557_s9 + $0x398] ss:$20 sps:$4 sm:$0xff]  }
 0x7fa   :  { %v5437_v50 = vmax.f32 %v19779_v33, %v5368_v63  ;;  %v5433_v55 = vmax.f32 %v19775_v34, %v5367_v56  ;;  %v13403_v22 = vunpack.i.h.bf16 %v13401_v19  ;;  %v13402_v46 = vunpack.i.l.bf16 %v13401_v19  ;;  %v13411_v53 = vpop.permute.xlu1 %13410  ;;  %v13978_v34 = vld [vmem:[%s22557_s9 + $0x374] ss:$20 sps:$4 sm:$0xff]  }
 0x7fb   :  { %v13413_v24 = vunpack.i.h.bf16 %v13411_v53  ;;  %v13412_v20 = vunpack.i.l.bf16 %v13411_v53  ;;  %v5496_v52 = vpack.c.bf16 %v5436_v1, %v5432_v61  ;;  %v5434_v43 = vmax.f32 %v19777_v4, %v5415_v3 }
 0x7fc   :  { %v5495_v49 = vpack.c.bf16 %v5435_v32, %v5431_v60  ;;  %v5497_v44 = vpack.c.bf16 %v5437_v50, %v5433_v55  ;;  %v13416_v39 = vpop.permute.xlu0 %13415  ;;  %v5438_v30 = vmax.f32 %v19783_v57, %v5416_v40  ;;  %v13973_v57 = vld [vmem:[%s22557_s9 + $0x3a0] ss:$20 sps:$4 sm:$0xff]  }
 0x7fd   :  { %v5402_v33 = vsel %vm5366_vm6, %v13403_v22, %v13413_v24  ;;  %v5401_v61 = vsel %vm5366_vm6, %v13402_v46, %v13412_v20  ;;  %5943 = vmatprep.mubr.bf16.mxu0 %v5496_v52  ;;  %v13418_v4 = vunpack.i.h.bf16 %v13416_v39  ;;  %v13417_v19 = vunpack.i.l.bf16 %v13416_v39  ;;  %v13981_v39 = vld [vmem:[%s22557_s9 + $0x37c] ss:$20 sps:$4 sm:$0xff]  }
 0x7fe   :  { %v5443_v1 = vmax.f32 %v19723_v38, %v5402_v33  ;;  %5944 = vmatmul.mubr.bf16.vlgmr.msra.gmra.mxu0 %v5495_v49  ;;  %v5498_v60 = vpack.c.bf16 %v5438_v30, %v5434_v43  ;;  %v13421_v32 = vpop.permute.xlu1 %13420  ;;  %v13976_v38 = vld [vmem:[%s22557_s9 + $0x370] ss:$20 sps:$4 sm:$0xff]   ;;  %v5439_v3 = vmax.f32 %v19719_v45, %v5401_v61 }
 0x7ff   :  { %v5386_v62 = vsel %vm5366_vm6, %v13413_v24, %v13418_v4  ;;  %v5385_v63 = vsel %vm5366_vm6, %v13412_v20, %v13417_v19  ;;  %v13423_v40 = vunpack.i.h.bf16 %v13421_v32  ;;  %v13422_v56 = vunpack.i.l.bf16 %v13421_v32  ;;  %6750 = vmatpush1.bf16.msra.mxu0 %v13970_v29  ;;  %v13984_v24 = vld [vmem:[%s22557_s9 + $0x34c] ss:$20 sps:$4 sm:$0xff]  }
 0x800   :  { %6056 = vmatprep.mubr.bf16.mxu1 %v5498_v60  ;;  %v13426_v50 = vpop.permute.xlu0 %13425  ;;  %v5440_v55 = vmax.f32 %v19721_v5, %v5385_v63  ;;  %v5444_v53 = vmax.f32 %v19725_v51, %v5386_v62  ;;  %6751 = vmatprep.subr.bf16.mxu0 %v13978_v34  ;;  %v13979_v29 = vld [vmem:[%s22557_s9 + $0x378] ss:$20 sps:$4 sm:$0xff]   ;;  %v5499_v33 = vpack.c.bf16 %v5443_v1, %v5439_v3  ;;  %v13982_v60 = vld [vmem:[%s22557_s9 + $0x348] ss:$20 sps:$4 sm:$0xff]   ;;  %v13985_v1 = vld [vmem:[%s22557_s9 + $0x350] ss:$20 sps:$4 sm:$0xff]  }
 0x801   :  { %v5370_v20 = vsel %vm5366_vm6, %v13418_v4, %v13423_v40  ;;  %v5418_v52 = vsel %vm5366_vm6, %v13423_v40, %v13403_v22  ;;  %v5369_v45 = vsel %vm5366_vm6, %v13417_v19, %v13422_v56  ;;  %v5417_v43 = vsel %vm5366_vm6, %v13422_v56, %v13402_v46  ;;  %6057 = vmatmul.mubr.bf16.vlgmr.msra.gmra.mxu1 %v5497_v44  ;;  %v13987_v46 = vld [vmem:[%s22557_s9 + $0x354] ss:$20 sps:$4 sm:$0xff]  }
 0x802   :  { %v5445_v5 = vmax.f32 %v19798_v21, %v5370_v20  ;;  %v5441_v51 = vmax.f32 %v19788_v59, %v5369_v45  ;;  %6793 = vmatpush1.bf16.msra.mxu1 %v13973_v57  ;;  %v5500_v49 = vpack.c.bf16 %v5444_v53, %v5440_v55  ;;  %v5442_v30 = vmax.f32 %v19793_v7, %v5417_v43  ;;  %v13990_v57 = vld [vmem:[%s22557_s9 + $0x324] ss:$20 sps:$4 sm:$0xff]  }
 0x803   :  { %v5446_v22 = vmax.f32 %v19803_v58, %v5418_v52  ;;  %6794 = vmatprep.subr.bf16.mxu1 %v13981_v39  ;;  %6752 = vmatpush1.bf16.msra.mxu0 %v13976_v38  ;;  %v13428_v44 = vunpack.i.h.bf16 %v13426_v50  ;;  %v13427_v21 = vunpack.i.l.bf16 %v13426_v50  ;;  %v13993_v38 = vld [vmem:[%s22557_s9 + $0x32c] ss:$20 sps:$4 sm:$0xff]  }
 0x804   :  { %v20008_v34 = vpop.permute.xlu0 %13435  ;;  %v20010_v59 = vpop.permute.xlu1 %13430  ;;  %v5501_v61 = vpack.c.bf16 %v5445_v5, %v5441_v51  ;;  %6753 = vmatprep.subr.bf16.mxu0 %v13984_v24  ;;  %5953 = vmatprep.mubr.bf16.mxu0 %v5500_v49  ;;  %v13988_v24 = vld [vmem:[%s22557_s9 + $0x320] ss:$20 sps:$4 sm:$0xff]   ;;  %v13999_v5 = vld [vmem:[%s22557_s9 + $0x304] ss:$20 sps:$4 sm:$0xff]  }
 0x805   :  { %v13438_v4 = vunpack.i.h.bf16 %v20008_v34  ;;  %v13437_v7 = vunpack.i.l.bf16 %v20008_v34  ;;  %v13433_v58 = vunpack.i.h.bf16 %v20010_v59  ;;  %v13432_v19 = vunpack.i.l.bf16 %v20010_v59 }
 0x806   :  { %5954 = vmatmul.mubr.bf16.gmra.mxu0 %v5499_v33  ;;  %v5502_v32 = vpack.c.bf16 %v5446_v22, %v5442_v30  ;;  %6795 = vmatpush1.bf16.msra.mxu1 %v13979_v29  ;;  %v13994_v22 = vld [vmem:[%s22557_s9 + $0x2f8] ss:$20 sps:$4 sm:$0xff]  }
 0x807   :  { %v5403_v62 = vsel %vm5366_vm6, %v13437_v7, %v13427_v21  ;;  %v5404_v63 = vsel %vm5366_vm6, %v13438_v4, %v13428_v44  ;;  %v5388_v40 = vsel %vm5366_vm6, %v13428_v44, %v13433_v58  ;;  %v5387_v56 = vsel %vm5366_vm6, %v13427_v21, %v13432_v19  ;;  %6796 = vmatprep.subr.bf16.mxu1 %v13987_v46  ;;  %v13997_v46 = vld [vmem:[%s22557_s9 + $0x300] ss:$20 sps:$4 sm:$0xff]  }
 0x808   :  { %v5447_v39 = vmax.f32 %v19727_v18, %v5403_v62  ;;  %v5451_v3 = vmax.f32 %v19731_v42, %v5404_v63  ;;  %6066 = vmatprep.mubr.bf16.mxu1 %v5502_v32  ;;  %v13441_v50 = vpop.permute.xlu1 %13440  ;;  %v5448_v55 = vmax.f32 %v19729_v2, %v5387_v56  ;;  %v5452_v53 = vmax.f32 %v19733_v27, %v5388_v40  ;;  %v13991_v18 = vld [vmem:[%s22557_s9 + $0x328] ss:$20 sps:$4 sm:$0xff]   ;;  %v14000_v56 = vld [vmem:[%s22557_s9 + $0x2d0] ss:$20 sps:$4 sm:$0xff]  }
 0x809   :  { %6067 = vmatmul.mubr.bf16.gmra.mxu1 %v5501_v61  ;;  %6754 = vmatpush1.bf16.msra.mxu0 %v13982_v60  ;;  %v13996_v2 = vld [vmem:[%s22557_s9 + $0x2fc] ss:$20 sps:$4 sm:$0xff]   ;;  %v13443_v42 = vunpack.i.h.bf16 %v13441_v50  ;;  %v13442_v27 = vunpack.i.l.bf16 %v13441_v50  ;;  %v14002_v44 = vld [vmem:[%s22557_s9 + $0x2d4] ss:$20 sps:$4 sm:$0xff]  }
 0x80a   :  { %v5504_v20 = vpack.c.bf16 %v5452_v53, %v5448_v55  ;;  %v5503_v52 = vpack.c.bf16 %v5451_v3, %v5447_v39  ;;  %6797 = vmatpush1.bf16.msra.mxu1 %v13985_v1  ;;  %6755 = vmatprep.subr.bf16.mxu0 %v13990_v57  ;;  %v14005_v32 = vld [vmem:[%s22557_s9 + $0x2dc] ss:$20 sps:$4 sm:$0xff]   ;;  %v14011_v55 = vld [vmem:[%s22557_s9 + $0x2b4] ss:$20 sps:$4 sm:$0xff]  }
 0x80b   :  { %6798 = vmatprep.subr.bf16.mxu1 %v13993_v38 }
 0x80c   :  { %v20057_v45 = vpop.permute.xlu1 %13450  ;;  %5963 = vmatprep.mubr.bf16.mxu0 %v5504_v20  ;;  %v20059_v43 = vpop.permute.xlu0 %13445 }
 0x80d   :  { %v13453_v51 = vunpack.i.h.bf16 %v20057_v45  ;;  %v13452_v29 = vunpack.i.l.bf16 %v20057_v45  ;;  %v13448_v49 = vunpack.i.h.bf16 %v20059_v43  ;;  %v13447_v30 = vunpack.i.l.bf16 %v20059_v43  ;;  %6756 = vmatpush1.bf16.msra.mxu0 %v13988_v24 }
 0x80e   :  { %5964 = vmatmul.mubr.bf16.gmra.mxu0 %v5503_v52  ;;  %6799 = vmatpush1.bf16.msra.mxu1 %v13991_v18  ;;  %v14006_v18 = vld [vmem:[%s22557_s9 + $0x2a8] ss:$20 sps:$4 sm:$0xff]  }
 0x80f   :  { %v5405_v21 = vsel %vm5366_vm6, %v13452_v29, %v13442_v27  ;;  %v5406_v33 = vsel %vm5366_vm6, %v13453_v51, %v13443_v42  ;;  %v5390_v61 = vsel %vm5366_vm6, %v13443_v42, %v13448_v49  ;;  %v5389_v60 = vsel %vm5366_vm6, %v13442_v27, %v13447_v30  ;;  %6757 = vmatprep.subr.bf16.mxu0 %v13996_v2  ;;  %v14009_v2 = vld [vmem:[%s22557_s9 + $0x2b0] ss:$20 sps:$4 sm:$0xff]  }
 0x810   :  { %v5455_v1 = vmax.f32 %v19735_v15, %v5405_v21  ;;  %v5459_v57 = vmax.f32 %v19739_v48, %v5406_v33  ;;  %v13456_v62 = vpop.permute.xlu0 %13455  ;;  %v5456_v63 = vmax.f32 %v19737_v23, %v5389_v60  ;;  %v5460_v40 = vmax.f32 %v19741_v10, %v5390_v61  ;;  %6800 = vmatprep.subr.bf16.mxu1 %v13999_v5  ;;  %v14003_v15 = vld [vmem:[%s22557_s9 + $0x2d8] ss:$20 sps:$4 sm:$0xff]  }
 0x811   :  { %6758 = vmatpush1.bf16.msra.mxu0 %v13994_v22  ;;  %v14008_v23 = vld [vmem:[%s22557_s9 + $0x2ac] ss:$20 sps:$4 sm:$0xff]   ;;  %v13458_v48 = vunpack.i.h.bf16 %v13456_v62  ;;  %v13457_v10 = vunpack.i.l.bf16 %v13456_v62  ;;  %v14014_v42 = vld [vmem:[%s22557_s9 + $0x284] ss:$20 sps:$4 sm:$0xff]  }
 0x812   :  { %v5508_v38 = vpack.c.bf16 %v5460_v40, %v5456_v63  ;;  %v5507_v39 = vpack.c.bf16 %v5459_v57, %v5455_v1  ;;  %6801 = vmatpush1.bf16.msra.mxu1 %v13997_v46  ;;  %6759 = vmatprep.subr.bf16.mxu0 %v14002_v44  ;;  %v14017_v44 = vld [vmem:[%s22557_s9 + $0x28c] ss:$20 sps:$4 sm:$0xff]  }
 0x813   :  { %6802 = vmatprep.subr.bf16.mxu1 %v14005_v32  ;;  %v14012_v1 = vld [vmem:[%s22557_s9 + $0x280] ss:$20 sps:$4 sm:$0xff]  }
 0x814   :  { %v20109_v3 = vpop.permute.xlu0 %13465  ;;  %5973 = vmatprep.mubr.bf16.mxu0 %v5508_v38  ;;  %v20111_v50 = vpop.permute.xlu1 %13460 }
 0x815   :  { %v13468_v53 = vunpack.i.h.bf16 %v20109_v3  ;;  %v13467_v24 = vunpack.i.l.bf16 %v20109_v3  ;;  %v13463_v20 = vunpack.i.h.bf16 %v20111_v50  ;;  %v13462_v52 = vunpack.i.l.bf16 %v20111_v50  ;;  %6760 = vmatpush1.bf16.msra.mxu0 %v14000_v56  ;;  %v14023_v56 = vld [vmem:[%s22557_s9 + $0x4e4] ss:$20 sps:$4 sm:$0xff]   ;;  %v14036_v50 = vld [vmem:[%s22557_s9 + $0x460] ss:$20 sps:$4 sm:$0xff]  }
 0x816   :  { %5974 = vmatmul.mubr.bf16.gmra.mxu0 %v5507_v39  ;;  %6803 = vmatpush1.bf16.msra.mxu1 %v14003_v15 }
 0x817   :  { %v5407_v27 = vsel %vm5366_vm6, %v13467_v24, %v13457_v10  ;;  %v5408_v5 = vsel %vm5366_vm6, %v13468_v53, %v13458_v48  ;;  %v5392_v22 = vsel %vm5366_vm6, %v13458_v48, %v13463_v20  ;;  %v5391_v46 = vsel %vm5366_vm6, %v13457_v10, %v13462_v52  ;;  %6761 = vmatprep.subr.bf16.mxu0 %v14008_v23  ;;  %v14018_v48 = vld [vmem:[%s22557_s9 + $0x4d8] ss:$20 sps:$4 sm:$0xff]   ;;  %v14021_v10 = vld [vmem:[%s22557_s9 + $0x4e0] ss:$20 sps:$4 sm:$0xff]  }
 0x818   :  { %v5463_v21 = vmax.f32 %v19743_v6, %v5407_v27  ;;  %v5467_v33 = vmax.f32 %v19747_v26, %v5408_v5  ;;  %v13471_v61 = vpop.permute.xlu1 %13470  ;;  %v5464_v60 = vmax.f32 %v19745_v13, %v5391_v46  ;;  %v5468_v32 = vmax.f32 %v19749_v47, %v5392_v22  ;;  %6804 = vmatprep.subr.bf16.mxu1 %v14011_v55  ;;  %v14015_v6 = vld [vmem:[%s22557_s9 + $0x288] ss:$20 sps:$4 sm:$0xff]  }
 0x819   :  { %6762 = vmatpush1.bf16.msra.mxu0 %v14006_v18  ;;  %v14020_v13 = vld [vmem:[%s22557_s9 + $0x4dc] ss:$20 sps:$4 sm:$0xff]   ;;  %v13473_v26 = vunpack.i.h.bf16 %v13471_v61  ;;  %v13472_v47 = vunpack.i.l.bf16 %v13471_v61  ;;  %v14026_v55 = vld [vmem:[%s22557_s9 + $0x4b4] ss:$20 sps:$4 sm:$0xff]  }
 0x81a   :  { %v5512_v57 = vpack.c.bf16 %v5468_v32, %v5464_v60  ;;  %v5511_v62 = vpack.c.bf16 %v5467_v33, %v5463_v21  ;;  %6805 = vmatpush1.bf16.msra.mxu1 %v14009_v2  ;;  %6763 = vmatprep.subr.bf16.mxu0 %v14014_v42  ;;  %v14029_v5 = vld [vmem:[%s22557_s9 + $0x4bc] ss:$20 sps:$4 sm:$0xff]  }
 0x81b   :  { %6806 = vmatprep.subr.bf16.mxu1 %v14017_v44 }
 0x81c   :  { %v20161_v63 = vpop.permute.xlu1 %13475  ;;  %5983 = vmatprep.mubr.bf16.mxu0 %v5512_v57  ;;  %v20163_v40 = vpop.permute.xlu0 %13480 }
 0x81d   :  { %v13478_v38 = vunpack.i.h.bf16 %v20161_v63  ;;  %v13477_v39 = vunpack.i.l.bf16 %v20161_v63  ;;  %v13483_v15 = vunpack.i.h.bf16 %v20163_v40  ;;  %v13482_v23 = vunpack.i.l.bf16 %v20163_v40  ;;  %6764 = vmatpush1.bf16.msra.mxu0 %v14012_v1  ;;  %v14024_v1 = vld [vmem:[%s22557_s9 + $0x4b0] ss:$20 sps:$4 sm:$0xff]  }
 0x81e   :  { %5984 = vmatmul.mubr.bf16.gmra.mxu0 %v5511_v62  ;;  %6807 = vmatpush1.bf16.msra.mxu1 %v14015_v6 }
 0x81f   :  { %v5409_v18 = vsel %vm5366_vm6, %v13477_v39, %v13472_v47  ;;  %v5410_v2 = vsel %vm5366_vm6, %v13478_v38, %v13473_v26  ;;  %v5394_v42 = vsel %vm5366_vm6, %v13473_v26, %v13483_v15  ;;  %v5393_v27 = vsel %vm5366_vm6, %v13472_v47, %v13482_v23  ;;  %6765 = vmatprep.subr.bf16.mxu0 %v14020_v13 }
 0x820   :  { %v5471_v22 = vmax.f32 %v19751_v25, %v5409_v18  ;;  %v5475_v46 = vmax.f32 %v19755_v14, %v5410_v2  ;;  %v13491_v44 = vpop.permute.xlu1 %13490  ;;  %v13486_v21 = vpop.permute.xlu0 %13485  ;;  %v5472_v33 = vmax.f32 %v19753_v31, %v5393_v27  ;;  %v5476_v61 = vmax.f32 %v19757_v35, %v5394_v42  ;;  %6808 = vmatprep.subr.bf16.mxu1 %v14023_v56  ;;  %v14027_v31 = vld [vmem:[%s22557_s9 + $0x4b8] ss:$20 sps:$4 sm:$0xff]  }
 0x821   :  { %v13488_v60 = vunpack.i.h.bf16 %v13486_v21  ;;  %v13487_v32 = vunpack.i.l.bf16 %v13486_v21  ;;  %6766 = vmatpush2.bf16.msra.mxu0 %v14018_v48  ;;  %v13493_v57 = vunpack.i.h.bf16 %v13491_v44  ;;  %v13492_v62 = vunpack.i.l.bf16 %v13491_v44 }
 0x822   :  { %v5516_v6 = vpack.c.bf16 %v5476_v61, %v5472_v33  ;;  %v5515_v25 = vpack.c.bf16 %v5475_v46, %v5471_v22  ;;  %6809 = vmatpush2.bf16.msra.mxu1 %v14021_v10  ;;  %6767 = vmatprep.subr.bf16.mxu0 %v14026_v55 }
 0x823   :  { %v5372_v14 = vsel %vm5366_vm6, %v13433_v58, %v13488_v60  ;;  %v5420_v35 = vsel %vm5366_vm6, %v13488_v60, %v13438_v4  ;;  %v5371_v13 = vsel %vm5366_vm6, %v13432_v19, %v13487_v32  ;;  %v5419_v26 = vsel %vm5366_vm6, %v13487_v32, %v13437_v7  ;;  %6810 = vmatprep.subr.bf16.mxu1 %v14029_v5  ;;  %v14032_v58 = vld [vmem:[%s22557_s9 + $0x48c] ss:$20 sps:$4 sm:$0xff]  }
 0x824   :  { %v5453_v47 = vmax.f32 %v19816_v9, %v5372_v14  ;;  %v5449_v56 = vmax.f32 %v19808_v54, %v5371_v13  ;;  %v20231_v4 = vpop.permute.xlu1 %13500  ;;  %5993 = vmatprep.mubr.bf16.mxu0 %v5516_v6  ;;  %v20233_v59 = vpop.permute.xlu0 %13495  ;;  %v5450_v19 = vmax.f32 %v19813_v8, %v5419_v26  ;;  %v5454_v34 = vmax.f32 %v19822_v16, %v5420_v35  ;;  %v14035_v54 = vld [vmem:[%s22557_s9 + $0x494] ss:$20 sps:$4 sm:$0xff]   ;;  %v14033_v16 = vld [vmem:[%s22557_s9 + $0x490] ss:$20 sps:$4 sm:$0xff]  }
 0x825   :  { %v13503_v7 = vunpack.i.h.bf16 %v20231_v4  ;;  %v13502_v48 = vunpack.i.l.bf16 %v20231_v4  ;;  %v13498_v10 = vunpack.i.h.bf16 %v20233_v59  ;;  %v13497_v55 = vunpack.i.l.bf16 %v20233_v59  ;;  %6768 = vmatpush2.bf16.msra.mxu0 %v14024_v1  ;;  %v14030_v8 = vld [vmem:[%s22557_s9 + $0x488] ss:$20 sps:$4 sm:$0xff]  }
 0x826   :  { %5994 = vmatmul.mubr.bf16.gmra.mxu0 %v5515_v25  ;;  %v5506_v9 = vpack.c.bf16 %v5454_v34, %v5450_v19  ;;  %v5505_v18 = vpack.c.bf16 %v5453_v47, %v5449_v56  ;;  %6811 = vmatpush2.bf16.msra.mxu1 %v14027_v31  ;;  %v23455_v47 = vld [vmem:[#allocation82_spill] sm:$0xff]  ;;  %v23469_v4 = vld [vmem:[#allocation37_spill] sm:$0xff] }
 0x827   :  { %v5411_v2 = vsel %vm5366_vm6, %v13502_v48, %v13492_v62  ;;  %v5412_v42 = vsel %vm5366_vm6, %v13503_v7, %v13493_v57  ;;  %v5396_v27 = vsel %vm5366_vm6, %v13493_v57, %v13498_v10  ;;  %v5395_v5 = vsel %vm5366_vm6, %v13492_v62, %v13497_v55  ;;  %6769 = vmatprep.subr.bf16.mxu0 %v14032_v58  ;;  %v14059_v59 = vld [vmem:[%s22557_s9 + $0x3f4] ss:$20 sps:$4 sm:$0xff]  }
 0x828   :  { %v5479_v22 = vmax.f32 %v19759_v17, %v5411_v2  ;;  %v5483_v46 = vmax.f32 %v19763_v41, %v5412_v42  ;;  %6076 = vmatprep.mubr.bf16.mxu1 %v5506_v9  ;;  %v13506_v44 = vpop.permute.xlu0 %13505  ;;  %v5480_v21 = vmax.f32 %v19761_v28, %v5395_v5  ;;  %v5484_v33 = vmax.f32 %v19765_v0, %v5396_v27  ;;  %v23456_v27 = vld [vmem:[#allocation22_spill] sm:$0xff]  ;;  %v23457_v5 = vld [vmem:[#allocation84_spill] sm:$0xff] }
 0x829   :  { %6077 = vmatmul.mubr.bf16.gmra.mxu1 %v5505_v18  ;;  %6812 = vmatprep.subr.bf16.mxu1 %v14035_v54  ;;  %v13508_v32 = vunpack.i.h.bf16 %v13506_v44  ;;  %v13507_v1 = vunpack.i.l.bf16 %v13506_v44 }
 0x82a   :  { %v5520_v61 = vpack.c.bf16 %v5484_v33, %v5480_v21  ;;  %v5519_v60 = vpack.c.bf16 %v5483_v46, %v5479_v22  ;;  %6770 = vmatpush2.bf16.msra.mxu0 %v14030_v8  ;;  %6813 = vmatpush2.bf16.msra.mxu1 %v14033_v16  ;;  %v23458_v46 = vld [vmem:[#allocation69_spill] sm:$0xff] }
 0x82c   :  { %v20270_v57 = vpop.permute.xlu0 %13515  ;;  %6003 = vmatprep.mubr.bf16.mxu0 %v5520_v61  ;;  %v20272_v17 = vpop.permute.xlu1 %13510 }
 0x82d   :  { %v13518_v41 = vunpack.i.h.bf16 %v20270_v57  ;;  %v13517_v62 = vunpack.i.l.bf16 %v20270_v57  ;;  %v13513_v28 = vunpack.i.h.bf16 %v20272_v17  ;;  %v13512_v0 = vunpack.i.l.bf16 %v20272_v17  ;;  %v14057_v57 = vld [vmem:[%s22557_s9 + $0x3f0] ss:$20 sps:$4 sm:$0xff]   ;;  %v23475_v17 = vld [vmem:[#allocation31_spill] sm:$0xff] }
 0x82e   :  { %6004 = vmatmul.mubr.bf16.gmra.mxu0 %v5519_v60  ;;  %v23460_v60 = vld [vmem:[#allocation73_spill] sm:$0xff] }
 0x82f   :  { %v5413_v6 = vsel %vm5366_vm6, %v13517_v62, %v13507_v1  ;;  %v5414_v25 = vsel %vm5366_vm6, %v13518_v41, %v13508_v32  ;;  %v5398_v31 = vsel %vm5366_vm6, %v13508_v32, %v13513_v28  ;;  %v5397_v14 = vsel %vm5366_vm6, %v13507_v1, %v13512_v0  ;;  %v23461_v1 = vld [vmem:[#allocation88_spill] sm:$0xff] }
 0x830   :  { %v5487_v35 = vmax.f32 %v19767_v12, %v5413_v6  ;;  %v5491_v13 = vmax.f32 %v19771_v36, %v5414_v25  ;;  %v13521_v26 = vpop.permute.xlu1 %13520  ;;  %v5488_v58 = vmax.f32 %v19769_v37, %v5397_v14  ;;  %v5492_v56 = vmax.f32 %v23455_v47, %v5398_v31  ;;  %v13526_v19 = vpop.permute.xlu0 %13525  ;;  %v23465_v47 = vld [vmem:[#allocation80_spill] sm:$0xff] }
 0x831   :  { %v13523_v34 = vunpack.i.h.bf16 %v13521_v26  ;;  %v13522_v54 = vunpack.i.l.bf16 %v13521_v26  ;;  %v13528_v8 = vunpack.i.h.bf16 %v13526_v19  ;;  %v13527_v16 = vunpack.i.l.bf16 %v13526_v19  ;;  %v23464_v26 = vld [vmem:[#allocation86_spill] sm:$0xff] }
 0x832   :  { %v5524_v9 = vpack.c.bf16 %v5492_v56, %v5488_v58  ;;  %v5523_v18 = vpack.c.bf16 %v5491_v13, %v5487_v35  ;;  %v23463_v35 = vld [vmem:[#allocation24_spill] sm:$0xff] }
 0x833   :  { %v5374_v2 = vsel %vm5366_vm6, %v13448_v49, %v13523_v34  ;;  %v5422_v12 = vsel %vm5366_vm6, %v13523_v34, %v13453_v51  ;;  %v5373_v37 = vsel %vm5366_vm6, %v13447_v30, %v13522_v54  ;;  %v5421_v36 = vsel %vm5366_vm6, %v13522_v54, %v13452_v29  ;;  %v23459_v51 = vld [vmem:[#allocation81_spill] sm:$0xff] }
 0x834   :  { %6013 = vmatprep.mubr.bf16.mxu0 %v5524_v9  ;;  %v13531_v42 = vpop.permute.xlu1 %13530  ;;  %v5461_v49 = vmax.f32 %v23456_v27, %v5374_v2  ;;  %v5457_v22 = vmax.f32 %v23457_v5, %v5373_v37  ;;  %v5458_v44 = vmax.f32 %v23458_v46, %v5421_v36  ;;  %v5462_v21 = vmax.f32 %v23459_v51, %v5422_v12  ;;  %v13536_v14 = vpop.permute.xlu0 %13535  ;;  %v14044_v2 = vld [vmem:[%s22557_s9 + $0x43c] ss:$20 sps:$4 sm:$0xff]   ;;  %v14045_v12 = vld [vmem:[%s22557_s9 + $0x440] ss:$20 sps:$4 sm:$0xff]  }
 0x835   :  { %v5424_v43 = vsel %vm5366_vm6, %v13528_v8, %v13468_v53  ;;  %v5423_v45 = vsel %vm5366_vm6, %v13527_v16, %v13467_v24  ;;  %v13533_v29 = vunpack.i.h.bf16 %v13531_v42  ;;  %v13532_v30 = vunpack.i.l.bf16 %v13531_v42  ;;  %v23466_v36 = vld [vmem:[#allocation28_spill] sm:$0xff]  ;;  %v14050_v51 = vld [vmem:[%s22557_s9 + $0x414] ss:$20 sps:$4 sm:$0xff]  }
 0x836   :  { %6014 = vmatmul.mubr.bf16.gmra.mxu0 %v5523_v18  ;;  %v5510_v33 = vpack.c.bf16 %v5462_v21, %v5458_v44  ;;  %v5509_v61 = vpack.c.bf16 %v5461_v49, %v5457_v22  ;;  %v5466_v32 = vmax.f32 %v23460_v60, %v5423_v45  ;;  %v5470_v6 = vmax.f32 %v23461_v1, %v5424_v43  ;;  %v23467_v27 = vld [vmem:[#allocation40_spill] sm:$0xff]  ;;  %v14051_v43 = vld [vmem:[%s22557_s9 + $0x418] ss:$20 sps:$4 sm:$0xff]   ;;  %v14053_v45 = vld [vmem:[%s22557_s9 + $0x41c] ss:$20 sps:$4 sm:$0xff]  }
 0x837   :  { %v5376_v25 = vsel %vm5366_vm6, %v13463_v20, %v13528_v8  ;;  %v5375_v3 = vsel %vm5366_vm6, %v13462_v52, %v13527_v16  ;;  %v5426_v53 = vsel %vm5366_vm6, %v13533_v29, %v13478_v38  ;;  %v5425_v24 = vsel %vm5366_vm6, %v13532_v30, %v13477_v39  ;;  %v14038_v20 = vld [vmem:[%s22557_s9 + $0x464] ss:$20 sps:$4 sm:$0xff]   ;;  %v14039_v52 = vld [vmem:[%s22557_s9 + $0x468] ss:$20 sps:$4 sm:$0xff]   ;;  %v14041_v39 = vld [vmem:[%s22557_s9 + $0x46c] ss:$20 sps:$4 sm:$0xff]  }
 0x838   :  { %6086 = vmatprep.mubr.bf16.mxu1 %v5510_v33  ;;  %v5514_v31 = vpack.c.bf16 %v5470_v6, %v5466_v32  ;;  %v23462_v38 = vld [vmem:[#allocation87_spill] sm:$0xff]  ;;  %v5465_v13 = vmax.f32 %v23463_v35, %v5375_v3  ;;  %v5474_v58 = vmax.f32 %v23464_v26, %v5425_v24  ;;  %v5478_v56 = vmax.f32 %v23465_v47, %v5426_v53  ;;  %v13541_v37 = vpop.permute.xlu1 %13540  ;;  %v14048_v44 = vld [vmem:[%s22557_s9 + $0x410] ss:$20 sps:$4 sm:$0xff]   ;;  %v23470_v32 = vld [vmem:[#allocation25_spill] sm:$0xff] }
 0x839   :  { %6087 = vmatmul.mubr.bf16.gmra.mxu1 %v5509_v61  ;;  %v5469_v63 = vmax.f32 %v23462_v38, %v5376_v25  ;;  %6771 = vmatprep.subr.bf16.mxu0 %v14038_v20  ;;  %v13538_v19 = vunpack.i.h.bf16 %v13536_v14  ;;  %v13537_v34 = vunpack.i.l.bf16 %v13536_v14  ;;  %v5378_v9 = vsel %vm5366_vm6, %v13483_v15, %v13533_v29  ;;  %v14042_v16 = vld [vmem:[%s22557_s9 + $0x438] ss:$20 sps:$4 sm:$0xff]   ;;  %v14060_v24 = vld [vmem:[%s22557_s9 + $0x3c0] ss:$20 sps:$4 sm:$0xff]   ;;  %v14066_v35 = vld [vmem:[%s22557_s9 + $0x4e8] ss:$20 sps:$4 sm:$0xff]  }
 0x83a   :  { %6096 = vmatprep.mubr.bf16.mxu1 %v5514_v31  ;;  %6814 = vmatprep.subr.bf16.mxu1 %v14041_v39  ;;  %v5377_v18 = vsel %vm5366_vm6, %v13482_v23, %v13532_v30  ;;  %v5518_v8 = vpack.c.bf16 %v5478_v56, %v5474_v58  ;;  %v14047_v23 = vld [vmem:[%s22557_s9 + $0x444] ss:$20 sps:$4 sm:$0xff]   ;;  %v5477_v42 = vmax.f32 %v23466_v36, %v5378_v9  ;;  %v13542_v46 = vunpack.i.l.bf16 %v13541_v37  ;;  %v14056_v61 = vld [vmem:[%s22557_s9 + $0x3ec] ss:$20 sps:$4 sm:$0xff]  }
 0x83b   :  { %6772 = vmatpush2.bf16.msra.mxu0 %v14036_v50  ;;  %6815 = vmatpush2.bf16.msra.mxu1 %v14039_v52  ;;  %v5513_v54 = vpack.c.bf16 %v5469_v63, %v5465_v13  ;;  %v5428_v40 = vsel %vm5366_vm6, %v13538_v19, %v13503_v7  ;;  %v5427_v15 = vsel %vm5366_vm6, %v13537_v34, %v13502_v48  ;;  %v23468_v7 = vld [vmem:[#allocation83_spill] sm:$0xff]  ;;  %v13543_v48 = vunpack.i.h.bf16 %v13541_v37  ;;  %v23473_v3 = vld [vmem:[#allocation89_spill] sm:$0xff] }
 0x83c   :  { %6773 = vmatprep.subr.bf16.mxu0 %v14044_v2  ;;  %v5473_v49 = vmax.f32 %v23467_v27, %v5377_v18  ;;  %6816 = vmatprep.subr.bf16.mxu1 %v14047_v23  ;;  %v5482_v5 = vmax.f32 %v23468_v7, %v5427_v15  ;;  %v5486_v22 = vmax.f32 %v23469_v4, %v5428_v40  ;;  %v14062_v31 = vld [vmem:[%s22557_s9 + $0x3c4] ss:$20 sps:$4 sm:$0xff]   ;;  %v14063_v50 = vld [vmem:[%s22557_s9 + $0x3c8] ss:$20 sps:$4 sm:$0xff]   ;;  %v14065_v20 = vld [vmem:[%s22557_s9 + $0x3cc] ss:$20 sps:$4 sm:$0xff]  }
 0x83d   :  { %v5380_v29 = vsel %vm5366_vm6, %v13498_v10, %v13538_v19  ;;  %v5379_v30 = vsel %vm5366_vm6, %v13497_v55, %v13537_v34  ;;  %v5430_v60 = vsel %vm5366_vm6, %v13543_v48, %v13518_v41  ;;  %v5429_v10 = vsel %vm5366_vm6, %v13542_v46, %v13517_v62  ;;  %v14054_v55 = vld [vmem:[%s22557_s9 + $0x3e8] ss:$20 sps:$4 sm:$0xff]   ;;  %v23471_v41 = vld [vmem:[#allocation18_spill] sm:$0xff]  ;;  %v14069_v13 = vld [vmem:[%s22557_s9 + $0x124] ss:$20 sps:$4 sm:$0xff]  }
 0x83e   :  { %v5517_v21 = vpack.c.bf16 %v5477_v42, %v5473_v49  ;;  %v5522_v33 = vpack.c.bf16 %v5486_v22, %v5482_v5  ;;  %v5485_v1 = vmax.f32 %v23470_v32, %v5380_v29  ;;  %v5481_v6 = vmax.f32 %v23471_v41, %v5379_v30  ;;  %v23472_v62 = vld [vmem:[#allocation35_spill] sm:$0xff]  ;;  %v14071_v29 = vld [vmem:[%s22557_s9 + $0x4c0] ss:$20 sps:$4 sm:$0xff]  }
 0x83f   :  { %6774 = vmatpush2.bf16.msra.mxu0 %v14042_v16  ;;  %6817 = vmatpush2.bf16.msra.mxu1 %v14045_v12  ;;  %v5490_v25 = vmax.f32 %v23472_v62, %v5429_v10  ;;  %v5494_v53 = vmax.f32 %v23473_v3, %v5430_v60  ;;  %v5382_v52 = vsel %vm5366_vm6, %v13513_v28, %v13543_v48  ;;  %v23474_v28 = vld [vmem:[#allocation17_spill] sm:$0xff]  ;;  %v14074_v30 = vld [vmem:[%s22557_s9 + $0xfc] ss:$20 sps:$4 sm:$0xff]   ;;  %v14075_v10 = vld [vmem:[%s22557_s9 + $0x380] ss:$20 sps:$4 sm:$0xff]  }
 0x840   :  { %6775 = vmatprep.subr.bf16.mxu0 %v14050_v51  ;;  %6818 = vmatprep.subr.bf16.mxu1 %v14053_v45  ;;  %v5521_v14 = vpack.c.bf16 %v5485_v1, %v5481_v6  ;;  %v5381_v38 = vsel %vm5366_vm6, %v13512_v0, %v13542_v46  ;;  %v5493_v39 = vmax.f32 %v23474_v28, %v5382_v52  ;;  %v14067_v51 = vld [vmem:[%s22557_s9 + $0x120] ss:$20 sps:$4 sm:$0xff]   ;;  %v14072_v60 = vld [vmem:[%s22557_s9 + $0xf8] ss:$20 sps:$4 sm:$0xff]   ;;  %v14077_v1 = vld [vmem:[%s22557_s9 + $0xd0] ss:$20 sps:$4 sm:$0xff]  }
 0x841   :  { %6097 = vmatmul.mubr.bf16.gmra.mxu1 %v5513_v54  ;;  %v5526_v63 = vpack.c.bf16 %v5494_v53, %v5490_v25  ;;  %v5489_v26 = vmax.f32 %v23475_v17, %v5381_v38  ;;  %v14080_v41 = vld [vmem:[%s22557_s9 + $0x358] ss:$20 sps:$4 sm:$0xff]   ;;  %v14081_v6 = vld [vmem:[%s22557_s9 + $0x470] ss:$20 sps:$4 sm:$0xff]   ;;  %v14082_v25 = vld [vmem:[%s22557_s9 + $0xa8] ss:$20 sps:$4 sm:$0xff]  }
 0x842   :  { %6106 = vmatprep.mubr.bf16.mxu1 %v5518_v8  ;;  %v14085_v3 = vld [vmem:[%s22557_s9 + $0x330] ss:$20 sps:$4 sm:$0xff]   ;;  %v14086_v53 = vld [vmem:[%s22557_s9 + $0x448] ss:$20 sps:$4 sm:$0xff]  }
 0x843   :  { %6776 = vmatpush2.bf16.msra.mxu0 %v14048_v44  ;;  %6819 = vmatpush2.bf16.msra.mxu1 %v14051_v43  ;;  %v5525_v11 = vpack.c.bf16 %v5493_v39, %v5489_v26  ;;  %v14094_v52 = vld [vmem:[%s22557_s9 + $0x5c] ss:$20 sps:$4 sm:$0xff]   ;;  %v14099_v28 = vld [vmem:[%s22557_s9 + $0x34] ss:$20 sps:$4 sm:$0xff]  }
 0x844   :  { %6777 = vmatprep.subr.bf16.mxu0 %v14056_v61  ;;  %6820 = vmatprep.subr.bf16.mxu1 %v14059_v59  ;;  %v14076_v59 = vld [vmem:[%s22557_s9 + $0x498] ss:$20 sps:$4 sm:$0xff]  }
 0x847   :  { %6778 = vmatpush2.bf16.msra.mxu0 %v14054_v55  ;;  %6821 = vmatpush2.bf16.msra.mxu1 %v14057_v57  ;;  %v14079_v55 = vld [vmem:[%s22557_s9 + $0xd4] ss:$20 sps:$4 sm:$0xff]   ;;  %v14084_v57 = vld [vmem:[%s22557_s9 + $0xac] ss:$20 sps:$4 sm:$0xff]  }
 0x848   :  { %6779 = vmatprep.subr.bf16.mxu0 %v14062_v31  ;;  %6822 = vmatprep.subr.bf16.mxu1 %v14065_v20  ;;  %v14091_v20 = vld [vmem:[%s22557_s9 + $0x420] ss:$20 sps:$4 sm:$0xff]  }
 0x849   :  { %6107 = vmatmul.mubr.bf16.gmra.mxu1 %v5517_v21  ;;  %v14070_v21 = vld [vmem:[%s22557_s9 + $0x3a8] ss:$20 sps:$4 sm:$0xff]  }
 0x84a   :  { %6116 = vmatprep.mubr.bf16.mxu1 %v5522_v33 }
 0x84b   :  { %6780 = vmatpush2.bf16.msra.mxu0 %v14060_v24  ;;  %6823 = vmatpush2.bf16.msra.mxu1 %v14063_v50  ;;  %v14089_v24 = vld [vmem:[%s22557_s9 + $0x84] ss:$20 sps:$4 sm:$0xff]   ;;  %v14090_v50 = vld [vmem:[%s22557_s9 + $0x308] ss:$20 sps:$4 sm:$0xff]  }
 0x84c   :  { %12962 = vmatprep.subr.bf16.mxu0 %v14066_v35  ;;  %7335 = vmatprep.subr.bf16.mxu1 %v14069_v13  ;;  %v14095_v35 = vld [vmem:[%s22557_s9 + $0x2e0] ss:$20 sps:$4 sm:$0xff]   ;;  %v14096_v13 = vld [vmem:[%s22557_s9 + $0x3f8] ss:$20 sps:$4 sm:$0xff]  }
 0x851   :  { %6117 = vmatmul.mubr.bf16.gmra.mxu1 %v5521_v14  ;;  %v14087_v14 = vld [vmem:[%s22557_s9 + $0x80] ss:$20 sps:$4 sm:$0xff]  }
 0x852   :  { %6126 = vmatprep.mubr.bf16.mxu1 %v5526_v63  ;;  %v14092_v63 = vld [vmem:[%s22557_s9 + $0x58] ss:$20 sps:$4 sm:$0xff]  }
 0x859   :  { %6127 = vmatmul.mubr.bf16.gmra.mxu1 %v5525_v11  ;;  %v14097_v11 = vld [vmem:[%s22557_s9 + $0x30] ss:$20 sps:$4 sm:$0xff]  }
 0x8be   :  { %v5945_v0 = vpop.f32.mrf.mxu0 }
 0x8c0   :  { %v5947_v58 = vpop.f32.mrf.mxu0 }
 0x8c1   :  { %v6058_v47 = vpop.f32.mrf.mxu1 }
 0x8c2   :  { %v6059_v56 = vadd.f32 %v6058_v47, %v5945_v0  ;;  %v5949_v19 = vpop.f32.mrf.mxu0  ;;  %v14100_v0 = vld [vmem:[%s22557_s9 + $0x2b8] ss:$20 sps:$4 sm:$0xff]   ;;  %v14101_v47 = vld [vmem:[%s22557_s9 + $0x3d0] ss:$20 sps:$4 sm:$0xff]  }
 0x8c3   :  { %v6060_v34 = vpop.f32.mrf.mxu1 }
 0x8c4   :  { %v5951_v54 = vpop.f32.mrf.mxu0  ;;  %v6061_v43 = vadd.f32 %v6060_v34, %v5947_v58 }
 0x8c5   :  { %v6062_v9 = vpop.f32.mrf.mxu1 }
 0x8c6   :  { %v6063_v18 = vadd.f32 %v6062_v9, %v5949_v19  ;;  %v5955_v8 = vpop.f32.mrf.mxu0  ;;  %v14102_v9 = vld [vmem:[%s22557_s9 + $0x8] ss:$20 sps:$4 sm:$0xff]  }
 0x8c7   :  { %v6064_v16 = vpop.f32.mrf.mxu1 }
 0x8c8   :  { %v20464_v2 = vpack.c.bf16 %v6063_v18, %v6059_v56  ;;  %v5957_v12 = vpop.f32.mrf.mxu0  ;;  %v6065_v22 = vadd.f32 %v6064_v16, %v5951_v54  ;;  %v14104_v56 = vld [vmem:[%s22557_s9 + $0xc] ss:$20 sps:$4 sm:$0xff]   ;;  %v14105_v18 = vld [vmem:[%s22557_s9 + $0x290] ss:$20 sps:$4 sm:$0xff]  }
 0x8c9   :  { %v6068_v40 = vpop.f32.mrf.mxu1  ;;  %v14111_v16 = vld [vmem:[%s22557_s9 + $0x264] ss:$20 sps:$4 sm:$0xff]  }
 0x8ca   :  { %v5959_v15 = vpop.f32.mrf.mxu0  ;;  %v6069_v48 = vadd.f32 %v6068_v40, %v5955_v8  ;;  %v20486_v33 = vpack.c.bf16 %v6065_v22, %v6061_v43  ;;  %v14108_v8 = vld [vmem:[%s22557_s9 + $0x11c] ss:$20 sps:$4 sm:$0xff]  }
 0x8cb   :  { %v6070_v23 = vpop.f32.mrf.mxu1 }
 0x8cc   :  { %v5961_v37 = vpop.f32.mrf.mxu0  ;;  %v6071_v7 = vadd.f32 %v6070_v23, %v5957_v12  ;;  %v14109_v23 = vld [vmem:[%s22557_s9 + $0x260] ss:$20 sps:$4 sm:$0xff]  }
 0x8cd   :  { %v6072_v36 = vpop.f32.mrf.mxu1 }
 0x8ce   :  { %v20466_v42 = vpop.f32.mrf.mxu0  ;;  %v6073_v27 = vadd.f32 %v6072_v36, %v5959_v15  ;;  %v14106_v15 = vld [vmem:[%s22557_s9 + $0x118] ss:$20 sps:$4 sm:$0xff]   ;;  %v14117_v36 = vld [vmem:[%s22557_s9 + $0x23c] ss:$20 sps:$4 sm:$0xff]  }
 0x8cf   :  { %v6074_v49 = vpop.f32.mrf.mxu1 }
 0x8d0   :  { %v6075_v5 = vadd.f32 %v6074_v49, %v5961_v37  ;;  %v20468_v4 = vpop.f32.mrf.mxu0  ;;  %v20478_v45 = vpack.c.bf16 %v6073_v27, %v6069_v48  ;;  %v14114_v37 = vld [vmem:[%s22557_s9 + $0xf4] ss:$20 sps:$4 sm:$0xff]   ;;  %v14112_v27 = vld [vmem:[%s22557_s9 + $0xf0] ss:$20 sps:$4 sm:$0xff]   ;;  %v14115_v49 = vld [vmem:[%s22557_s9 + $0x238] ss:$20 sps:$4 sm:$0xff]  }
 0x8d1   :  { %v14118_v48 = vld [vmem:[%s22557_s9 + $0xc8] ss:$20 sps:$4 sm:$0xff]  }
 0x8d2   :  { %v6236_v46 = vpack.c.bf16 %v6075_v5, %v6071_v7  ;;  %v20470_v44 = vpop.f32.mrf.mxu0  ;;  %v14120_v7 = vld [vmem:[%s22557_s9 + $0xcc] ss:$20 sps:$4 sm:$0xff]   ;;  %v14123_v5 = vld [vmem:[%s22557_s9 + $0x214] ss:$20 sps:$4 sm:$0xff]  }
 0x8d4   :  { %6781 = vmatprep.mubr.bf16.mxu0 %v6236_v46  ;;  %6824 = vmatprep.mubr.bf16.mxu1 %v6236_v46  ;;  %v20488_v61 = vpop.f32.mrf.mxu0 }
 0x8d5   :  { %6782 = vmatmul.mubr.bf16.vlgmr.msra.gmra.mxu0 %v20478_v45  ;;  %6825 = vmatmul.mubr.bf16.vlgmr.msra.gmra.mxu1 %v20478_v45 }
 0x8d6   :  { %12963 = vmatpush3.bf16.msra.mxu0 %v14070_v21  ;;  %7336 = vmatpush1.bf16.msra.mxu1 %v14067_v51  ;;  %v20505_v32 = vpop.f32.mrf.mxu0  ;;  %v14126_v51 = vld [vmem:[%s22557_s9 + $0xa4] ss:$20 sps:$4 sm:$0xff]   ;;  %v14129_v21 = vld [vmem:[%s22557_s9 + $0x1ec] ss:$20 sps:$4 sm:$0xff]  }
 0x8d7   :  { %6867 = vmatprep.mubr.bf16.mxu0 %v6236_v46  ;;  %7367 = vmatprep.mubr.bf16.mxu1 %v20486_v33 }
 0x8d8   :  { %12964 = vmatprep.subr.bf16.mxu0 %v14071_v29  ;;  %7337 = vmatprep.subr.bf16.mxu1 %v14074_v30  ;;  %v20519_v62 = vpop.f32.mrf.mxu0  ;;  %v14124_v30 = vld [vmem:[%s22557_s9 + $0xa0] ss:$20 sps:$4 sm:$0xff]  }
 0x8da   :  { %12965 = vmatpush3.bf16.msra.mxu0 %v14075_v10  ;;  %7338 = vmatpush1.bf16.msra.mxu1 %v14072_v60  ;;  %v20533_v31 = vpop.f32.mrf.mxu0  ;;  %v14127_v10 = vld [vmem:[%s22557_s9 + $0x1e8] ss:$20 sps:$4 sm:$0xff]  }
 0x8db   :  { %12966 = vmatprep.subr.bf16.mxu0 %v14076_v59  ;;  %7339 = vmatprep.subr.bf16.mxu1 %v14079_v55  ;;  %v14132_v59 = vld [vmem:[%s22557_s9 + $0x7c] ss:$20 sps:$4 sm:$0xff]   ;;  %v14135_v55 = vld [vmem:[%s22557_s9 + $0x1c4] ss:$20 sps:$4 sm:$0xff]  }
 0x8dc   :  { %v20547_v38 = vpop.f32.mrf.mxu0 }
 0x8de   :  { %12967 = vmatpush3.bf16.msra.mxu0 %v14080_v41  ;;  %7340 = vmatpush1.bf16.msra.mxu1 %v14077_v1  ;;  %v20561_v39 = vpop.f32.mrf.mxu0 }
 0x8df   :  { %12968 = vmatprep.subr.bf16.mxu0 %v14081_v6  ;;  %7341 = vmatprep.subr.bf16.mxu1 %v14084_v57  ;;  %v14130_v6 = vld [vmem:[%s22557_s9 + $0x78] ss:$20 sps:$4 sm:$0xff]  }
 0x8e0   :  { %v20578_v19 = vpop.f32.mrf.mxu0 }
 0x8e2   :  { %12969 = vmatpush3.bf16.msra.mxu0 %v14085_v3  ;;  %7342 = vmatpush1.bf16.msra.mxu1 %v14082_v25  ;;  %v20595_v40 = vpop.f32.mrf.mxu0  ;;  %v14133_v25 = vld [vmem:[%s22557_s9 + $0x1c0] ss:$20 sps:$4 sm:$0xff]  }
 0x8e3   :  { %12970 = vmatprep.subr.bf16.mxu0 %v14086_v53  ;;  %7343 = vmatprep.subr.bf16.mxu1 %v14089_v24  ;;  %v14138_v3 = vld [vmem:[%s22557_s9 + $0x54] ss:$20 sps:$4 sm:$0xff]   ;;  %v14141_v24 = vld [vmem:[%s22557_s9 + $0x19c] ss:$20 sps:$4 sm:$0xff]  }
 0x8e6   :  { %12971 = vmatpush3.bf16.msra.mxu0 %v14090_v50  ;;  %7344 = vmatpush1.bf16.msra.mxu1 %v14087_v14 }
 0x8e7   :  { %12972 = vmatprep.subr.bf16.mxu0 %v14091_v20  ;;  %7345 = vmatprep.subr.bf16.mxu1 %v14094_v52  ;;  %v14136_v20 = vld [vmem:[%s22557_s9 + $0x50] ss:$20 sps:$4 sm:$0xff]  }
 0x8e9   :  { %v6078_v17 = vpop.f32.mrf.mxu1 }
 0x8ea   :  { %12973 = vmatpush3.bf16.msra.mxu0 %v14095_v35  ;;  %7346 = vmatpush1.bf16.msra.mxu1 %v14092_v63  ;;  %v6079_v26 = vadd.f32 %v6078_v17, %v20466_v42  ;;  %v20609_v42 = vpop.f32.mrf.mxu0  ;;  %v14139_v63 = vld [vmem:[%s22557_s9 + $0x198] ss:$20 sps:$4 sm:$0xff]  }
 0x8eb   :  { %12974 = vmatprep.subr.bf16.mxu0 %v14096_v13  ;;  %7347 = vmatprep.subr.bf16.mxu1 %v14099_v28  ;;  %v20570_v58 = vpop.f32.mrf.mxu1  ;;  %v14144_v35 = vld [vmem:[%s22557_s9 + $0x2c] ss:$20 sps:$4 sm:$0xff]   ;;  %v14147_v13 = vld [vmem:[%s22557_s9 + $0x174] ss:$20 sps:$4 sm:$0xff]  }
 0x8ec   :  { %v5995_v22 = vpop.f32.mrf.mxu0 }
 0x8ed   :  { %v6082_v34 = vpop.f32.mrf.mxu1 }
 0x8ee   :  { %12975 = vmatpush3.bf16.msra.mxu0 %v14100_v0  ;;  %7348 = vmatpush1.bf16.msra.mxu1 %v14097_v11  ;;  %v6083_v54 = vadd.f32 %v6082_v34, %v20470_v44  ;;  %v14121_v44 = vld [vmem:[%s22557_s9 + $0x210] ss:$20 sps:$4 sm:$0xff]   ;;  %v20639_v43 = vpop.f32.mrf.mxu0  ;;  %v14153_v34 = vld [vmem:[%s22557_s9 + $0x14c] ss:$20 sps:$4 sm:$0xff]  }
 0x8ef   :  { %12976 = vmatprep.subr.bf16.mxu0 %v14101_v47  ;;  %7349 = vmatprep.subr.bf16.mxu1 %v14104_v56  ;;  %v20628_v46 = vpop.f32.mrf.mxu1  ;;  %v14145_v0 = vld [vmem:[%s22557_s9 + $0x170] ss:$20 sps:$4 sm:$0xff]  }
 0x8f0   :  { %v20593_v12 = vpack.c.bf16 %v6083_v54, %v6079_v26  ;;  %v14142_v26 = vld [vmem:[%s22557_s9 + $0x28] ss:$20 sps:$4 sm:$0xff]   ;;  %v14150_v47 = vld [vmem:[%s22557_s9 + $0x4] ss:$20 sps:$4 sm:$0xff]  }
 0x8f2   :  { %12977 = vmatpush3.bf16.msra.mxu0 %v14105_v18  ;;  %7350 = vmatpush1.bf16.msra.mxu1 %v14102_v9 }
 0x8f3   :  { %7292 = vmatprep.subr.bf16.mxu0 %v14108_v8  ;;  %7351 = vmatprep.subr.bf16.mxu1 %v14111_v16  ;;  %v14148_v8 = vld [vmem:[%s22557_s9] ss:$20 sps:$4 sm:$0xff]  }
 0x8f5   :  { %6868 = vmatmul.mubr.bf16.vlgmr.msra.gmra.mxu0 %v20478_v45 }
 0x8f6   :  { %7293 = vmatpush1.bf16.msra.mxu0 %v14106_v15  ;;  %7324 = vmatprep.mubr.bf16.mxu0 %v20486_v33  ;;  %v14156_v15 = vld [vmem:[%s22557_s9 + $0x25c] ss:$20 sps:$4 sm:$0xff]  }
 0x8f7   :  { %7352 = vmatpush2.bf16.msra.mxu1 %v14109_v23  ;;  %7294 = vmatprep.subr.bf16.mxu0 %v14114_v37  ;;  %v14159_v23 = vld [vmem:[%s22557_s9 + $0x61c] ss:$20 sps:$4 sm:$0xff]   ;;  %v6085_v37 = vadd.f32 %v20628_v46, %v20488_v61  ;;  %v14162_v46 = vld [vmem:[%s22557_s9 + $0x234] ss:$20 sps:$4 sm:$0xff]  }
 0x8f8   :  { %7353 = vmatprep.subr.bf16.mxu1 %v14117_v36 }
 0x8f9   :  { %v6088_v45 = vpop.f32.mrf.mxu1 }
 0x8fa   :  { %7295 = vmatpush1.bf16.msra.mxu0 %v14112_v27  ;;  %v6089_v29 = vadd.f32 %v6088_v45, %v20505_v32  ;;  %v5999_v32 = vpop.f32.mrf.mxu0  ;;  %v14160_v45 = vld [vmem:[%s22557_s9 + $0x230] ss:$20 sps:$4 sm:$0xff]  }
 0x8fb   :  { %7354 = vmatpush2.bf16.msra.mxu1 %v14115_v49  ;;  %7296 = vmatprep.subr.bf16.mxu0 %v14120_v7  ;;  %v20645_v60 = vpop.f32.mrf.mxu1  ;;  %v14154_v7 = vld [vmem:[%s22557_s9 + $0x258] ss:$20 sps:$4 sm:$0xff]  }
 0x8fc   :  { %7355 = vmatprep.subr.bf16.mxu1 %v14123_v5  ;;  %v6081_v5 = vadd.f32 %v20570_v58, %v20468_v4 }
 0x8fd   :  { %v6092_v1 = vpop.f32.mrf.mxu1 }
 0x8fe   :  { %7297 = vmatpush1.bf16.msra.mxu0 %v14118_v48  ;;  %v6093_v41 = vadd.f32 %v6092_v1, %v20533_v31  ;;  %v20673_v31 = vpop.f32.mrf.mxu0  ;;  %v14157_v48 = vld [vmem:[%s22557_s9 + $0x618] ss:$20 sps:$4 sm:$0xff]   ;;  %v20743_v4 = vpack.c.bf16 %v6085_v37, %v6081_v5 }
 0x8ff   :  { %7356 = vmatpush2.bf16.msra.mxu1 %v14121_v44  ;;  %7298 = vmatprep.subr.bf16.mxu0 %v14126_v51  ;;  %v20660_v57 = vpop.f32.mrf.mxu1  ;;  %v14165_v44 = vld [vmem:[%s22557_s9 + $0x5f4] ss:$20 sps:$4 sm:$0xff]   ;;  %v14192_v37 = vld [vmem:[%s22557_s9 + $0x16c] ss:$20 sps:$4 sm:$0xff]   ;;  %v14201_v5 = vld [vmem:[%s22557_s9 + $0x504] ss:$20 sps:$4 sm:$0xff]  }
 0x900   :  { %7357 = vmatprep.subr.bf16.mxu1 %v14129_v21  ;;  %v20668_v53 = vpack.c.bf16 %v6093_v41, %v6089_v29  ;;  %v6005_v28 = vpop.f32.mrf.mxu0  ;;  %v14166_v41 = vld [vmem:[%s22557_s9 + $0x208] ss:$20 sps:$4 sm:$0xff]  }
 0x901   :  { %v6098_v14 = vpop.f32.mrf.mxu1 }
 0x902   :  { %7299 = vmatpush1.bf16.msra.mxu0 %v14124_v30  ;;  %v6099_v50 = vadd.f32 %v6098_v14, %v20561_v39  ;;  %v20707_v54 = vpop.f32.mrf.mxu0  ;;  %v14163_v30 = vld [vmem:[%s22557_s9 + $0x5f0] ss:$20 sps:$4 sm:$0xff]  }
 0x903   :  { %7358 = vmatpush2.bf16.msra.mxu1 %v14127_v10  ;;  %7300 = vmatprep.subr.bf16.mxu0 %v14132_v59  ;;  %v20679_v52 = vpop.f32.mrf.mxu1  ;;  %v14168_v10 = vld [vmem:[%s22557_s9 + $0x20c] ss:$20 sps:$4 sm:$0xff]   ;;  %v14177_v14 = vld [vmem:[%s22557_s9 + $0x5a4] ss:$20 sps:$4 sm:$0xff]  }
 0x904   :  { %7359 = vmatprep.subr.bf16.mxu1 %v14135_v55  ;;  %v6009_v36 = vpop.f32.mrf.mxu0  ;;  %v14171_v59 = vld [vmem:[%s22557_s9 + $0x5cc] ss:$20 sps:$4 sm:$0xff]  }
 0x905   :  { %v6102_v39 = vpop.f32.mrf.mxu1 }
 0x906   :  { %7301 = vmatpush1.bf16.msra.mxu0 %v14130_v6  ;;  %v6103_v17 = vadd.f32 %v6102_v39, %v20595_v40  ;;  %v14151_v40 = vld [vmem:[%s22557_s9 + $0x148] ss:$20 sps:$4 sm:$0xff]   ;;  %v20745_v58 = vpop.f32.mrf.mxu0 }
 0x907   :  { %7360 = vmatpush2.bf16.msra.mxu1 %v14133_v25  ;;  %7302 = vmatprep.subr.bf16.mxu0 %v14138_v3  ;;  %v20694_v11 = vpop.f32.mrf.mxu1  ;;  %v14169_v25 = vld [vmem:[%s22557_s9 + $0x5c8] ss:$20 sps:$4 sm:$0xff]   ;;  %v14174_v3 = vld [vmem:[%s22557_s9 + $0x1e4] ss:$20 sps:$4 sm:$0xff]  }
 0x908   :  { %7361 = vmatprep.subr.bf16.mxu1 %v14141_v24  ;;  %v20702_v56 = vpack.c.bf16 %v6103_v17, %v6099_v50  ;;  %v6015_v55 = vpop.f32.mrf.mxu0  ;;  %v14180_v39 = vld [vmem:[%s22557_s9 + $0x1bc] ss:$20 sps:$4 sm:$0xff]  }
 0x909   :  { %v6108_v9 = vpop.f32.mrf.mxu1  ;;  %v14183_v17 = vld [vmem:[%s22557_s9 + $0x57c] ss:$20 sps:$4 sm:$0xff]  }
 0x90a   :  { %7303 = vmatpush1.bf16.msra.mxu0 %v14136_v20  ;;  %v6109_v18 = vadd.f32 %v6108_v9, %v5995_v22  ;;  %v20779_v50 = vpop.f32.mrf.mxu0  ;;  %v14181_v9 = vld [vmem:[%s22557_s9 + $0x578] ss:$20 sps:$4 sm:$0xff]  }
 0x90b   :  { %7362 = vmatpush2.bf16.msra.mxu1 %v14139_v63  ;;  %7304 = vmatprep.subr.bf16.mxu0 %v14144_v35  ;;  %v20712_v16 = vpop.f32.mrf.mxu1  ;;  %v14172_v35 = vld [vmem:[%s22557_s9 + $0x1e0] ss:$20 sps:$4 sm:$0xff]  }
 0x90c   :  { %7363 = vmatprep.subr.bf16.mxu1 %v14147_v13 }
 0x90d   :  { %v6112_v27 = vpop.f32.mrf.mxu1 }
 0x90e   :  { %7305 = vmatpush1.bf16.msra.mxu0 %v14142_v26  ;;  %v6113_v49 = vadd.f32 %v6112_v27, %v5999_v32  ;;  %v6019_v26 = vpop.f32.mrf.mxu0  ;;  %v14190_v27 = vld [vmem:[%s22557_s9 + $0x168] ss:$20 sps:$4 sm:$0xff]  }
 0x90f   :  { %7364 = vmatpush2.bf16.msra.mxu1 %v14145_v0  ;;  %7306 = vmatprep.subr.bf16.mxu0 %v14150_v47  ;;  %v20730_v22 = vpop.f32.mrf.mxu1 }
 0x910   :  { %7365 = vmatprep.subr.bf16.mxu1 %v14153_v34  ;;  %v20735_v61 = vpack.c.bf16 %v6113_v49, %v6109_v18  ;;  %v14178_v34 = vld [vmem:[%s22557_s9 + $0x1b8] ss:$20 sps:$4 sm:$0xff]   ;;  %v14186_v18 = vld [vmem:[%s22557_s9 + $0x194] ss:$20 sps:$4 sm:$0xff]  }
 0x911   :  { %v6118_v51 = vpop.f32.mrf.mxu1  ;;  %v14193_v49 = vld [vmem:[%s22557_s9 + $0x528] ss:$20 sps:$4 sm:$0xff]  }
 0x912   :  { %7307 = vmatpush1.bf16.msra.mxu0 %v14148_v8  ;;  %v6119_v21 = vadd.f32 %v6118_v51, %v6005_v28  ;;  %v14175_v28 = vld [vmem:[%s22557_s9 + $0x5a0] ss:$20 sps:$4 sm:$0xff]   ;;  %v14205_v51 = vld [vmem:[%s22557_s9 + $0x75c] ss:$20 sps:$4 sm:$0xff]  }
 0x913   :  { %7366 = vmatpush2.bf16.msra.mxu1 %v14151_v40  ;;  %7308 = vmatprep.subr.bf16.mxu0 %v14156_v15  ;;  %v20751_v29 = vpop.f32.mrf.mxu1  ;;  %v14189_v40 = vld [vmem:[%s22557_s9 + $0x554] ss:$20 sps:$4 sm:$0xff]   ;;  %v14184_v15 = vld [vmem:[%s22557_s9 + $0x190] ss:$20 sps:$4 sm:$0xff]  }
 0x914   :  { %7933 = vmatprep.subr.bf16.mxu1 %v14159_v23  ;;  %v14187_v23 = vld [vmem:[%s22557_s9 + $0x550] ss:$20 sps:$4 sm:$0xff]  }
 0x915   :  { %v6122_v32 = vpop.f32.mrf.mxu1 }
 0x916   :  { %7368 = vmatmul.mubr.bf16.vlgmr.msra.gmra.mxu1 %v20464_v2  ;;  %7309 = vmatpush2.bf16.msra.mxu0 %v14154_v7  ;;  %v6123_v1 = vadd.f32 %v6122_v32, %v6009_v36  ;;  %v14195_v36 = vld [vmem:[%s22557_s9 + $0x52c] ss:$20 sps:$4 sm:$0xff]   ;;  %v14198_v7 = vld [vmem:[%s22557_s9 + $0x144] ss:$20 sps:$4 sm:$0xff]  }
 0x917   :  { %7934 = vmatpush1.bf16.msra.mxu1 %v14157_v48  ;;  %7965 = vmatprep.mubr.bf16.mxu1 %v20743_v4  ;;  %v20766_v6 = vpop.f32.mrf.mxu1  ;;  %v14196_v48 = vld [vmem:[%s22557_s9 + $0x140] ss:$20 sps:$4 sm:$0xff]   ;;  %v14212_v32 = vld [vmem:[%s22557_s9 + $0x218] ss:$20 sps:$4 sm:$0xff]  }
 0x918   :  { %7310 = vmatprep.subr.bf16.mxu0 %v14162_v46  ;;  %7935 = vmatprep.subr.bf16.mxu1 %v14165_v44  ;;  %v20774_v24 = vpack.c.bf16 %v6123_v1, %v6119_v21  ;;  %v14199_v46 = vld [vmem:[%s22557_s9 + $0x500] ss:$20 sps:$4 sm:$0xff]   ;;  %v14202_v44 = vld [vmem:[%s22557_s9 + $0x268] ss:$20 sps:$4 sm:$0xff]  }
 0x919   :  { %v6128_v20 = vpop.f32.mrf.mxu1  ;;  %v14206_v21 = vld [vmem:[%s22557_s9 + $0x128] ss:$20 sps:$4 sm:$0xff]   ;;  %v14215_v1 = vld [vmem:[%s22557_s9 + $0x70c] ss:$20 sps:$4 sm:$0xff]  }
 0x91a   :  { %7311 = vmatpush2.bf16.msra.mxu0 %v14160_v45  ;;  %v6129_v63 = vadd.f32 %v6128_v20, %v6015_v55  ;;  %v14203_v45 = vld [vmem:[%s22557_s9 + $0x758] ss:$20 sps:$4 sm:$0xff]   ;;  %v14208_v55 = vld [vmem:[%s22557_s9 + $0x730] ss:$20 sps:$4 sm:$0xff]   ;;  %v14218_v20 = vld [vmem:[%s22557_s9 + $0x6e0] ss:$20 sps:$4 sm:$0xff]  }
 0x91b   :  { %7936 = vmatpush1.bf16.msra.mxu1 %v14163_v30  ;;  %7312 = vmatprep.subr.bf16.mxu0 %v14168_v10  ;;  %v20784_v13 = vpop.f32.mrf.mxu1  ;;  %v14207_v30 = vld [vmem:[%s22557_s9 + $0x240] ss:$20 sps:$4 sm:$0xff]  }
 0x91c   :  { %7937 = vmatprep.subr.bf16.mxu1 %v14171_v59  ;;  %v14210_v10 = vld [vmem:[%s22557_s9 + $0x734] ss:$20 sps:$4 sm:$0xff]  }
 0x91d   :  { %v6132_v0 = vpop.f32.mrf.mxu1  ;;  %v14211_v59 = vld [vmem:[%s22557_s9 + $0x100] ss:$20 sps:$4 sm:$0xff]  }
 0x91e   :  { %7313 = vmatpush2.bf16.msra.mxu0 %v14166_v41  ;;  %v6133_v47 = vadd.f32 %v6132_v0, %v6019_v26  ;;  %v14213_v41 = vld [vmem:[%s22557_s9 + $0x708] ss:$20 sps:$4 sm:$0xff]   ;;  %v14231_v0 = vld [vmem:[%s22557_s9 + $0x60] ss:$20 sps:$4 sm:$0xff]  }
 0x91f   :  { %7938 = vmatpush1.bf16.msra.mxu1 %v14169_v25  ;;  %7314 = vmatprep.subr.bf16.mxu0 %v14174_v3  ;;  %v14217_v25 = vld [vmem:[%s22557_s9 + $0x1f0] ss:$20 sps:$4 sm:$0xff]   ;;  %v14230_v26 = vld [vmem:[%s22557_s9 + $0x694] ss:$20 sps:$4 sm:$0xff]  }
 0x920   :  { %7939 = vmatprep.subr.bf16.mxu1 %v14177_v14  ;;  %v20804_v8 = vpack.c.bf16 %v6133_v47, %v6129_v63  ;;  %v14220_v3 = vld [vmem:[%s22557_s9 + $0x6e4] ss:$20 sps:$4 sm:$0xff]   ;;  %v14222_v63 = vld [vmem:[%s22557_s9 + $0x1c8] ss:$20 sps:$4 sm:$0xff]  }
 0x921   :  { %v14221_v14 = vld [vmem:[%s22557_s9 + $0xb0] ss:$20 sps:$4 sm:$0xff]  }
 0x922   :  { %7315 = vmatpush2.bf16.msra.mxu0 %v14172_v35  ;;  %v14225_v35 = vld [vmem:[%s22557_s9 + $0x6bc] ss:$20 sps:$4 sm:$0xff]  }
 0x923   :  { %7940 = vmatpush1.bf16.msra.mxu1 %v14175_v28  ;;  %7316 = vmatprep.subr.bf16.mxu0 %v14180_v39  ;;  %v14226_v28 = vld [vmem:[%s22557_s9 + $0x88] ss:$20 sps:$4 sm:$0xff]   ;;  %v14223_v39 = vld [vmem:[%s22557_s9 + $0x6b8] ss:$20 sps:$4 sm:$0xff]   ;;  %v14228_v47 = vld [vmem:[%s22557_s9 + $0x690] ss:$20 sps:$4 sm:$0xff]  }
 0x924   :  { %7941 = vmatprep.subr.bf16.mxu1 %v14183_v17  ;;  %v14227_v17 = vld [vmem:[%s22557_s9 + $0x1a0] ss:$20 sps:$4 sm:$0xff]  }
 0x926   :  { %7317 = vmatpush2.bf16.msra.mxu0 %v14178_v34  ;;  %v14232_v34 = vld [vmem:[%s22557_s9 + $0x178] ss:$20 sps:$4 sm:$0xff]  }
 0x927   :  { %7942 = vmatpush1.bf16.msra.mxu1 %v14181_v9  ;;  %7318 = vmatprep.subr.bf16.mxu0 %v14186_v18  ;;  %v14235_v9 = vld [vmem:[%s22557_s9 + $0x66c] ss:$20 sps:$4 sm:$0xff]  }
 0x928   :  { %7943 = vmatprep.subr.bf16.mxu1 %v14189_v40  ;;  %v14236_v18 = vld [vmem:[%s22557_s9 + $0x38] ss:$20 sps:$4 sm:$0xff]   ;;  %v14233_v40 = vld [vmem:[%s22557_s9 + $0x668] ss:$20 sps:$4 sm:$0xff]  }
 0x92a   :  { %7319 = vmatpush2.bf16.msra.mxu0 %v14184_v15  ;;  %v14237_v15 = vld [vmem:[%s22557_s9 + $0x150] ss:$20 sps:$4 sm:$0xff]  }
 0x92b   :  { %7944 = vmatpush1.bf16.msra.mxu1 %v14187_v23  ;;  %7320 = vmatprep.subr.bf16.mxu0 %v14192_v37  ;;  %v14240_v23 = vld [vmem:[%s22557_s9 + $0x644] ss:$20 sps:$4 sm:$0xff]  }
 0x92c   :  { %7945 = vmatprep.subr.bf16.mxu1 %v14195_v36  ;;  %v14241_v37 = vld [vmem:[%s22557_s9 + $0x10] ss:$20 sps:$4 sm:$0xff]   ;;  %v14238_v36 = vld [vmem:[%s22557_s9 + $0x640] ss:$20 sps:$4 sm:$0xff]  }
 0x92e   :  { %7321 = vmatpush2.bf16.msra.mxu0 %v14190_v27  ;;  %v14244_v27 = vld [vmem:[%s22557_s9 + $0x624] ss:$20 sps:$4 sm:$0xff]  }
 0x92f   :  { %7946 = vmatpush1.bf16.msra.mxu1 %v14193_v49  ;;  %7322 = vmatprep.subr.bf16.mxu0 %v14198_v7  ;;  %v14245_v49 = vld [vmem:[%s22557_s9 + $0x768] ss:$20 sps:$4 sm:$0xff]   ;;  %v14242_v7 = vld [vmem:[%s22557_s9 + $0x620] ss:$20 sps:$4 sm:$0xff]  }
 0x930   :  { %7947 = vmatprep.subr.bf16.mxu1 %v14201_v5  ;;  %v14246_v5 = vld [vmem:[%s22557_s9 + $0x628] ss:$20 sps:$4 sm:$0xff]  }
 0x932   :  { %7323 = vmatpush2.bf16.msra.mxu0 %v14196_v48  ;;  %v14249_v48 = vld [vmem:[%s22557_s9 + $0x5fc] ss:$20 sps:$4 sm:$0xff]  }
 0x933   :  { %7948 = vmatpush1.bf16.msra.mxu1 %v14199_v46  ;;  %12984 = vmatprep.subr.bf16.mxu0 %v14202_v44  ;;  %v14250_v46 = vld [vmem:[%s22557_s9 + $0x740] ss:$20 sps:$4 sm:$0xff]   ;;  %v14247_v44 = vld [vmem:[%s22557_s9 + $0x5f8] ss:$20 sps:$4 sm:$0xff]  }
 0x934   :  { %7949 = vmatprep.subr.bf16.mxu1 %v14205_v51  ;;  %v14251_v51 = vld [vmem:[%s22557_s9 + $0x600] ss:$20 sps:$4 sm:$0xff]  }
 0x935   :  { %7325 = vmatmul.mubr.bf16.vlgmr.msra.gmra.mxu0 %v20464_v2 }
 0x936   :  { %12985 = vmatpush3.bf16.msra.mxu0 %v14206_v21  ;;  %7410 = vmatprep.mubr.bf16.mxu0 %v20486_v33  ;;  %v14216_v33 = vld [vmem:[%s22557_s9 + $0xd8] ss:$20 sps:$4 sm:$0xff]  }
 0x937   :  { %7950 = vmatpush2.bf16.msra.mxu1 %v14203_v45  ;;  %12986 = vmatprep.subr.bf16.mxu0 %v14207_v30  ;;  %v14255_v21 = vld [vmem:[%s22557_s9 + $0x718] ss:$20 sps:$4 sm:$0xff]   ;;  %v14252_v45 = vld [vmem:[%s22557_s9 + $0x5d0] ss:$20 sps:$4 sm:$0xff]  }
 0x938   :  { %7951 = vmatprep.subr.bf16.mxu1 %v14210_v10  ;;  %v14256_v30 = vld [vmem:[%s22557_s9 + $0x5d8] ss:$20 sps:$4 sm:$0xff]   ;;  %v14260_v10 = vld [vmem:[%s22557_s9 + $0x6f0] ss:$20 sps:$4 sm:$0xff]  }
 0x93a   :  { %12987 = vmatpush3.bf16.msra.mxu0 %v14211_v59  ;;  %v14257_v59 = vld [vmem:[%s22557_s9 + $0x5a8] ss:$20 sps:$4 sm:$0xff]  }
 0x93b   :  { %7952 = vmatpush2.bf16.msra.mxu1 %v14208_v55  ;;  %12988 = vmatprep.subr.bf16.mxu0 %v14212_v32  ;;  %v14261_v55 = vld [vmem:[%s22557_s9 + $0x5b0] ss:$20 sps:$4 sm:$0xff]  }
 0x93c   :  { %7953 = vmatprep.subr.bf16.mxu1 %v14215_v1  ;;  %v14264_v32 = vld [vmem:[%s22557_s9 + $0x584] ss:$20 sps:$4 sm:$0xff]   ;;  %v14265_v1 = vld [vmem:[%s22557_s9 + $0x6c8] ss:$20 sps:$4 sm:$0xff]  }
 0x93e   :  { %12989 = vmatpush3.bf16.msra.mxu0 %v14216_v33  ;;  %v14262_v33 = vld [vmem:[%s22557_s9 + $0x580] ss:$20 sps:$4 sm:$0xff]  }
 0x93f   :  { %7954 = vmatpush2.bf16.msra.mxu1 %v14213_v41  ;;  %12990 = vmatprep.subr.bf16.mxu0 %v14217_v25  ;;  %v14266_v41 = vld [vmem:[%s22557_s9 + $0x588] ss:$20 sps:$4 sm:$0xff]  }
 0x940   :  { %7955 = vmatprep.subr.bf16.mxu1 %v14220_v3  ;;  %v14269_v25 = vld [vmem:[%s22557_s9 + $0x55c] ss:$20 sps:$4 sm:$0xff]   ;;  %v14270_v3 = vld [vmem:[%s22557_s9 + $0x6a0] ss:$20 sps:$4 sm:$0xff]  }
 0x942   :  { %12991 = vmatpush3.bf16.msra.mxu0 %v14221_v14  ;;  %v14267_v14 = vld [vmem:[%s22557_s9 + $0x558] ss:$20 sps:$4 sm:$0xff]  }
 0x943   :  { %7956 = vmatpush2.bf16.msra.mxu1 %v14218_v20  ;;  %12992 = vmatprep.subr.bf16.mxu0 %v14222_v63  ;;  %v14271_v20 = vld [vmem:[%s22557_s9 + $0x560] ss:$20 sps:$4 sm:$0xff]  }
 0x944   :  { %7957 = vmatprep.subr.bf16.mxu1 %v14225_v35  ;;  %v14274_v63 = vld [vmem:[%s22557_s9 + $0x534] ss:$20 sps:$4 sm:$0xff]   ;;  %v14275_v35 = vld [vmem:[%s22557_s9 + $0x678] ss:$20 sps:$4 sm:$0xff]  }
 0x946   :  { %12993 = vmatpush3.bf16.msra.mxu0 %v14226_v28  ;;  %v14272_v28 = vld [vmem:[%s22557_s9 + $0x530] ss:$20 sps:$4 sm:$0xff]  }
 0x947   :  { %7958 = vmatpush2.bf16.msra.mxu1 %v14223_v39  ;;  %12994 = vmatprep.subr.bf16.mxu0 %v14227_v17  ;;  %v14276_v39 = vld [vmem:[%s22557_s9 + $0x538] ss:$20 sps:$4 sm:$0xff]  }
 0x948   :  { %7959 = vmatprep.subr.bf16.mxu1 %v14230_v26  ;;  %v14279_v17 = vld [vmem:[%s22557_s9 + $0x50c] ss:$20 sps:$4 sm:$0xff]   ;;  %v14280_v26 = vld [vmem:[%s22557_s9 + $0x650] ss:$20 sps:$4 sm:$0xff]  }
 0x94a   :  { %12995 = vmatpush3.bf16.msra.mxu0 %v14231_v0  ;;  %v14277_v0 = vld [vmem:[%s22557_s9 + $0x508] ss:$20 sps:$4 sm:$0xff]  }
 0x94b   :  { %7960 = vmatpush2.bf16.msra.mxu1 %v14228_v47  ;;  %12996 = vmatprep.subr.bf16.mxu0 %v14232_v34  ;;  %v14281_v47 = vld [vmem:[%s22557_s9 + $0x510] ss:$20 sps:$4 sm:$0xff]  }
 0x94c   :  { %7961 = vmatprep.subr.bf16.mxu1 %v14235_v9  ;;  %v14284_v34 = vld [vmem:[%s22557_s9 + $0x764] ss:$20 sps:$4 sm:$0xff]  }
 0x94d   :  { %v14287_v9 = vld [vmem:[%s22557_s9 + $0x8a4] ss:$20 sps:$4 sm:$0xff]  }
 0x94e   :  { %12997 = vmatpush3.bf16.msra.mxu0 %v14236_v18  ;;  %v6095_v18 = vadd.f32 %v20660_v57, %v20547_v38  ;;  %v14293_v38 = vld [vmem:[%s22557_s9 + $0x87c] ss:$20 sps:$4 sm:$0xff]  }
 0x94f   :  { %7962 = vmatpush2.bf16.msra.mxu1 %v14233_v40  ;;  %12998 = vmatprep.subr.bf16.mxu0 %v14237_v15  ;;  %v14282_v40 = vld [vmem:[%s22557_s9 + $0x760] ss:$20 sps:$4 sm:$0xff]   ;;  %v6091_v15 = vadd.f32 %v20645_v60, %v20519_v62  ;;  %v14288_v62 = vld [vmem:[%s22557_s9 + $0x738] ss:$20 sps:$4 sm:$0xff]  }
 0x950   :  { %7963 = vmatprep.subr.bf16.mxu1 %v14240_v23  ;;  %v14285_v23 = vld [vmem:[%s22557_s9 + $0x8a0] ss:$20 sps:$4 sm:$0xff]   ;;  %v14291_v60 = vld [vmem:[%s22557_s9 + $0x878] ss:$20 sps:$4 sm:$0xff]  }
 0x951   :  { %v21059_v57 = vpack.c.bf16 %v6095_v18, %v6091_v15  ;;  %v14350_v18 = vld [vmem:[%s22557_s9 + $0x824] ss:$20 sps:$4 sm:$0xff]   ;;  %v14348_v15 = vld [vmem:[%s22557_s9 + $0x820] ss:$20 sps:$4 sm:$0xff]  }
 0x952   :  { %12999 = vmatpush3.bf16.msra.mxu0 %v14241_v37  ;;  %v14290_v37 = vld [vmem:[%s22557_s9 + $0x73c] ss:$20 sps:$4 sm:$0xff]  }
 0x953   :  { %7964 = vmatpush2.bf16.msra.mxu1 %v14238_v36  ;;  %7976 = vmatprep.subr.bf16.mxu0 %v14244_v27  ;;  %v14296_v36 = vld [vmem:[%s22557_s9 + $0x714] ss:$20 sps:$4 sm:$0xff]  }
 0x954   :  { %13006 = vmatprep.subr.bf16.mxu1 %v14245_v49  ;;  %v14299_v27 = vld [vmem:[%s22557_s9 + $0x854] ss:$20 sps:$4 sm:$0xff]   ;;  %v14294_v49 = vld [vmem:[%s22557_s9 + $0x710] ss:$20 sps:$4 sm:$0xff]  }
 0x955   :  { %7411 = vmatmul.mubr.bf16.vlgmr.msra.gmra.mxu0 %v20464_v2  ;;  %v14254_v2 = vld [vmem:[%s22557_s9 + $0x5d4] ss:$20 sps:$4 sm:$0xff]  }
 0x956   :  { %7966 = vmatmul.mubr.bf16.vlgmr.msra.gmra.mxu1 %v20593_v12  ;;  %7977 = vmatpush1.bf16.msra.mxu0 %v14242_v7  ;;  %v14297_v7 = vld [vmem:[%s22557_s9 + $0x850] ss:$20 sps:$4 sm:$0xff]  }
 0x957   :  { %8008 = vmatprep.mubr.bf16.mxu0 %v20743_v4  ;;  %13007 = vmatpush3.bf16.msra.mxu1 %v14246_v5  ;;  %v14302_v5 = vld [vmem:[%s22557_s9 + $0x6ec] ss:$20 sps:$4 sm:$0xff]  }
 0x958   :  { %8051 = vmatprep.mubr.bf16.mxu1 %v20743_v4  ;;  %7978 = vmatprep.subr.bf16.mxu0 %v14249_v48  ;;  %v14259_v4 = vld [vmem:[%s22557_s9 + $0x5ac] ss:$20 sps:$4 sm:$0xff]  }
 0x959   :  { %13008 = vmatprep.subr.bf16.mxu1 %v14250_v46  ;;  %v14305_v48 = vld [vmem:[%s22557_s9 + $0x82c] ss:$20 sps:$4 sm:$0xff]   ;;  %v14300_v46 = vld [vmem:[%s22557_s9 + $0x6e8] ss:$20 sps:$4 sm:$0xff]  }
 0x95a   :  { %7979 = vmatpush1.bf16.msra.mxu0 %v14247_v44  ;;  %v14303_v44 = vld [vmem:[%s22557_s9 + $0x828] ss:$20 sps:$4 sm:$0xff]  }
 0x95b   :  { %13009 = vmatpush3.bf16.msra.mxu1 %v14251_v51  ;;  %7980 = vmatprep.subr.bf16.mxu0 %v14254_v2  ;;  %v14308_v51 = vld [vmem:[%s22557_s9 + $0x6c4] ss:$20 sps:$4 sm:$0xff]  }
 0x95c   :  { %13010 = vmatprep.subr.bf16.mxu1 %v14255_v21  ;;  %v14311_v2 = vld [vmem:[%s22557_s9 + $0x804] ss:$20 sps:$4 sm:$0xff]   ;;  %v14306_v21 = vld [vmem:[%s22557_s9 + $0x6c0] ss:$20 sps:$4 sm:$0xff]  }
 0x95e   :  { %7981 = vmatpush1.bf16.msra.mxu0 %v14252_v45  ;;  %v14309_v45 = vld [vmem:[%s22557_s9 + $0x800] ss:$20 sps:$4 sm:$0xff]  }
 0x95f   :  { %13011 = vmatpush3.bf16.msra.mxu1 %v14256_v30  ;;  %7982 = vmatprep.subr.bf16.mxu0 %v14259_v4  ;;  %v14314_v30 = vld [vmem:[%s22557_s9 + $0x69c] ss:$20 sps:$4 sm:$0xff]  }
 0x960   :  { %13012 = vmatprep.subr.bf16.mxu1 %v14260_v10  ;;  %v14317_v4 = vld [vmem:[%s22557_s9 + $0x7dc] ss:$20 sps:$4 sm:$0xff]   ;;  %v14312_v10 = vld [vmem:[%s22557_s9 + $0x698] ss:$20 sps:$4 sm:$0xff]  }
 0x962   :  { %7983 = vmatpush1.bf16.msra.mxu0 %v14257_v59  ;;  %v14315_v59 = vld [vmem:[%s22557_s9 + $0x7d8] ss:$20 sps:$4 sm:$0xff]  }
 0x963   :  { %13013 = vmatpush3.bf16.msra.mxu1 %v14261_v55  ;;  %7984 = vmatprep.subr.bf16.mxu0 %v14264_v32  ;;  %v14320_v55 = vld [vmem:[%s22557_s9 + $0x674] ss:$20 sps:$4 sm:$0xff]  }
 0x964   :  { %13014 = vmatprep.subr.bf16.mxu1 %v14265_v1  ;;  %v14323_v32 = vld [vmem:[%s22557_s9 + $0x7b4] ss:$20 sps:$4 sm:$0xff]   ;;  %v14318_v1 = vld [vmem:[%s22557_s9 + $0x670] ss:$20 sps:$4 sm:$0xff]  }
 0x966   :  { %7985 = vmatpush1.bf16.msra.mxu0 %v14262_v33  ;;  %v14321_v33 = vld [vmem:[%s22557_s9 + $0x7b0] ss:$20 sps:$4 sm:$0xff]  }
 0x967   :  { %13015 = vmatpush3.bf16.msra.mxu1 %v14266_v41  ;;  %7986 = vmatprep.subr.bf16.mxu0 %v14269_v25  ;;  %v14326_v41 = vld [vmem:[%s22557_s9 + $0x64c] ss:$20 sps:$4 sm:$0xff]  }
 0x968   :  { %13016 = vmatprep.subr.bf16.mxu1 %v14270_v3  ;;  %v14329_v25 = vld [vmem:[%s22557_s9 + $0x78c] ss:$20 sps:$4 sm:$0xff]   ;;  %v14324_v3 = vld [vmem:[%s22557_s9 + $0x648] ss:$20 sps:$4 sm:$0xff]  }
 0x96a   :  { %7987 = vmatpush1.bf16.msra.mxu0 %v14267_v14  ;;  %v14327_v14 = vld [vmem:[%s22557_s9 + $0x788] ss:$20 sps:$4 sm:$0xff]  }
 0x96b   :  { %13017 = vmatpush3.bf16.msra.mxu1 %v14271_v20  ;;  %7988 = vmatprep.subr.bf16.mxu0 %v14274_v63  ;;  %v14332_v20 = vld [vmem:[%s22557_s9 + $0x89c] ss:$20 sps:$4 sm:$0xff]   ;;  %v14335_v63 = vld [vmem:[%s22557_s9 + $0x9e4] ss:$20 sps:$4 sm:$0xff]  }
 0x96c   :  { %13018 = vmatprep.subr.bf16.mxu1 %v14275_v35  ;;  %v14330_v35 = vld [vmem:[%s22557_s9 + $0x898] ss:$20 sps:$4 sm:$0xff]  }
 0x96e   :  { %7989 = vmatpush1.bf16.msra.mxu0 %v14272_v28  ;;  %v14333_v28 = vld [vmem:[%s22557_s9 + $0x9e0] ss:$20 sps:$4 sm:$0xff]  }
 0x96f   :  { %13019 = vmatpush3.bf16.msra.mxu1 %v14276_v39  ;;  %7990 = vmatprep.subr.bf16.mxu0 %v14279_v17  ;;  %v14338_v39 = vld [vmem:[%s22557_s9 + $0x874] ss:$20 sps:$4 sm:$0xff]   ;;  %v14341_v17 = vld [vmem:[%s22557_s9 + $0x9bc] ss:$20 sps:$4 sm:$0xff]  }
 0x970   :  { %13020 = vmatprep.subr.bf16.mxu1 %v14280_v26  ;;  %v14336_v26 = vld [vmem:[%s22557_s9 + $0x870] ss:$20 sps:$4 sm:$0xff]  }
 0x972   :  { %7991 = vmatpush1.bf16.msra.mxu0 %v14277_v0  ;;  %v14339_v0 = vld [vmem:[%s22557_s9 + $0x9b8] ss:$20 sps:$4 sm:$0xff]  }
 0x973   :  { %13021 = vmatpush3.bf16.msra.mxu1 %v14281_v47  ;;  %7992 = vmatprep.subr.bf16.mxu0 %v14284_v34  ;;  %v14344_v47 = vld [vmem:[%s22557_s9 + $0x84c] ss:$20 sps:$4 sm:$0xff]   ;;  %v14342_v34 = vld [vmem:[%s22557_s9 + $0x848] ss:$20 sps:$4 sm:$0xff]  }
 0x974   :  { %8627 = vmatprep.subr.bf16.mxu1 %v14287_v9  ;;  %v14345_v9 = vld [vmem:[%s22557_s9 + $0x990] ss:$20 sps:$4 sm:$0xff]  }
 0x976   :  { %8052 = vmatmul.mubr.bf16.vlgmr.msra.gmra.mxu1 %v20593_v12  ;;  %7993 = vmatpush2.bf16.msra.mxu0 %v14282_v40  ;;  %v14353_v40 = vld [vmem:[%s22557_s9 + $0x96c] ss:$20 sps:$4 sm:$0xff]  }
 0x977   :  { %8628 = vmatpush1.bf16.msra.mxu1 %v14285_v23  ;;  %8659 = vmatprep.mubr.bf16.mxu1 %v21059_v57  ;;  %v14351_v23 = vld [vmem:[%s22557_s9 + $0x968] ss:$20 sps:$4 sm:$0xff]  }
 0x978   :  { %7994 = vmatprep.subr.bf16.mxu0 %v14290_v37  ;;  %8629 = vmatprep.subr.bf16.mxu1 %v14293_v38  ;;  %v14356_v37 = vld [vmem:[%s22557_s9 + $0x7fc] ss:$20 sps:$4 sm:$0xff]   ;;  %v14359_v38 = vld [vmem:[%s22557_s9 + $0x944] ss:$20 sps:$4 sm:$0xff]  }
 0x97a   :  { %7995 = vmatpush2.bf16.msra.mxu0 %v14288_v62  ;;  %v14354_v62 = vld [vmem:[%s22557_s9 + $0x7f8] ss:$20 sps:$4 sm:$0xff]  }
 0x97b   :  { %8630 = vmatpush1.bf16.msra.mxu1 %v14291_v60  ;;  %7996 = vmatprep.subr.bf16.mxu0 %v14296_v36  ;;  %v14357_v60 = vld [vmem:[%s22557_s9 + $0x940] ss:$20 sps:$4 sm:$0xff]  }
 0x97c   :  { %8631 = vmatprep.subr.bf16.mxu1 %v14299_v27  ;;  %v14362_v36 = vld [vmem:[%s22557_s9 + $0x7d4] ss:$20 sps:$4 sm:$0xff]   ;;  %v14365_v27 = vld [vmem:[%s22557_s9 + $0x91c] ss:$20 sps:$4 sm:$0xff]  }
 0x97e   :  { %7997 = vmatpush2.bf16.msra.mxu0 %v14294_v49  ;;  %v21209_v49 = vpop.f32.mrf.mxu0 }
 0x97f   :  { %8632 = vmatpush1.bf16.msra.mxu1 %v14297_v7  ;;  %7998 = vmatprep.subr.bf16.mxu0 %v14302_v5  ;;  %v14360_v7 = vld [vmem:[%s22557_s9 + $0x7d0] ss:$20 sps:$4 sm:$0xff]  }
 0x980   :  { %8633 = vmatprep.subr.bf16.mxu1 %v14305_v48  ;;  %v14363_v48 = vld [vmem:[%s22557_s9 + $0x918] ss:$20 sps:$4 sm:$0xff]  }
 0x982   :  { %7999 = vmatpush2.bf16.msra.mxu0 %v14300_v46  ;;  %v14368_v46 = vld [vmem:[%s22557_s9 + $0x7ac] ss:$20 sps:$4 sm:$0xff]  }
 0x983   :  { %8634 = vmatpush1.bf16.msra.mxu1 %v14303_v44  ;;  %8000 = vmatprep.subr.bf16.mxu0 %v14308_v51  ;;  %v14371_v44 = vld [vmem:[%s22557_s9 + $0x8f4] ss:$20 sps:$4 sm:$0xff]  }
 0x984   :  { %8635 = vmatprep.subr.bf16.mxu1 %v14311_v2  ;;  %v14366_v51 = vld [vmem:[%s22557_s9 + $0x7a8] ss:$20 sps:$4 sm:$0xff]  }
 0x986   :  { %8001 = vmatpush2.bf16.msra.mxu0 %v14306_v21  ;;  %v14369_v21 = vld [vmem:[%s22557_s9 + $0x8f0] ss:$20 sps:$4 sm:$0xff]  }
 0x987   :  { %8636 = vmatpush1.bf16.msra.mxu1 %v14309_v45  ;;  %8002 = vmatprep.subr.bf16.mxu0 %v14314_v30  ;;  %v14374_v45 = vld [vmem:[%s22557_s9 + $0x784] ss:$20 sps:$4 sm:$0xff]   ;;  %v14377_v30 = vld [vmem:[%s22557_s9 + $0x8cc] ss:$20 sps:$4 sm:$0xff]  }
 0x988   :  { %8637 = vmatprep.subr.bf16.mxu1 %v14317_v4  ;;  %v14372_v4 = vld [vmem:[%s22557_s9 + $0x780] ss:$20 sps:$4 sm:$0xff]  }
 0x98a   :  { %8003 = vmatpush2.bf16.msra.mxu0 %v14312_v10 }
 0x98b   :  { %8638 = vmatpush1.bf16.msra.mxu1 %v14315_v59  ;;  %8004 = vmatprep.subr.bf16.mxu0 %v14320_v55  ;;  %v14375_v59 = vld [vmem:[%s22557_s9 + $0x8c8] ss:$20 sps:$4 sm:$0xff]  }
 0x98c   :  { %8639 = vmatprep.subr.bf16.mxu1 %v14323_v32  ;;  %v14380_v55 = vld [vmem:[%s22557_s9 + $0x9dc] ss:$20 sps:$4 sm:$0xff]  }
 0x98d   :  { %v14383_v32 = vld [vmem:[%s22557_s9 + $0xb1c] ss:$20 sps:$4 sm:$0xff]  }
 0x98e   :  { %8005 = vmatpush2.bf16.msra.mxu0 %v14318_v1  ;;  %v6105_v1 = vadd.f32 %v20694_v11, %v20609_v42  ;;  %v14386_v42 = vld [vmem:[%s22557_s9 + $0x9b4] ss:$20 sps:$4 sm:$0xff]  }
 0x98f   :  { %8640 = vmatpush1.bf16.msra.mxu1 %v14321_v33  ;;  %8006 = vmatprep.subr.bf16.mxu0 %v14326_v41  ;;  %v14378_v33 = vld [vmem:[%s22557_s9 + $0x9d8] ss:$20 sps:$4 sm:$0xff]   ;;  %v6101_v41 = vadd.f32 %v20679_v52, %v20578_v19  ;;  %v14389_v11 = vld [vmem:[%s22557_s9 + $0xaf4] ss:$20 sps:$4 sm:$0xff]   ;;  %v14384_v52 = vld [vmem:[%s22557_s9 + $0x9b0] ss:$20 sps:$4 sm:$0xff]  }
 0x990   :  { %8641 = vmatprep.subr.bf16.mxu1 %v14329_v25 }
 0x992   :  { %8007 = vmatpush2.bf16.msra.mxu0 %v14324_v3  ;;  %v14381_v3 = vld [vmem:[%s22557_s9 + $0xb18] ss:$20 sps:$4 sm:$0xff]  }
 0x993   :  { %8642 = vmatpush1.bf16.msra.mxu1 %v14327_v14  ;;  %8584 = vmatprep.subr.bf16.mxu0 %v14332_v20  ;;  %v21271_v14 = vpack.c.bf16 %v6105_v1, %v6101_v41  ;;  %v14430_v41 = vld [vmem:[%s22557_s9 + $0x8a8] ss:$20 sps:$4 sm:$0xff]  }
 0x994   :  { %8643 = vmatprep.subr.bf16.mxu1 %v14335_v63  ;;  %v14387_v63 = vld [vmem:[%s22557_s9 + $0xaf0] ss:$20 sps:$4 sm:$0xff]  }
 0x995   :  { %8009 = vmatmul.mubr.bf16.vlgmr.msra.gmra.mxu0 %v20593_v12  ;;  %v14347_v12 = vld [vmem:[%s22557_s9 + $0x994] ss:$20 sps:$4 sm:$0xff]   ;;  %v21214_v5 = vpop.f32.mrf.mxu0 }
 0x996   :  { %8585 = vmatpush1.bf16.msra.mxu0 %v14330_v35  ;;  %8616 = vmatprep.mubr.bf16.mxu0 %v21059_v57  ;;  %v14392_v35 = vld [vmem:[%s22557_s9 + $0x98c] ss:$20 sps:$4 sm:$0xff]  }
 0x997   :  { %8644 = vmatpush2.bf16.msra.mxu1 %v14333_v28  ;;  %8586 = vmatprep.subr.bf16.mxu0 %v14338_v39  ;;  %v21228_v2 = vpop.f32.mrf.mxu0  ;;  %v14395_v39 = vld [vmem:[%s22557_s9 + $0xacc] ss:$20 sps:$4 sm:$0xff]  }
 0x998   :  { %8645 = vmatprep.subr.bf16.mxu1 %v14341_v17 }
 0x999   :  { %v21242_v10 = vpop.f32.mrf.mxu0 }
 0x99a   :  { %8587 = vmatpush1.bf16.msra.mxu0 %v14336_v26  ;;  %v14390_v26 = vld [vmem:[%s22557_s9 + $0x988] ss:$20 sps:$4 sm:$0xff]  }
 0x99b   :  { %8646 = vmatpush2.bf16.msra.mxu1 %v14339_v0  ;;  %8588 = vmatprep.subr.bf16.mxu0 %v14344_v47  ;;  %v21260_v25 = vpop.f32.mrf.mxu0  ;;  %v14393_v47 = vld [vmem:[%s22557_s9 + $0xac8] ss:$20 sps:$4 sm:$0xff]  }
 0x99c   :  { %8647 = vmatprep.subr.bf16.mxu1 %v14347_v12  ;;  %v14398_v12 = vld [vmem:[%s22557_s9 + $0x964] ss:$20 sps:$4 sm:$0xff]  }
 0x99e   :  { %8589 = vmatpush1.bf16.msra.mxu0 %v14342_v34 }
 0x99f   :  { %8648 = vmatpush2.bf16.msra.mxu1 %v14345_v9  ;;  %8590 = vmatprep.subr.bf16.mxu0 %v14350_v18  ;;  %v14401_v9 = vld [vmem:[%s22557_s9 + $0xaa4] ss:$20 sps:$4 sm:$0xff]   ;;  %v14396_v18 = vld [vmem:[%s22557_s9 + $0x960] ss:$20 sps:$4 sm:$0xff]  }
 0x9a0   :  { %8649 = vmatprep.subr.bf16.mxu1 %v14353_v40  ;;  %v14399_v40 = vld [vmem:[%s22557_s9 + $0xaa0] ss:$20 sps:$4 sm:$0xff]  }
 0x9a2   :  { %8591 = vmatpush1.bf16.msra.mxu0 %v14348_v15  ;;  %v14404_v15 = vld [vmem:[%s22557_s9 + $0x93c] ss:$20 sps:$4 sm:$0xff]  }
 0x9a3   :  { %8650 = vmatpush2.bf16.msra.mxu1 %v14351_v23  ;;  %8592 = vmatprep.subr.bf16.mxu0 %v14356_v37  ;;  %v14407_v23 = vld [vmem:[%s22557_s9 + $0xa7c] ss:$20 sps:$4 sm:$0xff]   ;;  %v14402_v37 = vld [vmem:[%s22557_s9 + $0x938] ss:$20 sps:$4 sm:$0xff]  }
 0x9a4   :  { %8651 = vmatprep.subr.bf16.mxu1 %v14359_v38  ;;  %v14405_v38 = vld [vmem:[%s22557_s9 + $0xa78] ss:$20 sps:$4 sm:$0xff]  }
 0x9a6   :  { %8593 = vmatpush1.bf16.msra.mxu0 %v14354_v62  ;;  %v14410_v62 = vld [vmem:[%s22557_s9 + $0x914] ss:$20 sps:$4 sm:$0xff]  }
 0x9a7   :  { %8652 = vmatpush2.bf16.msra.mxu1 %v14357_v60  ;;  %8594 = vmatprep.subr.bf16.mxu0 %v14362_v36  ;;  %v14413_v60 = vld [vmem:[%s22557_s9 + $0xa54] ss:$20 sps:$4 sm:$0xff]   ;;  %v21327_v36 = vpop.f32.mrf.mxu1 }
 0x9a8   :  { %8653 = vmatprep.subr.bf16.mxu1 %v14365_v27  ;;  %v14408_v27 = vld [vmem:[%s22557_s9 + $0x910] ss:$20 sps:$4 sm:$0xff]  }
 0x9aa   :  { %8595 = vmatpush1.bf16.msra.mxu0 %v14360_v7  ;;  %v14411_v7 = vld [vmem:[%s22557_s9 + $0xa50] ss:$20 sps:$4 sm:$0xff]  }
 0x9ab   :  { %8654 = vmatpush2.bf16.msra.mxu1 %v14363_v48  ;;  %8596 = vmatprep.subr.bf16.mxu0 %v14368_v46  ;;  %v14416_v48 = vld [vmem:[%s22557_s9 + $0x8ec] ss:$20 sps:$4 sm:$0xff]   ;;  %v6826_v46 = vpop.f32.mrf.mxu1 }
 0x9ac   :  { %8655 = vmatprep.subr.bf16.mxu1 %v14371_v44  ;;  %v14419_v44 = vld [vmem:[%s22557_s9 + $0xa2c] ss:$20 sps:$4 sm:$0xff]  }
 0x9ae   :  { %8597 = vmatpush1.bf16.msra.mxu0 %v14366_v51  ;;  %v14414_v51 = vld [vmem:[%s22557_s9 + $0x8e8] ss:$20 sps:$4 sm:$0xff]  }
 0x9af   :  { %8656 = vmatpush2.bf16.msra.mxu1 %v14369_v21  ;;  %8598 = vmatprep.subr.bf16.mxu0 %v14374_v45  ;;  %v14417_v21 = vld [vmem:[%s22557_s9 + $0xa28] ss:$20 sps:$4 sm:$0xff]   ;;  %v14422_v45 = vld [vmem:[%s22557_s9 + $0x8c4] ss:$20 sps:$4 sm:$0xff]  }
 0x9b0   :  { %8657 = vmatprep.subr.bf16.mxu1 %v14377_v30  ;;  %v6828_v30 = vpop.f32.mrf.mxu1 }
 0x9b2   :  { %8599 = vmatpush1.bf16.msra.mxu0 %v14372_v4  ;;  %v14425_v4 = vld [vmem:[%s22557_s9 + $0xa04] ss:$20 sps:$4 sm:$0xff]   ;;  %v21362_v1 = vpop.f32.mrf.mxu1 }
 0x9b3   :  { %8658 = vmatpush2.bf16.msra.mxu1 %v14375_v59  ;;  %8600 = vmatprep.subr.bf16.mxu0 %v14380_v55  ;;  %v14420_v59 = vld [vmem:[%s22557_s9 + $0x8c0] ss:$20 sps:$4 sm:$0xff]  }
 0x9b4   :  { %9235 = vmatprep.subr.bf16.mxu1 %v14383_v32  ;;  %v14423_v55 = vld [vmem:[%s22557_s9 + $0xa00] ss:$20 sps:$4 sm:$0xff]   ;;  %v14426_v32 = vld [vmem:[%s22557_s9 + $0x9e8] ss:$20 sps:$4 sm:$0xff]  }
 0x9b5   :  { %v12978_v19 = vpop.f32.mrf.mxu0 }
 0x9b6   :  { %8660 = vmatmul.mubr.bf16.vlgmr.msra.gmra.mxu1 %v20668_v53  ;;  %8601 = vmatpush2.bf16.msra.mxu0 %v14378_v33  ;;  %v14429_v33 = vld [vmem:[%s22557_s9 + $0xc5c] ss:$20 sps:$4 sm:$0xff]  }
 0x9b7   :  { %9236 = vmatpush1.bf16.msra.mxu1 %v14381_v3  ;;  %9267 = vmatprep.mubr.bf16.mxu1 %v21271_v14  ;;  %v12979_v20 = vpop.f32.mrf.mxu0  ;;  %v14427_v3 = vld [vmem:[%s22557_s9 + $0xc58] ss:$20 sps:$4 sm:$0xff]  }
 0x9b8   :  { %v21284_v28 = vadd.f32 %v12979_v20, %v12978_v19  ;;  %8602 = vmatprep.subr.bf16.mxu0 %v14386_v42  ;;  %9237 = vmatprep.subr.bf16.mxu1 %v14389_v11  ;;  %v14431_v42 = vld [vmem:[%s22557_s9 + $0x9c0] ss:$20 sps:$4 sm:$0xff]   ;;  %v21376_v11 = vpop.f32.mrf.mxu1 }
 0x9b9   :  { %v12981_v17 = vpop.f32.mrf.mxu0  ;;  %v14434_v19 = vld [vmem:[%s22557_s9 + $0xc34] ss:$20 sps:$4 sm:$0xff]  }
 0x9ba   :  { %8603 = vmatpush2.bf16.msra.mxu0 %v14384_v52  ;;  %v14435_v20 = vld [vmem:[%s22557_s9 + $0x880] ss:$20 sps:$4 sm:$0xff]  }
 0x9bb   :  { %9238 = vmatpush1.bf16.msra.mxu1 %v14387_v63  ;;  %v12982_v0 = vpop.f32.mrf.mxu0  ;;  %8604 = vmatprep.subr.bf16.mxu0 %v14392_v35  ;;  %v14432_v35 = vld [vmem:[%s22557_s9 + $0xc30] ss:$20 sps:$4 sm:$0xff]  }
 0x9bc   :  { %v21298_v34 = vadd.f32 %v12982_v0, %v12981_v17  ;;  %9239 = vmatprep.subr.bf16.mxu1 %v14395_v39  ;;  %v14436_v39 = vld [vmem:[%s22557_s9 + $0x998] ss:$20 sps:$4 sm:$0xff]  }
 0x9bd   :  { %v14440_v0 = vld [vmem:[%s22557_s9 + $0x858] ss:$20 sps:$4 sm:$0xff]  }
 0x9be   :  { %8605 = vmatpush2.bf16.msra.mxu0 %v14390_v26 }
 0x9bf   :  { %9240 = vmatpush1.bf16.msra.mxu1 %v14393_v47  ;;  %8606 = vmatprep.subr.bf16.mxu0 %v14398_v12  ;;  %v14437_v47 = vld [vmem:[%s22557_s9 + $0xc08] ss:$20 sps:$4 sm:$0xff]   ;;  %v14441_v12 = vld [vmem:[%s22557_s9 + $0x970] ss:$20 sps:$4 sm:$0xff]  }
 0x9c0   :  { %9241 = vmatprep.subr.bf16.mxu1 %v14401_v9  ;;  %v14444_v9 = vld [vmem:[%s22557_s9 + $0xbe4] ss:$20 sps:$4 sm:$0xff]  }
 0x9c2   :  { %8607 = vmatpush2.bf16.msra.mxu0 %v14396_v18  ;;  %v14445_v18 = vld [vmem:[%s22557_s9 + $0x830] ss:$20 sps:$4 sm:$0xff]  }
 0x9c3   :  { %9242 = vmatpush1.bf16.msra.mxu1 %v14399_v40  ;;  %8608 = vmatprep.subr.bf16.mxu0 %v14404_v15  ;;  %v14442_v40 = vld [vmem:[%s22557_s9 + $0xbe0] ss:$20 sps:$4 sm:$0xff]   ;;  %v14446_v15 = vld [vmem:[%s22557_s9 + $0x948] ss:$20 sps:$4 sm:$0xff]  }
 0x9c4   :  { %9243 = vmatprep.subr.bf16.mxu1 %v14407_v23  ;;  %v14449_v23 = vld [vmem:[%s22557_s9 + $0xbbc] ss:$20 sps:$4 sm:$0xff]  }
 0x9c6   :  { %8609 = vmatpush2.bf16.msra.mxu0 %v14402_v37  ;;  %v14450_v37 = vld [vmem:[%s22557_s9 + $0x808] ss:$20 sps:$4 sm:$0xff]  }
 0x9c7   :  { %9244 = vmatpush1.bf16.msra.mxu1 %v14405_v38  ;;  %8610 = vmatprep.subr.bf16.mxu0 %v14410_v62  ;;  %v14447_v38 = vld [vmem:[%s22557_s9 + $0xbb8] ss:$20 sps:$4 sm:$0xff]   ;;  %v14451_v62 = vld [vmem:[%s22557_s9 + $0x920] ss:$20 sps:$4 sm:$0xff]  }
 0x9c8   :  { %9245 = vmatprep.subr.bf16.mxu1 %v14413_v60  ;;  %v14454_v60 = vld [vmem:[%s22557_s9 + $0xb94] ss:$20 sps:$4 sm:$0xff]  }
 0x9ca   :  { %8611 = vmatpush2.bf16.msra.mxu0 %v14408_v27  ;;  %v14455_v27 = vld [vmem:[%s22557_s9 + $0x7e0] ss:$20 sps:$4 sm:$0xff]  }
 0x9cb   :  { %9246 = vmatpush1.bf16.msra.mxu1 %v14411_v7  ;;  %8612 = vmatprep.subr.bf16.mxu0 %v14416_v48  ;;  %v14452_v7 = vld [vmem:[%s22557_s9 + $0xb90] ss:$20 sps:$4 sm:$0xff]   ;;  %v14456_v48 = vld [vmem:[%s22557_s9 + $0x8f8] ss:$20 sps:$4 sm:$0xff]  }
 0x9cc   :  { %9247 = vmatprep.subr.bf16.mxu1 %v14419_v44  ;;  %v14460_v44 = vld [vmem:[%s22557_s9 + $0x7b8] ss:$20 sps:$4 sm:$0xff]  }
 0x9ce   :  { %8613 = vmatpush2.bf16.msra.mxu0 %v14414_v51  ;;  %v14457_v51 = vld [vmem:[%s22557_s9 + $0xb68] ss:$20 sps:$4 sm:$0xff]  }
 0x9cf   :  { %9248 = vmatpush1.bf16.msra.mxu1 %v14417_v21  ;;  %8614 = vmatprep.subr.bf16.mxu0 %v14422_v45  ;;  %v14461_v21 = vld [vmem:[%s22557_s9 + $0x8d0] ss:$20 sps:$4 sm:$0xff]  }
 0x9d0   :  { %9249 = vmatprep.subr.bf16.mxu1 %v14425_v4  ;;  %v14464_v45 = vld [vmem:[%s22557_s9 + $0xb44] ss:$20 sps:$4 sm:$0xff]   ;;  %v14462_v4 = vld [vmem:[%s22557_s9 + $0xb40] ss:$20 sps:$4 sm:$0xff]  }
 0x9d2   :  { %8615 = vmatpush2.bf16.msra.mxu0 %v14420_v59  ;;  %v14468_v59 = vld [vmem:[%s22557_s9 + $0xb24] ss:$20 sps:$4 sm:$0xff]  }
 0x9d3   :  { %9250 = vmatpush1.bf16.msra.mxu1 %v14423_v55  ;;  %13028 = vmatprep.subr.bf16.mxu0 %v14426_v32  ;;  %v14469_v55 = vld [vmem:[%s22557_s9 + $0xc68] ss:$20 sps:$4 sm:$0xff]   ;;  %v14466_v32 = vld [vmem:[%s22557_s9 + $0xb20] ss:$20 sps:$4 sm:$0xff]  }
 0x9d4   :  { %9251 = vmatprep.subr.bf16.mxu1 %v14429_v33  ;;  %v14470_v33 = vld [vmem:[%s22557_s9 + $0xb28] ss:$20 sps:$4 sm:$0xff]  }
 0x9d5   :  { %8617 = vmatmul.mubr.bf16.vlgmr.msra.gmra.mxu0 %v20668_v53 }
 0x9d6   :  { %v7369_v52 = vpop.f32.mrf.mxu1  ;;  %13029 = vmatpush3.bf16.msra.mxu0 %v14430_v41  ;;  %8702 = vmatprep.mubr.bf16.mxu0 %v21059_v57  ;;  %v14439_v57 = vld [vmem:[%s22557_s9 + $0xc0c] ss:$20 sps:$4 sm:$0xff]   ;;  %v14473_v41 = vld [vmem:[%s22557_s9 + $0xafc] ss:$20 sps:$4 sm:$0xff]  }
 0x9d7   :  { %v21386_v63 = vadd.f32 %v7369_v52, %v6826_v46  ;;  %9252 = vmatpush2.bf16.msra.mxu1 %v14427_v3  ;;  %13030 = vmatprep.subr.bf16.mxu0 %v14431_v42  ;;  %v14459_v46 = vld [vmem:[%s22557_s9 + $0xb6c] ss:$20 sps:$4 sm:$0xff]  }
 0x9d8   :  { %v7371_v17 = vpop.f32.mrf.mxu1  ;;  %9253 = vmatprep.subr.bf16.mxu1 %v14434_v19  ;;  %v14474_v3 = vld [vmem:[%s22557_s9 + $0xc40] ss:$20 sps:$4 sm:$0xff]   ;;  %v14471_v42 = vld [vmem:[%s22557_s9 + $0xaf8] ss:$20 sps:$4 sm:$0xff]  }
 0x9d9   :  { %v21397_v26 = vadd.f32 %v7371_v17, %v6828_v30  ;;  %v14465_v30 = vld [vmem:[%s22557_s9 + $0x790] ss:$20 sps:$4 sm:$0xff]   ;;  %v14475_v19 = vld [vmem:[%s22557_s9 + $0xb00] ss:$20 sps:$4 sm:$0xff]   ;;  %v14479_v52 = vld [vmem:[%s22557_s9 + $0xc18] ss:$20 sps:$4 sm:$0xff]  }
 0x9da   :  { %13031 = vmatpush3.bf16.msra.mxu0 %v14435_v20  ;;  %v14476_v20 = vld [vmem:[%s22557_s9 + $0xad0] ss:$20 sps:$4 sm:$0xff]   ;;  %v14481_v17 = vld [vmem:[%s22557_s9 + $0xaa8] ss:$20 sps:$4 sm:$0xff]  }
 0x9db   :  { %9254 = vmatpush2.bf16.msra.mxu1 %v14432_v35  ;;  %13032 = vmatprep.subr.bf16.mxu0 %v14436_v39  ;;  %v14480_v35 = vld [vmem:[%s22557_s9 + $0xad8] ss:$20 sps:$4 sm:$0xff]   ;;  %v14484_v39 = vld [vmem:[%s22557_s9 + $0xbf0] ss:$20 sps:$4 sm:$0xff]  }
 0x9dc   :  { %9255 = vmatprep.subr.bf16.mxu1 %v14439_v57  ;;  %v14485_v57 = vld [vmem:[%s22557_s9 + $0xab0] ss:$20 sps:$4 sm:$0xff]  }
 0x9de   :  { %13033 = vmatpush3.bf16.msra.mxu0 %v14440_v0  ;;  %v14488_v0 = vld [vmem:[%s22557_s9 + $0xa84] ss:$20 sps:$4 sm:$0xff]  }
 0x9df   :  { %9256 = vmatpush2.bf16.msra.mxu1 %v14437_v47  ;;  %13034 = vmatprep.subr.bf16.mxu0 %v14441_v12  ;;  %v14489_v47 = vld [vmem:[%s22557_s9 + $0xbc8] ss:$20 sps:$4 sm:$0xff]   ;;  %v14486_v12 = vld [vmem:[%s22557_s9 + $0xa80] ss:$20 sps:$4 sm:$0xff]  }
 0x9e0   :  { %9257 = vmatprep.subr.bf16.mxu1 %v14444_v9  ;;  %v14490_v9 = vld [vmem:[%s22557_s9 + $0xa88] ss:$20 sps:$4 sm:$0xff]  }
 0x9e2   :  { %13035 = vmatpush3.bf16.msra.mxu0 %v14445_v18  ;;  %v14493_v18 = vld [vmem:[%s22557_s9 + $0xa5c] ss:$20 sps:$4 sm:$0xff]  }
 0x9e3   :  { %9258 = vmatpush2.bf16.msra.mxu1 %v14442_v40  ;;  %13036 = vmatprep.subr.bf16.mxu0 %v14446_v15  ;;  %v14494_v40 = vld [vmem:[%s22557_s9 + $0xba0] ss:$20 sps:$4 sm:$0xff]   ;;  %v14491_v15 = vld [vmem:[%s22557_s9 + $0xa58] ss:$20 sps:$4 sm:$0xff]  }
 0x9e4   :  { %9259 = vmatprep.subr.bf16.mxu1 %v14449_v23 }
 0x9e6   :  { %13037 = vmatpush3.bf16.msra.mxu0 %v14450_v37  ;;  %v14495_v37 = vld [vmem:[%s22557_s9 + $0xa60] ss:$20 sps:$4 sm:$0xff]  }
 0x9e7   :  { %9260 = vmatpush2.bf16.msra.mxu1 %v14447_v38  ;;  %13038 = vmatprep.subr.bf16.mxu0 %v14451_v62  ;;  %v14498_v38 = vld [vmem:[%s22557_s9 + $0xa34] ss:$20 sps:$4 sm:$0xff]   ;;  %v14499_v62 = vld [vmem:[%s22557_s9 + $0xb78] ss:$20 sps:$4 sm:$0xff]  }
 0x9e8   :  { %9261 = vmatprep.subr.bf16.mxu1 %v14454_v60  ;;  %v14496_v60 = vld [vmem:[%s22557_s9 + $0xa30] ss:$20 sps:$4 sm:$0xff]  }
 0x9ea   :  { %13039 = vmatpush3.bf16.msra.mxu0 %v14455_v27 }
 0x9eb   :  { %9262 = vmatpush2.bf16.msra.mxu1 %v14452_v7  ;;  %13040 = vmatprep.subr.bf16.mxu0 %v14456_v48  ;;  %v14500_v7 = vld [vmem:[%s22557_s9 + $0xa38] ss:$20 sps:$4 sm:$0xff]  }
 0x9ec   :  { %9263 = vmatprep.subr.bf16.mxu1 %v14459_v46  ;;  %v14503_v48 = vld [vmem:[%s22557_s9 + $0xa0c] ss:$20 sps:$4 sm:$0xff]   ;;  %v14504_v46 = vld [vmem:[%s22557_s9 + $0xb50] ss:$20 sps:$4 sm:$0xff]  }
 0x9ee   :  { %13041 = vmatpush3.bf16.msra.mxu0 %v14460_v44  ;;  %v14501_v44 = vld [vmem:[%s22557_s9 + $0xa08] ss:$20 sps:$4 sm:$0xff]  }
 0x9ef   :  { %9264 = vmatpush2.bf16.msra.mxu1 %v14457_v51  ;;  %13042 = vmatprep.subr.bf16.mxu0 %v14461_v21  ;;  %v14505_v21 = vld [vmem:[%s22557_s9 + $0xa10] ss:$20 sps:$4 sm:$0xff]  }
 0x9f0   :  { %9265 = vmatprep.subr.bf16.mxu1 %v14464_v45  ;;  %v14508_v45 = vld [vmem:[%s22557_s9 + $0xc64] ss:$20 sps:$4 sm:$0xff]  }
 0x9f2   :  { %13043 = vmatpush3.bf16.msra.mxu0 %v14465_v30  ;;  %v21568_v30 = vpop.f32.mrf.mxu1 }
 0x9f3   :  { %9266 = vmatpush2.bf16.msra.mxu1 %v14462_v4  ;;  %9278 = vmatprep.subr.bf16.mxu0 %v14468_v59  ;;  %v14511_v4 = vld [vmem:[%s22557_s9 + $0xda4] ss:$20 sps:$4 sm:$0xff]   ;;  %v6115_v59 = vadd.f32 %v20730_v22, %v20673_v31  ;;  %v14514_v31 = vld [vmem:[%s22557_s9 + $0xc3c] ss:$20 sps:$4 sm:$0xff]  }
 0x9f4   :  { %13050 = vmatprep.subr.bf16.mxu1 %v14469_v55  ;;  %v14506_v55 = vld [vmem:[%s22557_s9 + $0xc60] ss:$20 sps:$4 sm:$0xff]   ;;  %v14517_v22 = vld [vmem:[%s22557_s9 + $0xd7c] ss:$20 sps:$4 sm:$0xff]  }
 0x9f5   :  { %8703 = vmatmul.mubr.bf16.vlgmr.msra.gmra.mxu0 %v20668_v53  ;;  %v14478_v53 = vld [vmem:[%s22557_s9 + $0xad4] ss:$20 sps:$4 sm:$0xff]   ;;  %v7326_v23 = vpop.f32.mrf.mxu0 }
 0x9f6   :  { %9268 = vmatmul.mubr.bf16.vlgmr.msra.gmra.mxu1 %v20702_v56  ;;  %9279 = vmatpush1.bf16.msra.mxu0 %v14466_v32  ;;  %v6111_v32 = vadd.f32 %v20712_v16, %v20639_v43  ;;  %v7327_v43 = vadd.f32 %v7326_v23, %v21214_v5  ;;  %v14515_v5 = vld [vmem:[%s22557_s9 + $0xd78] ss:$20 sps:$4 sm:$0xff]  }
 0x9f7   :  { %9310 = vmatprep.mubr.bf16.mxu0 %v21271_v14  ;;  %13051 = vmatpush3.bf16.msra.mxu1 %v14470_v33  ;;  %v7328_v27 = vpop.f32.mrf.mxu0 }
 0x9f8   :  { %9353 = vmatprep.mubr.bf16.mxu1 %v21271_v14  ;;  %9280 = vmatprep.subr.bf16.mxu0 %v14473_v41  ;;  %v14483_v14 = vld [vmem:[%s22557_s9 + $0xaac] ss:$20 sps:$4 sm:$0xff]  }
 0x9f9   :  { %13052 = vmatprep.subr.bf16.mxu1 %v14474_v3  ;;  %v7330_v51 = vpop.f32.mrf.mxu0  ;;  %v14509_v41 = vld [vmem:[%s22557_s9 + $0xda0] ss:$20 sps:$4 sm:$0xff]   ;;  %v21583_v3 = vpop.f32.mrf.mxu1 }
 0x9fa   :  { %9281 = vmatpush1.bf16.msra.mxu0 %v14471_v42  ;;  %v21591_v42 = vpack.c.bf16 %v6115_v59, %v6111_v32  ;;  %v14544_v59 = vld [vmem:[%s22557_s9 + $0xb74] ss:$20 sps:$4 sm:$0xff]   ;;  %v14542_v32 = vld [vmem:[%s22557_s9 + $0xb70] ss:$20 sps:$4 sm:$0xff]  }
 0x9fb   :  { %13053 = vmatpush3.bf16.msra.mxu1 %v14475_v19  ;;  %9282 = vmatprep.subr.bf16.mxu0 %v14478_v53  ;;  %v7332_v33 = vpop.f32.mrf.mxu0  ;;  %v14512_v53 = vld [vmem:[%s22557_s9 + $0xc38] ss:$20 sps:$4 sm:$0xff]  }
 0x9fc   :  { %13054 = vmatprep.subr.bf16.mxu1 %v14479_v52  ;;  %v7329_v52 = vadd.f32 %v7328_v27, %v21228_v2  ;;  %v14523_v2 = vld [vmem:[%s22557_s9 + $0xd54] ss:$20 sps:$4 sm:$0xff]  }
 0x9fd   :  { %v14524_v27 = vld [vmem:[%s22557_s9 + $0xbe8] ss:$20 sps:$4 sm:$0xff]  }
 0x9fe   :  { %9283 = vmatpush1.bf16.msra.mxu0 %v14476_v20 }
 0x9ff   :  { %13055 = vmatpush3.bf16.msra.mxu1 %v14480_v35  ;;  %9284 = vmatprep.subr.bf16.mxu0 %v14483_v14  ;;  %v14520_v14 = vld [vmem:[%s22557_s9 + $0xc14] ss:$20 sps:$4 sm:$0xff]  }
 0xa00   :  { %13056 = vmatprep.subr.bf16.mxu1 %v14484_v39 }
 0xa02   :  { %9285 = vmatpush1.bf16.msra.mxu0 %v14481_v17 }
 0xa03   :  { %13057 = vmatpush3.bf16.msra.mxu1 %v14485_v57  ;;  %9286 = vmatprep.subr.bf16.mxu0 %v14488_v0  ;;  %v7331_v57 = vadd.f32 %v7330_v51, %v21242_v10  ;;  %v14521_v10 = vld [vmem:[%s22557_s9 + $0xd50] ss:$20 sps:$4 sm:$0xff]  }
 0xa04   :  { %13058 = vmatprep.subr.bf16.mxu1 %v14489_v47  ;;  %v14538_v51 = vld [vmem:[%s22557_s9 + $0xb9c] ss:$20 sps:$4 sm:$0xff]  }
 0xa06   :  { %9287 = vmatpush1.bf16.msra.mxu0 %v14486_v12 }
 0xa07   :  { %13059 = vmatpush3.bf16.msra.mxu1 %v14490_v9  ;;  %9288 = vmatprep.subr.bf16.mxu0 %v14493_v18  ;;  %v14518_v18 = vld [vmem:[%s22557_s9 + $0xc10] ss:$20 sps:$4 sm:$0xff]  }
 0xa08   :  { %13060 = vmatprep.subr.bf16.mxu1 %v14494_v40  ;;  %v7333_v40 = vadd.f32 %v7332_v33, %v21260_v25  ;;  %v14529_v25 = vld [vmem:[%s22557_s9 + $0xd2c] ss:$20 sps:$4 sm:$0xff]   ;;  %v14545_v33 = vld [vmem:[%s22557_s9 + $0xcb0] ss:$20 sps:$4 sm:$0xff]  }
 0xa0a   :  { %9289 = vmatpush1.bf16.msra.mxu0 %v14491_v15 }
 0xa0b   :  { %13061 = vmatpush3.bf16.msra.mxu1 %v14495_v37  ;;  %9290 = vmatprep.subr.bf16.mxu0 %v14498_v38 }
 0xa0c   :  { %13062 = vmatprep.subr.bf16.mxu1 %v14499_v62 }
 0xa0e   :  { %9291 = vmatpush1.bf16.msra.mxu0 %v14496_v60 }
 0xa0f   :  { %13063 = vmatpush3.bf16.msra.mxu1 %v14500_v7  ;;  %9292 = vmatprep.subr.bf16.mxu0 %v14503_v48  ;;  %v14527_v7 = vld [vmem:[%s22557_s9 + $0xd28] ss:$20 sps:$4 sm:$0xff]   ;;  %v14532_v48 = vld [vmem:[%s22557_s9 + $0xbc4] ss:$20 sps:$4 sm:$0xff]  }
 0xa10   :  { %13064 = vmatprep.subr.bf16.mxu1 %v14504_v46  ;;  %v14530_v46 = vld [vmem:[%s22557_s9 + $0xbc0] ss:$20 sps:$4 sm:$0xff]  }
 0xa12   :  { %9293 = vmatpush1.bf16.msra.mxu0 %v14501_v44  ;;  %v14533_v44 = vld [vmem:[%s22557_s9 + $0xd00] ss:$20 sps:$4 sm:$0xff]  }
 0xa13   :  { %13065 = vmatpush3.bf16.msra.mxu1 %v14505_v21  ;;  %9294 = vmatprep.subr.bf16.mxu0 %v14508_v45  ;;  %v14541_v21 = vld [vmem:[%s22557_s9 + $0xcdc] ss:$20 sps:$4 sm:$0xff]   ;;  %v14536_v45 = vld [vmem:[%s22557_s9 + $0xb98] ss:$20 sps:$4 sm:$0xff]  }
 0xa14   :  { %9929 = vmatprep.subr.bf16.mxu1 %v14511_v4  ;;  %v14539_v4 = vld [vmem:[%s22557_s9 + $0xcd8] ss:$20 sps:$4 sm:$0xff]  }
 0xa15   :  { %v13000_v16 = vpop.f32.mrf.mxu0 }
 0xa16   :  { %v7967_v19 = vpop.f32.mrf.mxu1  ;;  %9354 = vmatmul.mubr.bf16.vlgmr.msra.gmra.mxu1 %v20702_v56  ;;  %9295 = vmatpush2.bf16.msra.mxu0 %v14506_v55  ;;  %v14547_v55 = vld [vmem:[%s22557_s9 + $0xcb4] ss:$20 sps:$4 sm:$0xff]  }
 0xa17   :  { %v21599_v20 = vadd.f32 %v7967_v19, %v7327_v43  ;;  %9930 = vmatpush1.bf16.msra.mxu1 %v14509_v41  ;;  %9961 = vmatprep.mubr.bf16.mxu1 %v21591_v42  ;;  %v13001_v35 = vpop.f32.mrf.mxu0  ;;  %v14550_v41 = vld [vmem:[%s22557_s9 + $0xb4c] ss:$20 sps:$4 sm:$0xff]   ;;  %v14551_v43 = vld [vmem:[%s22557_s9 + $0xc88] ss:$20 sps:$4 sm:$0xff]   ;;  %v14559_v19 = vld [vmem:[%s22557_s9 + $0xee4] ss:$20 sps:$4 sm:$0xff]  }
 0xa18   :  { %v13002_v39 = vadd.f32 %v13001_v35, %v13000_v16  ;;  %v7969_v17 = vpop.f32.mrf.mxu1  ;;  %9296 = vmatprep.subr.bf16.mxu0 %v14514_v31  ;;  %9931 = vmatprep.subr.bf16.mxu1 %v14517_v22  ;;  %v14553_v31 = vld [vmem:[%s22557_s9 + $0xc8c] ss:$20 sps:$4 sm:$0xff]   ;;  %v14548_v22 = vld [vmem:[%s22557_s9 + $0xb48] ss:$20 sps:$4 sm:$0xff]  }
 0xa19   :  { %v21612_v0 = vadd.f32 %v7969_v17, %v7329_v52  ;;  %v13003_v47 = vpop.f32.mrf.mxu0  ;;  %v14556_v16 = vld [vmem:[%s22557_s9 + $0xd9c] ss:$20 sps:$4 sm:$0xff]   ;;  %v14557_v52 = vld [vmem:[%s22557_s9 + $0xee0] ss:$20 sps:$4 sm:$0xff]   ;;  %v14563_v17 = vld [vmem:[%s22557_s9 + $0xeb8] ss:$20 sps:$4 sm:$0xff]  }
 0xa1a   :  { %v21615_v12 = vadd.f32 %v13002_v39, %v21284_v28  ;;  %v7971_v9 = vpop.f32.mrf.mxu1  ;;  %9297 = vmatpush2.bf16.msra.mxu0 %v14512_v53  ;;  %v14526_v28 = vld [vmem:[%s22557_s9 + $0xbec] ss:$20 sps:$4 sm:$0xff]   ;;  %v14562_v35 = vld [vmem:[%s22557_s9 + $0xd74] ss:$20 sps:$4 sm:$0xff]   ;;  %v14560_v39 = vld [vmem:[%s22557_s9 + $0xd70] ss:$20 sps:$4 sm:$0xff]  }
 0xa1b   :  { %v21621_v15 = vadd.f32 %v7971_v9, %v7331_v57  ;;  %9932 = vmatpush1.bf16.msra.mxu1 %v14515_v5  ;;  %v13004_v23 = vpop.f32.mrf.mxu0  ;;  %9298 = vmatprep.subr.bf16.mxu0 %v14520_v14  ;;  %v14554_v53 = vld [vmem:[%s22557_s9 + $0xd98] ss:$20 sps:$4 sm:$0xff]   ;;  %v14565_v5 = vld [vmem:[%s22557_s9 + $0xebc] ss:$20 sps:$4 sm:$0xff]  }
 0xa1c   :  { %v13005_v37 = vadd.f32 %v13004_v23, %v13003_v47  ;;  %v7973_v38 = vpop.f32.mrf.mxu1  ;;  %9933 = vmatprep.subr.bf16.mxu1 %v14523_v2  ;;  %v14568_v2 = vld [vmem:[%s22557_s9 + $0xd4c] ss:$20 sps:$4 sm:$0xff]   ;;  %v14569_v23 = vld [vmem:[%s22557_s9 + $0xe90] ss:$20 sps:$4 sm:$0xff]  }
 0xa1d   :  { %v21632_v62 = vadd.f32 %v7973_v38, %v7333_v40 }
 0xa1e   :  { %v21635_v60 = vadd.f32 %v13005_v37, %v21298_v34  ;;  %9299 = vmatpush2.bf16.msra.mxu0 %v14518_v18  ;;  %v14535_v34 = vld [vmem:[%s22557_s9 + $0xd04] ss:$20 sps:$4 sm:$0xff]   ;;  %v14566_v18 = vld [vmem:[%s22557_s9 + $0xd48] ss:$20 sps:$4 sm:$0xff]   ;;  %v14577_v37 = vld [vmem:[%s22557_s9 + $0xe6c] ss:$20 sps:$4 sm:$0xff]  }
 0xa1f   :  { %9934 = vmatpush1.bf16.msra.mxu1 %v14521_v10  ;;  %9300 = vmatprep.subr.bf16.mxu0 %v14526_v28  ;;  %v14574_v10 = vld [vmem:[%s22557_s9 + $0xd24] ss:$20 sps:$4 sm:$0xff]  }
 0xa20   :  { %9935 = vmatprep.subr.bf16.mxu1 %v14529_v25 }
 0xa22   :  { %9301 = vmatpush2.bf16.msra.mxu0 %v14524_v27  ;;  %v14575_v27 = vld [vmem:[%s22557_s9 + $0xe68] ss:$20 sps:$4 sm:$0xff]  }
 0xa23   :  { %9936 = vmatpush1.bf16.msra.mxu1 %v14527_v7  ;;  %9302 = vmatprep.subr.bf16.mxu0 %v14532_v48  ;;  %v14580_v7 = vld [vmem:[%s22557_s9 + $0xcfc] ss:$20 sps:$4 sm:$0xff]   ;;  %v14583_v48 = vld [vmem:[%s22557_s9 + $0xe44] ss:$20 sps:$4 sm:$0xff]  }
 0xa24   :  { %9937 = vmatprep.subr.bf16.mxu1 %v14535_v34  ;;  %v14581_v34 = vld [vmem:[%s22557_s9 + $0xe40] ss:$20 sps:$4 sm:$0xff]  }
 0xa26   :  { %9303 = vmatpush2.bf16.msra.mxu0 %v14530_v46  ;;  %v14586_v46 = vld [vmem:[%s22557_s9 + $0xcd4] ss:$20 sps:$4 sm:$0xff]  }
 0xa27   :  { %9938 = vmatpush1.bf16.msra.mxu1 %v14533_v44  ;;  %9304 = vmatprep.subr.bf16.mxu0 %v14538_v51  ;;  %v14589_v44 = vld [vmem:[%s22557_s9 + $0xe1c] ss:$20 sps:$4 sm:$0xff]  }
 0xa28   :  { %9939 = vmatprep.subr.bf16.mxu1 %v14541_v21  ;;  %v14584_v51 = vld [vmem:[%s22557_s9 + $0xcd0] ss:$20 sps:$4 sm:$0xff]   ;;  %v14587_v21 = vld [vmem:[%s22557_s9 + $0xe18] ss:$20 sps:$4 sm:$0xff]  }
 0xa2a   :  { %9305 = vmatpush2.bf16.msra.mxu0 %v14536_v45  ;;  %v14592_v45 = vld [vmem:[%s22557_s9 + $0xcac] ss:$20 sps:$4 sm:$0xff]  }
 0xa2b   :  { %9940 = vmatpush1.bf16.msra.mxu1 %v14539_v4  ;;  %9306 = vmatprep.subr.bf16.mxu0 %v14544_v59  ;;  %v14595_v4 = vld [vmem:[%s22557_s9 + $0xdf4] ss:$20 sps:$4 sm:$0xff]  }
 0xa2c   :  { %9941 = vmatprep.subr.bf16.mxu1 %v14547_v55  ;;  %v14590_v59 = vld [vmem:[%s22557_s9 + $0xca8] ss:$20 sps:$4 sm:$0xff]   ;;  %v14593_v55 = vld [vmem:[%s22557_s9 + $0xdf0] ss:$20 sps:$4 sm:$0xff]  }
 0xa2e   :  { %9307 = vmatpush2.bf16.msra.mxu0 %v14542_v32  ;;  %v14598_v32 = vld [vmem:[%s22557_s9 + $0xc84] ss:$20 sps:$4 sm:$0xff]  }
 0xa2f   :  { %9942 = vmatpush1.bf16.msra.mxu1 %v14545_v33  ;;  %9308 = vmatprep.subr.bf16.mxu0 %v14550_v41  ;;  %v14601_v33 = vld [vmem:[%s22557_s9 + $0xdcc] ss:$20 sps:$4 sm:$0xff]  }
 0xa30   :  { %9943 = vmatprep.subr.bf16.mxu1 %v14553_v31  ;;  %v14596_v41 = vld [vmem:[%s22557_s9 + $0xc80] ss:$20 sps:$4 sm:$0xff]   ;;  %v14599_v31 = vld [vmem:[%s22557_s9 + $0xdc8] ss:$20 sps:$4 sm:$0xff]  }
 0xa32   :  { %9309 = vmatpush2.bf16.msra.mxu0 %v14548_v22  ;;  %v14604_v22 = vld [vmem:[%s22557_s9 + $0xedc] ss:$20 sps:$4 sm:$0xff]  }
 0xa33   :  { %9944 = vmatpush1.bf16.msra.mxu1 %v14551_v43  ;;  %9886 = vmatprep.subr.bf16.mxu0 %v14556_v16  ;;  %v14607_v43 = vld [vmem:[%s22557_s9 + $0x101c] ss:$20 sps:$4 sm:$0xff]   ;;  %v6125_v16 = vadd.f32 %v20766_v6, %v20745_v58  ;;  %v14613_v58 = vld [vmem:[%s22557_s9 + $0xff4] ss:$20 sps:$4 sm:$0xff]  }
 0xa34   :  { %9945 = vmatprep.subr.bf16.mxu1 %v14559_v19  ;;  %v14602_v19 = vld [vmem:[%s22557_s9 + $0xed8] ss:$20 sps:$4 sm:$0xff]  }
 0xa35   :  { %9311 = vmatmul.mubr.bf16.vlgmr.msra.gmra.mxu0 %v20702_v56  ;;  %v14571_v56 = vld [vmem:[%s22557_s9 + $0xe94] ss:$20 sps:$4 sm:$0xff]  }
 0xa36   :  { %v13022_v14 = vpop.f32.mrf.mxu1  ;;  %9887 = vmatpush1.bf16.msra.mxu0 %v14554_v53  ;;  %9918 = vmatprep.mubr.bf16.mxu0 %v21591_v42  ;;  %v6121_v53 = vadd.f32 %v20751_v29, %v20707_v54  ;;  %v14608_v54 = vld [vmem:[%s22557_s9 + $0xeb0] ss:$20 sps:$4 sm:$0xff]  }
 0xa37   :  { %9946 = vmatpush2.bf16.msra.mxu1 %v14557_v52  ;;  %9888 = vmatprep.subr.bf16.mxu0 %v14562_v35  ;;  %v14605_v52 = vld [vmem:[%s22557_s9 + $0x1018] ss:$20 sps:$4 sm:$0xff]   ;;  %v14610_v35 = vld [vmem:[%s22557_s9 + $0xeb4] ss:$20 sps:$4 sm:$0xff]   ;;  %v14611_v29 = vld [vmem:[%s22557_s9 + $0xff0] ss:$20 sps:$4 sm:$0xff]  }
 0xa38   :  { %v13023_v57 = vpop.f32.mrf.mxu1  ;;  %9947 = vmatprep.subr.bf16.mxu1 %v14565_v5  ;;  %v21817_v6 = vpack.c.bf16 %v6125_v16, %v6121_v53  ;;  %v14616_v5 = vld [vmem:[%s22557_s9 + $0xe8c] ss:$20 sps:$4 sm:$0xff]   ;;  %v14665_v16 = vld [vmem:[%s22557_s9 + $0xe70] ss:$20 sps:$4 sm:$0xff]  }
 0xa39   :  { %v13024_v47 = vadd.f32 %v13023_v57, %v13022_v14  ;;  %v14619_v14 = vld [vmem:[%s22557_s9 + $0xfcc] ss:$20 sps:$4 sm:$0xff]   ;;  %v14625_v57 = vld [vmem:[%s22557_s9 + $0xfa4] ss:$20 sps:$4 sm:$0xff]  }
 0xa3a   :  { %v13025_v9 = vpop.f32.mrf.mxu1  ;;  %9889 = vmatpush1.bf16.msra.mxu0 %v14560_v39  ;;  %v14614_v39 = vld [vmem:[%s22557_s9 + $0xe88] ss:$20 sps:$4 sm:$0xff]   ;;  %v14669_v53 = vld [vmem:[%s22557_s9 + $0xd30] ss:$20 sps:$4 sm:$0xff]  }
 0xa3b   :  { %v21727_v40 = vadd.f32 %v13024_v47, %v21615_v12  ;;  %9948 = vmatpush2.bf16.msra.mxu1 %v14563_v17  ;;  %9890 = vmatprep.subr.bf16.mxu0 %v14568_v2  ;;  %v14572_v12 = vld [vmem:[%s22557_s9 + $0xd20] ss:$20 sps:$4 sm:$0xff]   ;;  %v14617_v17 = vld [vmem:[%s22557_s9 + $0xfc8] ss:$20 sps:$4 sm:$0xff]   ;;  %v14622_v2 = vld [vmem:[%s22557_s9 + $0xe64] ss:$20 sps:$4 sm:$0xff]  }
 0xa3c   :  { %v13026_v28 = vpop.f32.mrf.mxu1  ;;  %9949 = vmatprep.subr.bf16.mxu1 %v14571_v56  ;;  %v14620_v56 = vld [vmem:[%s22557_s9 + $0xe60] ss:$20 sps:$4 sm:$0xff]  }
 0xa3d   :  { %v13027_v38 = vadd.f32 %v13026_v28, %v13025_v9  ;;  %v14623_v47 = vld [vmem:[%s22557_s9 + $0xfa0] ss:$20 sps:$4 sm:$0xff]   ;;  %v14628_v9 = vld [vmem:[%s22557_s9 + $0xe3c] ss:$20 sps:$4 sm:$0xff]  }
 0xa3e   :  { %9891 = vmatpush1.bf16.msra.mxu0 %v14566_v18  ;;  %v14631_v18 = vld [vmem:[%s22557_s9 + $0xf7c] ss:$20 sps:$4 sm:$0xff]   ;;  %v14634_v28 = vld [vmem:[%s22557_s9 + $0xe14] ss:$20 sps:$4 sm:$0xff]  }
 0xa3f   :  { %v21742_v25 = vadd.f32 %v13027_v38, %v21635_v60  ;;  %9950 = vmatpush2.bf16.msra.mxu1 %v14569_v23  ;;  %9892 = vmatprep.subr.bf16.mxu0 %v14574_v10  ;;  %v14578_v60 = vld [vmem:[%s22557_s9 + $0xcf8] ss:$20 sps:$4 sm:$0xff]   ;;  %v14632_v38 = vld [vmem:[%s22557_s9 + $0xe10] ss:$20 sps:$4 sm:$0xff]  }
 0xa40   :  { %9951 = vmatprep.subr.bf16.mxu1 %v14577_v37  ;;  %v14626_v23 = vld [vmem:[%s22557_s9 + $0xe38] ss:$20 sps:$4 sm:$0xff]   ;;  %v14637_v37 = vld [vmem:[%s22557_s9 + $0xf54] ss:$20 sps:$4 sm:$0xff]  }
 0xa41   :  { %v14629_v10 = vld [vmem:[%s22557_s9 + $0xf78] ss:$20 sps:$4 sm:$0xff]  }
 0xa42   :  { %9893 = vmatpush1.bf16.msra.mxu0 %v14572_v12  ;;  %v14635_v12 = vld [vmem:[%s22557_s9 + $0xf50] ss:$20 sps:$4 sm:$0xff]  }
 0xa43   :  { %9952 = vmatpush2.bf16.msra.mxu1 %v14575_v27  ;;  %9894 = vmatprep.subr.bf16.mxu0 %v14580_v7  ;;  %v14640_v27 = vld [vmem:[%s22557_s9 + $0xdec] ss:$20 sps:$4 sm:$0xff]  }
 0xa44   :  { %9953 = vmatprep.subr.bf16.mxu1 %v14583_v48  ;;  %v14643_v7 = vld [vmem:[%s22557_s9 + $0xf2c] ss:$20 sps:$4 sm:$0xff]   ;;  %v14638_v48 = vld [vmem:[%s22557_s9 + $0xde8] ss:$20 sps:$4 sm:$0xff]  }
 0xa46   :  { %9895 = vmatpush1.bf16.msra.mxu0 %v14578_v60  ;;  %v14641_v60 = vld [vmem:[%s22557_s9 + $0xf28] ss:$20 sps:$4 sm:$0xff]  }
 0xa47   :  { %9954 = vmatpush2.bf16.msra.mxu1 %v14581_v34  ;;  %9896 = vmatprep.subr.bf16.mxu0 %v14586_v46  ;;  %v14646_v34 = vld [vmem:[%s22557_s9 + $0xdc4] ss:$20 sps:$4 sm:$0xff]  }
 0xa48   :  { %9955 = vmatprep.subr.bf16.mxu1 %v14589_v44  ;;  %v14649_v46 = vld [vmem:[%s22557_s9 + $0xf04] ss:$20 sps:$4 sm:$0xff]   ;;  %v14644_v44 = vld [vmem:[%s22557_s9 + $0xdc0] ss:$20 sps:$4 sm:$0xff]  }
 0xa4a   :  { %9897 = vmatpush1.bf16.msra.mxu0 %v14584_v51  ;;  %v14647_v51 = vld [vmem:[%s22557_s9 + $0xf00] ss:$20 sps:$4 sm:$0xff]  }
 0xa4b   :  { %9956 = vmatpush2.bf16.msra.mxu1 %v14587_v21  ;;  %9898 = vmatprep.subr.bf16.mxu0 %v14592_v45  ;;  %v14650_v21 = vld [vmem:[%s22557_s9 + $0xee8] ss:$20 sps:$4 sm:$0xff]  }
 0xa4c   :  { %9957 = vmatprep.subr.bf16.mxu1 %v14595_v4  ;;  %v14653_v45 = vld [vmem:[%s22557_s9 + $0x115c] ss:$20 sps:$4 sm:$0xff]  }
 0xa4d   :  { %v14654_v4 = vld [vmem:[%s22557_s9 + $0xda8] ss:$20 sps:$4 sm:$0xff]  }
 0xa4e   :  { %9899 = vmatpush1.bf16.msra.mxu0 %v14590_v59  ;;  %v14651_v59 = vld [vmem:[%s22557_s9 + $0x1158] ss:$20 sps:$4 sm:$0xff]  }
 0xa4f   :  { %9958 = vmatpush2.bf16.msra.mxu1 %v14593_v55  ;;  %9900 = vmatprep.subr.bf16.mxu0 %v14598_v32  ;;  %v14655_v55 = vld [vmem:[%s22557_s9 + $0xec0] ss:$20 sps:$4 sm:$0xff]  }
 0xa50   :  { %9959 = vmatprep.subr.bf16.mxu1 %v14601_v33  ;;  %v14658_v32 = vld [vmem:[%s22557_s9 + $0x1134] ss:$20 sps:$4 sm:$0xff]  }
 0xa51   :  { %v14659_v33 = vld [vmem:[%s22557_s9 + $0xd80] ss:$20 sps:$4 sm:$0xff]  }
 0xa52   :  { %9901 = vmatpush1.bf16.msra.mxu0 %v14596_v41  ;;  %v14656_v41 = vld [vmem:[%s22557_s9 + $0x1130] ss:$20 sps:$4 sm:$0xff]  }
 0xa53   :  { %9960 = vmatpush2.bf16.msra.mxu1 %v14599_v31  ;;  %9902 = vmatprep.subr.bf16.mxu0 %v14604_v22  ;;  %v14660_v31 = vld [vmem:[%s22557_s9 + $0xe98] ss:$20 sps:$4 sm:$0xff]  }
 0xa54   :  { %10537 = vmatprep.subr.bf16.mxu1 %v14607_v43  ;;  %v14663_v22 = vld [vmem:[%s22557_s9 + $0x110c] ss:$20 sps:$4 sm:$0xff]   ;;  %v14661_v43 = vld [vmem:[%s22557_s9 + $0x1108] ss:$20 sps:$4 sm:$0xff]  }
 0xa56   :  { %9962 = vmatmul.mubr.bf16.vlgmr.msra.gmra.mxu1 %v20735_v61  ;;  %9903 = vmatpush2.bf16.msra.mxu0 %v14602_v19  ;;  %v14668_v19 = vld [vmem:[%s22557_s9 + $0x10e4] ss:$20 sps:$4 sm:$0xff]  }
 0xa57   :  { %10538 = vmatpush1.bf16.msra.mxu1 %v14605_v52  ;;  %10569 = vmatprep.mubr.bf16.mxu1 %v21817_v6  ;;  %v14666_v52 = vld [vmem:[%s22557_s9 + $0x10e0] ss:$20 sps:$4 sm:$0xff]  }
 0xa58   :  { %9904 = vmatprep.subr.bf16.mxu0 %v14610_v35  ;;  %10539 = vmatprep.subr.bf16.mxu1 %v14613_v58  ;;  %v14670_v35 = vld [vmem:[%s22557_s9 + $0xe48] ss:$20 sps:$4 sm:$0xff]  }
 0xa59   :  { %v14673_v58 = vld [vmem:[%s22557_s9 + $0x10bc] ss:$20 sps:$4 sm:$0xff]  }
 0xa5a   :  { %9905 = vmatpush2.bf16.msra.mxu0 %v14608_v54  ;;  %v14674_v54 = vld [vmem:[%s22557_s9 + $0xd08] ss:$20 sps:$4 sm:$0xff]  }
 0xa5b   :  { %10540 = vmatpush1.bf16.msra.mxu1 %v14611_v29  ;;  %9906 = vmatprep.subr.bf16.mxu0 %v14616_v5  ;;  %v14671_v29 = vld [vmem:[%s22557_s9 + $0x10b8] ss:$20 sps:$4 sm:$0xff]   ;;  %v14675_v5 = vld [vmem:[%s22557_s9 + $0xe20] ss:$20 sps:$4 sm:$0xff]  }
 0xa5c   :  { %10541 = vmatprep.subr.bf16.mxu1 %v14619_v14  ;;  %v14678_v14 = vld [vmem:[%s22557_s9 + $0x1094] ss:$20 sps:$4 sm:$0xff]  }
 0xa5e   :  { %9907 = vmatpush2.bf16.msra.mxu0 %v14614_v39  ;;  %v14679_v39 = vld [vmem:[%s22557_s9 + $0xce0] ss:$20 sps:$4 sm:$0xff]  }
 0xa5f   :  { %10542 = vmatpush1.bf16.msra.mxu1 %v14617_v17  ;;  %9908 = vmatprep.subr.bf16.mxu0 %v14622_v2  ;;  %v21970_v17 = vpop.f32.mrf.mxu0  ;;  %v14676_v2 = vld [vmem:[%s22557_s9 + $0x1090] ss:$20 sps:$4 sm:$0xff]  }
 0xa60   :  { %10543 = vmatprep.subr.bf16.mxu1 %v14625_v57  ;;  %v14680_v57 = vld [vmem:[%s22557_s9 + $0xdf8] ss:$20 sps:$4 sm:$0xff]  }
 0xa62   :  { %9909 = vmatpush2.bf16.msra.mxu0 %v14620_v56  ;;  %v14683_v56 = vld [vmem:[%s22557_s9 + $0x106c] ss:$20 sps:$4 sm:$0xff]  }
 0xa63   :  { %10544 = vmatpush1.bf16.msra.mxu1 %v14623_v47  ;;  %9910 = vmatprep.subr.bf16.mxu0 %v14628_v9  ;;  %v14684_v47 = vld [vmem:[%s22557_s9 + $0xcb8] ss:$20 sps:$4 sm:$0xff]   ;;  %v21984_v9 = vpop.f32.mrf.mxu0 }
 0xa64   :  { %10545 = vmatprep.subr.bf16.mxu1 %v14631_v18  ;;  %v14681_v18 = vld [vmem:[%s22557_s9 + $0x1068] ss:$20 sps:$4 sm:$0xff]  }
 0xa66   :  { %9911 = vmatpush2.bf16.msra.mxu0 %v14626_v23  ;;  %v14685_v23 = vld [vmem:[%s22557_s9 + $0xdd0] ss:$20 sps:$4 sm:$0xff]  }
 0xa67   :  { %10546 = vmatpush1.bf16.msra.mxu1 %v14629_v10  ;;  %9912 = vmatprep.subr.bf16.mxu0 %v14634_v28  ;;  %v14688_v10 = vld [vmem:[%s22557_s9 + $0x1044] ss:$20 sps:$4 sm:$0xff]  }
 0xa68   :  { %10547 = vmatprep.subr.bf16.mxu1 %v14637_v37  ;;  %v14689_v28 = vld [vmem:[%s22557_s9 + $0xc90] ss:$20 sps:$4 sm:$0xff]   ;;  %v21998_v37 = vpop.f32.mrf.mxu0 }
 0xa6a   :  { %9913 = vmatpush2.bf16.msra.mxu0 %v14632_v38  ;;  %v14686_v38 = vld [vmem:[%s22557_s9 + $0x1040] ss:$20 sps:$4 sm:$0xff]  }
 0xa6b   :  { %10548 = vmatpush1.bf16.msra.mxu1 %v14635_v12  ;;  %9914 = vmatprep.subr.bf16.mxu0 %v14640_v27  ;;  %v14692_v12 = vld [vmem:[%s22557_s9 + $0x1024] ss:$20 sps:$4 sm:$0xff]   ;;  %v14693_v27 = vld [vmem:[%s22557_s9 + $0x1168] ss:$20 sps:$4 sm:$0xff]  }
 0xa6c   :  { %10549 = vmatprep.subr.bf16.mxu1 %v14643_v7  ;;  %v14690_v7 = vld [vmem:[%s22557_s9 + $0x1020] ss:$20 sps:$4 sm:$0xff]  }
 0xa6e   :  { %9915 = vmatpush2.bf16.msra.mxu0 %v14638_v48  ;;  %v22012_v48 = vpop.f32.mrf.mxu0 }
 0xa6f   :  { %10550 = vmatpush1.bf16.msra.mxu1 %v14641_v60  ;;  %9916 = vmatprep.subr.bf16.mxu0 %v14646_v34  ;;  %v14694_v60 = vld [vmem:[%s22557_s9 + $0x1028] ss:$20 sps:$4 sm:$0xff]  }
 0xa70   :  { %10551 = vmatprep.subr.bf16.mxu1 %v14649_v46  ;;  %v14697_v34 = vld [vmem:[%s22557_s9 + $0xffc] ss:$20 sps:$4 sm:$0xff]  }
 0xa72   :  { %9917 = vmatpush2.bf16.msra.mxu0 %v14644_v44  ;;  %v14698_v44 = vld [vmem:[%s22557_s9 + $0x1140] ss:$20 sps:$4 sm:$0xff]  }
 0xa73   :  { %10552 = vmatpush1.bf16.msra.mxu1 %v14647_v51  ;;  %13072 = vmatprep.subr.bf16.mxu0 %v14650_v21  ;;  %v14695_v21 = vld [vmem:[%s22557_s9 + $0xff8] ss:$20 sps:$4 sm:$0xff]  }
 0xa74   :  { %10553 = vmatprep.subr.bf16.mxu1 %v14653_v45 }
 0xa75   :  { %9919 = vmatmul.mubr.bf16.vlgmr.msra.gmra.mxu0 %v20735_v61 }
 0xa76   :  { %13073 = vmatpush3.bf16.msra.mxu0 %v14654_v4  ;;  %10004 = vmatprep.mubr.bf16.mxu0 %v21591_v42  ;;  %v14664_v42 = vld [vmem:[%s22557_s9 + $0xd58] ss:$20 sps:$4 sm:$0xff]  }
 0xa77   :  { %10554 = vmatpush2.bf16.msra.mxu1 %v14651_v59  ;;  %13074 = vmatprep.subr.bf16.mxu0 %v14655_v55  ;;  %v14703_v59 = vld [vmem:[%s22557_s9 + $0x1118] ss:$20 sps:$4 sm:$0xff]  }
 0xa78   :  { %10555 = vmatprep.subr.bf16.mxu1 %v14658_v32 }
 0xa7a   :  { %13075 = vmatpush3.bf16.msra.mxu0 %v14659_v33  ;;  %v14700_v33 = vld [vmem:[%s22557_s9 + $0xfd0] ss:$20 sps:$4 sm:$0xff]  }
 0xa7b   :  { %10556 = vmatpush2.bf16.msra.mxu1 %v14656_v41  ;;  %13076 = vmatprep.subr.bf16.mxu0 %v14660_v31  ;;  %v14707_v41 = vld [vmem:[%s22557_s9 + $0xfac] ss:$20 sps:$4 sm:$0xff]  }
 0xa7c   :  { %10557 = vmatprep.subr.bf16.mxu1 %v14663_v22  ;;  %v14705_v22 = vld [vmem:[%s22557_s9 + $0xfa8] ss:$20 sps:$4 sm:$0xff]  }
 0xa7e   :  { %13077 = vmatpush3.bf16.msra.mxu0 %v14664_v42  ;;  %v14709_v42 = vld [vmem:[%s22557_s9 + $0xfb0] ss:$20 sps:$4 sm:$0xff]  }
 0xa7f   :  { %10558 = vmatpush2.bf16.msra.mxu1 %v14661_v43  ;;  %13078 = vmatprep.subr.bf16.mxu0 %v14665_v16  ;;  %v14713_v43 = vld [vmem:[%s22557_s9 + $0x10c8] ss:$20 sps:$4 sm:$0xff]   ;;  %v14710_v16 = vld [vmem:[%s22557_s9 + $0xf80] ss:$20 sps:$4 sm:$0xff]  }
 0xa80   :  { %10559 = vmatprep.subr.bf16.mxu1 %v14668_v19  ;;  %v14714_v19 = vld [vmem:[%s22557_s9 + $0xf88] ss:$20 sps:$4 sm:$0xff]  }
 0xa82   :  { %13079 = vmatpush3.bf16.msra.mxu0 %v14669_v53  ;;  %v14717_v53 = vld [vmem:[%s22557_s9 + $0xf5c] ss:$20 sps:$4 sm:$0xff]  }
 0xa83   :  { %10560 = vmatpush2.bf16.msra.mxu1 %v14666_v52  ;;  %13080 = vmatprep.subr.bf16.mxu0 %v14670_v35  ;;  %v14718_v52 = vld [vmem:[%s22557_s9 + $0x10a0] ss:$20 sps:$4 sm:$0xff]   ;;  %v14715_v35 = vld [vmem:[%s22557_s9 + $0xf58] ss:$20 sps:$4 sm:$0xff]  }
 0xa84   :  { %10561 = vmatprep.subr.bf16.mxu1 %v14673_v58  ;;  %v14719_v58 = vld [vmem:[%s22557_s9 + $0xf60] ss:$20 sps:$4 sm:$0xff]  }
 0xa86   :  { %13081 = vmatpush3.bf16.msra.mxu0 %v14674_v54  ;;  %v14722_v54 = vld [vmem:[%s22557_s9 + $0xf34] ss:$20 sps:$4 sm:$0xff]  }
 0xa87   :  { %10562 = vmatpush2.bf16.msra.mxu1 %v14671_v29  ;;  %13082 = vmatprep.subr.bf16.mxu0 %v14675_v5  ;;  %v22096_v29 = vpop.f32.mrf.mxu1  ;;  %v14723_v5 = vld [vmem:[%s22557_s9 + $0x1078] ss:$20 sps:$4 sm:$0xff]  }
 0xa88   :  { %10563 = vmatprep.subr.bf16.mxu1 %v14678_v14  ;;  %v14720_v14 = vld [vmem:[%s22557_s9 + $0xf30] ss:$20 sps:$4 sm:$0xff]  }
 0xa8a   :  { %13083 = vmatpush3.bf16.msra.mxu0 %v14679_v39  ;;  %v14724_v39 = vld [vmem:[%s22557_s9 + $0xf38] ss:$20 sps:$4 sm:$0xff]  }
 0xa8b   :  { %10564 = vmatpush2.bf16.msra.mxu1 %v14676_v2  ;;  %13084 = vmatprep.subr.bf16.mxu0 %v14680_v57  ;;  %v14727_v2 = vld [vmem:[%s22557_s9 + $0xf0c] ss:$20 sps:$4 sm:$0xff]   ;;  %v22110_v57 = vpop.f32.mrf.mxu1 }
 0xa8c   :  { %10565 = vmatprep.subr.bf16.mxu1 %v14683_v56  ;;  %v14728_v56 = vld [vmem:[%s22557_s9 + $0x1050] ss:$20 sps:$4 sm:$0xff]  }
 0xa8e   :  { %13085 = vmatpush3.bf16.msra.mxu0 %v14684_v47  ;;  %v14725_v47 = vld [vmem:[%s22557_s9 + $0xf08] ss:$20 sps:$4 sm:$0xff]  }
 0xa8f   :  { %10566 = vmatpush2.bf16.msra.mxu1 %v14681_v18  ;;  %13086 = vmatprep.subr.bf16.mxu0 %v14685_v23  ;;  %v14729_v18 = vld [vmem:[%s22557_s9 + $0xf10] ss:$20 sps:$4 sm:$0xff]  }
 0xa90   :  { %10567 = vmatprep.subr.bf16.mxu1 %v14688_v10  ;;  %v14732_v23 = vld [vmem:[%s22557_s9 + $0x1164] ss:$20 sps:$4 sm:$0xff]   ;;  %v22124_v10 = vpop.f32.mrf.mxu1 }
 0xa92   :  { %13087 = vmatpush3.bf16.msra.mxu0 %v14689_v28  ;;  %v14735_v28 = vld [vmem:[%s22557_s9 + $0x12a4] ss:$20 sps:$4 sm:$0xff]  }
 0xa93   :  { %10568 = vmatpush2.bf16.msra.mxu1 %v14686_v38  ;;  %10580 = vmatprep.subr.bf16.mxu0 %v14692_v12  ;;  %v6135_v38 = vadd.f32 %v21327_v36, %v21209_v49  ;;  %v14730_v12 = vld [vmem:[%s22557_s9 + $0x1160] ss:$20 sps:$4 sm:$0xff]   ;;  %v14738_v49 = vld [vmem:[%s22557_s9 + $0x113c] ss:$20 sps:$4 sm:$0xff]  }
 0xa94   :  { %13094 = vmatprep.subr.bf16.mxu1 %v14693_v27  ;;  %v6131_v27 = vadd.f32 %v20784_v13, %v20779_v50  ;;  %v14741_v36 = vld [vmem:[%s22557_s9 + $0x127c] ss:$20 sps:$4 sm:$0xff]  }
 0xa95   :  { %v8618_v46 = vpop.f32.mrf.mxu0  ;;  %10005 = vmatmul.mubr.bf16.vlgmr.msra.gmra.mxu0 %v20735_v61  ;;  %v14699_v61 = vld [vmem:[%s22557_s9 + $0x1000] ss:$20 sps:$4 sm:$0xff]  }
 0xa96   :  { %v22025_v51 = vadd.f32 %v8618_v46, %v21599_v20  ;;  %10570 = vmatmul.mubr.bf16.vlgmr.msra.gmra.mxu1 %v20774_v24  ;;  %10581 = vmatpush1.bf16.msra.mxu0 %v14690_v7  ;;  %v14702_v20 = vld [vmem:[%s22557_s9 + $0xfd4] ss:$20 sps:$4 sm:$0xff]   ;;  %v14736_v46 = vld [vmem:[%s22557_s9 + $0x1138] ss:$20 sps:$4 sm:$0xff]  }
 0xa97   :  { %10612 = vmatprep.mubr.bf16.mxu0 %v21817_v6  ;;  %13095 = vmatpush3.bf16.msra.mxu1 %v14694_v60  ;;  %v8620_v45 = vpop.f32.mrf.mxu0  ;;  %v14733_v7 = vld [vmem:[%s22557_s9 + $0x12a0] ss:$20 sps:$4 sm:$0xff]   ;;  %v22139_v60 = vpop.f32.mrf.mxu1 }
 0xa98   :  { %10655 = vmatprep.mubr.bf16.mxu1 %v21817_v6  ;;  %v22040_v4 = vadd.f32 %v8620_v45, %v21612_v0  ;;  %10582 = vmatprep.subr.bf16.mxu0 %v14697_v34  ;;  %v14704_v0 = vld [vmem:[%s22557_s9 + $0xfd8] ss:$20 sps:$4 sm:$0xff]   ;;  %v22147_v34 = vpack.c.bf16 %v6135_v38, %v6131_v27  ;;  %v14775_v38 = vld [vmem:[%s22557_s9 + $0x1188] ss:$20 sps:$4 sm:$0xff]  }
 0xa99   :  { %v8622_v55 = vpop.f32.mrf.mxu0  ;;  %13096 = vmatprep.subr.bf16.mxu1 %v14698_v44  ;;  %v14739_v45 = vld [vmem:[%s22557_s9 + $0x1278] ss:$20 sps:$4 sm:$0xff]  }
 0xa9a   :  { %v22046_v32 = vadd.f32 %v8622_v55, %v21621_v15  ;;  %10583 = vmatpush1.bf16.msra.mxu0 %v14695_v21  ;;  %v14708_v15 = vld [vmem:[%s22557_s9 + $0x10f0] ss:$20 sps:$4 sm:$0xff]  }
 0xa9b   :  { %13097 = vmatpush3.bf16.msra.mxu1 %v14699_v61  ;;  %v8624_v6 = vpop.f32.mrf.mxu0  ;;  %10584 = vmatprep.subr.bf16.mxu0 %v14702_v20  ;;  %v14744_v61 = vld [vmem:[%s22557_s9 + $0x1114] ss:$20 sps:$4 sm:$0xff]   ;;  %v14783_v27 = vld [vmem:[%s22557_s9 + $0x13e4] ss:$20 sps:$4 sm:$0xff]  }
 0xa9c   :  { %v22058_v31 = vadd.f32 %v8624_v6, %v21632_v62  ;;  %13098 = vmatprep.subr.bf16.mxu1 %v14703_v59  ;;  %v14712_v62 = vld [vmem:[%s22557_s9 + $0xf84] ss:$20 sps:$4 sm:$0xff]  }
 0xa9e   :  { %10585 = vmatpush1.bf16.msra.mxu0 %v14700_v33 }
 0xa9f   :  { %13099 = vmatpush3.bf16.msra.mxu1 %v14704_v0  ;;  %10586 = vmatprep.subr.bf16.mxu0 %v14707_v41  ;;  %v14742_v41 = vld [vmem:[%s22557_s9 + $0x1110] ss:$20 sps:$4 sm:$0xff]  }
 0xaa0   :  { %13100 = vmatprep.subr.bf16.mxu1 %v14708_v15 }
 0xaa2   :  { %10587 = vmatpush1.bf16.msra.mxu0 %v14705_v22 }
 0xaa3   :  { %13101 = vmatpush3.bf16.msra.mxu1 %v14709_v42  ;;  %10588 = vmatprep.subr.bf16.mxu0 %v14712_v62 }
 0xaa4   :  { %13102 = vmatprep.subr.bf16.mxu1 %v14713_v43  ;;  %v14753_v43 = vld [vmem:[%s22557_s9 + $0x122c] ss:$20 sps:$4 sm:$0xff]  }
 0xaa6   :  { %10589 = vmatpush1.bf16.msra.mxu0 %v14710_v16 }
 0xaa7   :  { %13103 = vmatpush3.bf16.msra.mxu1 %v14714_v19  ;;  %10590 = vmatprep.subr.bf16.mxu0 %v14717_v53  ;;  %v14748_v19 = vld [vmem:[%s22557_s9 + $0x10e8] ss:$20 sps:$4 sm:$0xff]  }
 0xaa8   :  { %13104 = vmatprep.subr.bf16.mxu1 %v14718_v52  ;;  %v14751_v53 = vld [vmem:[%s22557_s9 + $0x1228] ss:$20 sps:$4 sm:$0xff]   ;;  %v14756_v52 = vld [vmem:[%s22557_s9 + $0x10c4] ss:$20 sps:$4 sm:$0xff]  }
 0xaaa   :  { %10591 = vmatpush1.bf16.msra.mxu0 %v14715_v35  ;;  %v14757_v35 = vld [vmem:[%s22557_s9 + $0x1200] ss:$20 sps:$4 sm:$0xff]  }
 0xaab   :  { %13105 = vmatpush3.bf16.msra.mxu1 %v14719_v58  ;;  %10592 = vmatprep.subr.bf16.mxu0 %v14722_v54  ;;  %v14762_v58 = vld [vmem:[%s22557_s9 + $0x109c] ss:$20 sps:$4 sm:$0xff]  }
 0xaac   :  { %13106 = vmatprep.subr.bf16.mxu1 %v14723_v5  ;;  %v14765_v54 = vld [vmem:[%s22557_s9 + $0x11dc] ss:$20 sps:$4 sm:$0xff]   ;;  %v14760_v5 = vld [vmem:[%s22557_s9 + $0x1098] ss:$20 sps:$4 sm:$0xff]  }
 0xaae   :  { %10593 = vmatpush1.bf16.msra.mxu0 %v14720_v14  ;;  %v14763_v14 = vld [vmem:[%s22557_s9 + $0x11d8] ss:$20 sps:$4 sm:$0xff]  }
 0xaaf   :  { %13107 = vmatpush3.bf16.msra.mxu1 %v14724_v39  ;;  %10594 = vmatprep.subr.bf16.mxu0 %v14727_v2  ;;  %v14768_v39 = vld [vmem:[%s22557_s9 + $0x1074] ss:$20 sps:$4 sm:$0xff]  }
 0xab0   :  { %13108 = vmatprep.subr.bf16.mxu1 %v14728_v56  ;;  %v14771_v2 = vld [vmem:[%s22557_s9 + $0x11b4] ss:$20 sps:$4 sm:$0xff]   ;;  %v14766_v56 = vld [vmem:[%s22557_s9 + $0x1070] ss:$20 sps:$4 sm:$0xff]  }
 0xab2   :  { %10595 = vmatpush1.bf16.msra.mxu0 %v14725_v47  ;;  %v14769_v47 = vld [vmem:[%s22557_s9 + $0x11b0] ss:$20 sps:$4 sm:$0xff]  }
 0xab3   :  { %13109 = vmatpush3.bf16.msra.mxu1 %v14729_v18  ;;  %10596 = vmatprep.subr.bf16.mxu0 %v14732_v23  ;;  %v14774_v18 = vld [vmem:[%s22557_s9 + $0x104c] ss:$20 sps:$4 sm:$0xff]  }
 0xab4   :  { %11231 = vmatprep.subr.bf16.mxu1 %v14735_v28  ;;  %v14777_v23 = vld [vmem:[%s22557_s9 + $0x118c] ss:$20 sps:$4 sm:$0xff]   ;;  %v14772_v28 = vld [vmem:[%s22557_s9 + $0x1048] ss:$20 sps:$4 sm:$0xff]  }
 0xab5   :  { %v13044_v50 = vpop.f32.mrf.mxu0 }
 0xab6   :  { %v9269_v13 = vpop.f32.mrf.mxu1  ;;  %10656 = vmatmul.mubr.bf16.vlgmr.msra.gmra.mxu1 %v20774_v24  ;;  %10597 = vmatpush2.bf16.msra.mxu0 %v14730_v12  ;;  %v14780_v12 = vld [vmem:[%s22557_s9 + $0x129c] ss:$20 sps:$4 sm:$0xff]  }
 0xab7   :  { %v22154_v44 = vadd.f32 %v9269_v13, %v22025_v51  ;;  %11232 = vmatpush1.bf16.msra.mxu1 %v14733_v7  ;;  %11263 = vmatprep.mubr.bf16.mxu1 %v22147_v34  ;;  %v13045_v21 = vpop.f32.mrf.mxu0  ;;  %v14747_v51 = vld [vmem:[%s22557_s9 + $0x1254] ss:$20 sps:$4 sm:$0xff]   ;;  %v14778_v7 = vld [vmem:[%s22557_s9 + $0x1298] ss:$20 sps:$4 sm:$0xff]  }
 0xab8   :  { %v13046_v20 = vadd.f32 %v13045_v21, %v13044_v50  ;;  %v9271_v59 = vpop.f32.mrf.mxu1  ;;  %10598 = vmatprep.subr.bf16.mxu0 %v14738_v49  ;;  %11233 = vmatprep.subr.bf16.mxu1 %v14741_v36  ;;  %v14781_v49 = vld [vmem:[%s22557_s9 + $0x13e0] ss:$20 sps:$4 sm:$0xff]   ;;  %v14789_v50 = vld [vmem:[%s22557_s9 + $0x13bc] ss:$20 sps:$4 sm:$0xff]   ;;  %v14787_v21 = vld [vmem:[%s22557_s9 + $0x13b8] ss:$20 sps:$4 sm:$0xff]  }
 0xab9   :  { %v22167_v55 = vadd.f32 %v9271_v59, %v22040_v4  ;;  %v13047_v33 = vpop.f32.mrf.mxu0  ;;  %v14745_v4 = vld [vmem:[%s22557_s9 + $0x1250] ss:$20 sps:$4 sm:$0xff]   ;;  %v14786_v36 = vld [vmem:[%s22557_s9 + $0x1274] ss:$20 sps:$4 sm:$0xff]  }
 0xaba   :  { %v22170_v6 = vadd.f32 %v13046_v20, %v21727_v40  ;;  %v9273_v0 = vpop.f32.mrf.mxu1  ;;  %10599 = vmatpush2.bf16.msra.mxu0 %v14736_v46  ;;  %v14750_v40 = vld [vmem:[%s22557_s9 + $0x10ec] ss:$20 sps:$4 sm:$0xff]   ;;  %v14784_v46 = vld [vmem:[%s22557_s9 + $0x1270] ss:$20 sps:$4 sm:$0xff]  }
 0xabb   :  { %v22176_v15 = vadd.f32 %v9273_v0, %v22046_v32  ;;  %11234 = vmatpush1.bf16.msra.mxu1 %v14739_v45  ;;  %v13048_v22 = vpop.f32.mrf.mxu0  ;;  %10600 = vmatprep.subr.bf16.mxu0 %v14744_v61  ;;  %v14792_v45 = vld [vmem:[%s22557_s9 + $0x124c] ss:$20 sps:$4 sm:$0xff]   ;;  %v14793_v0 = vld [vmem:[%s22557_s9 + $0x1390] ss:$20 sps:$4 sm:$0xff]  }
 0xabc   :  { %v13049_v42 = vadd.f32 %v13048_v22, %v13047_v33  ;;  %v9275_v62 = vpop.f32.mrf.mxu1  ;;  %11235 = vmatprep.subr.bf16.mxu1 %v14747_v51  ;;  %v14790_v51 = vld [vmem:[%s22557_s9 + $0x1248] ss:$20 sps:$4 sm:$0xff]  }
 0xabd   :  { %v22188_v32 = vadd.f32 %v9275_v62, %v22058_v31  ;;  %v14754_v31 = vld [vmem:[%s22557_s9 + $0x10c0] ss:$20 sps:$4 sm:$0xff]   ;;  %v14799_v62 = vld [vmem:[%s22557_s9 + $0x1368] ss:$20 sps:$4 sm:$0xff]  }
 0xabe   :  { %v22191_v16 = vadd.f32 %v13049_v42, %v21742_v25  ;;  %10601 = vmatpush2.bf16.msra.mxu0 %v14742_v41  ;;  %v14759_v25 = vld [vmem:[%s22557_s9 + $0x1204] ss:$20 sps:$4 sm:$0xff]  }
 0xabf   :  { %11236 = vmatpush1.bf16.msra.mxu1 %v14745_v4  ;;  %10602 = vmatprep.subr.bf16.mxu0 %v14750_v40  ;;  %v14798_v41 = vld [vmem:[%s22557_s9 + $0x1224] ss:$20 sps:$4 sm:$0xff]   ;;  %v14801_v4 = vld [vmem:[%s22557_s9 + $0x136c] ss:$20 sps:$4 sm:$0xff]  }
 0xac0   :  { %11237 = vmatprep.subr.bf16.mxu1 %v14753_v43  ;;  %v14804_v43 = vld [vmem:[%s22557_s9 + $0x11fc] ss:$20 sps:$4 sm:$0xff]  }
 0xac2   :  { %10603 = vmatpush2.bf16.msra.mxu0 %v14748_v19  ;;  %v14807_v19 = vld [vmem:[%s22557_s9 + $0x1344] ss:$20 sps:$4 sm:$0xff]  }
 0xac3   :  { %11238 = vmatpush1.bf16.msra.mxu1 %v14751_v53  ;;  %10604 = vmatprep.subr.bf16.mxu0 %v14756_v52  ;;  %v14805_v53 = vld [vmem:[%s22557_s9 + $0x1340] ss:$20 sps:$4 sm:$0xff]  }
 0xac4   :  { %11239 = vmatprep.subr.bf16.mxu1 %v14759_v25  ;;  %v14810_v52 = vld [vmem:[%s22557_s9 + $0x11d4] ss:$20 sps:$4 sm:$0xff]   ;;  %v14813_v25 = vld [vmem:[%s22557_s9 + $0x131c] ss:$20 sps:$4 sm:$0xff]  }
 0xac6   :  { %10605 = vmatpush2.bf16.msra.mxu0 %v14754_v31  ;;  %v14808_v31 = vld [vmem:[%s22557_s9 + $0x11d0] ss:$20 sps:$4 sm:$0xff]  }
 0xac7   :  { %11240 = vmatpush1.bf16.msra.mxu1 %v14757_v35  ;;  %10606 = vmatprep.subr.bf16.mxu0 %v14762_v58  ;;  %v14811_v35 = vld [vmem:[%s22557_s9 + $0x1318] ss:$20 sps:$4 sm:$0xff]  }
 0xac8   :  { %11241 = vmatprep.subr.bf16.mxu1 %v14765_v54  ;;  %v14816_v58 = vld [vmem:[%s22557_s9 + $0x11ac] ss:$20 sps:$4 sm:$0xff]   ;;  %v14819_v54 = vld [vmem:[%s22557_s9 + $0x12f4] ss:$20 sps:$4 sm:$0xff]  }
 0xaca   :  { %10607 = vmatpush2.bf16.msra.mxu0 %v14760_v5  ;;  %v14814_v5 = vld [vmem:[%s22557_s9 + $0x11a8] ss:$20 sps:$4 sm:$0xff]  }
 0xacb   :  { %11242 = vmatpush1.bf16.msra.mxu1 %v14763_v14  ;;  %10608 = vmatprep.subr.bf16.mxu0 %v14768_v39  ;;  %v14817_v14 = vld [vmem:[%s22557_s9 + $0x12f0] ss:$20 sps:$4 sm:$0xff]  }
 0xacc   :  { %11243 = vmatprep.subr.bf16.mxu1 %v14771_v2  ;;  %v14822_v39 = vld [vmem:[%s22557_s9 + $0x1184] ss:$20 sps:$4 sm:$0xff]   ;;  %v14825_v2 = vld [vmem:[%s22557_s9 + $0x12cc] ss:$20 sps:$4 sm:$0xff]  }
 0xace   :  { %10609 = vmatpush2.bf16.msra.mxu0 %v14766_v56  ;;  %v14820_v56 = vld [vmem:[%s22557_s9 + $0x1180] ss:$20 sps:$4 sm:$0xff]  }
 0xacf   :  { %11244 = vmatpush1.bf16.msra.mxu1 %v14769_v47  ;;  %10610 = vmatprep.subr.bf16.mxu0 %v14774_v18  ;;  %v14823_v47 = vld [vmem:[%s22557_s9 + $0x12c8] ss:$20 sps:$4 sm:$0xff]  }
 0xad0   :  { %11245 = vmatprep.subr.bf16.mxu1 %v14777_v23  ;;  %v14828_v18 = vld [vmem:[%s22557_s9 + $0x13dc] ss:$20 sps:$4 sm:$0xff]   ;;  %v14826_v23 = vld [vmem:[%s22557_s9 + $0x13d8] ss:$20 sps:$4 sm:$0xff]  }
 0xad2   :  { %10611 = vmatpush2.bf16.msra.mxu0 %v14772_v28  ;;  %v14831_v28 = vld [vmem:[%s22557_s9 + $0x13b4] ss:$20 sps:$4 sm:$0xff]  }
 0xad3   :  { %11246 = vmatpush1.bf16.msra.mxu1 %v14775_v38  ;;  %11188 = vmatprep.subr.bf16.mxu0 %v14780_v12  ;;  %v14829_v38 = vld [vmem:[%s22557_s9 + $0x13b0] ss:$20 sps:$4 sm:$0xff]   ;;  %v14834_v12 = vld [vmem:[%s22557_s9 + $0x138c] ss:$20 sps:$4 sm:$0xff]  }
 0xad4   :  { %11247 = vmatprep.subr.bf16.mxu1 %v14783_v27  ;;  %v14832_v27 = vld [vmem:[%s22557_s9 + $0x1388] ss:$20 sps:$4 sm:$0xff]  }
 0xad5   :  { %10613 = vmatmul.mubr.bf16.vlgmr.msra.gmra.mxu0 %v20774_v24  ;;  %v14795_v24 = vld [vmem:[%s22557_s9 + $0x1394] ss:$20 sps:$4 sm:$0xff]  }
 0xad6   :  { %v13066_v13 = vpop.f32.mrf.mxu1  ;;  %11189 = vmatpush1.bf16.msra.mxu0 %v14778_v7  ;;  %11220 = vmatprep.mubr.bf16.mxu0 %v22147_v34  ;;  %v14837_v7 = vld [vmem:[%s22557_s9 + $0x1364] ss:$20 sps:$4 sm:$0xff]  }
 0xad7   :  { %11248 = vmatpush2.bf16.msra.mxu1 %v14781_v49  ;;  %11190 = vmatprep.subr.bf16.mxu0 %v14786_v36  ;;  %v14835_v49 = vld [vmem:[%s22557_s9 + $0x1360] ss:$20 sps:$4 sm:$0xff]   ;;  %v14840_v36 = vld [vmem:[%s22557_s9 + $0x133c] ss:$20 sps:$4 sm:$0xff]  }
 0xad8   :  { %v13067_v61 = vpop.f32.mrf.mxu1  ;;  %11249 = vmatprep.subr.bf16.mxu1 %v14789_v50  ;;  %v14838_v50 = vld [vmem:[%s22557_s9 + $0x1338] ss:$20 sps:$4 sm:$0xff]  }
 0xad9   :  { %v13068_v20 = vadd.f32 %v13067_v61, %v13066_v13  ;;  %v14843_v13 = vld [vmem:[%s22557_s9 + $0x1314] ss:$20 sps:$4 sm:$0xff]   ;;  %v14849_v61 = vld [vmem:[%s22557_s9 + $0x12c4] ss:$20 sps:$4 sm:$0xff]  }
 0xada   :  { %v13069_v59 = vpop.f32.mrf.mxu1  ;;  %11191 = vmatpush1.bf16.msra.mxu0 %v14784_v46  ;;  %v14841_v46 = vld [vmem:[%s22557_s9 + $0x1310] ss:$20 sps:$4 sm:$0xff]  }
 0xadb   :  { %v22283_v33 = vadd.f32 %v13068_v20, %v22170_v6  ;;  %11250 = vmatpush2.bf16.msra.mxu1 %v14787_v21  ;;  %11192 = vmatprep.subr.bf16.mxu0 %v14792_v45  ;;  %v14796_v6 = vld [vmem:[%s22557_s9 + $0x1220] ss:$20 sps:$4 sm:$0xff]   ;;  %v14844_v45 = vld [vmem:[%s22557_s9 + $0x12e8] ss:$20 sps:$4 sm:$0xff]  }
 0xadc   :  { %v13070_v22 = vpop.f32.mrf.mxu1  ;;  %11251 = vmatprep.subr.bf16.mxu1 %v14795_v24  ;;  %v14846_v21 = vld [vmem:[%s22557_s9 + $0x12ec] ss:$20 sps:$4 sm:$0xff]   ;;  %v14850_v20 = vld [vmem:[%s22557_s9 + $0x13e8] ss:$20 sps:$4 sm:$0xff]  }
 0xadd   :  { %v13071_v40 = vadd.f32 %v13070_v22, %v13069_v59  ;;  %v14847_v24 = vld [vmem:[%s22557_s9 + $0x12c0] ss:$20 sps:$4 sm:$0xff]   ;;  %v14851_v59 = vld [vmem:[%s22557_s9 + $0x12a8] ss:$20 sps:$4 sm:$0xff]   ;;  %v14855_v22 = vld [vmem:[%s22557_s9 + $0x1258] ss:$20 sps:$4 sm:$0xff]  }
 0xade   :  { %11193 = vmatpush1.bf16.msra.mxu0 %v14790_v51  ;;  %v14852_v51 = vld [vmem:[%s22557_s9 + $0x13c0] ss:$20 sps:$4 sm:$0xff]  }
 0xadf   :  { %v22298_v42 = vadd.f32 %v13071_v40, %v22191_v16  ;;  %11252 = vmatpush2.bf16.msra.mxu1 %v14793_v0  ;;  %11194 = vmatprep.subr.bf16.mxu0 %v14798_v41  ;;  %v14802_v16 = vld [vmem:[%s22557_s9 + $0x11f8] ss:$20 sps:$4 sm:$0xff]   ;;  %v14853_v0 = vld [vmem:[%s22557_s9 + $0x1280] ss:$20 sps:$4 sm:$0xff]   ;;  %v14858_v40 = vld [vmem:[%s22557_s9 + $0x1348] ss:$20 sps:$4 sm:$0xff]  }
 0xae0   :  { %11253 = vmatprep.subr.bf16.mxu1 %v14801_v4  ;;  %v14854_v41 = vld [vmem:[%s22557_s9 + $0x1398] ss:$20 sps:$4 sm:$0xff]   ;;  %v14856_v4 = vld [vmem:[%s22557_s9 + $0x1370] ss:$20 sps:$4 sm:$0xff]  }
 0xae2   :  { %11195 = vmatpush1.bf16.msra.mxu0 %v14796_v6  ;;  %v14859_v6 = vld [vmem:[%s22557_s9 + $0x1208] ss:$20 sps:$4 sm:$0xff]  }
 0xae3   :  { %11254 = vmatpush2.bf16.msra.mxu1 %v14799_v62  ;;  %11196 = vmatprep.subr.bf16.mxu0 %v14804_v43  ;;  %v14860_v62 = vld [vmem:[%s22557_s9 + $0x1320] ss:$20 sps:$4 sm:$0xff]  }
 0xae4   :  { %11255 = vmatprep.subr.bf16.mxu1 %v14807_v19  ;;  %v14861_v43 = vld [vmem:[%s22557_s9 + $0x11e0] ss:$20 sps:$4 sm:$0xff]   ;;  %v14862_v19 = vld [vmem:[%s22557_s9 + $0x12f8] ss:$20 sps:$4 sm:$0xff]  }
 0xae6   :  { %11197 = vmatpush1.bf16.msra.mxu0 %v14802_v16  ;;  %v14863_v16 = vld [vmem:[%s22557_s9 + $0x11b8] ss:$20 sps:$4 sm:$0xff]  }
 0xae7   :  { %11256 = vmatpush2.bf16.msra.mxu1 %v14805_v53  ;;  %11198 = vmatprep.subr.bf16.mxu0 %v14810_v52  ;;  %v14864_v53 = vld [vmem:[%s22557_s9 + $0x12d0] ss:$20 sps:$4 sm:$0xff]  }
 0xae8   :  { %11257 = vmatprep.subr.bf16.mxu1 %v14813_v25  ;;  %v14865_v52 = vld [vmem:[%s22557_s9 + $0x1190] ss:$20 sps:$4 sm:$0xff]   ;;  %v14866_v25 = vld [vmem:[#allocation7 + $0xf8] sm:$0xff]  }
 0xaea   :  { %11199 = vmatpush1.bf16.msra.mxu0 %v14808_v31  ;;  %v14867_v31 = vld [vmem:[#allocation7 + $0xb8] sm:$0xff]  }
 0xaeb   :  { %11258 = vmatpush2.bf16.msra.mxu1 %v14811_v35  ;;  %11200 = vmatprep.subr.bf16.mxu0 %v14816_v58  ;;  %v14868_v35 = vld [vmem:[#allocation7 + $0xf0] sm:$0xff]  }
 0xaec   :  { %11259 = vmatprep.subr.bf16.mxu1 %v14819_v54  ;;  %v14869_v58 = vld [vmem:[#allocation7 + $0xb0] sm:$0xff]   ;;  %v14870_v54 = vld [vmem:[#allocation7 + $0xe8] sm:$0xff]  }
 0xaee   :  { %11201 = vmatpush1.bf16.msra.mxu0 %v14814_v5 }
 0xaef   :  { %11260 = vmatpush2.bf16.msra.mxu1 %v14817_v14  ;;  %11202 = vmatprep.subr.bf16.mxu0 %v14822_v39  ;;  %v14871_v14 = vld [vmem:[#allocation7 + $0xa8] sm:$0xff]   ;;  %v14872_v39 = vld [vmem:[#allocation7 + $0xe0] sm:$0xff]  }
 0xaf0   :  { %11261 = vmatprep.subr.bf16.mxu1 %v14825_v2 }
 0xaf2   :  { %11203 = vmatpush1.bf16.msra.mxu0 %v14820_v56  ;;  %v14873_v56 = vld [vmem:[#allocation7 + $0xa0] sm:$0xff]  }
 0xaf3   :  { %11262 = vmatpush2.bf16.msra.mxu1 %v14823_v47  ;;  %11204 = vmatprep.subr.bf16.mxu0 %v14828_v18  ;;  %v14874_v47 = vld [vmem:[#allocation7 + $0xd8] sm:$0xff]  }
 0xaf5   :  { %v22451_v5 = vpop.f32.mrf.mxu0 }
 0xaf6   :  { %11264 = vmatmul.mubr.bf16.vlgmr.msra.gmra.mxu1 %v20804_v8  ;;  %11205 = vmatpush2.bf16.msra.mxu0 %v14826_v23  ;;  %v14876_v23 = vld [vmem:[#allocation7 + $0xd0] sm:$0xff]  }
 0xaf7   :  { %11206 = vmatprep.subr.bf16.mxu0 %v14831_v28  ;;  %v22453_v2 = vpop.f32.mrf.mxu0 }
 0xaf9   :  { %v22455_v18 = vpop.f32.mrf.mxu0 }
 0xafa   :  { %11207 = vmatpush2.bf16.msra.mxu0 %v14829_v38  ;;  %v14882_v38 = vld [vmem:[#allocation7 + $0x78] sm:$0xff]  }
 0xafb   :  { %11208 = vmatprep.subr.bf16.mxu0 %v14834_v12  ;;  %v22457_v28 = vpop.f32.mrf.mxu0  ;;  %v14877_v12 = vld [vmem:[#allocation7 + $0x90] sm:$0xff]   ;;  %13138 = vmatprep.subr.bf16.mxu1 %v14882_v38 }
 0xafe   :  { %11209 = vmatpush2.bf16.msra.mxu0 %v14832_v27  ;;  %v14883_v27 = vld [vmem:[#allocation7 + $0x38] sm:$0xff]  }
 0xaff   :  { %11210 = vmatprep.subr.bf16.mxu0 %v14837_v7  ;;  %v14884_v7 = vld [vmem:[#allocation7 + $0x70] sm:$0xff]   ;;  %13139 = vmatpush3.bf16.msra.mxu1 %v14883_v27 }
 0xb00   :  { %13140 = vmatprep.subr.bf16.mxu1 %v14884_v7 }
 0xb02   :  { %11211 = vmatpush2.bf16.msra.mxu0 %v14835_v49 }
 0xb03   :  { %11212 = vmatprep.subr.bf16.mxu0 %v14840_v36  ;;  %v14878_v36 = vld [vmem:[#allocation7 + $0xc8] sm:$0xff]  }
 0xb06   :  { %11213 = vmatpush2.bf16.msra.mxu0 %v14838_v50  ;;  %v14885_v50 = vld [vmem:[#allocation7 + $0x30] sm:$0xff]  }
 0xb07   :  { %11214 = vmatprep.subr.bf16.mxu0 %v14843_v13  ;;  %v14886_v13 = vld [vmem:[#allocation7 + $0x68] sm:$0xff]   ;;  %13141 = vmatpush3.bf16.msra.mxu1 %v14885_v50 }
 0xb08   :  { %13142 = vmatprep.subr.bf16.mxu1 %v14886_v13 }
 0xb0a   :  { %11215 = vmatpush2.bf16.msra.mxu0 %v14841_v46  ;;  %v14879_v46 = vld [vmem:[#allocation7 + $0x88] sm:$0xff]  }
 0xb0b   :  { %11216 = vmatprep.subr.bf16.mxu0 %v14846_v21 }
 0xb0e   :  { %11217 = vmatpush2.bf16.msra.mxu0 %v14844_v45  ;;  %v14880_v45 = vld [vmem:[#allocation7 + $0xc0] sm:$0xff]  }
 0xb0f   :  { %11218 = vmatprep.subr.bf16.mxu0 %v14849_v61  ;;  %v14887_v61 = vld [vmem:[#allocation7 + $0x28] sm:$0xff]  }
 0xb10   :  { %13143 = vmatpush3.bf16.msra.mxu1 %v14887_v61  ;;  %v8062_v61 = vadd.f32 %v21970_v17, %v21386_v63 }
 0xb12   :  { %11219 = vmatpush2.bf16.msra.mxu0 %v14847_v24  ;;  %v14888_v24 = vld [vmem:[#allocation7 + $0x60] sm:$0xff]  }
 0xb13   :  { %13116 = vmatprep.subr.bf16.mxu0 %v14850_v20  ;;  %v14881_v20 = vld [vmem:[#allocation7 + $0x80] sm:$0xff]   ;;  %13144 = vmatprep.subr.bf16.mxu1 %v14888_v24  ;;  %v7374_v24 = vadd.f32 %v21568_v30, %v21362_v1 }
 0xb15   :  { %11221 = vmatmul.mubr.bf16.vlgmr.msra.gmra.mxu0 %v20804_v8 }
 0xb16   :  { %13117 = vmatpush3.bf16.msra.mxu0 %v14851_v59  ;;  %11306 = vmatprep.mubr.bf16.mxu0 %v22147_v34  ;;  %v14857_v34 = vld [vmem:[%s22557_s9 + $0x1230] ss:$20 sps:$4 sm:$0xff]  }
 0xb17   :  { %13118 = vmatprep.subr.bf16.mxu0 %v14852_v51  ;;  %v14889_v51 = vld [vmem:[#allocation7 + $0x20] sm:$0xff]  }
 0xb18   :  { %13145 = vmatpush3.bf16.msra.mxu1 %v14889_v51  ;;  %v8713_v51 = vadd.f32 %v22096_v29, %v8062_v61 }
 0xb1a   :  { %13119 = vmatpush3.bf16.msra.mxu0 %v14853_v0 }
 0xb1b   :  { %13120 = vmatprep.subr.bf16.mxu0 %v14854_v41 }
 0xb1e   :  { %13121 = vmatpush3.bf16.msra.mxu0 %v14855_v22 }
 0xb1f   :  { %13122 = vmatprep.subr.bf16.mxu0 %v14856_v4  ;;  %v14890_v4 = vld [vmem:[#allocation7 + $0x58] sm:$0xff]  }
 0xb20   :  { %13146 = vmatprep.subr.bf16.mxu1 %v14890_v4  ;;  %v8067_v4 = vadd.f32 %v21998_v37, %v7374_v24 }
 0xb22   :  { %13123 = vmatpush3.bf16.msra.mxu0 %v14857_v34  ;;  %v8718_v17 = vadd.f32 %v22124_v10, %v8067_v4 }
 0xb23   :  { %13124 = vmatprep.subr.bf16.mxu0 %v14858_v40  ;;  %v14891_v40 = vld [vmem:[#allocation7 + $0x18] sm:$0xff]  }
 0xb24   :  { %13147 = vmatpush3.bf16.msra.mxu1 %v14891_v40  ;;  %v9364_v40 = vadd.f32 %v22451_v5, %v8713_v51 }
 0xb26   :  { %13125 = vmatpush3.bf16.msra.mxu0 %v14859_v6 }
 0xb27   :  { %13126 = vmatprep.subr.bf16.mxu0 %v14860_v62  ;;  %v9963_v62 = vpop.f32.mrf.mxu1 }
 0xb28   :  { %v10015_v30 = vadd.f32 %v9963_v62, %v9364_v40 }
 0xb2a   :  { %13127 = vmatpush3.bf16.msra.mxu0 %v14861_v43 }
 0xb2b   :  { %13128 = vmatprep.subr.bf16.mxu0 %v14862_v19 }
 0xb2e   :  { %13129 = vmatpush3.bf16.msra.mxu0 %v14863_v16  ;;  %v14892_v16 = vld [vmem:[#allocation7 + $0x50] sm:$0xff]  }
 0xb2f   :  { %13130 = vmatprep.subr.bf16.mxu0 %v14864_v53  ;;  %13148 = vmatprep.subr.bf16.mxu1 %v14892_v16 }
 0xb32   :  { %13131 = vmatpush3.bf16.msra.mxu0 %v14865_v52  ;;  %v14893_v52 = vld [vmem:[#allocation7 + $0x10] sm:$0xff]  }
 0xb33   :  { %13160 = vmatprep.subr.bf16.mxu0 %v14866_v25  ;;  %v9965_v25 = vpop.f32.mrf.mxu1  ;;  %13149 = vmatpush3.bf16.msra.mxu1 %v14893_v52 }
 0xb35   :  { %11307 = vmatmul.mubr.bf16.vlgmr.msra.gmra.mxu0 %v20804_v8  ;;  %v14875_v8 = vld [vmem:[#allocation7 + $0x98] sm:$0xff]   ;;  %v22459_v49 = vpop.f32.mrf.mxu0 }
 0xb36   :  { %13161 = vmatpush3.bf16.msra.mxu0 %v14867_v31  ;;  %v10013_v61 = vadd.f32 %v22459_v49, %v22154_v44 }
 0xb37   :  { %13162 = vmatprep.subr.bf16.mxu0 %v14868_v35  ;;  %v22461_v21 = vpop.f32.mrf.mxu0  ;;  %v14894_v35 = vld [vmem:[#allocation7 + $0x48] sm:$0xff]  }
 0xb38   :  { %13150 = vmatprep.subr.bf16.mxu1 %v14894_v35  ;;  %v10014_v24 = vadd.f32 %v22461_v21, %v22167_v55  ;;  %v23480_v55 = vld [vmem:[#allocation14_spill] sm:$0xff] }
 0xb39   :  { %v22463_v59 = vpop.f32.mrf.mxu0 }
 0xb3a   :  { %13163 = vmatpush3.bf16.msra.mxu0 %v14869_v58  ;;  %v14895_v58 = vld [vmem:[#allocation7 + $0x8] sm:$0xff]  }
 0xb3b   :  { %13164 = vmatprep.subr.bf16.mxu0 %v14870_v54  ;;  %v22465_v0 = vpop.f32.mrf.mxu0  ;;  %v14896_v54 = vld [vmem:[#allocation7 + $0x40] sm:$0xff]   ;;  %13151 = vmatpush3.bf16.msra.mxu1 %v14895_v58 }
 0xb3c   :  { %13152 = vmatprep.subr.bf16.mxu1 %v14896_v54 }
 0xb3e   :  { %13165 = vmatpush3.bf16.msra.mxu0 %v14871_v14  ;;  %v9967_v14 = vpop.f32.mrf.mxu1 }
 0xb3f   :  { %13166 = vmatprep.subr.bf16.mxu0 %v14872_v39  ;;  %v14897_v39 = vld [vmem:[#allocation7] sm:$0xff]  }
 0xb40   :  { %13153 = vmatpush3.bf16.msra.mxu1 %v14897_v39 }
 0xb42   :  { %13167 = vmatpush3.bf16.msra.mxu0 %v14873_v56  ;;  %v9969_v56 = vpop.f32.mrf.mxu1 }
 0xb43   :  { %13168 = vmatprep.subr.bf16.mxu0 %v14874_v47 }
 0xb46   :  { %13169 = vmatpush3.bf16.msra.mxu0 %v14875_v8 }
 0xb47   :  { %13170 = vmatprep.subr.bf16.mxu0 %v14876_v23 }
 0xb4a   :  { %13171 = vmatpush3.bf16.msra.mxu0 %v14877_v12 }
 0xb4b   :  { %13172 = vmatprep.subr.bf16.mxu0 %v14878_v36 }
 0xb4e   :  { %13173 = vmatpush3.bf16.msra.mxu0 %v14879_v46 }
 0xb4f   :  { %13174 = vmatprep.subr.bf16.mxu0 %v14880_v45 }
 0xb52   :  { %13175 = vmatpush3.bf16.msra.mxu0 %v14881_v20  ;;  %v8063_v20 = vadd.f32 %v21984_v9, %v21397_v26 }
 0xb55   :  { %v13088_v41 = vpop.f32.mrf.mxu0 }
 0xb56   :  { %v22470_v47 = vpop.f32.mrf.mxu1 }
 0xb57   :  { %v13089_v22 = vpop.f32.mrf.mxu0 }
 0xb58   :  { %v13090_v34 = vadd.f32 %v13089_v22, %v13088_v41  ;;  %v22472_v8 = vpop.f32.mrf.mxu1  ;;  %v7376_v41 = vadd.f32 %v21583_v3, %v21376_v11  ;;  %v22501_v11 = vld [vmem:[%s22558_s10] sm:$0x1f]  ;;  %v9369_v3 = vadd.f32 %v22455_v18, %v8718_v17  ;;  %v10019_v17 = vadd.f32 %v22465_v0, %v22188_v32 }
 0xb59   :  { %v13091_v6 = vpop.f32.mrf.mxu0  ;;  %v11334_v21 = vrot.slane %v22501_v11, %v23480_v55 }
 0xb5a   :  { %v10017_v43 = vadd.f32 %v13090_v34, %v22283_v33  ;;  %v15004_v33 = vmov 0.0   ;;  %v22474_v23 = vpop.f32.mrf.mxu1  ;;  %v8714_v34 = vadd.f32 %v22110_v57, %v8063_v20  ;;  %v8068_v63 = vadd.f32 %v22012_v48, %v7376_v41 }
 0xb5b   :  { %v13092_v19 = vpop.f32.mrf.mxu0  ;;  %13191 = vmatprep.subr.bf16.mxu1 %v15004_v33  ;;  %v10020_v5 = vadd.f32 %v9967_v14, %v9369_v3  ;;  %v10664_v20 = vadd.f32 %v22470_v47, %v10013_v61  ;;  %v10018_v41 = vadd.f32 %v22463_v59, %v22176_v15 }
 0xb5c   :  { %v13093_v53 = vadd.f32 %v13092_v19, %v13091_v6  ;;  %v9365_v1 = vadd.f32 %v22453_v2, %v8714_v34  ;;  %v8719_v26 = vadd.f32 %v22139_v60, %v8068_v63  ;;  %v23476_v2 = vld [vmem:[#allocation12_spill] sm:$0xff]  ;;  %v23479_v34 = vld [vmem:[#allocation13_spill] sm:$0xff] }
 0xb5d   :  { %v23477_v62 = vsub.s32 2, %v23476_v2  ;;  %v11330_v40 = vrot.slane %v22501_v11, %v23479_v34  ;;  %v10669_v44 = vadd.f32 %v22474_v23, %v10018_v41 }
 0xb5e   :  { %v10022_v31 = vadd.f32 %v13093_v53, %v22298_v42  ;;  %v22476_v42 = vpop.f32.mrf.mxu1  ;;  %v10016_v37 = vadd.f32 %v9965_v25, %v9365_v1  ;;  %v9370_v57 = vadd.f32 %v22457_v28, %v8719_v26 }
 0xb5f   :  { %v11338_v60 = vrot.slane %v22501_v11, %v23477_v62  ;;  %v10670_v1 = vadd.f32 %v22476_v42, %v10019_v17  ;;  %v14900_v42 = vld [vmem:[#allocation7 + $0x128] sm:$0xff]  }
 0xb60   :  { %v10021_v16 = vadd.f32 %v9969_v56, %v9370_v57 }
 0xb76   :  { %v13110_v38 = vpop.f32.mrf.mxu1 }
 0xb78   :  { %v13111_v12 = vpop.f32.mrf.mxu1 }
 0xb79   :  { %v13112_v27 = vadd.f32 %v13111_v12, %v13110_v38 }
 0xb7a   :  { %v13113_v7 = vpop.f32.mrf.mxu1 }
 0xb7b   :  { %v22478_v36 = vadd.f32 %v13112_v27, %v10017_v43 }
 0xb7c   :  { %v13114_v50 = vpop.f32.mrf.mxu1 }
 0xb7d   :  { %v13115_v13 = vadd.f32 %v13114_v50, %v13113_v7 }
 0xb7f   :  { %v22480_v46 = vadd.f32 %v13115_v13, %v10022_v31  ;;  %v23478_v31 = vsub.s32 3, %v23476_v2 }
 0xb81   :  { %v11342_v18 = vrot.slane %v22501_v11, %v23478_v31 }
 0xb95   :  { %v10614_v45 = vpop.f32.mrf.mxu0 }
 0xb96   :  { %v10666_v29 = vadd.f32 %v10614_v45, %v10015_v30 }
 0xb97   :  { %v10616_v22 = vpop.f32.mrf.mxu0 }
 0xb98   :  { %v10667_v10 = vadd.f32 %v10616_v22, %v10016_v37  ;;  %v10665_v22 = vadd.f32 %v22472_v8, %v10014_v24 }
 0xb99   :  { %v10618_v9 = vpop.f32.mrf.mxu0 }
 0xb9a   :  { %v10671_v53 = vadd.f32 %v10618_v9, %v10020_v5  ;;  %v14899_v5 = vld [vmem:[#allocation7 + $0x130] sm:$0xff]  }
 0xb9b   :  { %v10620_v43 = vpop.f32.mrf.mxu0 }
 0xb9c   :  { %v10672_v35 = vadd.f32 %v10620_v43, %v10021_v16  ;;  %v14903_v43 = vld [vmem:[#allocation7 + $0x110] sm:$0xff]  }
 0xbb6   :  { %v11265_v48 = vpop.f32.mrf.mxu1 }
 0xbb7   :  { %v11317_v6 = vadd.f32 %v11265_v48, %v10666_v29  ;;  %v14898_v48 = vld [vmem:[#allocation7 + $0x138] sm:$0xff]  }
 0xbb8   :  { %v11267_v19 = vpop.f32.mrf.mxu1 }
 0xbb9   :  { %v11318_v52 = vadd.f32 %v11267_v19, %v10667_v10  ;;  %v11354_v28 = vadd.f32 %v11338_v60, %v11317_v6  ;;  %v14901_v10 = vld [vmem:[#allocation7 + $0x120] sm:$0xff]   ;;  %v14902_v6 = vld [vmem:[#allocation7 + $0x118] sm:$0xff]  }
 0xbba   :  { %v11269_v25 = vpop.f32.mrf.mxu1 }
 0xbbb   :  { %v11322_v58 = vadd.f32 %v11269_v25, %v10671_v53  ;;  %v11355_v14 = vadd.f32 %v11342_v18, %v11318_v52  ;;  %v11364_v12 = vmax.f32 %v11354_v28, 0.0 }
 0xbbc   :  { %v11271_v54 = vpop.f32.mrf.mxu1 }
 0xbbd   :  { %v11359_v39 = vadd.f32 %v11338_v60, %v11322_v58  ;;  %v11323_v38 = vadd.f32 %v11271_v54, %v10672_v35  ;;  %v11365_v50 = vmax.f32 %v11355_v14, 0.0  ;;  %v11345_v60 = vsub.s32 4, %v23476_v2  ;;  %v14905_v58 = vld [vmem:[#allocation7 + $0x100] sm:$0xff]  }
 0xbbf   :  { %v11369_v27 = vmax.f32 %v11359_v39, 0.0  ;;  %v11360_v7 = vadd.f32 %v11342_v18, %v11323_v38  ;;  %v11346_v31 = vrot.slane %v22501_v11, %v11345_v60  ;;  %v14904_v18 = vld [vmem:[#allocation7 + $0x108] sm:$0xff]  }
 0xbc1   :  { %v11374_v13 = vpack.c.bf16 %v11369_v27, %v11364_v12  ;;  %v11370_v56 = vmax.f32 %v11360_v7, 0.0 }
 0xbc3   :  { %v11375_v45 = vpack.c.bf16 %v11370_v56, %v11365_v50 }
 0xbc5   :  { %11777 = vmatprep.mubr.bf16.mxu0 %v11375_v45 }
 0xbc6   :  { %11778 = vmatmul.mubr.bf16.vlgmr.msra.gmra.mxu0 %v11374_v13 }
 0xbd5   :  { %v11222_v51 = vpop.f32.mrf.mxu0 }
 0xbd6   :  { %v11315_v4 = vadd.f32 %v11222_v51, %v10664_v20 }
 0xbd7   :  { %v11224_v63 = vpop.f32.mrf.mxu0 }
 0xbd8   :  { %v11316_v49 = vadd.f32 %v11224_v63, %v10665_v22  ;;  %v11352_v15 = vadd.f32 %v11330_v40, %v11315_v4 }
 0xbd9   :  { %v11226_v47 = vpop.f32.mrf.mxu0 }
 0xbda   :  { %v11320_v59 = vadd.f32 %v11226_v47, %v10669_v44  ;;  %v11353_v30 = vadd.f32 %v11334_v21, %v11316_v49  ;;  %v11362_v3 = vmax.f32 %v11352_v15, 0.0 }
 0xbdb   :  { %v11228_v8 = vpop.f32.mrf.mxu0 }
 0xbdc   :  { %v11357_v26 = vadd.f32 %v11330_v40, %v11320_v59  ;;  %v11321_v9 = vadd.f32 %v11228_v8, %v10670_v1  ;;  %v11363_v57 = vmax.f32 %v11353_v30, 0.0 }
 0xbde   :  { %v11367_v37 = vmax.f32 %v11357_v26, 0.0  ;;  %v11358_v29 = vadd.f32 %v11334_v21, %v11321_v9 }
 0xbe0   :  { %v11372_v32 = vpack.c.bf16 %v11367_v37, %v11362_v3  ;;  %v11368_v0 = vmax.f32 %v11358_v29, 0.0 }
 0xbe2   :  { %v11373_v23 = vpack.c.bf16 %v11368_v0, %v11363_v57 }
 0xbe4   :  { %11736 = vmatprep.mubr.bf16.mxu1 %v11373_v23 }
 0xbe5   :  { %11737 = vmatmul.mubr.bf16.vlgmr.msra.gmra.mxu1 %v11372_v32 }
 0xbe6   :  { %13192 = vmatpush3.bf16.msra.mxu1 %v14898_v48  ;;  %13207 = vmatprep.mubr.msk.bf16.mxu1 %vm15005_vm7, %v15004_v33 }
 0xbe7   :  { %13193 = vmatprep.subr.bf16.mxu1 %v15004_v33 }
 0xbea   :  { %13194 = vmatpush3.bf16.msra.mxu1 %v14899_v5 }
 0xbeb   :  { %13195 = vmatprep.subr.bf16.mxu1 %v15004_v33 }
 0xbee   :  { %13196 = vmatpush3.bf16.msra.mxu1 %v14900_v42 }
 0xbef   :  { %13197 = vmatprep.subr.bf16.mxu1 %v15004_v33 }
 0xbf2   :  { %13198 = vmatpush3.bf16.msra.mxu1 %v14901_v10 }
 0xbf3   :  { %13199 = vmatprep.subr.bf16.mxu1 %v15004_v33 }
 0xbf5   :  { %v13132_v62 = vpop.f32.mrf.mxu0 }
 0xbf6   :  { %13200 = vmatpush3.bf16.msra.mxu1 %v14902_v6 }
 0xbf7   :  { %v13133_v19 = vpop.f32.mrf.mxu0  ;;  %13201 = vmatprep.subr.bf16.mxu1 %v15004_v33 }
 0xbf8   :  { %v13134_v16 = vadd.f32 %v13133_v19, %v13132_v62 }
 0xbf9   :  { %v13135_v53 = vpop.f32.mrf.mxu0 }
 0xbfa   :  { %v11319_v52 = vadd.f32 %v13134_v16, %v22478_v36  ;;  %13202 = vmatpush3.bf16.msra.mxu1 %v14903_v43 }
 0xbfb   :  { %v13136_v25 = vpop.f32.mrf.mxu0  ;;  %13203 = vmatprep.subr.bf16.mxu1 %v15004_v33 }
 0xbfc   :  { %v13137_v35 = vadd.f32 %v13136_v25, %v13135_v53  ;;  %v11356_v28 = vadd.f32 %v11346_v31, %v11319_v52 }
 0xbfe   :  { %v11324_v2 = vadd.f32 %v13137_v35, %v22480_v46  ;;  %13204 = vmatpush3.bf16.msra.mxu1 %v14904_v18  ;;  %v11366_v14 = vmax.f32 %v11356_v28, 0.0  ;;  %v12809_v46 = vld [vmem:[%s22560_s12] ss:$0 sm:$0xff] }
 0xbff   :  { %13205 = vmatprep.subr.bf16.mxu1 %v15004_v33 }
 0xc00   :  { %v11361_v54 = vadd.f32 %v11346_v31, %v11324_v2 }
 0xc02   :  { %v11371_v39 = vmax.f32 %v11361_v54, 0.0  ;;  %13206 = vmatpush3.bf16.msra.mxu1 %v14905_v58 }
 0xc04   :  { %v11376_v36 = vpack.c.bf16 %v11371_v39, %v11366_v14 }
 0xc06   :  { %13208 = vmatmul.mubr.bf16.vlgmr.msra.gmra.mxu1 %v11376_v36 }
 0xc86   :  { %v13176_v12 = vpop.f32.mrf.mxu0 }
 0xc88   :  { %v13177_v7 = vpop.f32.mrf.mxu0 }
 0xc89   :  { %v13178_v61 = vadd.f32 %v13177_v7, %v13176_v12 }
 0xc8a   :  { %v13179_v56 = vpop.f32.mrf.mxu0 }
 0xc8c   :  { %v13180_v24 = vpop.f32.mrf.mxu0 }
 0xc8d   :  { %v13181_v22 = vadd.f32 %v13180_v24, %v13179_v56 }
 0xca5   :  { %v13154_v11 = vpop.f32.mrf.mxu1 }
 0xca7   :  { %v13155_v38 = vpop.f32.mrf.mxu1 }
 0xca8   :  { %v13156_v50 = vadd.f32 %v13155_v38, %v13154_v11 }
 0xca9   :  { %v13157_v27 = vpop.f32.mrf.mxu1 }
 0xcaa   :  { %v11739_v45 = vadd.f32 %v13156_v50, %v12809_v46 }
 0xcab   :  { %v13158_v13 = vpop.f32.mrf.mxu1 }
 0xcac   :  { %v13159_v33 = vadd.f32 %v13158_v13, %v13157_v27  ;;  %v11780_v51 = vadd.f32 %v13178_v61, %v11739_v45 }
 0xcae   :  { %v11742_v20 = vadd.f32 %v13159_v33, %v12809_v46 }
 0xcb0   :  { %v11783_v40 = vadd.f32 %v13181_v22, %v11742_v20 }
 0xcc6   :  { %v11820_v41 = vpop.f32.mrf.mxu1 }
 0xcc7   :  { %v11821_v4 = vadd.f32 %v11820_v41, %v11780_v51 }
 0xcc8   :  { %v13209_v34 = vpop.f32.mrf.mxu1 }
 0xcc9   :  { %11827 = vst [vmem:[%s22561_s13] sm:$0xff] %v11821_v4 }
 0xcca   :  { %v11823_v63 = vpop.f32.mrf.mxu1 }
 0xccb   :  { %v11824_v17 = vadd.f32 %v11823_v63, %v11783_v40 }
 0xccc   :  { %v13210_v44 = vpop.f32.mrf.mxu1 }
 0xccd   :  { %11828 = vst [vmem:[%s22561_s13 + $0x8] sm:$0xff] %v11824_v17 }
 0xcce   :  { %11833 = vsyncpa [#allocation3], 1 }
 0xccf   :  { %11834 = vsyncpa [#allocation5], 1 }
 0xcd0   :  { %11835 = vsyncpa [#allocation8], 1 }

</bundles_post_ra>
